<compile_context>
chip_gen: v5e
topology: v5e:2x2
jax: 0.10.0
libtpu: 0.0.40
codegen_flags: <defaults>
</compile_context>

<pallas_src>
import jax
import jax.numpy as jnp
from jax.experimental import pallas as pl
from jax.experimental.pallas import tpu as pltpu


def _round_up(x, m):
    return (x + m - 1) // m * m


def _pick_batch_tile(Bp, cap=64):
    """Largest multiple-of-8 divisor of Bp that is <= cap; prefer >= 2 tiles so the
    leading "parallel" grid axis can shard across v7x's two TensorCores."""
    divs = [d for d in range(8, Bp + 1, 8) if Bp % d == 0]
    under = [d for d in divs if d <= cap] or [min(divs)]
    multi = [d for d in under if Bp // d >= 2]
    return max(multi) if multi else max(under)


def _default_gate_dtype(compute_dtype):
    if jnp.dtype(compute_dtype) == jnp.dtype(jnp.float32):
        return jnp.dtype(jnp.float32)
    try:
        kind = jax.devices()[0].device_kind.lower()
    except Exception:
        kind = ""
    # v5e and older have no bf16 VPU/EUP path; keep gate math in f32 there.
    if any(tag in kind for tag in ("v2", "v3", "v4", "v5")):
        return jnp.dtype(jnp.float32)
    return jnp.dtype(jnp.bfloat16)


def _vmem_limit_bytes(est_bytes):
    try:
        cap = int(pltpu.get_tpu_info().vmem_capacity_bytes)
    except Exception:
        cap = 64 * 1024 * 1024  # conservative default (v7x per-TC VMEM)
    want = max(32 * 1024 * 1024, int(1.5 * est_bytes) + (8 << 20))
    return int(min(int(0.9 * cap), want))


def _make_lstm_kernel(num_layers, Hp, TT, T_real, compute_dtype, gate_dtype,
                      out_dtype, needs_time_mask):
    f32 = jnp.float32

    def sigmoid_via_tanh(x):
        # One EUP push per gate instead of a possible exp + reciprocal pair.
        return 0.5 * jnp.tanh(0.5 * x) + 0.5

    def kernel(*refs):
        zx0_ref = refs[0]
        n_w = 1 + 3 * (num_layers - 1)
        w_refs = refs[1:1 + n_w]
        h_ll_ref = refs[1 + n_w]
        h_last_ref = refs[2 + n_w]
        scratch = refs[3 + n_w:]
        h_st, c_st = scratch[0], scratch[1]
        if num_layers > 1:
            zx_scr, h_stage = scratch[2], scratch[3]

        tc = pl.program_id(1)  # time-chunk index (recurrent, "arbitrary" axis)

        @pl.when(tc == 0)
        def _():
            h_st[...] = jnp.zeros_like(h_st)
            c_st[...] = jnp.zeros_like(c_st)

        def run_layer(layer, wh_ref, load_zx, is_last_layer):
            h_cur = h_st[layer]                        # (Bt, Hp) compute dtype
            c_cur = c_st[layer]                        # (Bt, Hp) f32
            for tt in range(TT):                       # static unroll over chunk
                # z = (x @ Wx + b)  +  h @ Wh     (input part precomputed per chunk)
                z = load_zx(tt) + jnp.dot(h_cur, wh_ref[...],
                                          preferred_element_type=f32)
                zg = z.astype(gate_dtype)
                ft = sigmoid_via_tanh(zg[:, 0 * Hp:1 * Hp])
                it = sigmoid_via_tanh(zg[:, 1 * Hp:2 * Hp])
                cz = jnp.tanh(zg[:, 2 * Hp:3 * Hp])
                ot = sigmoid_via_tanh(zg[:, 3 * Hp:4 * Hp])
                ct = ft.astype(f32) * c_cur + (it * cz).astype(f32)
                ht = (ot * jnp.tanh(ct.astype(gate_dtype))).astype(compute_dtype)
                if needs_time_mask:
                    valid = (tc * TT + tt) < T_real    # tail-chunk padding mask
                    ht = jnp.where(valid, ht, h_cur)
                    ct = jnp.where(valid, ct, c_cur)
                h_cur, c_cur = ht, ct
                if is_last_layer:
                    h_ll_ref[tt] = h_cur.astype(out_dtype)
                else:
                    h_stage[tt] = h_cur
            h_st[layer] = h_cur
            c_st[layer] = c_cur

        # Layer 0: input projection was hoisted into the wrapper (whole sequence).
        run_layer(0, w_refs[0], lambda tt: zx0_ref[tt].astype(f32),
                  is_last_layer=(num_layers == 1))

        # Deeper layers, layer-major within the chunk: one batched (TT*Bt)-row
        # input-projection GEMM per layer, then TT small recurrent steps.
        for layer in range(1, num_layers):
            base = 1 + 3 * (layer - 1)
            wh_ref, wx_ref, b_ref = w_refs[base], w_refs[base + 1], w_refs[base + 2]
            x_in = h_stage[...]                        # previous layer's hiddens
            tt_n, bt_n, _ = x_in.shape
            zx_all = jnp.dot(x_in.reshape(tt_n * bt_n, Hp), wx_ref[...],
                             preferred_element_type=f32) + b_ref[...]
            zx_scr[...] = zx_all.reshape(tt_n, bt_n, 4 * Hp)
            run_layer(layer, wh_ref, lambda tt: zx_scr[tt],
                      is_last_layer=(layer == num_layers - 1))

        # h_last only materialized on the final time chunk (the output block stays
        # resident across the inner "arbitrary" time axis — do not reorder the grid).
        @pl.when(tc == pl.num_programs(1) - 1)
        def _():
            h_last_ref[...] = h_st[...].astype(jnp.float32)

    return kernel


def lstm_forward_pallas(seq, params, *, weight_dtype=jnp.bfloat16, out_dtype=None,
                        gate_dtype=None, max_time_chunk=16, max_batch_tile=64):
    """seq: (T, B, input_dim) f32.  params: list of (Wh (H,4H), Wx (in_l,4H),
    b (1,4H)) with gate column order [f, i, c, o] (cat([h, x]) convention).
    Returns (h_last_layer (T,B,H), h_last (L,B,H))."""
    T, B, _ = seq.shape
    L = len(params)
    H = params[0][0].shape[0]

    compute_dtype = jnp.dtype(weight_dtype)
    out_dt = jnp.dtype(out_dtype) if out_dtype is not None else jnp.dtype(jnp.float32)
    gate_dt = (jnp.dtype(gate_dtype) if gate_dtype is not None
               else _default_gate_dtype(compute_dtype))

    Hp = _round_up(H, 128)            # lane-dense hidden dim (per-gate padded)
    Bp = _round_up(B, 8)              # sublane-aligned batch
    Bt = _pick_batch_tile(Bp, max_batch_tile)
    n_bt = Bp // Bt

    TT = min(max_time_chunk, T)       # time-chunk length (tail is masked)
    T_pad = _round_up(T, TT)
    n_tc = T_pad // TT
    needs_time_mask = (T_pad != T)

    seq_f32 = seq.astype(jnp.float32)

    # ---- layer-0 input projection + bias, hoisted over the whole sequence ----
    _, Wx0, b0 = params[0]
    zx0 = jnp.einsum("tbd,dg->tbg", seq_f32, Wx0.astype(jnp.float32))
    zx0 = zx0 + b0.astype(jnp.float32)                    # (T, B, 4H) f32
    zx0_p = jnp.zeros((T_pad, Bp, 4 * Hp), compute_dtype)
    for g in range(4):
        zx0_p = zx0_p.at[:T, :B, g * Hp:g * Hp + H].set(
            zx0[:, :, g * H:(g + 1) * H].astype(compute_dtype))

    # ---- pad & pack kernel-resident weights (zero padding keeps pad lanes inert) ----
    def pad_w(w):
        rows = w.shape[0]
        wp = jnp.zeros((Hp, 4 * Hp), jnp.float32)
        for g in range(4):
            wp = wp.at[:rows, g * Hp:g * Hp + H].set(w[:, g * H:(g + 1) * H])
        return wp.astype(compute_dtype)

    def pad_b(b):
        bp = jnp.zeros((1, 4 * Hp), jnp.float32)
        for g in range(4):
            bp = bp.at[:, g * Hp:g * Hp + H].set(b[:, g * H:(g + 1) * H])
        return bp

    flat_w = [pad_w(params[0][0])]                         # Wh_0
    for layer in range(1, L):
        Wh, Wx, b = params[layer]
        flat_w += [pad_w(Wh), pad_w(Wx), pad_b(b)]         # Wh_l, Wx_l, b_l

    # ---- VMEM budget (generation-aware) ----
    def _isz(dt):
        return jnp.dtype(dt).itemsize

    def vmem_estimate(single_buffer_weights):
        wmul = 1 if single_buffer_weights else 2
        est = wmul * sum(w.size * w.dtype.itemsize for w in flat_w)
        est += 2 * TT * Bt * 4 * Hp * _isz(compute_dtype)  # zx0 input block (x2 buf)
        est += 2 * TT * Bt * Hp * _isz(out_dt)             # h_ll output block
        est += 2 * L * Bt * Hp * 4                         # h_last output block
        est += L * Bt * Hp * (_isz(compute_dtype) + 4)     # h/c carried state
        if L > 1:
            est += TT * Bt * 4 * Hp * 4                    # per-chunk z_x scratch
            est += TT * Bt * Hp * _isz(compute_dtype)      # staged layer hiddens
        return est

    kernel = _make_lstm_kernel(L, Hp, TT, T, compute_dtype, gate_dt, out_dt,
                               needs_time_mask)

    out_shape = (
        jax.ShapeDtypeStruct((T_pad, Bp, Hp), out_dt),     # h_last_layer (padded)
        jax.ShapeDtypeStruct((L, Bp, Hp), jnp.float32),    # h_last (padded)
    )
    out_specs = [
        pl.BlockSpec((TT, Bt, Hp), lambda b, t: (t, b, 0)),
        pl.BlockSpec((L, Bt, Hp), lambda b, t: (0, b, 0)),
    ]
    scratch_shapes = [
        pltpu.VMEM((L, Bt, Hp), compute_dtype),            # h state (carried in time)
        pltpu.VMEM((L, Bt, Hp), jnp.float32),              # c state (carried in time)
    ]
    if L > 1:
        scratch_shapes += [
            pltpu.VMEM((TT, Bt, 4 * Hp), jnp.float32),     # per-chunk z_x (layers>0)
            pltpu.VMEM((TT, Bt, Hp), compute_dtype),       # staged layer hiddens
        ]

    def const_spec(shape, single_buffer):
        idx = lambda b, t, _n=len(shape): (0,) * _n
        if single_buffer:
            # Constant-index resident weights: single buffer (pipelining buys nothing).
            return pl.BlockSpec(shape, idx, pipeline_mode=pl.Buffered(1))
        return pl.BlockSpec(shape, idx)

    def build(single_buffer_weights):
        in_specs = [pl.BlockSpec((TT, Bt, 4 * Hp), lambda b, t: (t, b, 0))]
        in_specs += [const_spec(w.shape, single_buffer_weights) for w in flat_w]
        return pl.pallas_call(
            kernel,
            out_shape=out_shape,
            grid_spec=pltpu.PrefetchScalarGridSpec(
                num_scalar_prefetch=0,
                grid=(n_bt, n_tc),
                in_specs=in_specs,
                out_specs=out_specs,
                scratch_shapes=scratch_shapes,
            ),
            compiler_params=pltpu.CompilerParams(
                dimension_semantics=("parallel", "arbitrary"),  # batch ∥, time recur.
                vmem_limit_bytes=_vmem_limit_bytes(
                    vmem_estimate(single_buffer_weights)),
            ),
        )

    args = (zx0_p, *flat_w)
    try:
        h_ll_p, h_last_p = build(True)(*args)
        jax.block_until_ready((h_ll_p, h_last_p))
    except Exception:
        # Fallback if this JAX build rejects Buffered(1) single-buffering.
        h_ll_p, h_last_p = build(False)(*args)

    return h_ll_p[:T, :B, :H], h_last_p[:, :B, :H]


def lstm_forward_ref(seq, params):
    """Pure-JAX reference mirroring the PyTorch LSTM.forward semantics (f32)."""
    T, B, _ = seq.shape
    L = len(params)
    H = params[0][0].shape[0]
    h = jnp.zeros((L, B, H), jnp.float32)
    c = jnp.zeros((L, B, H), jnp.float32)
    h_ll = []
    for t in range(T):
        inp = seq[t]
        new_h, new_c = [], []
        for layer, (Wh, Wx, b) in enumerate(params):
            z = h[layer] @ Wh + inp @ Wx + b
            ft = jax.nn.sigmoid(z[:, :H])
            it = jax.nn.sigmoid(z[:, H:2 * H])
            cz = jnp.tanh(z[:, 2 * H:3 * H])
            ot = jax.nn.sigmoid(z[:, 3 * H:])
            ct = ft * c[layer] + it * cz
            ht = ot * jnp.tanh(ct)
            new_h.append(ht)
            new_c.append(ct)
            inp = ht
        h = jnp.stack(new_h)
        c = jnp.stack(new_c)
        h_ll.append(h[-1])
    return jnp.stack(h_ll), h


def init_lstm_params(key, input_dim, latent_dim, num_layers):
    """Deterministic init matching the PyTorch module's Linear shapes.

    Layer 0 linears: Linear(latent_dim + input_dim, latent_dim) x4 (f, i, c, o).
    Layers >0:       Linear(2 * latent_dim, latent_dim) x4.
    Returns per-layer (Wh (H,4H), Wx (in_l,4H), b (1,4H)) with gate order [f,i,c,o].
    """
    H = latent_dim
    params = []
    for layer in range(num_layers):
        in_extra = input_dim if layer == 0 else latent_dim
        fan_in = H + in_extra
        k = 1.0 / jnp.sqrt(jnp.float32(fan_in))
        gate_wT, gate_b = [], []
        for _gate in range(4):  # f, i, c, o
            key, kw, kb = jax.random.split(key, 3)
            W = jax.random.uniform(kw, (H, fan_in), jnp.float32, -k, k)  # (out, in)
            b = jax.random.uniform(kb, (H,), jnp.float32, -k, k)
            gate_wT.append(W.T)            # (fan_in, H)
            gate_b.append(b)
        W_all = jnp.concatenate(gate_wT, axis=1)        # (fan_in, 4H)
        b_all = jnp.concatenate(gate_b)[None, :]        # (1, 4H)
        Wh = W_all[:H]          # rows for h_in (cat([h_in, x]) -> h first)
        Wx = W_all[H:]          # rows for x / lower-layer h
        params.append((Wh, Wx, b_all))
    return params


if __name__ == "__main__":
    # Small deterministic example consistent with the module's forward().
    seq_len, batch, input_dim, latent_dim, num_layers = 8, 2, 4, 32, 2
    # TODO(synk): decoder / decode() are not part of LSTM.forward(); not implemented.

    key = jax.random.PRNGKey(0)
    key, kseq = jax.random.split(key)
    seq = jax.random.normal(kseq, (seq_len, batch, input_dim), jnp.float32)
    params = init_lstm_params(key, input_dim, latent_dim, num_layers)
    ref_hll, ref_hlast = lstm_forward_ref(seq, params)

    # 1) f32 weights / f32 gates: validates exact forward semantics.
    hll, hlast = lstm_forward_pallas(seq, params, weight_dtype=jnp.float32)
    jax.block_until_ready((hll, hlast))
    assert hll.shape == (seq_len, batch, latent_dim)
    assert hlast.shape == (num_layers, batch, latent_dim)
    assert jnp.allclose(hll, ref_hll, atol=2e-4, rtol=2e-4)
    assert jnp.allclose(hlast, ref_hlast, atol=2e-4, rtol=2e-4)

    # 2) Optimized configuration: bf16 weights/state, bf16 gates on v6e/v7x,
    #    bf16 h_last_layer writeback.
    hll_b, hlast_b = lstm_forward_pallas(seq, params, weight_dtype=jnp.bfloat16,
                                         out_dtype=jnp.bfloat16)
    jax.block_until_ready((hll_b, hlast_b))
    assert jnp.allclose(hll_b.astype(jnp.float32), ref_hll, atol=5e-2, rtol=5e-2)
    assert jnp.allclose(hlast_b.astype(jnp.float32), ref_hlast, atol=5e-2, rtol=5e-2)

    # 3) Ragged time chunk (T % TT != 0 -> masked tail) + multiple batch tiles
    #    + single-layer path.
    b2, t2 = 18, 5
    key, kseq2 = jax.random.split(key)
    seq2 = jax.random.normal(kseq2, (t2, b2, input_dim), jnp.float32)
    params2 = init_lstm_params(key, input_dim, latent_dim, 1)
    ref2_hll, ref2_hlast = lstm_forward_ref(seq2, params2)
    hll2, hlast2 = lstm_forward_pallas(seq2, params2, weight_dtype=jnp.float32,
                                       max_time_chunk=4)
    jax.block_until_ready((hll2, hlast2))
    assert jnp.allclose(hll2, ref2_hll, atol=2e-4, rtol=2e-4)
    assert jnp.allclose(hlast2, ref2_hlast, atol=2e-4, rtol=2e-4)

    print("KERNEL_OK")
</pallas_src>

<mosaic_0001>
module attributes {stable_mosaic.version = 11 : i64} {
  func.func @kernel(%arg0: i32, %arg1: i32, %arg2: memref<8x8x512xf32, #tpu.memory_space<vmem>>, %arg3: memref<128x512xf32, #tpu.memory_space<vmem>>, %arg4: memref<128x512xf32, #tpu.memory_space<vmem>>, %arg5: memref<128x512xf32, #tpu.memory_space<vmem>>, %arg6: memref<1x512xf32, #tpu.memory_space<vmem>>, %arg7: memref<8x8x128xf32, #tpu.memory_space<vmem>>, %arg8: memref<2x8x128xf32, #tpu.memory_space<vmem>>, %arg9: memref<2x8x128xf32, #tpu.memory_space<vmem>>, %arg10: memref<2x8x128xf32, #tpu.memory_space<vmem>>, %arg11: memref<8x8x512xf32, #tpu.memory_space<vmem>>, %arg12: memref<8x8x128xf32, #tpu.memory_space<vmem>>) attributes {dimension_semantics = [#tpu.dimension_semantics<parallel>, #tpu.dimension_semantics<arbitrary>], iteration_bounds = array<i64: 1, 1>, scalar_prefetch = 0 : i64, scratch_operands = 4 : i64, tpu.core_type = #tpu.core_type<tc>, window_params = [{transform_indices = @transform_0, window_bounds = array<i64: 8, 8, 512>}, {pipeline_mode = #tpu.pipeline_mode<synchronous>, transform_indices = @transform_1, window_bounds = array<i64: 128, 512>}, {pipeline_mode = #tpu.pipeline_mode<synchronous>, transform_indices = @transform_2, window_bounds = array<i64: 128, 512>}, {pipeline_mode = #tpu.pipeline_mode<synchronous>, transform_indices = @transform_3, window_bounds = array<i64: 128, 512>}, {pipeline_mode = #tpu.pipeline_mode<synchronous>, transform_indices = @transform_4, window_bounds = array<i64: 1, 512>}, {transform_indices = @transform_5, window_bounds = array<i64: 8, 8, 128>}, {transform_indices = @transform_6, window_bounds = array<i64: 2, 8, 128>}]} {
    %c0_i32 = arith.constant 0 : i32
    %0 = arith.cmpi eq, %arg1, %c0_i32 : i32
    %1 = arith.extui %0 : i1 to i32
    %c0_i32_0 = arith.constant 0 : i32
    %2 = arith.cmpi ne, %1, %c0_i32_0 : i32
    scf.if %2 {
      %cst_317 = arith.constant 0.000000e+00 : f32
      %659 = vector.broadcast %cst_317 : f32 to vector<2x8x128xf32>
      %c0_318 = arith.constant 0 : index
      %c0_319 = arith.constant 0 : index
      %c0_320 = arith.constant 0 : index
      %660 = vector.load %arg9[%c0_318, %c0_319, %c0_320] : memref<2x8x128xf32, #tpu.memory_space<vmem>>, vector<2x8x128xf32>
      tpu.vector_store %arg9[%c0_318, %c0_319, %c0_320], %659 {strides = array<i32>} : memref<2x8x128xf32, #tpu.memory_space<vmem>>, vector<2x8x128xf32>,
      %cst_321 = arith.constant 0.000000e+00 : f32
      %661 = vector.broadcast %cst_321 : f32 to vector<2x8x128xf32>
      %c0_322 = arith.constant 0 : index
      %c0_323 = arith.constant 0 : index
      %c0_324 = arith.constant 0 : index
      %662 = vector.load %arg10[%c0_322, %c0_323, %c0_324] : memref<2x8x128xf32, #tpu.memory_space<vmem>>, vector<2x8x128xf32>
      tpu.vector_store %arg10[%c0_322, %c0_323, %c0_324], %661 {strides = array<i32>} : memref<2x8x128xf32, #tpu.memory_space<vmem>>, vector<2x8x128xf32>,
    } else {
    }
    %c0 = arith.constant 0 : index
    %c0_1 = arith.constant 0 : index
    %c0_2 = arith.constant 0 : index
    %3 = vector.load %arg9[%c0, %c0_1, %c0_2] : memref<2x8x128xf32, #tpu.memory_space<vmem>>, vector<1x8x128xf32>
    %4 = vector.shape_cast %3 : vector<1x8x128xf32> to vector<8x128xf32>
    %c0_3 = arith.constant 0 : index
    %c0_4 = arith.constant 0 : index
    %c0_5 = arith.constant 0 : index
    %5 = vector.load %arg10[%c0_3, %c0_4, %c0_5] : memref<2x8x128xf32, #tpu.memory_space<vmem>>, vector<1x8x128xf32>
    %6 = vector.shape_cast %5 : vector<1x8x128xf32> to vector<8x128xf32>
    %c0_6 = arith.constant 0 : index
    %c0_7 = arith.constant 0 : index
    %c0_8 = arith.constant 0 : index
    %7 = vector.load %arg2[%c0_6, %c0_7, %c0_8] : memref<8x8x512xf32, #tpu.memory_space<vmem>>, vector<1x8x512xf32>
    %8 = vector.shape_cast %7 : vector<1x8x512xf32> to vector<8x512xf32>
    %c0_9 = arith.constant 0 : index
    %c0_10 = arith.constant 0 : index
    %9 = vector.load %arg3[%c0_9, %c0_10] : memref<128x512xf32, #tpu.memory_space<vmem>>, vector<128x512xf32>
    %cst = arith.constant dense<0.000000e+00> : vector<8x512xf32>
    %10 = tpu.matmul %4, %9, %cst {dimension_numbers = #tpu.dot_dimension_numbers<[1], [0], [0], [1], [0, 0, 1, 1], [], []>} : vector<8x128xf32>, vector<128x512xf32>, vector<8x512xf32> -> vector<8x512xf32>
    %11 = arith.addf %8, %10 : vector<8x512xf32>
    %12 = vector.extract_strided_slice %11 {offsets = [0, 0], sizes = [8, 128], strides = [1, 1]} : vector<8x512xf32> to vector<8x128xf32>
    %cst_11 = arith.constant 5.000000e-01 : f32
    %13 = vector.broadcast %cst_11 : f32 to vector<8x128xf32>
    %14 = arith.mulf %13, %12 : vector<8x128xf32>
    %15 = math.tanh %14 : vector<8x128xf32>
    %cst_12 = arith.constant 5.000000e-01 : f32
    %16 = vector.broadcast %cst_12 : f32 to vector<8x128xf32>
    %17 = arith.mulf %16, %15 : vector<8x128xf32>
    %cst_13 = arith.constant 5.000000e-01 : f32
    %18 = vector.broadcast %cst_13 : f32 to vector<8x128xf32>
    %19 = arith.addf %17, %18 : vector<8x128xf32>
    %20 = vector.extract_strided_slice %11 {offsets = [0, 128], sizes = [8, 128], strides = [1, 1]} : vector<8x512xf32> to vector<8x128xf32>
    %cst_14 = arith.constant 5.000000e-01 : f32
    %21 = vector.broadcast %cst_14 : f32 to vector<8x128xf32>
    %22 = arith.mulf %21, %20 : vector<8x128xf32>
    %23 = math.tanh %22 : vector<8x128xf32>
    %cst_15 = arith.constant 5.000000e-01 : f32
    %24 = vector.broadcast %cst_15 : f32 to vector<8x128xf32>
    %25 = arith.mulf %24, %23 : vector<8x128xf32>
    %cst_16 = arith.constant 5.000000e-01 : f32
    %26 = vector.broadcast %cst_16 : f32 to vector<8x128xf32>
    %27 = arith.addf %25, %26 : vector<8x128xf32>
    %28 = vector.extract_strided_slice %11 {offsets = [0, 256], sizes = [8, 128], strides = [1, 1]} : vector<8x512xf32> to vector<8x128xf32>
    %29 = math.tanh %28 : vector<8x128xf32>
    %30 = vector.extract_strided_slice %11 {offsets = [0, 384], sizes = [8, 128], strides = [1, 1]} : vector<8x512xf32> to vector<8x128xf32>
    %cst_17 = arith.constant 5.000000e-01 : f32
    %31 = vector.broadcast %cst_17 : f32 to vector<8x128xf32>
    %32 = arith.mulf %31, %30 : vector<8x128xf32>
    %33 = math.tanh %32 : vector<8x128xf32>
    %cst_18 = arith.constant 5.000000e-01 : f32
    %34 = vector.broadcast %cst_18 : f32 to vector<8x128xf32>
    %35 = arith.mulf %34, %33 : vector<8x128xf32>
    %cst_19 = arith.constant 5.000000e-01 : f32
    %36 = vector.broadcast %cst_19 : f32 to vector<8x128xf32>
    %37 = arith.addf %35, %36 : vector<8x128xf32>
    %38 = arith.mulf %19, %6 : vector<8x128xf32>
    %39 = arith.mulf %27, %29 : vector<8x128xf32>
    %40 = arith.addf %38, %39 : vector<8x128xf32>
    %41 = math.tanh %40 : vector<8x128xf32>
    %42 = arith.mulf %37, %41 : vector<8x128xf32>
    %c0_20 = arith.constant 0 : index
    %c0_21 = arith.constant 0 : index
    %c0_22 = arith.constant 0 : index
    %43 = vector.load %arg12[%c0_20, %c0_21, %c0_22] : memref<8x8x128xf32, #tpu.memory_space<vmem>>, vector<1x8x128xf32>
    %44 = vector.shape_cast %43 : vector<1x8x128xf32> to vector<8x128xf32>
    %45 = vector.shape_cast %42 : vector<8x128xf32> to vector<1x8x128xf32>
    tpu.vector_store %arg12[%c0_20, %c0_21, %c0_22], %45 {strides = array<i32>} : memref<8x8x128xf32, #tpu.memory_space<vmem>>, vector<1x8x128xf32>,
    %c1 = arith.constant 1 : index
    %c0_23 = arith.constant 0 : index
    %c0_24 = arith.constant 0 : index
    %46 = vector.load %arg2[%c1, %c0_23, %c0_24] : memref<8x8x512xf32, #tpu.memory_space<vmem>>, vector<1x8x512xf32>
    %47 = vector.shape_cast %46 : vector<1x8x512xf32> to vector<8x512xf32>
    %c0_25 = arith.constant 0 : index
    %c0_26 = arith.constant 0 : index
    %48 = vector.load %arg3[%c0_25, %c0_26] : memref<128x512xf32, #tpu.memory_space<vmem>>, vector<128x512xf32>
    %cst_27 = arith.constant dense<0.000000e+00> : vector<8x512xf32>
    %49 = tpu.matmul %42, %48, %cst_27 {dimension_numbers = #tpu.dot_dimension_numbers<[1], [0], [0], [1], [0, 0, 1, 1], [], []>} : vector<8x128xf32>, vector<128x512xf32>, vector<8x512xf32> -> vector<8x512xf32>
    %50 = arith.addf %47, %49 : vector<8x512xf32>
    %51 = vector.extract_strided_slice %50 {offsets = [0, 0], sizes = [8, 128], strides = [1, 1]} : vector<8x512xf32> to vector<8x128xf32>
    %cst_28 = arith.constant 5.000000e-01 : f32
    %52 = vector.broadcast %cst_28 : f32 to vector<8x128xf32>
    %53 = arith.mulf %52, %51 : vector<8x128xf32>
    %54 = math.tanh %53 : vector<8x128xf32>
    %cst_29 = arith.constant 5.000000e-01 : f32
    %55 = vector.broadcast %cst_29 : f32 to vector<8x128xf32>
    %56 = arith.mulf %55, %54 : vector<8x128xf32>
    %cst_30 = arith.constant 5.000000e-01 : f32
    %57 = vector.broadcast %cst_30 : f32 to vector<8x128xf32>
    %58 = arith.addf %56, %57 : vector<8x128xf32>
    %59 = vector.extract_strided_slice %50 {offsets = [0, 128], sizes = [8, 128], strides = [1, 1]} : vector<8x512xf32> to vector<8x128xf32>
    %cst_31 = arith.constant 5.000000e-01 : f32
    %60 = vector.broadcast %cst_31 : f32 to vector<8x128xf32>
    %61 = arith.mulf %60, %59 : vector<8x128xf32>
    %62 = math.tanh %61 : vector<8x128xf32>
    %cst_32 = arith.constant 5.000000e-01 : f32
    %63 = vector.broadcast %cst_32 : f32 to vector<8x128xf32>
    %64 = arith.mulf %63, %62 : vector<8x128xf32>
    %cst_33 = arith.constant 5.000000e-01 : f32
    %65 = vector.broadcast %cst_33 : f32 to vector<8x128xf32>
    %66 = arith.addf %64, %65 : vector<8x128xf32>
    %67 = vector.extract_strided_slice %50 {offsets = [0, 256], sizes = [8, 128], strides = [1, 1]} : vector<8x512xf32> to vector<8x128xf32>
    %68 = math.tanh %67 : vector<8x128xf32>
    %69 = vector.extract_strided_slice %50 {offsets = [0, 384], sizes = [8, 128], strides = [1, 1]} : vector<8x512xf32> to vector<8x128xf32>
    %cst_34 = arith.constant 5.000000e-01 : f32
    %70 = vector.broadcast %cst_34 : f32 to vector<8x128xf32>
    %71 = arith.mulf %70, %69 : vector<8x128xf32>
    %72 = math.tanh %71 : vector<8x128xf32>
    %cst_35 = arith.constant 5.000000e-01 : f32
    %73 = vector.broadcast %cst_35 : f32 to vector<8x128xf32>
    %74 = arith.mulf %73, %72 : vector<8x128xf32>
    %cst_36 = arith.constant 5.000000e-01 : f32
    %75 = vector.broadcast %cst_36 : f32 to vector<8x128xf32>
    %76 = arith.addf %74, %75 : vector<8x128xf32>
    %77 = arith.mulf %58, %40 : vector<8x128xf32>
    %78 = arith.mulf %66, %68 : vector<8x128xf32>
    %79 = arith.addf %77, %78 : vector<8x128xf32>
    %80 = math.tanh %79 : vector<8x128xf32>
    %81 = arith.mulf %76, %80 : vector<8x128xf32>
    %c1_37 = arith.constant 1 : index
    %c0_38 = arith.constant 0 : index
    %c0_39 = arith.constant 0 : index
    %82 = vector.load %arg12[%c1_37, %c0_38, %c0_39] : memref<8x8x128xf32, #tpu.memory_space<vmem>>, vector<1x8x128xf32>
    %83 = vector.shape_cast %82 : vector<1x8x128xf32> to vector<8x128xf32>
    %84 = vector.shape_cast %81 : vector<8x128xf32> to vector<1x8x128xf32>
    tpu.vector_store %arg12[%c1_37, %c0_38, %c0_39], %84 {strides = array<i32>} : memref<8x8x128xf32, #tpu.memory_space<vmem>>, vector<1x8x128xf32>,
    %c2 = arith.constant 2 : index
    %c0_40 = arith.constant 0 : index
    %c0_41 = arith.constant 0 : index
    %85 = vector.load %arg2[%c2, %c0_40, %c0_41] : memref<8x8x512xf32, #tpu.memory_space<vmem>>, vector<1x8x512xf32>
    %86 = vector.shape_cast %85 : vector<1x8x512xf32> to vector<8x512xf32>
    %c0_42 = arith.constant 0 : index
    %c0_43 = arith.constant 0 : index
    %87 = vector.load %arg3[%c0_42, %c0_43] : memref<128x512xf32, #tpu.memory_space<vmem>>, vector<128x512xf32>
    %cst_44 = arith.constant dense<0.000000e+00> : vector<8x512xf32>
    %88 = tpu.matmul %81, %87, %cst_44 {dimension_numbers = #tpu.dot_dimension_numbers<[1], [0], [0], [1], [0, 0, 1, 1], [], []>} : vector<8x128xf32>, vector<128x512xf32>, vector<8x512xf32> -> vector<8x512xf32>
    %89 = arith.addf %86, %88 : vector<8x512xf32>
    %90 = vector.extract_strided_slice %89 {offsets = [0, 0], sizes = [8, 128], strides = [1, 1]} : vector<8x512xf32> to vector<8x128xf32>
    %cst_45 = arith.constant 5.000000e-01 : f32
    %91 = vector.broadcast %cst_45 : f32 to vector<8x128xf32>
    %92 = arith.mulf %91, %90 : vector<8x128xf32>
    %93 = math.tanh %92 : vector<8x128xf32>
    %cst_46 = arith.constant 5.000000e-01 : f32
    %94 = vector.broadcast %cst_46 : f32 to vector<8x128xf32>
    %95 = arith.mulf %94, %93 : vector<8x128xf32>
    %cst_47 = arith.constant 5.000000e-01 : f32
    %96 = vector.broadcast %cst_47 : f32 to vector<8x128xf32>
    %97 = arith.addf %95, %96 : vector<8x128xf32>
    %98 = vector.extract_strided_slice %89 {offsets = [0, 128], sizes = [8, 128], strides = [1, 1]} : vector<8x512xf32> to vector<8x128xf32>
    %cst_48 = arith.constant 5.000000e-01 : f32
    %99 = vector.broadcast %cst_48 : f32 to vector<8x128xf32>
    %100 = arith.mulf %99, %98 : vector<8x128xf32>
    %101 = math.tanh %100 : vector<8x128xf32>
    %cst_49 = arith.constant 5.000000e-01 : f32
    %102 = vector.broadcast %cst_49 : f32 to vector<8x128xf32>
    %103 = arith.mulf %102, %101 : vector<8x128xf32>
    %cst_50 = arith.constant 5.000000e-01 : f32
    %104 = vector.broadcast %cst_50 : f32 to vector<8x128xf32>
    %105 = arith.addf %103, %104 : vector<8x128xf32>
    %106 = vector.extract_strided_slice %89 {offsets = [0, 256], sizes = [8, 128], strides = [1, 1]} : vector<8x512xf32> to vector<8x128xf32>
    %107 = math.tanh %106 : vector<8x128xf32>
    %108 = vector.extract_strided_slice %89 {offsets = [0, 384], sizes = [8, 128], strides = [1, 1]} : vector<8x512xf32> to vector<8x128xf32>
    %cst_51 = arith.constant 5.000000e-01 : f32
    %109 = vector.broadcast %cst_51 : f32 to vector<8x128xf32>
    %110 = arith.mulf %109, %108 : vector<8x128xf32>
    %111 = math.tanh %110 : vector<8x128xf32>
    %cst_52 = arith.constant 5.000000e-01 : f32
    %112 = vector.broadcast %cst_52 : f32 to vector<8x128xf32>
    %113 = arith.mulf %112, %111 : vector<8x128xf32>
    %cst_53 = arith.constant 5.000000e-01 : f32
    %114 = vector.broadcast %cst_53 : f32 to vector<8x128xf32>
    %115 = arith.addf %113, %114 : vector<8x128xf32>
    %116 = arith.mulf %97, %79 : vector<8x128xf32>
    %117 = arith.mulf %105, %107 : vector<8x128xf32>
    %118 = arith.addf %116, %117 : vector<8x128xf32>
    %119 = math.tanh %118 : vector<8x128xf32>
    %120 = arith.mulf %115, %119 : vector<8x128xf32>
    %c2_54 = arith.constant 2 : index
    %c0_55 = arith.constant 0 : index
    %c0_56 = arith.constant 0 : index
    %121 = vector.load %arg12[%c2_54, %c0_55, %c0_56] : memref<8x8x128xf32, #tpu.memory_space<vmem>>, vector<1x8x128xf32>
    %122 = vector.shape_cast %121 : vector<1x8x128xf32> to vector<8x128xf32>
    %123 = vector.shape_cast %120 : vector<8x128xf32> to vector<1x8x128xf32>
    tpu.vector_store %arg12[%c2_54, %c0_55, %c0_56], %123 {strides = array<i32>} : memref<8x8x128xf32, #tpu.memory_space<vmem>>, vector<1x8x128xf32>,
    %c3 = arith.constant 3 : index
    %c0_57 = arith.constant 0 : index
    %c0_58 = arith.constant 0 : index
    %124 = vector.load %arg2[%c3, %c0_57, %c0_58] : memref<8x8x512xf32, #tpu.memory_space<vmem>>, vector<1x8x512xf32>
    %125 = vector.shape_cast %124 : vector<1x8x512xf32> to vector<8x512xf32>
    %c0_59 = arith.constant 0 : index
    %c0_60 = arith.constant 0 : index
    %126 = vector.load %arg3[%c0_59, %c0_60] : memref<128x512xf32, #tpu.memory_space<vmem>>, vector<128x512xf32>
    %cst_61 = arith.constant dense<0.000000e+00> : vector<8x512xf32>
    %127 = tpu.matmul %120, %126, %cst_61 {dimension_numbers = #tpu.dot_dimension_numbers<[1], [0], [0], [1], [0, 0, 1, 1], [], []>} : vector<8x128xf32>, vector<128x512xf32>, vector<8x512xf32> -> vector<8x512xf32>
    %128 = arith.addf %125, %127 : vector<8x512xf32>
    %129 = vector.extract_strided_slice %128 {offsets = [0, 0], sizes = [8, 128], strides = [1, 1]} : vector<8x512xf32> to vector<8x128xf32>
    %cst_62 = arith.constant 5.000000e-01 : f32
    %130 = vector.broadcast %cst_62 : f32 to vector<8x128xf32>
    %131 = arith.mulf %130, %129 : vector<8x128xf32>
    %132 = math.tanh %131 : vector<8x128xf32>
    %cst_63 = arith.constant 5.000000e-01 : f32
    %133 = vector.broadcast %cst_63 : f32 to vector<8x128xf32>
    %134 = arith.mulf %133, %132 : vector<8x128xf32>
    %cst_64 = arith.constant 5.000000e-01 : f32
    %135 = vector.broadcast %cst_64 : f32 to vector<8x128xf32>
    %136 = arith.addf %134, %135 : vector<8x128xf32>
    %137 = vector.extract_strided_slice %128 {offsets = [0, 128], sizes = [8, 128], strides = [1, 1]} : vector<8x512xf32> to vector<8x128xf32>
    %cst_65 = arith.constant 5.000000e-01 : f32
    %138 = vector.broadcast %cst_65 : f32 to vector<8x128xf32>
    %139 = arith.mulf %138, %137 : vector<8x128xf32>
    %140 = math.tanh %139 : vector<8x128xf32>
    %cst_66 = arith.constant 5.000000e-01 : f32
    %141 = vector.broadcast %cst_66 : f32 to vector<8x128xf32>
    %142 = arith.mulf %141, %140 : vector<8x128xf32>
    %cst_67 = arith.constant 5.000000e-01 : f32
    %143 = vector.broadcast %cst_67 : f32 to vector<8x128xf32>
    %144 = arith.addf %142, %143 : vector<8x128xf32>
    %145 = vector.extract_strided_slice %128 {offsets = [0, 256], sizes = [8, 128], strides = [1, 1]} : vector<8x512xf32> to vector<8x128xf32>
    %146 = math.tanh %145 : vector<8x128xf32>
    %147 = vector.extract_strided_slice %128 {offsets = [0, 384], sizes = [8, 128], strides = [1, 1]} : vector<8x512xf32> to vector<8x128xf32>
    %cst_68 = arith.constant 5.000000e-01 : f32
    %148 = vector.broadcast %cst_68 : f32 to vector<8x128xf32>
    %149 = arith.mulf %148, %147 : vector<8x128xf32>
    %150 = math.tanh %149 : vector<8x128xf32>
    %cst_69 = arith.constant 5.000000e-01 : f32
    %151 = vector.broadcast %cst_69 : f32 to vector<8x128xf32>
    %152 = arith.mulf %151, %150 : vector<8x128xf32>
    %cst_70 = arith.constant 5.000000e-01 : f32
    %153 = vector.broadcast %cst_70 : f32 to vector<8x128xf32>
    %154 = arith.addf %152, %153 : vector<8x128xf32>
    %155 = arith.mulf %136, %118 : vector<8x128xf32>
    %156 = arith.mulf %144, %146 : vector<8x128xf32>
    %157 = arith.addf %155, %156 : vector<8x128xf32>
    %158 = math.tanh %157 : vector<8x128xf32>
    %159 = arith.mulf %154, %158 : vector<8x128xf32>
    %c3_71 = arith.constant 3 : index
    %c0_72 = arith.constant 0 : index
    %c0_73 = arith.constant 0 : index
    %160 = vector.load %arg12[%c3_71, %c0_72, %c0_73] : memref<8x8x128xf32, #tpu.memory_space<vmem>>, vector<1x8x128xf32>
    %161 = vector.shape_cast %160 : vector<1x8x128xf32> to vector<8x128xf32>
    %162 = vector.shape_cast %159 : vector<8x128xf32> to vector<1x8x128xf32>
    tpu.vector_store %arg12[%c3_71, %c0_72, %c0_73], %162 {strides = array<i32>} : memref<8x8x128xf32, #tpu.memory_space<vmem>>, vector<1x8x128xf32>,
    %c4 = arith.constant 4 : index
    %c0_74 = arith.constant 0 : index
    %c0_75 = arith.constant 0 : index
    %163 = vector.load %arg2[%c4, %c0_74, %c0_75] : memref<8x8x512xf32, #tpu.memory_space<vmem>>, vector<1x8x512xf32>
    %164 = vector.shape_cast %163 : vector<1x8x512xf32> to vector<8x512xf32>
    %c0_76 = arith.constant 0 : index
    %c0_77 = arith.constant 0 : index
    %165 = vector.load %arg3[%c0_76, %c0_77] : memref<128x512xf32, #tpu.memory_space<vmem>>, vector<128x512xf32>
    %cst_78 = arith.constant dense<0.000000e+00> : vector<8x512xf32>
    %166 = tpu.matmul %159, %165, %cst_78 {dimension_numbers = #tpu.dot_dimension_numbers<[1], [0], [0], [1], [0, 0, 1, 1], [], []>} : vector<8x128xf32>, vector<128x512xf32>, vector<8x512xf32> -> vector<8x512xf32>
    %167 = arith.addf %164, %166 : vector<8x512xf32>
    %168 = vector.extract_strided_slice %167 {offsets = [0, 0], sizes = [8, 128], strides = [1, 1]} : vector<8x512xf32> to vector<8x128xf32>
    %cst_79 = arith.constant 5.000000e-01 : f32
    %169 = vector.broadcast %cst_79 : f32 to vector<8x128xf32>
    %170 = arith.mulf %169, %168 : vector<8x128xf32>
    %171 = math.tanh %170 : vector<8x128xf32>
    %cst_80 = arith.constant 5.000000e-01 : f32
    %172 = vector.broadcast %cst_80 : f32 to vector<8x128xf32>
    %173 = arith.mulf %172, %171 : vector<8x128xf32>
    %cst_81 = arith.constant 5.000000e-01 : f32
    %174 = vector.broadcast %cst_81 : f32 to vector<8x128xf32>
    %175 = arith.addf %173, %174 : vector<8x128xf32>
    %176 = vector.extract_strided_slice %167 {offsets = [0, 128], sizes = [8, 128], strides = [1, 1]} : vector<8x512xf32> to vector<8x128xf32>
    %cst_82 = arith.constant 5.000000e-01 : f32
    %177 = vector.broadcast %cst_82 : f32 to vector<8x128xf32>
    %178 = arith.mulf %177, %176 : vector<8x128xf32>
    %179 = math.tanh %178 : vector<8x128xf32>
    %cst_83 = arith.constant 5.000000e-01 : f32
    %180 = vector.broadcast %cst_83 : f32 to vector<8x128xf32>
    %181 = arith.mulf %180, %179 : vector<8x128xf32>
    %cst_84 = arith.constant 5.000000e-01 : f32
    %182 = vector.broadcast %cst_84 : f32 to vector<8x128xf32>
    %183 = arith.addf %181, %182 : vector<8x128xf32>
    %184 = vector.extract_strided_slice %167 {offsets = [0, 256], sizes = [8, 128], strides = [1, 1]} : vector<8x512xf32> to vector<8x128xf32>
    %185 = math.tanh %184 : vector<8x128xf32>
    %186 = vector.extract_strided_slice %167 {offsets = [0, 384], sizes = [8, 128], strides = [1, 1]} : vector<8x512xf32> to vector<8x128xf32>
    %cst_85 = arith.constant 5.000000e-01 : f32
    %187 = vector.broadcast %cst_85 : f32 to vector<8x128xf32>
    %188 = arith.mulf %187, %186 : vector<8x128xf32>
    %189 = math.tanh %188 : vector<8x128xf32>
    %cst_86 = arith.constant 5.000000e-01 : f32
    %190 = vector.broadcast %cst_86 : f32 to vector<8x128xf32>
    %191 = arith.mulf %190, %189 : vector<8x128xf32>
    %cst_87 = arith.constant 5.000000e-01 : f32
    %192 = vector.broadcast %cst_87 : f32 to vector<8x128xf32>
    %193 = arith.addf %191, %192 : vector<8x128xf32>
    %194 = arith.mulf %175, %157 : vector<8x128xf32>
    %195 = arith.mulf %183, %185 : vector<8x128xf32>
    %196 = arith.addf %194, %195 : vector<8x128xf32>
    %197 = math.tanh %196 : vector<8x128xf32>
    %198 = arith.mulf %193, %197 : vector<8x128xf32>
    %c4_88 = arith.constant 4 : index
    %c0_89 = arith.constant 0 : index
    %c0_90 = arith.constant 0 : index
    %199 = vector.load %arg12[%c4_88, %c0_89, %c0_90] : memref<8x8x128xf32, #tpu.memory_space<vmem>>, vector<1x8x128xf32>
    %200 = vector.shape_cast %199 : vector<1x8x128xf32> to vector<8x128xf32>
    %201 = vector.shape_cast %198 : vector<8x128xf32> to vector<1x8x128xf32>
    tpu.vector_store %arg12[%c4_88, %c0_89, %c0_90], %201 {strides = array<i32>} : memref<8x8x128xf32, #tpu.memory_space<vmem>>, vector<1x8x128xf32>,
    %c5 = arith.constant 5 : index
    %c0_91 = arith.constant 0 : index
    %c0_92 = arith.constant 0 : index
    %202 = vector.load %arg2[%c5, %c0_91, %c0_92] : memref<8x8x512xf32, #tpu.memory_space<vmem>>, vector<1x8x512xf32>
    %203 = vector.shape_cast %202 : vector<1x8x512xf32> to vector<8x512xf32>
    %c0_93 = arith.constant 0 : index
    %c0_94 = arith.constant 0 : index
    %204 = vector.load %arg3[%c0_93, %c0_94] : memref<128x512xf32, #tpu.memory_space<vmem>>, vector<128x512xf32>
    %cst_95 = arith.constant dense<0.000000e+00> : vector<8x512xf32>
    %205 = tpu.matmul %198, %204, %cst_95 {dimension_numbers = #tpu.dot_dimension_numbers<[1], [0], [0], [1], [0, 0, 1, 1], [], []>} : vector<8x128xf32>, vector<128x512xf32>, vector<8x512xf32> -> vector<8x512xf32>
    %206 = arith.addf %203, %205 : vector<8x512xf32>
    %207 = vector.extract_strided_slice %206 {offsets = [0, 0], sizes = [8, 128], strides = [1, 1]} : vector<8x512xf32> to vector<8x128xf32>
    %cst_96 = arith.constant 5.000000e-01 : f32
    %208 = vector.broadcast %cst_96 : f32 to vector<8x128xf32>
    %209 = arith.mulf %208, %207 : vector<8x128xf32>
    %210 = math.tanh %209 : vector<8x128xf32>
    %cst_97 = arith.constant 5.000000e-01 : f32
    %211 = vector.broadcast %cst_97 : f32 to vector<8x128xf32>
    %212 = arith.mulf %211, %210 : vector<8x128xf32>
    %cst_98 = arith.constant 5.000000e-01 : f32
    %213 = vector.broadcast %cst_98 : f32 to vector<8x128xf32>
    %214 = arith.addf %212, %213 : vector<8x128xf32>
    %215 = vector.extract_strided_slice %206 {offsets = [0, 128], sizes = [8, 128], strides = [1, 1]} : vector<8x512xf32> to vector<8x128xf32>
    %cst_99 = arith.constant 5.000000e-01 : f32
    %216 = vector.broadcast %cst_99 : f32 to vector<8x128xf32>
    %217 = arith.mulf %216, %215 : vector<8x128xf32>
    %218 = math.tanh %217 : vector<8x128xf32>
    %cst_100 = arith.constant 5.000000e-01 : f32
    %219 = vector.broadcast %cst_100 : f32 to vector<8x128xf32>
    %220 = arith.mulf %219, %218 : vector<8x128xf32>
    %cst_101 = arith.constant 5.000000e-01 : f32
    %221 = vector.broadcast %cst_101 : f32 to vector<8x128xf32>
    %222 = arith.addf %220, %221 : vector<8x128xf32>
    %223 = vector.extract_strided_slice %206 {offsets = [0, 256], sizes = [8, 128], strides = [1, 1]} : vector<8x512xf32> to vector<8x128xf32>
    %224 = math.tanh %223 : vector<8x128xf32>
    %225 = vector.extract_strided_slice %206 {offsets = [0, 384], sizes = [8, 128], strides = [1, 1]} : vector<8x512xf32> to vector<8x128xf32>
    %cst_102 = arith.constant 5.000000e-01 : f32
    %226 = vector.broadcast %cst_102 : f32 to vector<8x128xf32>
    %227 = arith.mulf %226, %225 : vector<8x128xf32>
    %228 = math.tanh %227 : vector<8x128xf32>
    %cst_103 = arith.constant 5.000000e-01 : f32
    %229 = vector.broadcast %cst_103 : f32 to vector<8x128xf32>
    %230 = arith.mulf %229, %228 : vector<8x128xf32>
    %cst_104 = arith.constant 5.000000e-01 : f32
    %231 = vector.broadcast %cst_104 : f32 to vector<8x128xf32>
    %232 = arith.addf %230, %231 : vector<8x128xf32>
    %233 = arith.mulf %214, %196 : vector<8x128xf32>
    %234 = arith.mulf %222, %224 : vector<8x128xf32>
    %235 = arith.addf %233, %234 : vector<8x128xf32>
    %236 = math.tanh %235 : vector<8x128xf32>
    %237 = arith.mulf %232, %236 : vector<8x128xf32>
    %c5_105 = arith.constant 5 : index
    %c0_106 = arith.constant 0 : index
    %c0_107 = arith.constant 0 : index
    %238 = vector.load %arg12[%c5_105, %c0_106, %c0_107] : memref<8x8x128xf32, #tpu.memory_space<vmem>>, vector<1x8x128xf32>
    %239 = vector.shape_cast %238 : vector<1x8x128xf32> to vector<8x128xf32>
    %240 = vector.shape_cast %237 : vector<8x128xf32> to vector<1x8x128xf32>
    tpu.vector_store %arg12[%c5_105, %c0_106, %c0_107], %240 {strides = array<i32>} : memref<8x8x128xf32, #tpu.memory_space<vmem>>, vector<1x8x128xf32>,
    %c6 = arith.constant 6 : index
    %c0_108 = arith.constant 0 : index
    %c0_109 = arith.constant 0 : index
    %241 = vector.load %arg2[%c6, %c0_108, %c0_109] : memref<8x8x512xf32, #tpu.memory_space<vmem>>, vector<1x8x512xf32>
    %242 = vector.shape_cast %241 : vector<1x8x512xf32> to vector<8x512xf32>
    %c0_110 = arith.constant 0 : index
    %c0_111 = arith.constant 0 : index
    %243 = vector.load %arg3[%c0_110, %c0_111] : memref<128x512xf32, #tpu.memory_space<vmem>>, vector<128x512xf32>
    %cst_112 = arith.constant dense<0.000000e+00> : vector<8x512xf32>
    %244 = tpu.matmul %237, %243, %cst_112 {dimension_numbers = #tpu.dot_dimension_numbers<[1], [0], [0], [1], [0, 0, 1, 1], [], []>} : vector<8x128xf32>, vector<128x512xf32>, vector<8x512xf32> -> vector<8x512xf32>
    %245 = arith.addf %242, %244 : vector<8x512xf32>
    %246 = vector.extract_strided_slice %245 {offsets = [0, 0], sizes = [8, 128], strides = [1, 1]} : vector<8x512xf32> to vector<8x128xf32>
    %cst_113 = arith.constant 5.000000e-01 : f32
    %247 = vector.broadcast %cst_113 : f32 to vector<8x128xf32>
    %248 = arith.mulf %247, %246 : vector<8x128xf32>
    %249 = math.tanh %248 : vector<8x128xf32>
    %cst_114 = arith.constant 5.000000e-01 : f32
    %250 = vector.broadcast %cst_114 : f32 to vector<8x128xf32>
    %251 = arith.mulf %250, %249 : vector<8x128xf32>
    %cst_115 = arith.constant 5.000000e-01 : f32
    %252 = vector.broadcast %cst_115 : f32 to vector<8x128xf32>
    %253 = arith.addf %251, %252 : vector<8x128xf32>
    %254 = vector.extract_strided_slice %245 {offsets = [0, 128], sizes = [8, 128], strides = [1, 1]} : vector<8x512xf32> to vector<8x128xf32>
    %cst_116 = arith.constant 5.000000e-01 : f32
    %255 = vector.broadcast %cst_116 : f32 to vector<8x128xf32>
    %256 = arith.mulf %255, %254 : vector<8x128xf32>
    %257 = math.tanh %256 : vector<8x128xf32>
    %cst_117 = arith.constant 5.000000e-01 : f32
    %258 = vector.broadcast %cst_117 : f32 to vector<8x128xf32>
    %259 = arith.mulf %258, %257 : vector<8x128xf32>
    %cst_118 = arith.constant 5.000000e-01 : f32
    %260 = vector.broadcast %cst_118 : f32 to vector<8x128xf32>
    %261 = arith.addf %259, %260 : vector<8x128xf32>
    %262 = vector.extract_strided_slice %245 {offsets = [0, 256], sizes = [8, 128], strides = [1, 1]} : vector<8x512xf32> to vector<8x128xf32>
    %263 = math.tanh %262 : vector<8x128xf32>
    %264 = vector.extract_strided_slice %245 {offsets = [0, 384], sizes = [8, 128], strides = [1, 1]} : vector<8x512xf32> to vector<8x128xf32>
    %cst_119 = arith.constant 5.000000e-01 : f32
    %265 = vector.broadcast %cst_119 : f32 to vector<8x128xf32>
    %266 = arith.mulf %265, %264 : vector<8x128xf32>
    %267 = math.tanh %266 : vector<8x128xf32>
    %cst_120 = arith.constant 5.000000e-01 : f32
    %268 = vector.broadcast %cst_120 : f32 to vector<8x128xf32>
    %269 = arith.mulf %268, %267 : vector<8x128xf32>
    %cst_121 = arith.constant 5.000000e-01 : f32
    %270 = vector.broadcast %cst_121 : f32 to vector<8x128xf32>
    %271 = arith.addf %269, %270 : vector<8x128xf32>
    %272 = arith.mulf %253, %235 : vector<8x128xf32>
    %273 = arith.mulf %261, %263 : vector<8x128xf32>
    %274 = arith.addf %272, %273 : vector<8x128xf32>
    %275 = math.tanh %274 : vector<8x128xf32>
    %276 = arith.mulf %271, %275 : vector<8x128xf32>
    %c6_122 = arith.constant 6 : index
    %c0_123 = arith.constant 0 : index
    %c0_124 = arith.constant 0 : index
    %277 = vector.load %arg12[%c6_122, %c0_123, %c0_124] : memref<8x8x128xf32, #tpu.memory_space<vmem>>, vector<1x8x128xf32>
    %278 = vector.shape_cast %277 : vector<1x8x128xf32> to vector<8x128xf32>
    %279 = vector.shape_cast %276 : vector<8x128xf32> to vector<1x8x128xf32>
    tpu.vector_store %arg12[%c6_122, %c0_123, %c0_124], %279 {strides = array<i32>} : memref<8x8x128xf32, #tpu.memory_space<vmem>>, vector<1x8x128xf32>,
    %c7 = arith.constant 7 : index
    %c0_125 = arith.constant 0 : index
    %c0_126 = arith.constant 0 : index
    %280 = vector.load %arg2[%c7, %c0_125, %c0_126] : memref<8x8x512xf32, #tpu.memory_space<vmem>>, vector<1x8x512xf32>
    %281 = vector.shape_cast %280 : vector<1x8x512xf32> to vector<8x512xf32>
    %c0_127 = arith.constant 0 : index
    %c0_128 = arith.constant 0 : index
    %282 = vector.load %arg3[%c0_127, %c0_128] : memref<128x512xf32, #tpu.memory_space<vmem>>, vector<128x512xf32>
    %cst_129 = arith.constant dense<0.000000e+00> : vector<8x512xf32>
    %283 = tpu.matmul %276, %282, %cst_129 {dimension_numbers = #tpu.dot_dimension_numbers<[1], [0], [0], [1], [0, 0, 1, 1], [], []>} : vector<8x128xf32>, vector<128x512xf32>, vector<8x512xf32> -> vector<8x512xf32>
    %284 = arith.addf %281, %283 : vector<8x512xf32>
    %285 = vector.extract_strided_slice %284 {offsets = [0, 0], sizes = [8, 128], strides = [1, 1]} : vector<8x512xf32> to vector<8x128xf32>
    %cst_130 = arith.constant 5.000000e-01 : f32
    %286 = vector.broadcast %cst_130 : f32 to vector<8x128xf32>
    %287 = arith.mulf %286, %285 : vector<8x128xf32>
    %288 = math.tanh %287 : vector<8x128xf32>
    %cst_131 = arith.constant 5.000000e-01 : f32
    %289 = vector.broadcast %cst_131 : f32 to vector<8x128xf32>
    %290 = arith.mulf %289, %288 : vector<8x128xf32>
    %cst_132 = arith.constant 5.000000e-01 : f32
    %291 = vector.broadcast %cst_132 : f32 to vector<8x128xf32>
    %292 = arith.addf %290, %291 : vector<8x128xf32>
    %293 = vector.extract_strided_slice %284 {offsets = [0, 128], sizes = [8, 128], strides = [1, 1]} : vector<8x512xf32> to vector<8x128xf32>
    %cst_133 = arith.constant 5.000000e-01 : f32
    %294 = vector.broadcast %cst_133 : f32 to vector<8x128xf32>
    %295 = arith.mulf %294, %293 : vector<8x128xf32>
    %296 = math.tanh %295 : vector<8x128xf32>
    %cst_134 = arith.constant 5.000000e-01 : f32
    %297 = vector.broadcast %cst_134 : f32 to vector<8x128xf32>
    %298 = arith.mulf %297, %296 : vector<8x128xf32>
    %cst_135 = arith.constant 5.000000e-01 : f32
    %299 = vector.broadcast %cst_135 : f32 to vector<8x128xf32>
    %300 = arith.addf %298, %299 : vector<8x128xf32>
    %301 = vector.extract_strided_slice %284 {offsets = [0, 256], sizes = [8, 128], strides = [1, 1]} : vector<8x512xf32> to vector<8x128xf32>
    %302 = math.tanh %301 : vector<8x128xf32>
    %303 = vector.extract_strided_slice %284 {offsets = [0, 384], sizes = [8, 128], strides = [1, 1]} : vector<8x512xf32> to vector<8x128xf32>
    %cst_136 = arith.constant 5.000000e-01 : f32
    %304 = vector.broadcast %cst_136 : f32 to vector<8x128xf32>
    %305 = arith.mulf %304, %303 : vector<8x128xf32>
    %306 = math.tanh %305 : vector<8x128xf32>
    %cst_137 = arith.constant 5.000000e-01 : f32
    %307 = vector.broadcast %cst_137 : f32 to vector<8x128xf32>
    %308 = arith.mulf %307, %306 : vector<8x128xf32>
    %cst_138 = arith.constant 5.000000e-01 : f32
    %309 = vector.broadcast %cst_138 : f32 to vector<8x128xf32>
    %310 = arith.addf %308, %309 : vector<8x128xf32>
    %311 = arith.mulf %292, %274 : vector<8x128xf32>
    %312 = arith.mulf %300, %302 : vector<8x128xf32>
    %313 = arith.addf %311, %312 : vector<8x128xf32>
    %314 = math.tanh %313 : vector<8x128xf32>
    %315 = arith.mulf %310, %314 : vector<8x128xf32>
    %c7_139 = arith.constant 7 : index
    %c0_140 = arith.constant 0 : index
    %c0_141 = arith.constant 0 : index
    %316 = vector.load %arg12[%c7_139, %c0_140, %c0_141] : memref<8x8x128xf32, #tpu.memory_space<vmem>>, vector<1x8x128xf32>
    %317 = vector.shape_cast %316 : vector<1x8x128xf32> to vector<8x128xf32>
    %318 = vector.shape_cast %315 : vector<8x128xf32> to vector<1x8x128xf32>
    tpu.vector_store %arg12[%c7_139, %c0_140, %c0_141], %318 {strides = array<i32>} : memref<8x8x128xf32, #tpu.memory_space<vmem>>, vector<1x8x128xf32>,
    %c0_142 = arith.constant 0 : index
    %c0_143 = arith.constant 0 : index
    %c0_144 = arith.constant 0 : index
    %319 = vector.load %arg9[%c0_142, %c0_143, %c0_144] : memref<2x8x128xf32, #tpu.memory_space<vmem>>, vector<1x8x128xf32>
    %320 = vector.shape_cast %319 : vector<1x8x128xf32> to vector<8x128xf32>
    %321 = vector.shape_cast %315 : vector<8x128xf32> to vector<1x8x128xf32>
    tpu.vector_store %arg9[%c0_142, %c0_143, %c0_144], %321 {strides = array<i32>} : memref<2x8x128xf32, #tpu.memory_space<vmem>>, vector<1x8x128xf32>,
    %c0_145 = arith.constant 0 : index
    %c0_146 = arith.constant 0 : index
    %c0_147 = arith.constant 0 : index
    %322 = vector.load %arg10[%c0_145, %c0_146, %c0_147] : memref<2x8x128xf32, #tpu.memory_space<vmem>>, vector<1x8x128xf32>
    %323 = vector.shape_cast %322 : vector<1x8x128xf32> to vector<8x128xf32>
    %324 = vector.shape_cast %313 : vector<8x128xf32> to vector<1x8x128xf32>
    tpu.vector_store %arg10[%c0_145, %c0_146, %c0_147], %324 {strides = array<i32>} : memref<2x8x128xf32, #tpu.memory_space<vmem>>, vector<1x8x128xf32>,
    %c0_148 = arith.constant 0 : index
    %c0_149 = arith.constant 0 : index
    %c0_150 = arith.constant 0 : index
    %325 = vector.load %arg12[%c0_148, %c0_149, %c0_150] : memref<8x8x128xf32, #tpu.memory_space<vmem>>, vector<8x8x128xf32>
    %326 = vector.shape_cast %325 : vector<8x8x128xf32> to vector<64x128xf32>
    %c0_151 = arith.constant 0 : index
    %c0_152 = arith.constant 0 : index
    %327 = vector.load %arg5[%c0_151, %c0_152] : memref<128x512xf32, #tpu.memory_space<vmem>>, vector<128x512xf32>
    %cst_153 = arith.constant dense<0.000000e+00> : vector<64x512xf32>
    %328 = tpu.matmul %326, %327, %cst_153 {dimension_numbers = #tpu.dot_dimension_numbers<[1], [0], [0], [1], [0, 0, 1, 1], [], []>} : vector<64x128xf32>, vector<128x512xf32>, vector<64x512xf32> -> vector<64x512xf32>
    %c0_154 = arith.constant 0 : index
    %c0_155 = arith.constant 0 : index
    %329 = vector.load %arg6[%c0_154, %c0_155] : memref<1x512xf32, #tpu.memory_space<vmem>>, vector<1x512xf32>
    %330 = vector.broadcast %329 : vector<1x512xf32> to vector<64x512xf32>
    %331 = arith.addf %328, %330 : vector<64x512xf32>
    %332 = vector.shape_cast %331 : vector<64x512xf32> to vector<8x8x512xf32>
    %c0_156 = arith.constant 0 : index
    %c0_157 = arith.constant 0 : index
    %c0_158 = arith.constant 0 : index
    %333 = vector.load %arg11[%c0_156, %c0_157, %c0_158] : memref<8x8x512xf32, #tpu.memory_space<vmem>>, vector<8x8x512xf32>
    tpu.vector_store %arg11[%c0_156, %c0_157, %c0_158], %332 {strides = array<i32>} : memref<8x8x512xf32, #tpu.memory_space<vmem>>, vector<8x8x512xf32>,
    %c1_159 = arith.constant 1 : index
    %c0_160 = arith.constant 0 : index
    %c0_161 = arith.constant 0 : index
    %334 = vector.load %arg9[%c1_159, %c0_160, %c0_161] : memref<2x8x128xf32, #tpu.memory_space<vmem>>, vector<1x8x128xf32>
    %335 = vector.shape_cast %334 : vector<1x8x128xf32> to vector<8x128xf32>
    %c1_162 = arith.constant 1 : index
    %c0_163 = arith.constant 0 : index
    %c0_164 = arith.constant 0 : index
    %336 = vector.load %arg10[%c1_162, %c0_163, %c0_164] : memref<2x8x128xf32, #tpu.memory_space<vmem>>, vector<1x8x128xf32>
    %337 = vector.shape_cast %336 : vector<1x8x128xf32> to vector<8x128xf32>
    %c0_165 = arith.constant 0 : index
    %c0_166 = arith.constant 0 : index
    %c0_167 = arith.constant 0 : index
    %338 = vector.load %arg11[%c0_165, %c0_166, %c0_167] : memref<8x8x512xf32, #tpu.memory_space<vmem>>, vector<1x8x512xf32>
    %339 = vector.shape_cast %338 : vector<1x8x512xf32> to vector<8x512xf32>
    %c0_168 = arith.constant 0 : index
    %c0_169 = arith.constant 0 : index
    %340 = vector.load %arg4[%c0_168, %c0_169] : memref<128x512xf32, #tpu.memory_space<vmem>>, vector<128x512xf32>
    %cst_170 = arith.constant dense<0.000000e+00> : vector<8x512xf32>
    %341 = tpu.matmul %335, %340, %cst_170 {dimension_numbers = #tpu.dot_dimension_numbers<[1], [0], [0], [1], [0, 0, 1, 1], [], []>} : vector<8x128xf32>, vector<128x512xf32>, vector<8x512xf32> -> vector<8x512xf32>
    %342 = arith.addf %339, %341 : vector<8x512xf32>
    %343 = vector.extract_strided_slice %342 {offsets = [0, 0], sizes = [8, 128], strides = [1, 1]} : vector<8x512xf32> to vector<8x128xf32>
    %cst_171 = arith.constant 5.000000e-01 : f32
    %344 = vector.broadcast %cst_171 : f32 to vector<8x128xf32>
    %345 = arith.mulf %344, %343 : vector<8x128xf32>
    %346 = math.tanh %345 : vector<8x128xf32>
    %cst_172 = arith.constant 5.000000e-01 : f32
    %347 = vector.broadcast %cst_172 : f32 to vector<8x128xf32>
    %348 = arith.mulf %347, %346 : vector<8x128xf32>
    %cst_173 = arith.constant 5.000000e-01 : f32
    %349 = vector.broadcast %cst_173 : f32 to vector<8x128xf32>
    %350 = arith.addf %348, %349 : vector<8x128xf32>
    %351 = vector.extract_strided_slice %342 {offsets = [0, 128], sizes = [8, 128], strides = [1, 1]} : vector<8x512xf32> to vector<8x128xf32>
    %cst_174 = arith.constant 5.000000e-01 : f32
    %352 = vector.broadcast %cst_174 : f32 to vector<8x128xf32>
    %353 = arith.mulf %352, %351 : vector<8x128xf32>
    %354 = math.tanh %353 : vector<8x128xf32>
    %cst_175 = arith.constant 5.000000e-01 : f32
    %355 = vector.broadcast %cst_175 : f32 to vector<8x128xf32>
    %356 = arith.mulf %355, %354 : vector<8x128xf32>
    %cst_176 = arith.constant 5.000000e-01 : f32
    %357 = vector.broadcast %cst_176 : f32 to vector<8x128xf32>
    %358 = arith.addf %356, %357 : vector<8x128xf32>
    %359 = vector.extract_strided_slice %342 {offsets = [0, 256], sizes = [8, 128], strides = [1, 1]} : vector<8x512xf32> to vector<8x128xf32>
    %360 = math.tanh %359 : vector<8x128xf32>
    %361 = vector.extract_strided_slice %342 {offsets = [0, 384], sizes = [8, 128], strides = [1, 1]} : vector<8x512xf32> to vector<8x128xf32>
    %cst_177 = arith.constant 5.000000e-01 : f32
    %362 = vector.broadcast %cst_177 : f32 to vector<8x128xf32>
    %363 = arith.mulf %362, %361 : vector<8x128xf32>
    %364 = math.tanh %363 : vector<8x128xf32>
    %cst_178 = arith.constant 5.000000e-01 : f32
    %365 = vector.broadcast %cst_178 : f32 to vector<8x128xf32>
    %366 = arith.mulf %365, %364 : vector<8x128xf32>
    %cst_179 = arith.constant 5.000000e-01 : f32
    %367 = vector.broadcast %cst_179 : f32 to vector<8x128xf32>
    %368 = arith.addf %366, %367 : vector<8x128xf32>
    %369 = arith.mulf %350, %337 : vector<8x128xf32>
    %370 = arith.mulf %358, %360 : vector<8x128xf32>
    %371 = arith.addf %369, %370 : vector<8x128xf32>
    %372 = math.tanh %371 : vector<8x128xf32>
    %373 = arith.mulf %368, %372 : vector<8x128xf32>
    %c0_180 = arith.constant 0 : index
    %c0_181 = arith.constant 0 : index
    %c0_182 = arith.constant 0 : index
    %374 = vector.load %arg7[%c0_180, %c0_181, %c0_182] : memref<8x8x128xf32, #tpu.memory_space<vmem>>, vector<1x8x128xf32>
    %375 = vector.shape_cast %374 : vector<1x8x128xf32> to vector<8x128xf32>
    %376 = vector.shape_cast %373 : vector<8x128xf32> to vector<1x8x128xf32>
    tpu.vector_store %arg7[%c0_180, %c0_181, %c0_182], %376 {strides = array<i32>} : memref<8x8x128xf32, #tpu.memory_space<vmem>>, vector<1x8x128xf32>,
    %c1_183 = arith.constant 1 : index
    %c0_184 = arith.constant 0 : index
    %c0_185 = arith.constant 0 : index
    %377 = vector.load %arg11[%c1_183, %c0_184, %c0_185] : memref<8x8x512xf32, #tpu.memory_space<vmem>>, vector<1x8x512xf32>
    %378 = vector.shape_cast %377 : vector<1x8x512xf32> to vector<8x512xf32>
    %c0_186 = arith.constant 0 : index
    %c0_187 = arith.constant 0 : index
    %379 = vector.load %arg4[%c0_186, %c0_187] : memref<128x512xf32, #tpu.memory_space<vmem>>, vector<128x512xf32>
    %cst_188 = arith.constant dense<0.000000e+00> : vector<8x512xf32>
    %380 = tpu.matmul %373, %379, %cst_188 {dimension_numbers = #tpu.dot_dimension_numbers<[1], [0], [0], [1], [0, 0, 1, 1], [], []>} : vector<8x128xf32>, vector<128x512xf32>, vector<8x512xf32> -> vector<8x512xf32>
    %381 = arith.addf %378, %380 : vector<8x512xf32>
    %382 = vector.extract_strided_slice %381 {offsets = [0, 0], sizes = [8, 128], strides = [1, 1]} : vector<8x512xf32> to vector<8x128xf32>
    %cst_189 = arith.constant 5.000000e-01 : f32
    %383 = vector.broadcast %cst_189 : f32 to vector<8x128xf32>
    %384 = arith.mulf %383, %382 : vector<8x128xf32>
    %385 = math.tanh %384 : vector<8x128xf32>
    %cst_190 = arith.constant 5.000000e-01 : f32
    %386 = vector.broadcast %cst_190 : f32 to vector<8x128xf32>
    %387 = arith.mulf %386, %385 : vector<8x128xf32>
    %cst_191 = arith.constant 5.000000e-01 : f32
    %388 = vector.broadcast %cst_191 : f32 to vector<8x128xf32>
    %389 = arith.addf %387, %388 : vector<8x128xf32>
    %390 = vector.extract_strided_slice %381 {offsets = [0, 128], sizes = [8, 128], strides = [1, 1]} : vector<8x512xf32> to vector<8x128xf32>
    %cst_192 = arith.constant 5.000000e-01 : f32
    %391 = vector.broadcast %cst_192 : f32 to vector<8x128xf32>
    %392 = arith.mulf %391, %390 : vector<8x128xf32>
    %393 = math.tanh %392 : vector<8x128xf32>
    %cst_193 = arith.constant 5.000000e-01 : f32
    %394 = vector.broadcast %cst_193 : f32 to vector<8x128xf32>
    %395 = arith.mulf %394, %393 : vector<8x128xf32>
    %cst_194 = arith.constant 5.000000e-01 : f32
    %396 = vector.broadcast %cst_194 : f32 to vector<8x128xf32>
    %397 = arith.addf %395, %396 : vector<8x128xf32>
    %398 = vector.extract_strided_slice %381 {offsets = [0, 256], sizes = [8, 128], strides = [1, 1]} : vector<8x512xf32> to vector<8x128xf32>
    %399 = math.tanh %398 : vector<8x128xf32>
    %400 = vector.extract_strided_slice %381 {offsets = [0, 384], sizes = [8, 128], strides = [1, 1]} : vector<8x512xf32> to vector<8x128xf32>
    %cst_195 = arith.constant 5.000000e-01 : f32
    %401 = vector.broadcast %cst_195 : f32 to vector<8x128xf32>
    %402 = arith.mulf %401, %400 : vector<8x128xf32>
    %403 = math.tanh %402 : vector<8x128xf32>
    %cst_196 = arith.constant 5.000000e-01 : f32
    %404 = vector.broadcast %cst_196 : f32 to vector<8x128xf32>
    %405 = arith.mulf %404, %403 : vector<8x128xf32>
    %cst_197 = arith.constant 5.000000e-01 : f32
    %406 = vector.broadcast %cst_197 : f32 to vector<8x128xf32>
    %407 = arith.addf %405, %406 : vector<8x128xf32>
    %408 = arith.mulf %389, %371 : vector<8x128xf32>
    %409 = arith.mulf %397, %399 : vector<8x128xf32>
    %410 = arith.addf %408, %409 : vector<8x128xf32>
    %411 = math.tanh %410 : vector<8x128xf32>
    %412 = arith.mulf %407, %411 : vector<8x128xf32>
    %c1_198 = arith.constant 1 : index
    %c0_199 = arith.constant 0 : index
    %c0_200 = arith.constant 0 : index
    %413 = vector.load %arg7[%c1_198, %c0_199, %c0_200] : memref<8x8x128xf32, #tpu.memory_space<vmem>>, vector<1x8x128xf32>
    %414 = vector.shape_cast %413 : vector<1x8x128xf32> to vector<8x128xf32>
    %415 = vector.shape_cast %412 : vector<8x128xf32> to vector<1x8x128xf32>
    tpu.vector_store %arg7[%c1_198, %c0_199, %c0_200], %415 {strides = array<i32>} : memref<8x8x128xf32, #tpu.memory_space<vmem>>, vector<1x8x128xf32>,
    %c2_201 = arith.constant 2 : index
    %c0_202 = arith.constant 0 : index
    %c0_203 = arith.constant 0 : index
    %416 = vector.load %arg11[%c2_201, %c0_202, %c0_203] : memref<8x8x512xf32, #tpu.memory_space<vmem>>, vector<1x8x512xf32>
    %417 = vector.shape_cast %416 : vector<1x8x512xf32> to vector<8x512xf32>
    %c0_204 = arith.constant 0 : index
    %c0_205 = arith.constant 0 : index
    %418 = vector.load %arg4[%c0_204, %c0_205] : memref<128x512xf32, #tpu.memory_space<vmem>>, vector<128x512xf32>
    %cst_206 = arith.constant dense<0.000000e+00> : vector<8x512xf32>
    %419 = tpu.matmul %412, %418, %cst_206 {dimension_numbers = #tpu.dot_dimension_numbers<[1], [0], [0], [1], [0, 0, 1, 1], [], []>} : vector<8x128xf32>, vector<128x512xf32>, vector<8x512xf32> -> vector<8x512xf32>
    %420 = arith.addf %417, %419 : vector<8x512xf32>
    %421 = vector.extract_strided_slice %420 {offsets = [0, 0], sizes = [8, 128], strides = [1, 1]} : vector<8x512xf32> to vector<8x128xf32>
    %cst_207 = arith.constant 5.000000e-01 : f32
    %422 = vector.broadcast %cst_207 : f32 to vector<8x128xf32>
    %423 = arith.mulf %422, %421 : vector<8x128xf32>
    %424 = math.tanh %423 : vector<8x128xf32>
    %cst_208 = arith.constant 5.000000e-01 : f32
    %425 = vector.broadcast %cst_208 : f32 to vector<8x128xf32>
    %426 = arith.mulf %425, %424 : vector<8x128xf32>
    %cst_209 = arith.constant 5.000000e-01 : f32
    %427 = vector.broadcast %cst_209 : f32 to vector<8x128xf32>
    %428 = arith.addf %426, %427 : vector<8x128xf32>
    %429 = vector.extract_strided_slice %420 {offsets = [0, 128], sizes = [8, 128], strides = [1, 1]} : vector<8x512xf32> to vector<8x128xf32>
    %cst_210 = arith.constant 5.000000e-01 : f32
    %430 = vector.broadcast %cst_210 : f32 to vector<8x128xf32>
    %431 = arith.mulf %430, %429 : vector<8x128xf32>
    %432 = math.tanh %431 : vector<8x128xf32>
    %cst_211 = arith.constant 5.000000e-01 : f32
    %433 = vector.broadcast %cst_211 : f32 to vector<8x128xf32>
    %434 = arith.mulf %433, %432 : vector<8x128xf32>
    %cst_212 = arith.constant 5.000000e-01 : f32
    %435 = vector.broadcast %cst_212 : f32 to vector<8x128xf32>
    %436 = arith.addf %434, %435 : vector<8x128xf32>
    %437 = vector.extract_strided_slice %420 {offsets = [0, 256], sizes = [8, 128], strides = [1, 1]} : vector<8x512xf32> to vector<8x128xf32>
    %438 = math.tanh %437 : vector<8x128xf32>
    %439 = vector.extract_strided_slice %420 {offsets = [0, 384], sizes = [8, 128], strides = [1, 1]} : vector<8x512xf32> to vector<8x128xf32>
    %cst_213 = arith.constant 5.000000e-01 : f32
    %440 = vector.broadcast %cst_213 : f32 to vector<8x128xf32>
    %441 = arith.mulf %440, %439 : vector<8x128xf32>
    %442 = math.tanh %441 : vector<8x128xf32>
    %cst_214 = arith.constant 5.000000e-01 : f32
    %443 = vector.broadcast %cst_214 : f32 to vector<8x128xf32>
    %444 = arith.mulf %443, %442 : vector<8x128xf32>
    %cst_215 = arith.constant 5.000000e-01 : f32
    %445 = vector.broadcast %cst_215 : f32 to vector<8x128xf32>
    %446 = arith.addf %444, %445 : vector<8x128xf32>
    %447 = arith.mulf %428, %410 : vector<8x128xf32>
    %448 = arith.mulf %436, %438 : vector<8x128xf32>
    %449 = arith.addf %447, %448 : vector<8x128xf32>
    %450 = math.tanh %449 : vector<8x128xf32>
    %451 = arith.mulf %446, %450 : vector<8x128xf32>
    %c2_216 = arith.constant 2 : index
    %c0_217 = arith.constant 0 : index
    %c0_218 = arith.constant 0 : index
    %452 = vector.load %arg7[%c2_216, %c0_217, %c0_218] : memref<8x8x128xf32, #tpu.memory_space<vmem>>, vector<1x8x128xf32>
    %453 = vector.shape_cast %452 : vector<1x8x128xf32> to vector<8x128xf32>
    %454 = vector.shape_cast %451 : vector<8x128xf32> to vector<1x8x128xf32>
    tpu.vector_store %arg7[%c2_216, %c0_217, %c0_218], %454 {strides = array<i32>} : memref<8x8x128xf32, #tpu.memory_space<vmem>>, vector<1x8x128xf32>,
    %c3_219 = arith.constant 3 : index
    %c0_220 = arith.constant 0 : index
    %c0_221 = arith.constant 0 : index
    %455 = vector.load %arg11[%c3_219, %c0_220, %c0_221] : memref<8x8x512xf32, #tpu.memory_space<vmem>>, vector<1x8x512xf32>
    %456 = vector.shape_cast %455 : vector<1x8x512xf32> to vector<8x512xf32>
    %c0_222 = arith.constant 0 : index
    %c0_223 = arith.constant 0 : index
    %457 = vector.load %arg4[%c0_222, %c0_223] : memref<128x512xf32, #tpu.memory_space<vmem>>, vector<128x512xf32>
    %cst_224 = arith.constant dense<0.000000e+00> : vector<8x512xf32>
    %458 = tpu.matmul %451, %457, %cst_224 {dimension_numbers = #tpu.dot_dimension_numbers<[1], [0], [0], [1], [0, 0, 1, 1], [], []>} : vector<8x128xf32>, vector<128x512xf32>, vector<8x512xf32> -> vector<8x512xf32>
    %459 = arith.addf %456, %458 : vector<8x512xf32>
    %460 = vector.extract_strided_slice %459 {offsets = [0, 0], sizes = [8, 128], strides = [1, 1]} : vector<8x512xf32> to vector<8x128xf32>
    %cst_225 = arith.constant 5.000000e-01 : f32
    %461 = vector.broadcast %cst_225 : f32 to vector<8x128xf32>
    %462 = arith.mulf %461, %460 : vector<8x128xf32>
    %463 = math.tanh %462 : vector<8x128xf32>
    %cst_226 = arith.constant 5.000000e-01 : f32
    %464 = vector.broadcast %cst_226 : f32 to vector<8x128xf32>
    %465 = arith.mulf %464, %463 : vector<8x128xf32>
    %cst_227 = arith.constant 5.000000e-01 : f32
    %466 = vector.broadcast %cst_227 : f32 to vector<8x128xf32>
    %467 = arith.addf %465, %466 : vector<8x128xf32>
    %468 = vector.extract_strided_slice %459 {offsets = [0, 128], sizes = [8, 128], strides = [1, 1]} : vector<8x512xf32> to vector<8x128xf32>
    %cst_228 = arith.constant 5.000000e-01 : f32
    %469 = vector.broadcast %cst_228 : f32 to vector<8x128xf32>
    %470 = arith.mulf %469, %468 : vector<8x128xf32>
    %471 = math.tanh %470 : vector<8x128xf32>
    %cst_229 = arith.constant 5.000000e-01 : f32
    %472 = vector.broadcast %cst_229 : f32 to vector<8x128xf32>
    %473 = arith.mulf %472, %471 : vector<8x128xf32>
    %cst_230 = arith.constant 5.000000e-01 : f32
    %474 = vector.broadcast %cst_230 : f32 to vector<8x128xf32>
    %475 = arith.addf %473, %474 : vector<8x128xf32>
    %476 = vector.extract_strided_slice %459 {offsets = [0, 256], sizes = [8, 128], strides = [1, 1]} : vector<8x512xf32> to vector<8x128xf32>
    %477 = math.tanh %476 : vector<8x128xf32>
    %478 = vector.extract_strided_slice %459 {offsets = [0, 384], sizes = [8, 128], strides = [1, 1]} : vector<8x512xf32> to vector<8x128xf32>
    %cst_231 = arith.constant 5.000000e-01 : f32
    %479 = vector.broadcast %cst_231 : f32 to vector<8x128xf32>
    %480 = arith.mulf %479, %478 : vector<8x128xf32>
    %481 = math.tanh %480 : vector<8x128xf32>
    %cst_232 = arith.constant 5.000000e-01 : f32
    %482 = vector.broadcast %cst_232 : f32 to vector<8x128xf32>
    %483 = arith.mulf %482, %481 : vector<8x128xf32>
    %cst_233 = arith.constant 5.000000e-01 : f32
    %484 = vector.broadcast %cst_233 : f32 to vector<8x128xf32>
    %485 = arith.addf %483, %484 : vector<8x128xf32>
    %486 = arith.mulf %467, %449 : vector<8x128xf32>
    %487 = arith.mulf %475, %477 : vector<8x128xf32>
    %488 = arith.addf %486, %487 : vector<8x128xf32>
    %489 = math.tanh %488 : vector<8x128xf32>
    %490 = arith.mulf %485, %489 : vector<8x128xf32>
    %c3_234 = arith.constant 3 : index
    %c0_235 = arith.constant 0 : index
    %c0_236 = arith.constant 0 : index
    %491 = vector.load %arg7[%c3_234, %c0_235, %c0_236] : memref<8x8x128xf32, #tpu.memory_space<vmem>>, vector<1x8x128xf32>
    %492 = vector.shape_cast %491 : vector<1x8x128xf32> to vector<8x128xf32>
    %493 = vector.shape_cast %490 : vector<8x128xf32> to vector<1x8x128xf32>
    tpu.vector_store %arg7[%c3_234, %c0_235, %c0_236], %493 {strides = array<i32>} : memref<8x8x128xf32, #tpu.memory_space<vmem>>, vector<1x8x128xf32>,
    %c4_237 = arith.constant 4 : index
    %c0_238 = arith.constant 0 : index
    %c0_239 = arith.constant 0 : index
    %494 = vector.load %arg11[%c4_237, %c0_238, %c0_239] : memref<8x8x512xf32, #tpu.memory_space<vmem>>, vector<1x8x512xf32>
    %495 = vector.shape_cast %494 : vector<1x8x512xf32> to vector<8x512xf32>
    %c0_240 = arith.constant 0 : index
    %c0_241 = arith.constant 0 : index
    %496 = vector.load %arg4[%c0_240, %c0_241] : memref<128x512xf32, #tpu.memory_space<vmem>>, vector<128x512xf32>
    %cst_242 = arith.constant dense<0.000000e+00> : vector<8x512xf32>
    %497 = tpu.matmul %490, %496, %cst_242 {dimension_numbers = #tpu.dot_dimension_numbers<[1], [0], [0], [1], [0, 0, 1, 1], [], []>} : vector<8x128xf32>, vector<128x512xf32>, vector<8x512xf32> -> vector<8x512xf32>
    %498 = arith.addf %495, %497 : vector<8x512xf32>
    %499 = vector.extract_strided_slice %498 {offsets = [0, 0], sizes = [8, 128], strides = [1, 1]} : vector<8x512xf32> to vector<8x128xf32>
    %cst_243 = arith.constant 5.000000e-01 : f32
    %500 = vector.broadcast %cst_243 : f32 to vector<8x128xf32>
    %501 = arith.mulf %500, %499 : vector<8x128xf32>
    %502 = math.tanh %501 : vector<8x128xf32>
    %cst_244 = arith.constant 5.000000e-01 : f32
    %503 = vector.broadcast %cst_244 : f32 to vector<8x128xf32>
    %504 = arith.mulf %503, %502 : vector<8x128xf32>
    %cst_245 = arith.constant 5.000000e-01 : f32
    %505 = vector.broadcast %cst_245 : f32 to vector<8x128xf32>
    %506 = arith.addf %504, %505 : vector<8x128xf32>
    %507 = vector.extract_strided_slice %498 {offsets = [0, 128], sizes = [8, 128], strides = [1, 1]} : vector<8x512xf32> to vector<8x128xf32>
    %cst_246 = arith.constant 5.000000e-01 : f32
    %508 = vector.broadcast %cst_246 : f32 to vector<8x128xf32>
    %509 = arith.mulf %508, %507 : vector<8x128xf32>
    %510 = math.tanh %509 : vector<8x128xf32>
    %cst_247 = arith.constant 5.000000e-01 : f32
    %511 = vector.broadcast %cst_247 : f32 to vector<8x128xf32>
    %512 = arith.mulf %511, %510 : vector<8x128xf32>
    %cst_248 = arith.constant 5.000000e-01 : f32
    %513 = vector.broadcast %cst_248 : f32 to vector<8x128xf32>
    %514 = arith.addf %512, %513 : vector<8x128xf32>
    %515 = vector.extract_strided_slice %498 {offsets = [0, 256], sizes = [8, 128], strides = [1, 1]} : vector<8x512xf32> to vector<8x128xf32>
    %516 = math.tanh %515 : vector<8x128xf32>
    %517 = vector.extract_strided_slice %498 {offsets = [0, 384], sizes = [8, 128], strides = [1, 1]} : vector<8x512xf32> to vector<8x128xf32>
    %cst_249 = arith.constant 5.000000e-01 : f32
    %518 = vector.broadcast %cst_249 : f32 to vector<8x128xf32>
    %519 = arith.mulf %518, %517 : vector<8x128xf32>
    %520 = math.tanh %519 : vector<8x128xf32>
    %cst_250 = arith.constant 5.000000e-01 : f32
    %521 = vector.broadcast %cst_250 : f32 to vector<8x128xf32>
    %522 = arith.mulf %521, %520 : vector<8x128xf32>
    %cst_251 = arith.constant 5.000000e-01 : f32
    %523 = vector.broadcast %cst_251 : f32 to vector<8x128xf32>
    %524 = arith.addf %522, %523 : vector<8x128xf32>
    %525 = arith.mulf %506, %488 : vector<8x128xf32>
    %526 = arith.mulf %514, %516 : vector<8x128xf32>
    %527 = arith.addf %525, %526 : vector<8x128xf32>
    %528 = math.tanh %527 : vector<8x128xf32>
    %529 = arith.mulf %524, %528 : vector<8x128xf32>
    %c4_252 = arith.constant 4 : index
    %c0_253 = arith.constant 0 : index
    %c0_254 = arith.constant 0 : index
    %530 = vector.load %arg7[%c4_252, %c0_253, %c0_254] : memref<8x8x128xf32, #tpu.memory_space<vmem>>, vector<1x8x128xf32>
    %531 = vector.shape_cast %530 : vector<1x8x128xf32> to vector<8x128xf32>
    %532 = vector.shape_cast %529 : vector<8x128xf32> to vector<1x8x128xf32>
    tpu.vector_store %arg7[%c4_252, %c0_253, %c0_254], %532 {strides = array<i32>} : memref<8x8x128xf32, #tpu.memory_space<vmem>>, vector<1x8x128xf32>,
    %c5_255 = arith.constant 5 : index
    %c0_256 = arith.constant 0 : index
    %c0_257 = arith.constant 0 : index
    %533 = vector.load %arg11[%c5_255, %c0_256, %c0_257] : memref<8x8x512xf32, #tpu.memory_space<vmem>>, vector<1x8x512xf32>
    %534 = vector.shape_cast %533 : vector<1x8x512xf32> to vector<8x512xf32>
    %c0_258 = arith.constant 0 : index
    %c0_259 = arith.constant 0 : index
    %535 = vector.load %arg4[%c0_258, %c0_259] : memref<128x512xf32, #tpu.memory_space<vmem>>, vector<128x512xf32>
    %cst_260 = arith.constant dense<0.000000e+00> : vector<8x512xf32>
    %536 = tpu.matmul %529, %535, %cst_260 {dimension_numbers = #tpu.dot_dimension_numbers<[1], [0], [0], [1], [0, 0, 1, 1], [], []>} : vector<8x128xf32>, vector<128x512xf32>, vector<8x512xf32> -> vector<8x512xf32>
    %537 = arith.addf %534, %536 : vector<8x512xf32>
    %538 = vector.extract_strided_slice %537 {offsets = [0, 0], sizes = [8, 128], strides = [1, 1]} : vector<8x512xf32> to vector<8x128xf32>
    %cst_261 = arith.constant 5.000000e-01 : f32
    %539 = vector.broadcast %cst_261 : f32 to vector<8x128xf32>
    %540 = arith.mulf %539, %538 : vector<8x128xf32>
    %541 = math.tanh %540 : vector<8x128xf32>
    %cst_262 = arith.constant 5.000000e-01 : f32
    %542 = vector.broadcast %cst_262 : f32 to vector<8x128xf32>
    %543 = arith.mulf %542, %541 : vector<8x128xf32>
    %cst_263 = arith.constant 5.000000e-01 : f32
    %544 = vector.broadcast %cst_263 : f32 to vector<8x128xf32>
    %545 = arith.addf %543, %544 : vector<8x128xf32>
    %546 = vector.extract_strided_slice %537 {offsets = [0, 128], sizes = [8, 128], strides = [1, 1]} : vector<8x512xf32> to vector<8x128xf32>
    %cst_264 = arith.constant 5.000000e-01 : f32
    %547 = vector.broadcast %cst_264 : f32 to vector<8x128xf32>
    %548 = arith.mulf %547, %546 : vector<8x128xf32>
    %549 = math.tanh %548 : vector<8x128xf32>
    %cst_265 = arith.constant 5.000000e-01 : f32
    %550 = vector.broadcast %cst_265 : f32 to vector<8x128xf32>
    %551 = arith.mulf %550, %549 : vector<8x128xf32>
    %cst_266 = arith.constant 5.000000e-01 : f32
    %552 = vector.broadcast %cst_266 : f32 to vector<8x128xf32>
    %553 = arith.addf %551, %552 : vector<8x128xf32>
    %554 = vector.extract_strided_slice %537 {offsets = [0, 256], sizes = [8, 128], strides = [1, 1]} : vector<8x512xf32> to vector<8x128xf32>
    %555 = math.tanh %554 : vector<8x128xf32>
    %556 = vector.extract_strided_slice %537 {offsets = [0, 384], sizes = [8, 128], strides = [1, 1]} : vector<8x512xf32> to vector<8x128xf32>
    %cst_267 = arith.constant 5.000000e-01 : f32
    %557 = vector.broadcast %cst_267 : f32 to vector<8x128xf32>
    %558 = arith.mulf %557, %556 : vector<8x128xf32>
    %559 = math.tanh %558 : vector<8x128xf32>
    %cst_268 = arith.constant 5.000000e-01 : f32
    %560 = vector.broadcast %cst_268 : f32 to vector<8x128xf32>
    %561 = arith.mulf %560, %559 : vector<8x128xf32>
    %cst_269 = arith.constant 5.000000e-01 : f32
    %562 = vector.broadcast %cst_269 : f32 to vector<8x128xf32>
    %563 = arith.addf %561, %562 : vector<8x128xf32>
    %564 = arith.mulf %545, %527 : vector<8x128xf32>
    %565 = arith.mulf %553, %555 : vector<8x128xf32>
    %566 = arith.addf %564, %565 : vector<8x128xf32>
    %567 = math.tanh %566 : vector<8x128xf32>
    %568 = arith.mulf %563, %567 : vector<8x128xf32>
    %c5_270 = arith.constant 5 : index
    %c0_271 = arith.constant 0 : index
    %c0_272 = arith.constant 0 : index
    %569 = vector.load %arg7[%c5_270, %c0_271, %c0_272] : memref<8x8x128xf32, #tpu.memory_space<vmem>>, vector<1x8x128xf32>
    %570 = vector.shape_cast %569 : vector<1x8x128xf32> to vector<8x128xf32>
    %571 = vector.shape_cast %568 : vector<8x128xf32> to vector<1x8x128xf32>
    tpu.vector_store %arg7[%c5_270, %c0_271, %c0_272], %571 {strides = array<i32>} : memref<8x8x128xf32, #tpu.memory_space<vmem>>, vector<1x8x128xf32>,
    %c6_273 = arith.constant 6 : index
    %c0_274 = arith.constant 0 : index
    %c0_275 = arith.constant 0 : index
    %572 = vector.load %arg11[%c6_273, %c0_274, %c0_275] : memref<8x8x512xf32, #tpu.memory_space<vmem>>, vector<1x8x512xf32>
    %573 = vector.shape_cast %572 : vector<1x8x512xf32> to vector<8x512xf32>
    %c0_276 = arith.constant 0 : index
    %c0_277 = arith.constant 0 : index
    %574 = vector.load %arg4[%c0_276, %c0_277] : memref<128x512xf32, #tpu.memory_space<vmem>>, vector<128x512xf32>
    %cst_278 = arith.constant dense<0.000000e+00> : vector<8x512xf32>
    %575 = tpu.matmul %568, %574, %cst_278 {dimension_numbers = #tpu.dot_dimension_numbers<[1], [0], [0], [1], [0, 0, 1, 1], [], []>} : vector<8x128xf32>, vector<128x512xf32>, vector<8x512xf32> -> vector<8x512xf32>
    %576 = arith.addf %573, %575 : vector<8x512xf32>
    %577 = vector.extract_strided_slice %576 {offsets = [0, 0], sizes = [8, 128], strides = [1, 1]} : vector<8x512xf32> to vector<8x128xf32>
    %cst_279 = arith.constant 5.000000e-01 : f32
    %578 = vector.broadcast %cst_279 : f32 to vector<8x128xf32>
    %579 = arith.mulf %578, %577 : vector<8x128xf32>
    %580 = math.tanh %579 : vector<8x128xf32>
    %cst_280 = arith.constant 5.000000e-01 : f32
    %581 = vector.broadcast %cst_280 : f32 to vector<8x128xf32>
    %582 = arith.mulf %581, %580 : vector<8x128xf32>
    %cst_281 = arith.constant 5.000000e-01 : f32
    %583 = vector.broadcast %cst_281 : f32 to vector<8x128xf32>
    %584 = arith.addf %582, %583 : vector<8x128xf32>
    %585 = vector.extract_strided_slice %576 {offsets = [0, 128], sizes = [8, 128], strides = [1, 1]} : vector<8x512xf32> to vector<8x128xf32>
    %cst_282 = arith.constant 5.000000e-01 : f32
    %586 = vector.broadcast %cst_282 : f32 to vector<8x128xf32>
    %587 = arith.mulf %586, %585 : vector<8x128xf32>
    %588 = math.tanh %587 : vector<8x128xf32>
    %cst_283 = arith.constant 5.000000e-01 : f32
    %589 = vector.broadcast %cst_283 : f32 to vector<8x128xf32>
    %590 = arith.mulf %589, %588 : vector<8x128xf32>
    %cst_284 = arith.constant 5.000000e-01 : f32
    %591 = vector.broadcast %cst_284 : f32 to vector<8x128xf32>
    %592 = arith.addf %590, %591 : vector<8x128xf32>
    %593 = vector.extract_strided_slice %576 {offsets = [0, 256], sizes = [8, 128], strides = [1, 1]} : vector<8x512xf32> to vector<8x128xf32>
    %594 = math.tanh %593 : vector<8x128xf32>
    %595 = vector.extract_strided_slice %576 {offsets = [0, 384], sizes = [8, 128], strides = [1, 1]} : vector<8x512xf32> to vector<8x128xf32>
    %cst_285 = arith.constant 5.000000e-01 : f32
    %596 = vector.broadcast %cst_285 : f32 to vector<8x128xf32>
    %597 = arith.mulf %596, %595 : vector<8x128xf32>
    %598 = math.tanh %597 : vector<8x128xf32>
    %cst_286 = arith.constant 5.000000e-01 : f32
    %599 = vector.broadcast %cst_286 : f32 to vector<8x128xf32>
    %600 = arith.mulf %599, %598 : vector<8x128xf32>
    %cst_287 = arith.constant 5.000000e-01 : f32
    %601 = vector.broadcast %cst_287 : f32 to vector<8x128xf32>
    %602 = arith.addf %600, %601 : vector<8x128xf32>
    %603 = arith.mulf %584, %566 : vector<8x128xf32>
    %604 = arith.mulf %592, %594 : vector<8x128xf32>
    %605 = arith.addf %603, %604 : vector<8x128xf32>
    %606 = math.tanh %605 : vector<8x128xf32>
    %607 = arith.mulf %602, %606 : vector<8x128xf32>
    %c6_288 = arith.constant 6 : index
    %c0_289 = arith.constant 0 : index
    %c0_290 = arith.constant 0 : index
    %608 = vector.load %arg7[%c6_288, %c0_289, %c0_290] : memref<8x8x128xf32, #tpu.memory_space<vmem>>, vector<1x8x128xf32>
    %609 = vector.shape_cast %608 : vector<1x8x128xf32> to vector<8x128xf32>
    %610 = vector.shape_cast %607 : vector<8x128xf32> to vector<1x8x128xf32>
    tpu.vector_store %arg7[%c6_288, %c0_289, %c0_290], %610 {strides = array<i32>} : memref<8x8x128xf32, #tpu.memory_space<vmem>>, vector<1x8x128xf32>,
    %c7_291 = arith.constant 7 : index
    %c0_292 = arith.constant 0 : index
    %c0_293 = arith.constant 0 : index
    %611 = vector.load %arg11[%c7_291, %c0_292, %c0_293] : memref<8x8x512xf32, #tpu.memory_space<vmem>>, vector<1x8x512xf32>
    %612 = vector.shape_cast %611 : vector<1x8x512xf32> to vector<8x512xf32>
    %c0_294 = arith.constant 0 : index
    %c0_295 = arith.constant 0 : index
    %613 = vector.load %arg4[%c0_294, %c0_295] : memref<128x512xf32, #tpu.memory_space<vmem>>, vector<128x512xf32>
    %cst_296 = arith.constant dense<0.000000e+00> : vector<8x512xf32>
    %614 = tpu.matmul %607, %613, %cst_296 {dimension_numbers = #tpu.dot_dimension_numbers<[1], [0], [0], [1], [0, 0, 1, 1], [], []>} : vector<8x128xf32>, vector<128x512xf32>, vector<8x512xf32> -> vector<8x512xf32>
    %615 = arith.addf %612, %614 : vector<8x512xf32>
    %616 = vector.extract_strided_slice %615 {offsets = [0, 0], sizes = [8, 128], strides = [1, 1]} : vector<8x512xf32> to vector<8x128xf32>
    %cst_297 = arith.constant 5.000000e-01 : f32
    %617 = vector.broadcast %cst_297 : f32 to vector<8x128xf32>
    %618 = arith.mulf %617, %616 : vector<8x128xf32>
    %619 = math.tanh %618 : vector<8x128xf32>
    %cst_298 = arith.constant 5.000000e-01 : f32
    %620 = vector.broadcast %cst_298 : f32 to vector<8x128xf32>
    %621 = arith.mulf %620, %619 : vector<8x128xf32>
    %cst_299 = arith.constant 5.000000e-01 : f32
    %622 = vector.broadcast %cst_299 : f32 to vector<8x128xf32>
    %623 = arith.addf %621, %622 : vector<8x128xf32>
    %624 = vector.extract_strided_slice %615 {offsets = [0, 128], sizes = [8, 128], strides = [1, 1]} : vector<8x512xf32> to vector<8x128xf32>
    %cst_300 = arith.constant 5.000000e-01 : f32
    %625 = vector.broadcast %cst_300 : f32 to vector<8x128xf32>
    %626 = arith.mulf %625, %624 : vector<8x128xf32>
    %627 = math.tanh %626 : vector<8x128xf32>
    %cst_301 = arith.constant 5.000000e-01 : f32
    %628 = vector.broadcast %cst_301 : f32 to vector<8x128xf32>
    %629 = arith.mulf %628, %627 : vector<8x128xf32>
    %cst_302 = arith.constant 5.000000e-01 : f32
    %630 = vector.broadcast %cst_302 : f32 to vector<8x128xf32>
    %631 = arith.addf %629, %630 : vector<8x128xf32>
    %632 = vector.extract_strided_slice %615 {offsets = [0, 256], sizes = [8, 128], strides = [1, 1]} : vector<8x512xf32> to vector<8x128xf32>
    %633 = math.tanh %632 : vector<8x128xf32>
    %634 = vector.extract_strided_slice %615 {offsets = [0, 384], sizes = [8, 128], strides = [1, 1]} : vector<8x512xf32> to vector<8x128xf32>
    %cst_303 = arith.constant 5.000000e-01 : f32
    %635 = vector.broadcast %cst_303 : f32 to vector<8x128xf32>
    %636 = arith.mulf %635, %634 : vector<8x128xf32>
    %637 = math.tanh %636 : vector<8x128xf32>
    %cst_304 = arith.constant 5.000000e-01 : f32
    %638 = vector.broadcast %cst_304 : f32 to vector<8x128xf32>
    %639 = arith.mulf %638, %637 : vector<8x128xf32>
    %cst_305 = arith.constant 5.000000e-01 : f32
    %640 = vector.broadcast %cst_305 : f32 to vector<8x128xf32>
    %641 = arith.addf %639, %640 : vector<8x128xf32>
    %642 = arith.mulf %623, %605 : vector<8x128xf32>
    %643 = arith.mulf %631, %633 : vector<8x128xf32>
    %644 = arith.addf %642, %643 : vector<8x128xf32>
    %645 = math.tanh %644 : vector<8x128xf32>
    %646 = arith.mulf %641, %645 : vector<8x128xf32>
    %c7_306 = arith.constant 7 : index
    %c0_307 = arith.constant 0 : index
    %c0_308 = arith.constant 0 : index
    %647 = vector.load %arg7[%c7_306, %c0_307, %c0_308] : memref<8x8x128xf32, #tpu.memory_space<vmem>>, vector<1x8x128xf32>
    %648 = vector.shape_cast %647 : vector<1x8x128xf32> to vector<8x128xf32>
    %649 = vector.shape_cast %646 : vector<8x128xf32> to vector<1x8x128xf32>
    tpu.vector_store %arg7[%c7_306, %c0_307, %c0_308], %649 {strides = array<i32>} : memref<8x8x128xf32, #tpu.memory_space<vmem>>, vector<1x8x128xf32>,
    %c1_309 = arith.constant 1 : index
    %c0_310 = arith.constant 0 : index
    %c0_311 = arith.constant 0 : index
    %650 = vector.load %arg9[%c1_309, %c0_310, %c0_311] : memref<2x8x128xf32, #tpu.memory_space<vmem>>, vector<1x8x128xf32>
    %651 = vector.shape_cast %650 : vector<1x8x128xf32> to vector<8x128xf32>
    %652 = vector.shape_cast %646 : vector<8x128xf32> to vector<1x8x128xf32>
    tpu.vector_store %arg9[%c1_309, %c0_310, %c0_311], %652 {strides = array<i32>} : memref<2x8x128xf32, #tpu.memory_space<vmem>>, vector<1x8x128xf32>,
    %c1_312 = arith.constant 1 : index
    %c0_313 = arith.constant 0 : index
    %c0_314 = arith.constant 0 : index
    %653 = vector.load %arg10[%c1_312, %c0_313, %c0_314] : memref<2x8x128xf32, #tpu.memory_space<vmem>>, vector<1x8x128xf32>
    %654 = vector.shape_cast %653 : vector<1x8x128xf32> to vector<8x128xf32>
    %655 = vector.shape_cast %644 : vector<8x128xf32> to vector<1x8x128xf32>
    tpu.vector_store %arg10[%c1_312, %c0_313, %c0_314], %655 {strides = array<i32>} : memref<2x8x128xf32, #tpu.memory_space<vmem>>, vector<1x8x128xf32>,
    %c0_i32_315 = arith.constant 0 : i32
    %656 = arith.cmpi eq, %arg1, %c0_i32_315 : i32
    %657 = arith.extui %656 : i1 to i32
    %c0_i32_316 = arith.constant 0 : i32
    %658 = arith.cmpi ne, %657, %c0_i32_316 : i32
    scf.if %658 {
      %c0_317 = arith.constant 0 : index
      %c0_318 = arith.constant 0 : index
      %c0_319 = arith.constant 0 : index
      %659 = vector.load %arg9[%c0_317, %c0_318, %c0_319] : memref<2x8x128xf32, #tpu.memory_space<vmem>>, vector<2x8x128xf32>
      %c0_320 = arith.constant 0 : index
      %c0_321 = arith.constant 0 : index
      %c0_322 = arith.constant 0 : index
      %660 = vector.load %arg8[%c0_320, %c0_321, %c0_322] : memref<2x8x128xf32, #tpu.memory_space<vmem>>, vector<2x8x128xf32>
      tpu.vector_store %arg8[%c0_320, %c0_321, %c0_322], %659 {strides = array<i32>} : memref<2x8x128xf32, #tpu.memory_space<vmem>>, vector<2x8x128xf32>,
    } else {
    }
    return
  }
  func.func @transform_0(%arg0: i32, %arg1: i32) -> (i32, i32, i32) {
    %c0_i32 = arith.constant 0 : i32
    %c0_i32_0 = arith.constant 0 : i32
    return %arg1, %arg0, %c0_i32 : i32, i32, i32
  }
  func.func @transform_1(%arg0: i32, %arg1: i32) -> (i32, i32) {
    %c0_i32 = arith.constant 0 : i32
    %c0_i32_0 = arith.constant 0 : i32
    %c0_i32_1 = arith.constant 0 : i32
    return %c0_i32, %c0_i32_0 : i32, i32
  }
  func.func @transform_2(%arg0: i32, %arg1: i32) -> (i32, i32) {
    %c0_i32 = arith.constant 0 : i32
    %c0_i32_0 = arith.constant 0 : i32
    %c0_i32_1 = arith.constant 0 : i32
    return %c0_i32, %c0_i32_0 : i32, i32
  }
  func.func @transform_3(%arg0: i32, %arg1: i32) -> (i32, i32) {
    %c0_i32 = arith.constant 0 : i32
    %c0_i32_0 = arith.constant 0 : i32
    %c0_i32_1 = arith.constant 0 : i32
    return %c0_i32, %c0_i32_0 : i32, i32
  }
  func.func @transform_4(%arg0: i32, %arg1: i32) -> (i32, i32) {
    %c0_i32 = arith.constant 0 : i32
    %c0_i32_0 = arith.constant 0 : i32
    %c0_i32_1 = arith.constant 0 : i32
    return %c0_i32, %c0_i32_0 : i32, i32
  }
  func.func @transform_5(%arg0: i32, %arg1: i32) -> (i32, i32, i32) {
    %c0_i32 = arith.constant 0 : i32
    %c0_i32_0 = arith.constant 0 : i32
    return %arg1, %arg0, %c0_i32 : i32, i32, i32
  }
  func.func @transform_6(%arg0: i32, %arg1: i32) -> (i32, i32, i32) {
    %c0_i32 = arith.constant 0 : i32
    %c0_i32_0 = arith.constant 0 : i32
    %c0_i32_1 = arith.constant 0 : i32
    return %c0_i32, %arg0, %c0_i32_0 : i32, i32, i32
  }
}

module attributes {stable_mosaic.version = 11 : i64} {
  func.func @kernel(%arg0: i32, %arg1: i32, %arg2: memref<8x8x512xf32, #tpu.memory_space<vmem>>, %arg3: memref<128x512xf32, #tpu.memory_space<vmem>>, %arg4: memref<128x512xf32, #tpu.memory_space<vmem>>, %arg5: memref<128x512xf32, #tpu.memory_space<vmem>>, %arg6: memref<1x512xf32, #tpu.memory_space<vmem>>, %arg7: memref<8x8x128xf32, #tpu.memory_space<vmem>>, %arg8: memref<2x8x128xf32, #tpu.memory_space<vmem>>, %arg9: memref<2x8x128xf32, #tpu.memory_space<vmem>>, %arg10: memref<2x8x128xf32, #tpu.memory_space<vmem>>, %arg11: memref<8x8x512xf32, #tpu.memory_space<vmem>>, %arg12: memref<8x8x128xf32, #tpu.memory_space<vmem>>) attributes {dimension_semantics = [#tpu.dimension_semantics<parallel>, #tpu.dimension_semantics<arbitrary>], iteration_bounds = array<i64: 1, 1>, scalar_prefetch = 0 : i64, scratch_operands = 4 : i64, tpu.core_type = #tpu.core_type<tc>, window_params = [{transform_indices = @transform_0, window_bounds = array<i64: 8, 8, 512>}, {pipeline_mode = #tpu.pipeline_mode<synchronous>, transform_indices = @transform_1, window_bounds = array<i64: 128, 512>}, {pipeline_mode = #tpu.pipeline_mode<synchronous>, transform_indices = @transform_2, window_bounds = array<i64: 128, 512>}, {pipeline_mode = #tpu.pipeline_mode<synchronous>, transform_indices = @transform_3, window_bounds = array<i64: 128, 512>}, {pipeline_mode = #tpu.pipeline_mode<synchronous>, transform_indices = @transform_4, window_bounds = array<i64: 1, 512>}, {transform_indices = @transform_5, window_bounds = array<i64: 8, 8, 128>}, {transform_indices = @transform_6, window_bounds = array<i64: 2, 8, 128>}]} {
    %c0_i32 = arith.constant 0 : i32
    %0 = arith.cmpi eq, %arg1, %c0_i32 : i32
    %1 = arith.extui %0 : i1 to i32
    %c0_i32_0 = arith.constant 0 : i32
    %2 = arith.cmpi ne, %1, %c0_i32_0 : i32
    scf.if %2 {
      %cst_317 = arith.constant 0.000000e+00 : f32
      %659 = vector.broadcast %cst_317 : f32 to vector<2x8x128xf32>
      %c0_318 = arith.constant 0 : index
      %c0_319 = arith.constant 0 : index
      %c0_320 = arith.constant 0 : index
      %660 = vector.load %arg9[%c0_318, %c0_319, %c0_320] : memref<2x8x128xf32, #tpu.memory_space<vmem>>, vector<2x8x128xf32>
      tpu.vector_store %arg9[%c0_318, %c0_319, %c0_320], %659 {strides = array<i32>} : memref<2x8x128xf32, #tpu.memory_space<vmem>>, vector<2x8x128xf32>,
      %cst_321 = arith.constant 0.000000e+00 : f32
      %661 = vector.broadcast %cst_321 : f32 to vector<2x8x128xf32>
      %c0_322 = arith.constant 0 : index
      %c0_323 = arith.constant 0 : index
      %c0_324 = arith.constant 0 : index
      %662 = vector.load %arg10[%c0_322, %c0_323, %c0_324] : memref<2x8x128xf32, #tpu.memory_space<vmem>>, vector<2x8x128xf32>
      tpu.vector_store %arg10[%c0_322, %c0_323, %c0_324], %661 {strides = array<i32>} : memref<2x8x128xf32, #tpu.memory_space<vmem>>, vector<2x8x128xf32>,
    } else {
    }
    %c0 = arith.constant 0 : index
    %c0_1 = arith.constant 0 : index
    %c0_2 = arith.constant 0 : index
    %3 = vector.load %arg9[%c0, %c0_1, %c0_2] : memref<2x8x128xf32, #tpu.memory_space<vmem>>, vector<1x8x128xf32>
    %4 = vector.shape_cast %3 : vector<1x8x128xf32> to vector<8x128xf32>
    %c0_3 = arith.constant 0 : index
    %c0_4 = arith.constant 0 : index
    %c0_5 = arith.constant 0 : index
    %5 = vector.load %arg10[%c0_3, %c0_4, %c0_5] : memref<2x8x128xf32, #tpu.memory_space<vmem>>, vector<1x8x128xf32>
    %6 = vector.shape_cast %5 : vector<1x8x128xf32> to vector<8x128xf32>
    %c0_6 = arith.constant 0 : index
    %c0_7 = arith.constant 0 : index
    %c0_8 = arith.constant 0 : index
    %7 = vector.load %arg2[%c0_6, %c0_7, %c0_8] : memref<8x8x512xf32, #tpu.memory_space<vmem>>, vector<1x8x512xf32>
    %8 = vector.shape_cast %7 : vector<1x8x512xf32> to vector<8x512xf32>
    %c0_9 = arith.constant 0 : index
    %c0_10 = arith.constant 0 : index
    %9 = vector.load %arg3[%c0_9, %c0_10] : memref<128x512xf32, #tpu.memory_space<vmem>>, vector<128x512xf32>
    %cst = arith.constant dense<0.000000e+00> : vector<8x512xf32>
    %10 = tpu.matmul %4, %9, %cst {dimension_numbers = #tpu.dot_dimension_numbers<[1], [0], [0], [1], [0, 0, 1, 1], [], []>} : vector<8x128xf32>, vector<128x512xf32>, vector<8x512xf32> -> vector<8x512xf32>
    %11 = arith.addf %8, %10 : vector<8x512xf32>
    %12 = vector.extract_strided_slice %11 {offsets = [0, 0], sizes = [8, 128], strides = [1, 1]} : vector<8x512xf32> to vector<8x128xf32>
    %cst_11 = arith.constant 5.000000e-01 : f32
    %13 = vector.broadcast %cst_11 : f32 to vector<8x128xf32>
    %14 = arith.mulf %13, %12 : vector<8x128xf32>
    %15 = math.tanh %14 : vector<8x128xf32>
    %cst_12 = arith.constant 5.000000e-01 : f32
    %16 = vector.broadcast %cst_12 : f32 to vector<8x128xf32>
    %17 = arith.mulf %16, %15 : vector<8x128xf32>
    %cst_13 = arith.constant 5.000000e-01 : f32
    %18 = vector.broadcast %cst_13 : f32 to vector<8x128xf32>
    %19 = arith.addf %17, %18 : vector<8x128xf32>
    %20 = vector.extract_strided_slice %11 {offsets = [0, 128], sizes = [8, 128], strides = [1, 1]} : vector<8x512xf32> to vector<8x128xf32>
    %cst_14 = arith.constant 5.000000e-01 : f32
    %21 = vector.broadcast %cst_14 : f32 to vector<8x128xf32>
    %22 = arith.mulf %21, %20 : vector<8x128xf32>
    %23 = math.tanh %22 : vector<8x128xf32>
    %cst_15 = arith.constant 5.000000e-01 : f32
    %24 = vector.broadcast %cst_15 : f32 to vector<8x128xf32>
    %25 = arith.mulf %24, %23 : vector<8x128xf32>
    %cst_16 = arith.constant 5.000000e-01 : f32
    %26 = vector.broadcast %cst_16 : f32 to vector<8x128xf32>
    %27 = arith.addf %25, %26 : vector<8x128xf32>
    %28 = vector.extract_strided_slice %11 {offsets = [0, 256], sizes = [8, 128], strides = [1, 1]} : vector<8x512xf32> to vector<8x128xf32>
    %29 = math.tanh %28 : vector<8x128xf32>
    %30 = vector.extract_strided_slice %11 {offsets = [0, 384], sizes = [8, 128], strides = [1, 1]} : vector<8x512xf32> to vector<8x128xf32>
    %cst_17 = arith.constant 5.000000e-01 : f32
    %31 = vector.broadcast %cst_17 : f32 to vector<8x128xf32>
    %32 = arith.mulf %31, %30 : vector<8x128xf32>
    %33 = math.tanh %32 : vector<8x128xf32>
    %cst_18 = arith.constant 5.000000e-01 : f32
    %34 = vector.broadcast %cst_18 : f32 to vector<8x128xf32>
    %35 = arith.mulf %34, %33 : vector<8x128xf32>
    %cst_19 = arith.constant 5.000000e-01 : f32
    %36 = vector.broadcast %cst_19 : f32 to vector<8x128xf32>
    %37 = arith.addf %35, %36 : vector<8x128xf32>
    %38 = arith.mulf %19, %6 : vector<8x128xf32>
    %39 = arith.mulf %27, %29 : vector<8x128xf32>
    %40 = arith.addf %38, %39 : vector<8x128xf32>
    %41 = math.tanh %40 : vector<8x128xf32>
    %42 = arith.mulf %37, %41 : vector<8x128xf32>
    %c0_20 = arith.constant 0 : index
    %c0_21 = arith.constant 0 : index
    %c0_22 = arith.constant 0 : index
    %43 = vector.load %arg12[%c0_20, %c0_21, %c0_22] : memref<8x8x128xf32, #tpu.memory_space<vmem>>, vector<1x8x128xf32>
    %44 = vector.shape_cast %43 : vector<1x8x128xf32> to vector<8x128xf32>
    %45 = vector.shape_cast %42 : vector<8x128xf32> to vector<1x8x128xf32>
    tpu.vector_store %arg12[%c0_20, %c0_21, %c0_22], %45 {strides = array<i32>} : memref<8x8x128xf32, #tpu.memory_space<vmem>>, vector<1x8x128xf32>,
    %c1 = arith.constant 1 : index
    %c0_23 = arith.constant 0 : index
    %c0_24 = arith.constant 0 : index
    %46 = vector.load %arg2[%c1, %c0_23, %c0_24] : memref<8x8x512xf32, #tpu.memory_space<vmem>>, vector<1x8x512xf32>
    %47 = vector.shape_cast %46 : vector<1x8x512xf32> to vector<8x512xf32>
    %c0_25 = arith.constant 0 : index
    %c0_26 = arith.constant 0 : index
    %48 = vector.load %arg3[%c0_25, %c0_26] : memref<128x512xf32, #tpu.memory_space<vmem>>, vector<128x512xf32>
    %cst_27 = arith.constant dense<0.000000e+00> : vector<8x512xf32>
    %49 = tpu.matmul %42, %48, %cst_27 {dimension_numbers = #tpu.dot_dimension_numbers<[1], [0], [0], [1], [0, 0, 1, 1], [], []>} : vector<8x128xf32>, vector<128x512xf32>, vector<8x512xf32> -> vector<8x512xf32>
    %50 = arith.addf %47, %49 : vector<8x512xf32>
    %51 = vector.extract_strided_slice %50 {offsets = [0, 0], sizes = [8, 128], strides = [1, 1]} : vector<8x512xf32> to vector<8x128xf32>
    %cst_28 = arith.constant 5.000000e-01 : f32
    %52 = vector.broadcast %cst_28 : f32 to vector<8x128xf32>
    %53 = arith.mulf %52, %51 : vector<8x128xf32>
    %54 = math.tanh %53 : vector<8x128xf32>
    %cst_29 = arith.constant 5.000000e-01 : f32
    %55 = vector.broadcast %cst_29 : f32 to vector<8x128xf32>
    %56 = arith.mulf %55, %54 : vector<8x128xf32>
    %cst_30 = arith.constant 5.000000e-01 : f32
    %57 = vector.broadcast %cst_30 : f32 to vector<8x128xf32>
    %58 = arith.addf %56, %57 : vector<8x128xf32>
    %59 = vector.extract_strided_slice %50 {offsets = [0, 128], sizes = [8, 128], strides = [1, 1]} : vector<8x512xf32> to vector<8x128xf32>
    %cst_31 = arith.constant 5.000000e-01 : f32
    %60 = vector.broadcast %cst_31 : f32 to vector<8x128xf32>
    %61 = arith.mulf %60, %59 : vector<8x128xf32>
    %62 = math.tanh %61 : vector<8x128xf32>
    %cst_32 = arith.constant 5.000000e-01 : f32
    %63 = vector.broadcast %cst_32 : f32 to vector<8x128xf32>
    %64 = arith.mulf %63, %62 : vector<8x128xf32>
    %cst_33 = arith.constant 5.000000e-01 : f32
    %65 = vector.broadcast %cst_33 : f32 to vector<8x128xf32>
    %66 = arith.addf %64, %65 : vector<8x128xf32>
    %67 = vector.extract_strided_slice %50 {offsets = [0, 256], sizes = [8, 128], strides = [1, 1]} : vector<8x512xf32> to vector<8x128xf32>
    %68 = math.tanh %67 : vector<8x128xf32>
    %69 = vector.extract_strided_slice %50 {offsets = [0, 384], sizes = [8, 128], strides = [1, 1]} : vector<8x512xf32> to vector<8x128xf32>
    %cst_34 = arith.constant 5.000000e-01 : f32
    %70 = vector.broadcast %cst_34 : f32 to vector<8x128xf32>
    %71 = arith.mulf %70, %69 : vector<8x128xf32>
    %72 = math.tanh %71 : vector<8x128xf32>
    %cst_35 = arith.constant 5.000000e-01 : f32
    %73 = vector.broadcast %cst_35 : f32 to vector<8x128xf32>
    %74 = arith.mulf %73, %72 : vector<8x128xf32>
    %cst_36 = arith.constant 5.000000e-01 : f32
    %75 = vector.broadcast %cst_36 : f32 to vector<8x128xf32>
    %76 = arith.addf %74, %75 : vector<8x128xf32>
    %77 = arith.mulf %58, %40 : vector<8x128xf32>
    %78 = arith.mulf %66, %68 : vector<8x128xf32>
    %79 = arith.addf %77, %78 : vector<8x128xf32>
    %80 = math.tanh %79 : vector<8x128xf32>
    %81 = arith.mulf %76, %80 : vector<8x128xf32>
    %c1_37 = arith.constant 1 : index
    %c0_38 = arith.constant 0 : index
    %c0_39 = arith.constant 0 : index
    %82 = vector.load %arg12[%c1_37, %c0_38, %c0_39] : memref<8x8x128xf32, #tpu.memory_space<vmem>>, vector<1x8x128xf32>
    %83 = vector.shape_cast %82 : vector<1x8x128xf32> to vector<8x128xf32>
    %84 = vector.shape_cast %81 : vector<8x128xf32> to vector<1x8x128xf32>
    tpu.vector_store %arg12[%c1_37, %c0_38, %c0_39], %84 {strides = array<i32>} : memref<8x8x128xf32, #tpu.memory_space<vmem>>, vector<1x8x128xf32>,
    %c2 = arith.constant 2 : index
    %c0_40 = arith.constant 0 : index
    %c0_41 = arith.constant 0 : index
    %85 = vector.load %arg2[%c2, %c0_40, %c0_41] : memref<8x8x512xf32, #tpu.memory_space<vmem>>, vector<1x8x512xf32>
    %86 = vector.shape_cast %85 : vector<1x8x512xf32> to vector<8x512xf32>
    %c0_42 = arith.constant 0 : index
    %c0_43 = arith.constant 0 : index
    %87 = vector.load %arg3[%c0_42, %c0_43] : memref<128x512xf32, #tpu.memory_space<vmem>>, vector<128x512xf32>
    %cst_44 = arith.constant dense<0.000000e+00> : vector<8x512xf32>
    %88 = tpu.matmul %81, %87, %cst_44 {dimension_numbers = #tpu.dot_dimension_numbers<[1], [0], [0], [1], [0, 0, 1, 1], [], []>} : vector<8x128xf32>, vector<128x512xf32>, vector<8x512xf32> -> vector<8x512xf32>
    %89 = arith.addf %86, %88 : vector<8x512xf32>
    %90 = vector.extract_strided_slice %89 {offsets = [0, 0], sizes = [8, 128], strides = [1, 1]} : vector<8x512xf32> to vector<8x128xf32>
    %cst_45 = arith.constant 5.000000e-01 : f32
    %91 = vector.broadcast %cst_45 : f32 to vector<8x128xf32>
    %92 = arith.mulf %91, %90 : vector<8x128xf32>
    %93 = math.tanh %92 : vector<8x128xf32>
    %cst_46 = arith.constant 5.000000e-01 : f32
    %94 = vector.broadcast %cst_46 : f32 to vector<8x128xf32>
    %95 = arith.mulf %94, %93 : vector<8x128xf32>
    %cst_47 = arith.constant 5.000000e-01 : f32
    %96 = vector.broadcast %cst_47 : f32 to vector<8x128xf32>
    %97 = arith.addf %95, %96 : vector<8x128xf32>
    %98 = vector.extract_strided_slice %89 {offsets = [0, 128], sizes = [8, 128], strides = [1, 1]} : vector<8x512xf32> to vector<8x128xf32>
    %cst_48 = arith.constant 5.000000e-01 : f32
    %99 = vector.broadcast %cst_48 : f32 to vector<8x128xf32>
    %100 = arith.mulf %99, %98 : vector<8x128xf32>
    %101 = math.tanh %100 : vector<8x128xf32>
    %cst_49 = arith.constant 5.000000e-01 : f32
    %102 = vector.broadcast %cst_49 : f32 to vector<8x128xf32>
    %103 = arith.mulf %102, %101 : vector<8x128xf32>
    %cst_50 = arith.constant 5.000000e-01 : f32
    %104 = vector.broadcast %cst_50 : f32 to vector<8x128xf32>
    %105 = arith.addf %103, %104 : vector<8x128xf32>
    %106 = vector.extract_strided_slice %89 {offsets = [0, 256], sizes = [8, 128], strides = [1, 1]} : vector<8x512xf32> to vector<8x128xf32>
    %107 = math.tanh %106 : vector<8x128xf32>
    %108 = vector.extract_strided_slice %89 {offsets = [0, 384], sizes = [8, 128], strides = [1, 1]} : vector<8x512xf32> to vector<8x128xf32>
    %cst_51 = arith.constant 5.000000e-01 : f32
    %109 = vector.broadcast %cst_51 : f32 to vector<8x128xf32>
    %110 = arith.mulf %109, %108 : vector<8x128xf32>
    %111 = math.tanh %110 : vector<8x128xf32>
    %cst_52 = arith.constant 5.000000e-01 : f32
    %112 = vector.broadcast %cst_52 : f32 to vector<8x128xf32>
    %113 = arith.mulf %112, %111 : vector<8x128xf32>
    %cst_53 = arith.constant 5.000000e-01 : f32
    %114 = vector.broadcast %cst_53 : f32 to vector<8x128xf32>
    %115 = arith.addf %113, %114 : vector<8x128xf32>
    %116 = arith.mulf %97, %79 : vector<8x128xf32>
    %117 = arith.mulf %105, %107 : vector<8x128xf32>
    %118 = arith.addf %116, %117 : vector<8x128xf32>
    %119 = math.tanh %118 : vector<8x128xf32>
    %120 = arith.mulf %115, %119 : vector<8x128xf32>
    %c2_54 = arith.constant 2 : index
    %c0_55 = arith.constant 0 : index
    %c0_56 = arith.constant 0 : index
    %121 = vector.load %arg12[%c2_54, %c0_55, %c0_56] : memref<8x8x128xf32, #tpu.memory_space<vmem>>, vector<1x8x128xf32>
    %122 = vector.shape_cast %121 : vector<1x8x128xf32> to vector<8x128xf32>
    %123 = vector.shape_cast %120 : vector<8x128xf32> to vector<1x8x128xf32>
    tpu.vector_store %arg12[%c2_54, %c0_55, %c0_56], %123 {strides = array<i32>} : memref<8x8x128xf32, #tpu.memory_space<vmem>>, vector<1x8x128xf32>,
    %c3 = arith.constant 3 : index
    %c0_57 = arith.constant 0 : index
    %c0_58 = arith.constant 0 : index
    %124 = vector.load %arg2[%c3, %c0_57, %c0_58] : memref<8x8x512xf32, #tpu.memory_space<vmem>>, vector<1x8x512xf32>
    %125 = vector.shape_cast %124 : vector<1x8x512xf32> to vector<8x512xf32>
    %c0_59 = arith.constant 0 : index
    %c0_60 = arith.constant 0 : index
    %126 = vector.load %arg3[%c0_59, %c0_60] : memref<128x512xf32, #tpu.memory_space<vmem>>, vector<128x512xf32>
    %cst_61 = arith.constant dense<0.000000e+00> : vector<8x512xf32>
    %127 = tpu.matmul %120, %126, %cst_61 {dimension_numbers = #tpu.dot_dimension_numbers<[1], [0], [0], [1], [0, 0, 1, 1], [], []>} : vector<8x128xf32>, vector<128x512xf32>, vector<8x512xf32> -> vector<8x512xf32>
    %128 = arith.addf %125, %127 : vector<8x512xf32>
    %129 = vector.extract_strided_slice %128 {offsets = [0, 0], sizes = [8, 128], strides = [1, 1]} : vector<8x512xf32> to vector<8x128xf32>
    %cst_62 = arith.constant 5.000000e-01 : f32
    %130 = vector.broadcast %cst_62 : f32 to vector<8x128xf32>
    %131 = arith.mulf %130, %129 : vector<8x128xf32>
    %132 = math.tanh %131 : vector<8x128xf32>
    %cst_63 = arith.constant 5.000000e-01 : f32
    %133 = vector.broadcast %cst_63 : f32 to vector<8x128xf32>
    %134 = arith.mulf %133, %132 : vector<8x128xf32>
    %cst_64 = arith.constant 5.000000e-01 : f32
    %135 = vector.broadcast %cst_64 : f32 to vector<8x128xf32>
    %136 = arith.addf %134, %135 : vector<8x128xf32>
    %137 = vector.extract_strided_slice %128 {offsets = [0, 128], sizes = [8, 128], strides = [1, 1]} : vector<8x512xf32> to vector<8x128xf32>
    %cst_65 = arith.constant 5.000000e-01 : f32
    %138 = vector.broadcast %cst_65 : f32 to vector<8x128xf32>
    %139 = arith.mulf %138, %137 : vector<8x128xf32>
    %140 = math.tanh %139 : vector<8x128xf32>
    %cst_66 = arith.constant 5.000000e-01 : f32
    %141 = vector.broadcast %cst_66 : f32 to vector<8x128xf32>
    %142 = arith.mulf %141, %140 : vector<8x128xf32>
    %cst_67 = arith.constant 5.000000e-01 : f32
    %143 = vector.broadcast %cst_67 : f32 to vector<8x128xf32>
    %144 = arith.addf %142, %143 : vector<8x128xf32>
    %145 = vector.extract_strided_slice %128 {offsets = [0, 256], sizes = [8, 128], strides = [1, 1]} : vector<8x512xf32> to vector<8x128xf32>
    %146 = math.tanh %145 : vector<8x128xf32>
    %147 = vector.extract_strided_slice %128 {offsets = [0, 384], sizes = [8, 128], strides = [1, 1]} : vector<8x512xf32> to vector<8x128xf32>
    %cst_68 = arith.constant 5.000000e-01 : f32
    %148 = vector.broadcast %cst_68 : f32 to vector<8x128xf32>
    %149 = arith.mulf %148, %147 : vector<8x128xf32>
    %150 = math.tanh %149 : vector<8x128xf32>
    %cst_69 = arith.constant 5.000000e-01 : f32
    %151 = vector.broadcast %cst_69 : f32 to vector<8x128xf32>
    %152 = arith.mulf %151, %150 : vector<8x128xf32>
    %cst_70 = arith.constant 5.000000e-01 : f32
    %153 = vector.broadcast %cst_70 : f32 to vector<8x128xf32>
    %154 = arith.addf %152, %153 : vector<8x128xf32>
    %155 = arith.mulf %136, %118 : vector<8x128xf32>
    %156 = arith.mulf %144, %146 : vector<8x128xf32>
    %157 = arith.addf %155, %156 : vector<8x128xf32>
    %158 = math.tanh %157 : vector<8x128xf32>
    %159 = arith.mulf %154, %158 : vector<8x128xf32>
    %c3_71 = arith.constant 3 : index
    %c0_72 = arith.constant 0 : index
    %c0_73 = arith.constant 0 : index
    %160 = vector.load %arg12[%c3_71, %c0_72, %c0_73] : memref<8x8x128xf32, #tpu.memory_space<vmem>>, vector<1x8x128xf32>
    %161 = vector.shape_cast %160 : vector<1x8x128xf32> to vector<8x128xf32>
    %162 = vector.shape_cast %159 : vector<8x128xf32> to vector<1x8x128xf32>
    tpu.vector_store %arg12[%c3_71, %c0_72, %c0_73], %162 {strides = array<i32>} : memref<8x8x128xf32, #tpu.memory_space<vmem>>, vector<1x8x128xf32>,
    %c4 = arith.constant 4 : index
    %c0_74 = arith.constant 0 : index
    %c0_75 = arith.constant 0 : index
    %163 = vector.load %arg2[%c4, %c0_74, %c0_75] : memref<8x8x512xf32, #tpu.memory_space<vmem>>, vector<1x8x512xf32>
    %164 = vector.shape_cast %163 : vector<1x8x512xf32> to vector<8x512xf32>
    %c0_76 = arith.constant 0 : index
    %c0_77 = arith.constant 0 : index
    %165 = vector.load %arg3[%c0_76, %c0_77] : memref<128x512xf32, #tpu.memory_space<vmem>>, vector<128x512xf32>
    %cst_78 = arith.constant dense<0.000000e+00> : vector<8x512xf32>
    %166 = tpu.matmul %159, %165, %cst_78 {dimension_numbers = #tpu.dot_dimension_numbers<[1], [0], [0], [1], [0, 0, 1, 1], [], []>} : vector<8x128xf32>, vector<128x512xf32>, vector<8x512xf32> -> vector<8x512xf32>
    %167 = arith.addf %164, %166 : vector<8x512xf32>
    %168 = vector.extract_strided_slice %167 {offsets = [0, 0], sizes = [8, 128], strides = [1, 1]} : vector<8x512xf32> to vector<8x128xf32>
    %cst_79 = arith.constant 5.000000e-01 : f32
    %169 = vector.broadcast %cst_79 : f32 to vector<8x128xf32>
    %170 = arith.mulf %169, %168 : vector<8x128xf32>
    %171 = math.tanh %170 : vector<8x128xf32>
    %cst_80 = arith.constant 5.000000e-01 : f32
    %172 = vector.broadcast %cst_80 : f32 to vector<8x128xf32>
    %173 = arith.mulf %172, %171 : vector<8x128xf32>
    %cst_81 = arith.constant 5.000000e-01 : f32
    %174 = vector.broadcast %cst_81 : f32 to vector<8x128xf32>
    %175 = arith.addf %173, %174 : vector<8x128xf32>
    %176 = vector.extract_strided_slice %167 {offsets = [0, 128], sizes = [8, 128], strides = [1, 1]} : vector<8x512xf32> to vector<8x128xf32>
    %cst_82 = arith.constant 5.000000e-01 : f32
    %177 = vector.broadcast %cst_82 : f32 to vector<8x128xf32>
    %178 = arith.mulf %177, %176 : vector<8x128xf32>
    %179 = math.tanh %178 : vector<8x128xf32>
    %cst_83 = arith.constant 5.000000e-01 : f32
    %180 = vector.broadcast %cst_83 : f32 to vector<8x128xf32>
    %181 = arith.mulf %180, %179 : vector<8x128xf32>
    %cst_84 = arith.constant 5.000000e-01 : f32
    %182 = vector.broadcast %cst_84 : f32 to vector<8x128xf32>
    %183 = arith.addf %181, %182 : vector<8x128xf32>
    %184 = vector.extract_strided_slice %167 {offsets = [0, 256], sizes = [8, 128], strides = [1, 1]} : vector<8x512xf32> to vector<8x128xf32>
    %185 = math.tanh %184 : vector<8x128xf32>
    %186 = vector.extract_strided_slice %167 {offsets = [0, 384], sizes = [8, 128], strides = [1, 1]} : vector<8x512xf32> to vector<8x128xf32>
    %cst_85 = arith.constant 5.000000e-01 : f32
    %187 = vector.broadcast %cst_85 : f32 to vector<8x128xf32>
    %188 = arith.mulf %187, %186 : vector<8x128xf32>
    %189 = math.tanh %188 : vector<8x128xf32>
    %cst_86 = arith.constant 5.000000e-01 : f32
    %190 = vector.broadcast %cst_86 : f32 to vector<8x128xf32>
    %191 = arith.mulf %190, %189 : vector<8x128xf32>
    %cst_87 = arith.constant 5.000000e-01 : f32
    %192 = vector.broadcast %cst_87 : f32 to vector<8x128xf32>
    %193 = arith.addf %191, %192 : vector<8x128xf32>
    %194 = arith.mulf %175, %157 : vector<8x128xf32>
    %195 = arith.mulf %183, %185 : vector<8x128xf32>
    %196 = arith.addf %194, %195 : vector<8x128xf32>
    %197 = math.tanh %196 : vector<8x128xf32>
    %198 = arith.mulf %193, %197 : vector<8x128xf32>
    %c4_88 = arith.constant 4 : index
    %c0_89 = arith.constant 0 : index
    %c0_90 = arith.constant 0 : index
    %199 = vector.load %arg12[%c4_88, %c0_89, %c0_90] : memref<8x8x128xf32, #tpu.memory_space<vmem>>, vector<1x8x128xf32>
    %200 = vector.shape_cast %199 : vector<1x8x128xf32> to vector<8x128xf32>
    %201 = vector.shape_cast %198 : vector<8x128xf32> to vector<1x8x128xf32>
    tpu.vector_store %arg12[%c4_88, %c0_89, %c0_90], %201 {strides = array<i32>} : memref<8x8x128xf32, #tpu.memory_space<vmem>>, vector<1x8x128xf32>,
    %c5 = arith.constant 5 : index
    %c0_91 = arith.constant 0 : index
    %c0_92 = arith.constant 0 : index
    %202 = vector.load %arg2[%c5, %c0_91, %c0_92] : memref<8x8x512xf32, #tpu.memory_space<vmem>>, vector<1x8x512xf32>
    %203 = vector.shape_cast %202 : vector<1x8x512xf32> to vector<8x512xf32>
    %c0_93 = arith.constant 0 : index
    %c0_94 = arith.constant 0 : index
    %204 = vector.load %arg3[%c0_93, %c0_94] : memref<128x512xf32, #tpu.memory_space<vmem>>, vector<128x512xf32>
    %cst_95 = arith.constant dense<0.000000e+00> : vector<8x512xf32>
    %205 = tpu.matmul %198, %204, %cst_95 {dimension_numbers = #tpu.dot_dimension_numbers<[1], [0], [0], [1], [0, 0, 1, 1], [], []>} : vector<8x128xf32>, vector<128x512xf32>, vector<8x512xf32> -> vector<8x512xf32>
    %206 = arith.addf %203, %205 : vector<8x512xf32>
    %207 = vector.extract_strided_slice %206 {offsets = [0, 0], sizes = [8, 128], strides = [1, 1]} : vector<8x512xf32> to vector<8x128xf32>
    %cst_96 = arith.constant 5.000000e-01 : f32
    %208 = vector.broadcast %cst_96 : f32 to vector<8x128xf32>
    %209 = arith.mulf %208, %207 : vector<8x128xf32>
    %210 = math.tanh %209 : vector<8x128xf32>
    %cst_97 = arith.constant 5.000000e-01 : f32
    %211 = vector.broadcast %cst_97 : f32 to vector<8x128xf32>
    %212 = arith.mulf %211, %210 : vector<8x128xf32>
    %cst_98 = arith.constant 5.000000e-01 : f32
    %213 = vector.broadcast %cst_98 : f32 to vector<8x128xf32>
    %214 = arith.addf %212, %213 : vector<8x128xf32>
    %215 = vector.extract_strided_slice %206 {offsets = [0, 128], sizes = [8, 128], strides = [1, 1]} : vector<8x512xf32> to vector<8x128xf32>
    %cst_99 = arith.constant 5.000000e-01 : f32
    %216 = vector.broadcast %cst_99 : f32 to vector<8x128xf32>
    %217 = arith.mulf %216, %215 : vector<8x128xf32>
    %218 = math.tanh %217 : vector<8x128xf32>
    %cst_100 = arith.constant 5.000000e-01 : f32
    %219 = vector.broadcast %cst_100 : f32 to vector<8x128xf32>
    %220 = arith.mulf %219, %218 : vector<8x128xf32>
    %cst_101 = arith.constant 5.000000e-01 : f32
    %221 = vector.broadcast %cst_101 : f32 to vector<8x128xf32>
    %222 = arith.addf %220, %221 : vector<8x128xf32>
    %223 = vector.extract_strided_slice %206 {offsets = [0, 256], sizes = [8, 128], strides = [1, 1]} : vector<8x512xf32> to vector<8x128xf32>
    %224 = math.tanh %223 : vector<8x128xf32>
    %225 = vector.extract_strided_slice %206 {offsets = [0, 384], sizes = [8, 128], strides = [1, 1]} : vector<8x512xf32> to vector<8x128xf32>
    %cst_102 = arith.constant 5.000000e-01 : f32
    %226 = vector.broadcast %cst_102 : f32 to vector<8x128xf32>
    %227 = arith.mulf %226, %225 : vector<8x128xf32>
    %228 = math.tanh %227 : vector<8x128xf32>
    %cst_103 = arith.constant 5.000000e-01 : f32
    %229 = vector.broadcast %cst_103 : f32 to vector<8x128xf32>
    %230 = arith.mulf %229, %228 : vector<8x128xf32>
    %cst_104 = arith.constant 5.000000e-01 : f32
    %231 = vector.broadcast %cst_104 : f32 to vector<8x128xf32>
    %232 = arith.addf %230, %231 : vector<8x128xf32>
    %233 = arith.mulf %214, %196 : vector<8x128xf32>
    %234 = arith.mulf %222, %224 : vector<8x128xf32>
    %235 = arith.addf %233, %234 : vector<8x128xf32>
    %236 = math.tanh %235 : vector<8x128xf32>
    %237 = arith.mulf %232, %236 : vector<8x128xf32>
    %c5_105 = arith.constant 5 : index
    %c0_106 = arith.constant 0 : index
    %c0_107 = arith.constant 0 : index
    %238 = vector.load %arg12[%c5_105, %c0_106, %c0_107] : memref<8x8x128xf32, #tpu.memory_space<vmem>>, vector<1x8x128xf32>
    %239 = vector.shape_cast %238 : vector<1x8x128xf32> to vector<8x128xf32>
    %240 = vector.shape_cast %237 : vector<8x128xf32> to vector<1x8x128xf32>
    tpu.vector_store %arg12[%c5_105, %c0_106, %c0_107], %240 {strides = array<i32>} : memref<8x8x128xf32, #tpu.memory_space<vmem>>, vector<1x8x128xf32>,
    %c6 = arith.constant 6 : index
    %c0_108 = arith.constant 0 : index
    %c0_109 = arith.constant 0 : index
    %241 = vector.load %arg2[%c6, %c0_108, %c0_109] : memref<8x8x512xf32, #tpu.memory_space<vmem>>, vector<1x8x512xf32>
    %242 = vector.shape_cast %241 : vector<1x8x512xf32> to vector<8x512xf32>
    %c0_110 = arith.constant 0 : index
    %c0_111 = arith.constant 0 : index
    %243 = vector.load %arg3[%c0_110, %c0_111] : memref<128x512xf32, #tpu.memory_space<vmem>>, vector<128x512xf32>
    %cst_112 = arith.constant dense<0.000000e+00> : vector<8x512xf32>
    %244 = tpu.matmul %237, %243, %cst_112 {dimension_numbers = #tpu.dot_dimension_numbers<[1], [0], [0], [1], [0, 0, 1, 1], [], []>} : vector<8x128xf32>, vector<128x512xf32>, vector<8x512xf32> -> vector<8x512xf32>
    %245 = arith.addf %242, %244 : vector<8x512xf32>
    %246 = vector.extract_strided_slice %245 {offsets = [0, 0], sizes = [8, 128], strides = [1, 1]} : vector<8x512xf32> to vector<8x128xf32>
    %cst_113 = arith.constant 5.000000e-01 : f32
    %247 = vector.broadcast %cst_113 : f32 to vector<8x128xf32>
    %248 = arith.mulf %247, %246 : vector<8x128xf32>
    %249 = math.tanh %248 : vector<8x128xf32>
    %cst_114 = arith.constant 5.000000e-01 : f32
    %250 = vector.broadcast %cst_114 : f32 to vector<8x128xf32>
    %251 = arith.mulf %250, %249 : vector<8x128xf32>
    %cst_115 = arith.constant 5.000000e-01 : f32
    %252 = vector.broadcast %cst_115 : f32 to vector<8x128xf32>
    %253 = arith.addf %251, %252 : vector<8x128xf32>
    %254 = vector.extract_strided_slice %245 {offsets = [0, 128], sizes = [8, 128], strides = [1, 1]} : vector<8x512xf32> to vector<8x128xf32>
    %cst_116 = arith.constant 5.000000e-01 : f32
    %255 = vector.broadcast %cst_116 : f32 to vector<8x128xf32>
    %256 = arith.mulf %255, %254 : vector<8x128xf32>
    %257 = math.tanh %256 : vector<8x128xf32>
    %cst_117 = arith.constant 5.000000e-01 : f32
    %258 = vector.broadcast %cst_117 : f32 to vector<8x128xf32>
    %259 = arith.mulf %258, %257 : vector<8x128xf32>
    %cst_118 = arith.constant 5.000000e-01 : f32
    %260 = vector.broadcast %cst_118 : f32 to vector<8x128xf32>
    %261 = arith.addf %259, %260 : vector<8x128xf32>
    %262 = vector.extract_strided_slice %245 {offsets = [0, 256], sizes = [8, 128], strides = [1, 1]} : vector<8x512xf32> to vector<8x128xf32>
    %263 = math.tanh %262 : vector<8x128xf32>
    %264 = vector.extract_strided_slice %245 {offsets = [0, 384], sizes = [8, 128], strides = [1, 1]} : vector<8x512xf32> to vector<8x128xf32>
    %cst_119 = arith.constant 5.000000e-01 : f32
    %265 = vector.broadcast %cst_119 : f32 to vector<8x128xf32>
    %266 = arith.mulf %265, %264 : vector<8x128xf32>
    %267 = math.tanh %266 : vector<8x128xf32>
    %cst_120 = arith.constant 5.000000e-01 : f32
    %268 = vector.broadcast %cst_120 : f32 to vector<8x128xf32>
    %269 = arith.mulf %268, %267 : vector<8x128xf32>
    %cst_121 = arith.constant 5.000000e-01 : f32
    %270 = vector.broadcast %cst_121 : f32 to vector<8x128xf32>
    %271 = arith.addf %269, %270 : vector<8x128xf32>
    %272 = arith.mulf %253, %235 : vector<8x128xf32>
    %273 = arith.mulf %261, %263 : vector<8x128xf32>
    %274 = arith.addf %272, %273 : vector<8x128xf32>
    %275 = math.tanh %274 : vector<8x128xf32>
    %276 = arith.mulf %271, %275 : vector<8x128xf32>
    %c6_122 = arith.constant 6 : index
    %c0_123 = arith.constant 0 : index
    %c0_124 = arith.constant 0 : index
    %277 = vector.load %arg12[%c6_122, %c0_123, %c0_124] : memref<8x8x128xf32, #tpu.memory_space<vmem>>, vector<1x8x128xf32>
    %278 = vector.shape_cast %277 : vector<1x8x128xf32> to vector<8x128xf32>
    %279 = vector.shape_cast %276 : vector<8x128xf32> to vector<1x8x128xf32>
    tpu.vector_store %arg12[%c6_122, %c0_123, %c0_124], %279 {strides = array<i32>} : memref<8x8x128xf32, #tpu.memory_space<vmem>>, vector<1x8x128xf32>,
    %c7 = arith.constant 7 : index
    %c0_125 = arith.constant 0 : index
    %c0_126 = arith.constant 0 : index
    %280 = vector.load %arg2[%c7, %c0_125, %c0_126] : memref<8x8x512xf32, #tpu.memory_space<vmem>>, vector<1x8x512xf32>
    %281 = vector.shape_cast %280 : vector<1x8x512xf32> to vector<8x512xf32>
    %c0_127 = arith.constant 0 : index
    %c0_128 = arith.constant 0 : index
    %282 = vector.load %arg3[%c0_127, %c0_128] : memref<128x512xf32, #tpu.memory_space<vmem>>, vector<128x512xf32>
    %cst_129 = arith.constant dense<0.000000e+00> : vector<8x512xf32>
    %283 = tpu.matmul %276, %282, %cst_129 {dimension_numbers = #tpu.dot_dimension_numbers<[1], [0], [0], [1], [0, 0, 1, 1], [], []>} : vector<8x128xf32>, vector<128x512xf32>, vector<8x512xf32> -> vector<8x512xf32>
    %284 = arith.addf %281, %283 : vector<8x512xf32>
    %285 = vector.extract_strided_slice %284 {offsets = [0, 0], sizes = [8, 128], strides = [1, 1]} : vector<8x512xf32> to vector<8x128xf32>
    %cst_130 = arith.constant 5.000000e-01 : f32
    %286 = vector.broadcast %cst_130 : f32 to vector<8x128xf32>
    %287 = arith.mulf %286, %285 : vector<8x128xf32>
    %288 = math.tanh %287 : vector<8x128xf32>
    %cst_131 = arith.constant 5.000000e-01 : f32
    %289 = vector.broadcast %cst_131 : f32 to vector<8x128xf32>
    %290 = arith.mulf %289, %288 : vector<8x128xf32>
    %cst_132 = arith.constant 5.000000e-01 : f32
    %291 = vector.broadcast %cst_132 : f32 to vector<8x128xf32>
    %292 = arith.addf %290, %291 : vector<8x128xf32>
    %293 = vector.extract_strided_slice %284 {offsets = [0, 128], sizes = [8, 128], strides = [1, 1]} : vector<8x512xf32> to vector<8x128xf32>
    %cst_133 = arith.constant 5.000000e-01 : f32
    %294 = vector.broadcast %cst_133 : f32 to vector<8x128xf32>
    %295 = arith.mulf %294, %293 : vector<8x128xf32>
    %296 = math.tanh %295 : vector<8x128xf32>
    %cst_134 = arith.constant 5.000000e-01 : f32
    %297 = vector.broadcast %cst_134 : f32 to vector<8x128xf32>
    %298 = arith.mulf %297, %296 : vector<8x128xf32>
    %cst_135 = arith.constant 5.000000e-01 : f32
    %299 = vector.broadcast %cst_135 : f32 to vector<8x128xf32>
    %300 = arith.addf %298, %299 : vector<8x128xf32>
    %301 = vector.extract_strided_slice %284 {offsets = [0, 256], sizes = [8, 128], strides = [1, 1]} : vector<8x512xf32> to vector<8x128xf32>
    %302 = math.tanh %301 : vector<8x128xf32>
    %303 = vector.extract_strided_slice %284 {offsets = [0, 384], sizes = [8, 128], strides = [1, 1]} : vector<8x512xf32> to vector<8x128xf32>
    %cst_136 = arith.constant 5.000000e-01 : f32
    %304 = vector.broadcast %cst_136 : f32 to vector<8x128xf32>
    %305 = arith.mulf %304, %303 : vector<8x128xf32>
    %306 = math.tanh %305 : vector<8x128xf32>
    %cst_137 = arith.constant 5.000000e-01 : f32
    %307 = vector.broadcast %cst_137 : f32 to vector<8x128xf32>
    %308 = arith.mulf %307, %306 : vector<8x128xf32>
    %cst_138 = arith.constant 5.000000e-01 : f32
    %309 = vector.broadcast %cst_138 : f32 to vector<8x128xf32>
    %310 = arith.addf %308, %309 : vector<8x128xf32>
    %311 = arith.mulf %292, %274 : vector<8x128xf32>
    %312 = arith.mulf %300, %302 : vector<8x128xf32>
    %313 = arith.addf %311, %312 : vector<8x128xf32>
    %314 = math.tanh %313 : vector<8x128xf32>
    %315 = arith.mulf %310, %314 : vector<8x128xf32>
    %c7_139 = arith.constant 7 : index
    %c0_140 = arith.constant 0 : index
    %c0_141 = arith.constant 0 : index
    %316 = vector.load %arg12[%c7_139, %c0_140, %c0_141] : memref<8x8x128xf32, #tpu.memory_space<vmem>>, vector<1x8x128xf32>
    %317 = vector.shape_cast %316 : vector<1x8x128xf32> to vector<8x128xf32>
    %318 = vector.shape_cast %315 : vector<8x128xf32> to vector<1x8x128xf32>
    tpu.vector_store %arg12[%c7_139, %c0_140, %c0_141], %318 {strides = array<i32>} : memref<8x8x128xf32, #tpu.memory_space<vmem>>, vector<1x8x128xf32>,
    %c0_142 = arith.constant 0 : index
    %c0_143 = arith.constant 0 : index
    %c0_144 = arith.constant 0 : index
    %319 = vector.load %arg9[%c0_142, %c0_143, %c0_144] : memref<2x8x128xf32, #tpu.memory_space<vmem>>, vector<1x8x128xf32>
    %320 = vector.shape_cast %319 : vector<1x8x128xf32> to vector<8x128xf32>
    %321 = vector.shape_cast %315 : vector<8x128xf32> to vector<1x8x128xf32>
    tpu.vector_store %arg9[%c0_142, %c0_143, %c0_144], %321 {strides = array<i32>} : memref<2x8x128xf32, #tpu.memory_space<vmem>>, vector<1x8x128xf32>,
    %c0_145 = arith.constant 0 : index
    %c0_146 = arith.constant 0 : index
    %c0_147 = arith.constant 0 : index
    %322 = vector.load %arg10[%c0_145, %c0_146, %c0_147] : memref<2x8x128xf32, #tpu.memory_space<vmem>>, vector<1x8x128xf32>
    %323 = vector.shape_cast %322 : vector<1x8x128xf32> to vector<8x128xf32>
    %324 = vector.shape_cast %313 : vector<8x128xf32> to vector<1x8x128xf32>
    tpu.vector_store %arg10[%c0_145, %c0_146, %c0_147], %324 {strides = array<i32>} : memref<2x8x128xf32, #tpu.memory_space<vmem>>, vector<1x8x128xf32>,
    %c0_148 = arith.constant 0 : index
    %c0_149 = arith.constant 0 : index
    %c0_150 = arith.constant 0 : index
    %325 = vector.load %arg12[%c0_148, %c0_149, %c0_150] : memref<8x8x128xf32, #tpu.memory_space<vmem>>, vector<8x8x128xf32>
    %326 = vector.shape_cast %325 : vector<8x8x128xf32> to vector<64x128xf32>
    %c0_151 = arith.constant 0 : index
    %c0_152 = arith.constant 0 : index
    %327 = vector.load %arg5[%c0_151, %c0_152] : memref<128x512xf32, #tpu.memory_space<vmem>>, vector<128x512xf32>
    %cst_153 = arith.constant dense<0.000000e+00> : vector<64x512xf32>
    %328 = tpu.matmul %326, %327, %cst_153 {dimension_numbers = #tpu.dot_dimension_numbers<[1], [0], [0], [1], [0, 0, 1, 1], [], []>} : vector<64x128xf32>, vector<128x512xf32>, vector<64x512xf32> -> vector<64x512xf32>
    %c0_154 = arith.constant 0 : index
    %c0_155 = arith.constant 0 : index
    %329 = vector.load %arg6[%c0_154, %c0_155] : memref<1x512xf32, #tpu.memory_space<vmem>>, vector<1x512xf32>
    %330 = vector.broadcast %329 : vector<1x512xf32> to vector<64x512xf32>
    %331 = arith.addf %328, %330 : vector<64x512xf32>
    %332 = vector.shape_cast %331 : vector<64x512xf32> to vector<8x8x512xf32>
    %c0_156 = arith.constant 0 : index
    %c0_157 = arith.constant 0 : index
    %c0_158 = arith.constant 0 : index
    %333 = vector.load %arg11[%c0_156, %c0_157, %c0_158] : memref<8x8x512xf32, #tpu.memory_space<vmem>>, vector<8x8x512xf32>
    tpu.vector_store %arg11[%c0_156, %c0_157, %c0_158], %332 {strides = array<i32>} : memref<8x8x512xf32, #tpu.memory_space<vmem>>, vector<8x8x512xf32>,
    %c1_159 = arith.constant 1 : index
    %c0_160 = arith.constant 0 : index
    %c0_161 = arith.constant 0 : index
    %334 = vector.load %arg9[%c1_159, %c0_160, %c0_161] : memref<2x8x128xf32, #tpu.memory_space<vmem>>, vector<1x8x128xf32>
    %335 = vector.shape_cast %334 : vector<1x8x128xf32> to vector<8x128xf32>
    %c1_162 = arith.constant 1 : index
    %c0_163 = arith.constant 0 : index
    %c0_164 = arith.constant 0 : index
    %336 = vector.load %arg10[%c1_162, %c0_163, %c0_164] : memref<2x8x128xf32, #tpu.memory_space<vmem>>, vector<1x8x128xf32>
    %337 = vector.shape_cast %336 : vector<1x8x128xf32> to vector<8x128xf32>
    %c0_165 = arith.constant 0 : index
    %c0_166 = arith.constant 0 : index
    %c0_167 = arith.constant 0 : index
    %338 = vector.load %arg11[%c0_165, %c0_166, %c0_167] : memref<8x8x512xf32, #tpu.memory_space<vmem>>, vector<1x8x512xf32>
    %339 = vector.shape_cast %338 : vector<1x8x512xf32> to vector<8x512xf32>
    %c0_168 = arith.constant 0 : index
    %c0_169 = arith.constant 0 : index
    %340 = vector.load %arg4[%c0_168, %c0_169] : memref<128x512xf32, #tpu.memory_space<vmem>>, vector<128x512xf32>
    %cst_170 = arith.constant dense<0.000000e+00> : vector<8x512xf32>
    %341 = tpu.matmul %335, %340, %cst_170 {dimension_numbers = #tpu.dot_dimension_numbers<[1], [0], [0], [1], [0, 0, 1, 1], [], []>} : vector<8x128xf32>, vector<128x512xf32>, vector<8x512xf32> -> vector<8x512xf32>
    %342 = arith.addf %339, %341 : vector<8x512xf32>
    %343 = vector.extract_strided_slice %342 {offsets = [0, 0], sizes = [8, 128], strides = [1, 1]} : vector<8x512xf32> to vector<8x128xf32>
    %cst_171 = arith.constant 5.000000e-01 : f32
    %344 = vector.broadcast %cst_171 : f32 to vector<8x128xf32>
    %345 = arith.mulf %344, %343 : vector<8x128xf32>
    %346 = math.tanh %345 : vector<8x128xf32>
    %cst_172 = arith.constant 5.000000e-01 : f32
    %347 = vector.broadcast %cst_172 : f32 to vector<8x128xf32>
    %348 = arith.mulf %347, %346 : vector<8x128xf32>
    %cst_173 = arith.constant 5.000000e-01 : f32
    %349 = vector.broadcast %cst_173 : f32 to vector<8x128xf32>
    %350 = arith.addf %348, %349 : vector<8x128xf32>
    %351 = vector.extract_strided_slice %342 {offsets = [0, 128], sizes = [8, 128], strides = [1, 1]} : vector<8x512xf32> to vector<8x128xf32>
    %cst_174 = arith.constant 5.000000e-01 : f32
    %352 = vector.broadcast %cst_174 : f32 to vector<8x128xf32>
    %353 = arith.mulf %352, %351 : vector<8x128xf32>
    %354 = math.tanh %353 : vector<8x128xf32>
    %cst_175 = arith.constant 5.000000e-01 : f32
    %355 = vector.broadcast %cst_175 : f32 to vector<8x128xf32>
    %356 = arith.mulf %355, %354 : vector<8x128xf32>
    %cst_176 = arith.constant 5.000000e-01 : f32
    %357 = vector.broadcast %cst_176 : f32 to vector<8x128xf32>
    %358 = arith.addf %356, %357 : vector<8x128xf32>
    %359 = vector.extract_strided_slice %342 {offsets = [0, 256], sizes = [8, 128], strides = [1, 1]} : vector<8x512xf32> to vector<8x128xf32>
    %360 = math.tanh %359 : vector<8x128xf32>
    %361 = vector.extract_strided_slice %342 {offsets = [0, 384], sizes = [8, 128], strides = [1, 1]} : vector<8x512xf32> to vector<8x128xf32>
    %cst_177 = arith.constant 5.000000e-01 : f32
    %362 = vector.broadcast %cst_177 : f32 to vector<8x128xf32>
    %363 = arith.mulf %362, %361 : vector<8x128xf32>
    %364 = math.tanh %363 : vector<8x128xf32>
    %cst_178 = arith.constant 5.000000e-01 : f32
    %365 = vector.broadcast %cst_178 : f32 to vector<8x128xf32>
    %366 = arith.mulf %365, %364 : vector<8x128xf32>
    %cst_179 = arith.constant 5.000000e-01 : f32
    %367 = vector.broadcast %cst_179 : f32 to vector<8x128xf32>
    %368 = arith.addf %366, %367 : vector<8x128xf32>
    %369 = arith.mulf %350, %337 : vector<8x128xf32>
    %370 = arith.mulf %358, %360 : vector<8x128xf32>
    %371 = arith.addf %369, %370 : vector<8x128xf32>
    %372 = math.tanh %371 : vector<8x128xf32>
    %373 = arith.mulf %368, %372 : vector<8x128xf32>
    %c0_180 = arith.constant 0 : index
    %c0_181 = arith.constant 0 : index
    %c0_182 = arith.constant 0 : index
    %374 = vector.load %arg7[%c0_180, %c0_181, %c0_182] : memref<8x8x128xf32, #tpu.memory_space<vmem>>, vector<1x8x128xf32>
    %375 = vector.shape_cast %374 : vector<1x8x128xf32> to vector<8x128xf32>
    %376 = vector.shape_cast %373 : vector<8x128xf32> to vector<1x8x128xf32>
    tpu.vector_store %arg7[%c0_180, %c0_181, %c0_182], %376 {strides = array<i32>} : memref<8x8x128xf32, #tpu.memory_space<vmem>>, vector<1x8x128xf32>,
    %c1_183 = arith.constant 1 : index
    %c0_184 = arith.constant 0 : index
    %c0_185 = arith.constant 0 : index
    %377 = vector.load %arg11[%c1_183, %c0_184, %c0_185] : memref<8x8x512xf32, #tpu.memory_space<vmem>>, vector<1x8x512xf32>
    %378 = vector.shape_cast %377 : vector<1x8x512xf32> to vector<8x512xf32>
    %c0_186 = arith.constant 0 : index
    %c0_187 = arith.constant 0 : index
    %379 = vector.load %arg4[%c0_186, %c0_187] : memref<128x512xf32, #tpu.memory_space<vmem>>, vector<128x512xf32>
    %cst_188 = arith.constant dense<0.000000e+00> : vector<8x512xf32>
    %380 = tpu.matmul %373, %379, %cst_188 {dimension_numbers = #tpu.dot_dimension_numbers<[1], [0], [0], [1], [0, 0, 1, 1], [], []>} : vector<8x128xf32>, vector<128x512xf32>, vector<8x512xf32> -> vector<8x512xf32>
    %381 = arith.addf %378, %380 : vector<8x512xf32>
    %382 = vector.extract_strided_slice %381 {offsets = [0, 0], sizes = [8, 128], strides = [1, 1]} : vector<8x512xf32> to vector<8x128xf32>
    %cst_189 = arith.constant 5.000000e-01 : f32
    %383 = vector.broadcast %cst_189 : f32 to vector<8x128xf32>
    %384 = arith.mulf %383, %382 : vector<8x128xf32>
    %385 = math.tanh %384 : vector<8x128xf32>
    %cst_190 = arith.constant 5.000000e-01 : f32
    %386 = vector.broadcast %cst_190 : f32 to vector<8x128xf32>
    %387 = arith.mulf %386, %385 : vector<8x128xf32>
    %cst_191 = arith.constant 5.000000e-01 : f32
    %388 = vector.broadcast %cst_191 : f32 to vector<8x128xf32>
    %389 = arith.addf %387, %388 : vector<8x128xf32>
    %390 = vector.extract_strided_slice %381 {offsets = [0, 128], sizes = [8, 128], strides = [1, 1]} : vector<8x512xf32> to vector<8x128xf32>
    %cst_192 = arith.constant 5.000000e-01 : f32
    %391 = vector.broadcast %cst_192 : f32 to vector<8x128xf32>
    %392 = arith.mulf %391, %390 : vector<8x128xf32>
    %393 = math.tanh %392 : vector<8x128xf32>
    %cst_193 = arith.constant 5.000000e-01 : f32
    %394 = vector.broadcast %cst_193 : f32 to vector<8x128xf32>
    %395 = arith.mulf %394, %393 : vector<8x128xf32>
    %cst_194 = arith.constant 5.000000e-01 : f32
    %396 = vector.broadcast %cst_194 : f32 to vector<8x128xf32>
    %397 = arith.addf %395, %396 : vector<8x128xf32>
    %398 = vector.extract_strided_slice %381 {offsets = [0, 256], sizes = [8, 128], strides = [1, 1]} : vector<8x512xf32> to vector<8x128xf32>
    %399 = math.tanh %398 : vector<8x128xf32>
    %400 = vector.extract_strided_slice %381 {offsets = [0, 384], sizes = [8, 128], strides = [1, 1]} : vector<8x512xf32> to vector<8x128xf32>
    %cst_195 = arith.constant 5.000000e-01 : f32
    %401 = vector.broadcast %cst_195 : f32 to vector<8x128xf32>
    %402 = arith.mulf %401, %400 : vector<8x128xf32>
    %403 = math.tanh %402 : vector<8x128xf32>
    %cst_196 = arith.constant 5.000000e-01 : f32
    %404 = vector.broadcast %cst_196 : f32 to vector<8x128xf32>
    %405 = arith.mulf %404, %403 : vector<8x128xf32>
    %cst_197 = arith.constant 5.000000e-01 : f32
    %406 = vector.broadcast %cst_197 : f32 to vector<8x128xf32>
    %407 = arith.addf %405, %406 : vector<8x128xf32>
    %408 = arith.mulf %389, %371 : vector<8x128xf32>
    %409 = arith.mulf %397, %399 : vector<8x128xf32>
    %410 = arith.addf %408, %409 : vector<8x128xf32>
    %411 = math.tanh %410 : vector<8x128xf32>
    %412 = arith.mulf %407, %411 : vector<8x128xf32>
    %c1_198 = arith.constant 1 : index
    %c0_199 = arith.constant 0 : index
    %c0_200 = arith.constant 0 : index
    %413 = vector.load %arg7[%c1_198, %c0_199, %c0_200] : memref<8x8x128xf32, #tpu.memory_space<vmem>>, vector<1x8x128xf32>
    %414 = vector.shape_cast %413 : vector<1x8x128xf32> to vector<8x128xf32>
    %415 = vector.shape_cast %412 : vector<8x128xf32> to vector<1x8x128xf32>
    tpu.vector_store %arg7[%c1_198, %c0_199, %c0_200], %415 {strides = array<i32>} : memref<8x8x128xf32, #tpu.memory_space<vmem>>, vector<1x8x128xf32>,
    %c2_201 = arith.constant 2 : index
    %c0_202 = arith.constant 0 : index
    %c0_203 = arith.constant 0 : index
    %416 = vector.load %arg11[%c2_201, %c0_202, %c0_203] : memref<8x8x512xf32, #tpu.memory_space<vmem>>, vector<1x8x512xf32>
    %417 = vector.shape_cast %416 : vector<1x8x512xf32> to vector<8x512xf32>
    %c0_204 = arith.constant 0 : index
    %c0_205 = arith.constant 0 : index
    %418 = vector.load %arg4[%c0_204, %c0_205] : memref<128x512xf32, #tpu.memory_space<vmem>>, vector<128x512xf32>
    %cst_206 = arith.constant dense<0.000000e+00> : vector<8x512xf32>
    %419 = tpu.matmul %412, %418, %cst_206 {dimension_numbers = #tpu.dot_dimension_numbers<[1], [0], [0], [1], [0, 0, 1, 1], [], []>} : vector<8x128xf32>, vector<128x512xf32>, vector<8x512xf32> -> vector<8x512xf32>
    %420 = arith.addf %417, %419 : vector<8x512xf32>
    %421 = vector.extract_strided_slice %420 {offsets = [0, 0], sizes = [8, 128], strides = [1, 1]} : vector<8x512xf32> to vector<8x128xf32>
    %cst_207 = arith.constant 5.000000e-01 : f32
    %422 = vector.broadcast %cst_207 : f32 to vector<8x128xf32>
    %423 = arith.mulf %422, %421 : vector<8x128xf32>
    %424 = math.tanh %423 : vector<8x128xf32>
    %cst_208 = arith.constant 5.000000e-01 : f32
    %425 = vector.broadcast %cst_208 : f32 to vector<8x128xf32>
    %426 = arith.mulf %425, %424 : vector<8x128xf32>
    %cst_209 = arith.constant 5.000000e-01 : f32
    %427 = vector.broadcast %cst_209 : f32 to vector<8x128xf32>
    %428 = arith.addf %426, %427 : vector<8x128xf32>
    %429 = vector.extract_strided_slice %420 {offsets = [0, 128], sizes = [8, 128], strides = [1, 1]} : vector<8x512xf32> to vector<8x128xf32>
    %cst_210 = arith.constant 5.000000e-01 : f32
    %430 = vector.broadcast %cst_210 : f32 to vector<8x128xf32>
    %431 = arith.mulf %430, %429 : vector<8x128xf32>
    %432 = math.tanh %431 : vector<8x128xf32>
    %cst_211 = arith.constant 5.000000e-01 : f32
    %433 = vector.broadcast %cst_211 : f32 to vector<8x128xf32>
    %434 = arith.mulf %433, %432 : vector<8x128xf32>
    %cst_212 = arith.constant 5.000000e-01 : f32
    %435 = vector.broadcast %cst_212 : f32 to vector<8x128xf32>
    %436 = arith.addf %434, %435 : vector<8x128xf32>
    %437 = vector.extract_strided_slice %420 {offsets = [0, 256], sizes = [8, 128], strides = [1, 1]} : vector<8x512xf32> to vector<8x128xf32>
    %438 = math.tanh %437 : vector<8x128xf32>
    %439 = vector.extract_strided_slice %420 {offsets = [0, 384], sizes = [8, 128], strides = [1, 1]} : vector<8x512xf32> to vector<8x128xf32>
    %cst_213 = arith.constant 5.000000e-01 : f32
    %440 = vector.broadcast %cst_213 : f32 to vector<8x128xf32>
    %441 = arith.mulf %440, %439 : vector<8x128xf32>
    %442 = math.tanh %441 : vector<8x128xf32>
    %cst_214 = arith.constant 5.000000e-01 : f32
    %443 = vector.broadcast %cst_214 : f32 to vector<8x128xf32>
    %444 = arith.mulf %443, %442 : vector<8x128xf32>
    %cst_215 = arith.constant 5.000000e-01 : f32
    %445 = vector.broadcast %cst_215 : f32 to vector<8x128xf32>
    %446 = arith.addf %444, %445 : vector<8x128xf32>
    %447 = arith.mulf %428, %410 : vector<8x128xf32>
    %448 = arith.mulf %436, %438 : vector<8x128xf32>
    %449 = arith.addf %447, %448 : vector<8x128xf32>
    %450 = math.tanh %449 : vector<8x128xf32>
    %451 = arith.mulf %446, %450 : vector<8x128xf32>
    %c2_216 = arith.constant 2 : index
    %c0_217 = arith.constant 0 : index
    %c0_218 = arith.constant 0 : index
    %452 = vector.load %arg7[%c2_216, %c0_217, %c0_218] : memref<8x8x128xf32, #tpu.memory_space<vmem>>, vector<1x8x128xf32>
    %453 = vector.shape_cast %452 : vector<1x8x128xf32> to vector<8x128xf32>
    %454 = vector.shape_cast %451 : vector<8x128xf32> to vector<1x8x128xf32>
    tpu.vector_store %arg7[%c2_216, %c0_217, %c0_218], %454 {strides = array<i32>} : memref<8x8x128xf32, #tpu.memory_space<vmem>>, vector<1x8x128xf32>,
    %c3_219 = arith.constant 3 : index
    %c0_220 = arith.constant 0 : index
    %c0_221 = arith.constant 0 : index
    %455 = vector.load %arg11[%c3_219, %c0_220, %c0_221] : memref<8x8x512xf32, #tpu.memory_space<vmem>>, vector<1x8x512xf32>
    %456 = vector.shape_cast %455 : vector<1x8x512xf32> to vector<8x512xf32>
    %c0_222 = arith.constant 0 : index
    %c0_223 = arith.constant 0 : index
    %457 = vector.load %arg4[%c0_222, %c0_223] : memref<128x512xf32, #tpu.memory_space<vmem>>, vector<128x512xf32>
    %cst_224 = arith.constant dense<0.000000e+00> : vector<8x512xf32>
    %458 = tpu.matmul %451, %457, %cst_224 {dimension_numbers = #tpu.dot_dimension_numbers<[1], [0], [0], [1], [0, 0, 1, 1], [], []>} : vector<8x128xf32>, vector<128x512xf32>, vector<8x512xf32> -> vector<8x512xf32>
    %459 = arith.addf %456, %458 : vector<8x512xf32>
    %460 = vector.extract_strided_slice %459 {offsets = [0, 0], sizes = [8, 128], strides = [1, 1]} : vector<8x512xf32> to vector<8x128xf32>
    %cst_225 = arith.constant 5.000000e-01 : f32
    %461 = vector.broadcast %cst_225 : f32 to vector<8x128xf32>
    %462 = arith.mulf %461, %460 : vector<8x128xf32>
    %463 = math.tanh %462 : vector<8x128xf32>
    %cst_226 = arith.constant 5.000000e-01 : f32
    %464 = vector.broadcast %cst_226 : f32 to vector<8x128xf32>
    %465 = arith.mulf %464, %463 : vector<8x128xf32>
    %cst_227 = arith.constant 5.000000e-01 : f32
    %466 = vector.broadcast %cst_227 : f32 to vector<8x128xf32>
    %467 = arith.addf %465, %466 : vector<8x128xf32>
    %468 = vector.extract_strided_slice %459 {offsets = [0, 128], sizes = [8, 128], strides = [1, 1]} : vector<8x512xf32> to vector<8x128xf32>
    %cst_228 = arith.constant 5.000000e-01 : f32
    %469 = vector.broadcast %cst_228 : f32 to vector<8x128xf32>
    %470 = arith.mulf %469, %468 : vector<8x128xf32>
    %471 = math.tanh %470 : vector<8x128xf32>
    %cst_229 = arith.constant 5.000000e-01 : f32
    %472 = vector.broadcast %cst_229 : f32 to vector<8x128xf32>
    %473 = arith.mulf %472, %471 : vector<8x128xf32>
    %cst_230 = arith.constant 5.000000e-01 : f32
    %474 = vector.broadcast %cst_230 : f32 to vector<8x128xf32>
    %475 = arith.addf %473, %474 : vector<8x128xf32>
    %476 = vector.extract_strided_slice %459 {offsets = [0, 256], sizes = [8, 128], strides = [1, 1]} : vector<8x512xf32> to vector<8x128xf32>
    %477 = math.tanh %476 : vector<8x128xf32>
    %478 = vector.extract_strided_slice %459 {offsets = [0, 384], sizes = [8, 128], strides = [1, 1]} : vector<8x512xf32> to vector<8x128xf32>
    %cst_231 = arith.constant 5.000000e-01 : f32
    %479 = vector.broadcast %cst_231 : f32 to vector<8x128xf32>
    %480 = arith.mulf %479, %478 : vector<8x128xf32>
    %481 = math.tanh %480 : vector<8x128xf32>
    %cst_232 = arith.constant 5.000000e-01 : f32
    %482 = vector.broadcast %cst_232 : f32 to vector<8x128xf32>
    %483 = arith.mulf %482, %481 : vector<8x128xf32>
    %cst_233 = arith.constant 5.000000e-01 : f32
    %484 = vector.broadcast %cst_233 : f32 to vector<8x128xf32>
    %485 = arith.addf %483, %484 : vector<8x128xf32>
    %486 = arith.mulf %467, %449 : vector<8x128xf32>
    %487 = arith.mulf %475, %477 : vector<8x128xf32>
    %488 = arith.addf %486, %487 : vector<8x128xf32>
    %489 = math.tanh %488 : vector<8x128xf32>
    %490 = arith.mulf %485, %489 : vector<8x128xf32>
    %c3_234 = arith.constant 3 : index
    %c0_235 = arith.constant 0 : index
    %c0_236 = arith.constant 0 : index
    %491 = vector.load %arg7[%c3_234, %c0_235, %c0_236] : memref<8x8x128xf32, #tpu.memory_space<vmem>>, vector<1x8x128xf32>
    %492 = vector.shape_cast %491 : vector<1x8x128xf32> to vector<8x128xf32>
    %493 = vector.shape_cast %490 : vector<8x128xf32> to vector<1x8x128xf32>
    tpu.vector_store %arg7[%c3_234, %c0_235, %c0_236], %493 {strides = array<i32>} : memref<8x8x128xf32, #tpu.memory_space<vmem>>, vector<1x8x128xf32>,
    %c4_237 = arith.constant 4 : index
    %c0_238 = arith.constant 0 : index
    %c0_239 = arith.constant 0 : index
    %494 = vector.load %arg11[%c4_237, %c0_238, %c0_239] : memref<8x8x512xf32, #tpu.memory_space<vmem>>, vector<1x8x512xf32>
    %495 = vector.shape_cast %494 : vector<1x8x512xf32> to vector<8x512xf32>
    %c0_240 = arith.constant 0 : index
    %c0_241 = arith.constant 0 : index
    %496 = vector.load %arg4[%c0_240, %c0_241] : memref<128x512xf32, #tpu.memory_space<vmem>>, vector<128x512xf32>
    %cst_242 = arith.constant dense<0.000000e+00> : vector<8x512xf32>
    %497 = tpu.matmul %490, %496, %cst_242 {dimension_numbers = #tpu.dot_dimension_numbers<[1], [0], [0], [1], [0, 0, 1, 1], [], []>} : vector<8x128xf32>, vector<128x512xf32>, vector<8x512xf32> -> vector<8x512xf32>
    %498 = arith.addf %495, %497 : vector<8x512xf32>
    %499 = vector.extract_strided_slice %498 {offsets = [0, 0], sizes = [8, 128], strides = [1, 1]} : vector<8x512xf32> to vector<8x128xf32>
    %cst_243 = arith.constant 5.000000e-01 : f32
    %500 = vector.broadcast %cst_243 : f32 to vector<8x128xf32>
    %501 = arith.mulf %500, %499 : vector<8x128xf32>
    %502 = math.tanh %501 : vector<8x128xf32>
    %cst_244 = arith.constant 5.000000e-01 : f32
    %503 = vector.broadcast %cst_244 : f32 to vector<8x128xf32>
    %504 = arith.mulf %503, %502 : vector<8x128xf32>
    %cst_245 = arith.constant 5.000000e-01 : f32
    %505 = vector.broadcast %cst_245 : f32 to vector<8x128xf32>
    %506 = arith.addf %504, %505 : vector<8x128xf32>
    %507 = vector.extract_strided_slice %498 {offsets = [0, 128], sizes = [8, 128], strides = [1, 1]} : vector<8x512xf32> to vector<8x128xf32>
    %cst_246 = arith.constant 5.000000e-01 : f32
    %508 = vector.broadcast %cst_246 : f32 to vector<8x128xf32>
    %509 = arith.mulf %508, %507 : vector<8x128xf32>
    %510 = math.tanh %509 : vector<8x128xf32>
    %cst_247 = arith.constant 5.000000e-01 : f32
    %511 = vector.broadcast %cst_247 : f32 to vector<8x128xf32>
    %512 = arith.mulf %511, %510 : vector<8x128xf32>
    %cst_248 = arith.constant 5.000000e-01 : f32
    %513 = vector.broadcast %cst_248 : f32 to vector<8x128xf32>
    %514 = arith.addf %512, %513 : vector<8x128xf32>
    %515 = vector.extract_strided_slice %498 {offsets = [0, 256], sizes = [8, 128], strides = [1, 1]} : vector<8x512xf32> to vector<8x128xf32>
    %516 = math.tanh %515 : vector<8x128xf32>
    %517 = vector.extract_strided_slice %498 {offsets = [0, 384], sizes = [8, 128], strides = [1, 1]} : vector<8x512xf32> to vector<8x128xf32>
    %cst_249 = arith.constant 5.000000e-01 : f32
    %518 = vector.broadcast %cst_249 : f32 to vector<8x128xf32>
    %519 = arith.mulf %518, %517 : vector<8x128xf32>
    %520 = math.tanh %519 : vector<8x128xf32>
    %cst_250 = arith.constant 5.000000e-01 : f32
    %521 = vector.broadcast %cst_250 : f32 to vector<8x128xf32>
    %522 = arith.mulf %521, %520 : vector<8x128xf32>
    %cst_251 = arith.constant 5.000000e-01 : f32
    %523 = vector.broadcast %cst_251 : f32 to vector<8x128xf32>
    %524 = arith.addf %522, %523 : vector<8x128xf32>
    %525 = arith.mulf %506, %488 : vector<8x128xf32>
    %526 = arith.mulf %514, %516 : vector<8x128xf32>
    %527 = arith.addf %525, %526 : vector<8x128xf32>
    %528 = math.tanh %527 : vector<8x128xf32>
    %529 = arith.mulf %524, %528 : vector<8x128xf32>
    %c4_252 = arith.constant 4 : index
    %c0_253 = arith.constant 0 : index
    %c0_254 = arith.constant 0 : index
    %530 = vector.load %arg7[%c4_252, %c0_253, %c0_254] : memref<8x8x128xf32, #tpu.memory_space<vmem>>, vector<1x8x128xf32>
    %531 = vector.shape_cast %530 : vector<1x8x128xf32> to vector<8x128xf32>
    %532 = vector.shape_cast %529 : vector<8x128xf32> to vector<1x8x128xf32>
    tpu.vector_store %arg7[%c4_252, %c0_253, %c0_254], %532 {strides = array<i32>} : memref<8x8x128xf32, #tpu.memory_space<vmem>>, vector<1x8x128xf32>,
    %c5_255 = arith.constant 5 : index
    %c0_256 = arith.constant 0 : index
    %c0_257 = arith.constant 0 : index
    %533 = vector.load %arg11[%c5_255, %c0_256, %c0_257] : memref<8x8x512xf32, #tpu.memory_space<vmem>>, vector<1x8x512xf32>
    %534 = vector.shape_cast %533 : vector<1x8x512xf32> to vector<8x512xf32>
    %c0_258 = arith.constant 0 : index
    %c0_259 = arith.constant 0 : index
    %535 = vector.load %arg4[%c0_258, %c0_259] : memref<128x512xf32, #tpu.memory_space<vmem>>, vector<128x512xf32>
    %cst_260 = arith.constant dense<0.000000e+00> : vector<8x512xf32>
    %536 = tpu.matmul %529, %535, %cst_260 {dimension_numbers = #tpu.dot_dimension_numbers<[1], [0], [0], [1], [0, 0, 1, 1], [], []>} : vector<8x128xf32>, vector<128x512xf32>, vector<8x512xf32> -> vector<8x512xf32>
    %537 = arith.addf %534, %536 : vector<8x512xf32>
    %538 = vector.extract_strided_slice %537 {offsets = [0, 0], sizes = [8, 128], strides = [1, 1]} : vector<8x512xf32> to vector<8x128xf32>
    %cst_261 = arith.constant 5.000000e-01 : f32
    %539 = vector.broadcast %cst_261 : f32 to vector<8x128xf32>
    %540 = arith.mulf %539, %538 : vector<8x128xf32>
    %541 = math.tanh %540 : vector<8x128xf32>
    %cst_262 = arith.constant 5.000000e-01 : f32
    %542 = vector.broadcast %cst_262 : f32 to vector<8x128xf32>
    %543 = arith.mulf %542, %541 : vector<8x128xf32>
    %cst_263 = arith.constant 5.000000e-01 : f32
    %544 = vector.broadcast %cst_263 : f32 to vector<8x128xf32>
    %545 = arith.addf %543, %544 : vector<8x128xf32>
    %546 = vector.extract_strided_slice %537 {offsets = [0, 128], sizes = [8, 128], strides = [1, 1]} : vector<8x512xf32> to vector<8x128xf32>
    %cst_264 = arith.constant 5.000000e-01 : f32
    %547 = vector.broadcast %cst_264 : f32 to vector<8x128xf32>
    %548 = arith.mulf %547, %546 : vector<8x128xf32>
    %549 = math.tanh %548 : vector<8x128xf32>
    %cst_265 = arith.constant 5.000000e-01 : f32
    %550 = vector.broadcast %cst_265 : f32 to vector<8x128xf32>
    %551 = arith.mulf %550, %549 : vector<8x128xf32>
    %cst_266 = arith.constant 5.000000e-01 : f32
    %552 = vector.broadcast %cst_266 : f32 to vector<8x128xf32>
    %553 = arith.addf %551, %552 : vector<8x128xf32>
    %554 = vector.extract_strided_slice %537 {offsets = [0, 256], sizes = [8, 128], strides = [1, 1]} : vector<8x512xf32> to vector<8x128xf32>
    %555 = math.tanh %554 : vector<8x128xf32>
    %556 = vector.extract_strided_slice %537 {offsets = [0, 384], sizes = [8, 128], strides = [1, 1]} : vector<8x512xf32> to vector<8x128xf32>
    %cst_267 = arith.constant 5.000000e-01 : f32
    %557 = vector.broadcast %cst_267 : f32 to vector<8x128xf32>
    %558 = arith.mulf %557, %556 : vector<8x128xf32>
    %559 = math.tanh %558 : vector<8x128xf32>
    %cst_268 = arith.constant 5.000000e-01 : f32
    %560 = vector.broadcast %cst_268 : f32 to vector<8x128xf32>
    %561 = arith.mulf %560, %559 : vector<8x128xf32>
    %cst_269 = arith.constant 5.000000e-01 : f32
    %562 = vector.broadcast %cst_269 : f32 to vector<8x128xf32>
    %563 = arith.addf %561, %562 : vector<8x128xf32>
    %564 = arith.mulf %545, %527 : vector<8x128xf32>
    %565 = arith.mulf %553, %555 : vector<8x128xf32>
    %566 = arith.addf %564, %565 : vector<8x128xf32>
    %567 = math.tanh %566 : vector<8x128xf32>
    %568 = arith.mulf %563, %567 : vector<8x128xf32>
    %c5_270 = arith.constant 5 : index
    %c0_271 = arith.constant 0 : index
    %c0_272 = arith.constant 0 : index
    %569 = vector.load %arg7[%c5_270, %c0_271, %c0_272] : memref<8x8x128xf32, #tpu.memory_space<vmem>>, vector<1x8x128xf32>
    %570 = vector.shape_cast %569 : vector<1x8x128xf32> to vector<8x128xf32>
    %571 = vector.shape_cast %568 : vector<8x128xf32> to vector<1x8x128xf32>
    tpu.vector_store %arg7[%c5_270, %c0_271, %c0_272], %571 {strides = array<i32>} : memref<8x8x128xf32, #tpu.memory_space<vmem>>, vector<1x8x128xf32>,
    %c6_273 = arith.constant 6 : index
    %c0_274 = arith.constant 0 : index
    %c0_275 = arith.constant 0 : index
    %572 = vector.load %arg11[%c6_273, %c0_274, %c0_275] : memref<8x8x512xf32, #tpu.memory_space<vmem>>, vector<1x8x512xf32>
    %573 = vector.shape_cast %572 : vector<1x8x512xf32> to vector<8x512xf32>
    %c0_276 = arith.constant 0 : index
    %c0_277 = arith.constant 0 : index
    %574 = vector.load %arg4[%c0_276, %c0_277] : memref<128x512xf32, #tpu.memory_space<vmem>>, vector<128x512xf32>
    %cst_278 = arith.constant dense<0.000000e+00> : vector<8x512xf32>
    %575 = tpu.matmul %568, %574, %cst_278 {dimension_numbers = #tpu.dot_dimension_numbers<[1], [0], [0], [1], [0, 0, 1, 1], [], []>} : vector<8x128xf32>, vector<128x512xf32>, vector<8x512xf32> -> vector<8x512xf32>
    %576 = arith.addf %573, %575 : vector<8x512xf32>
    %577 = vector.extract_strided_slice %576 {offsets = [0, 0], sizes = [8, 128], strides = [1, 1]} : vector<8x512xf32> to vector<8x128xf32>
    %cst_279 = arith.constant 5.000000e-01 : f32
    %578 = vector.broadcast %cst_279 : f32 to vector<8x128xf32>
    %579 = arith.mulf %578, %577 : vector<8x128xf32>
    %580 = math.tanh %579 : vector<8x128xf32>
    %cst_280 = arith.constant 5.000000e-01 : f32
    %581 = vector.broadcast %cst_280 : f32 to vector<8x128xf32>
    %582 = arith.mulf %581, %580 : vector<8x128xf32>
    %cst_281 = arith.constant 5.000000e-01 : f32
    %583 = vector.broadcast %cst_281 : f32 to vector<8x128xf32>
    %584 = arith.addf %582, %583 : vector<8x128xf32>
    %585 = vector.extract_strided_slice %576 {offsets = [0, 128], sizes = [8, 128], strides = [1, 1]} : vector<8x512xf32> to vector<8x128xf32>
    %cst_282 = arith.constant 5.000000e-01 : f32
    %586 = vector.broadcast %cst_282 : f32 to vector<8x128xf32>
    %587 = arith.mulf %586, %585 : vector<8x128xf32>
    %588 = math.tanh %587 : vector<8x128xf32>
    %cst_283 = arith.constant 5.000000e-01 : f32
    %589 = vector.broadcast %cst_283 : f32 to vector<8x128xf32>
    %590 = arith.mulf %589, %588 : vector<8x128xf32>
    %cst_284 = arith.constant 5.000000e-01 : f32
    %591 = vector.broadcast %cst_284 : f32 to vector<8x128xf32>
    %592 = arith.addf %590, %591 : vector<8x128xf32>
    %593 = vector.extract_strided_slice %576 {offsets = [0, 256], sizes = [8, 128], strides = [1, 1]} : vector<8x512xf32> to vector<8x128xf32>
    %594 = math.tanh %593 : vector<8x128xf32>
    %595 = vector.extract_strided_slice %576 {offsets = [0, 384], sizes = [8, 128], strides = [1, 1]} : vector<8x512xf32> to vector<8x128xf32>
    %cst_285 = arith.constant 5.000000e-01 : f32
    %596 = vector.broadcast %cst_285 : f32 to vector<8x128xf32>
    %597 = arith.mulf %596, %595 : vector<8x128xf32>
    %598 = math.tanh %597 : vector<8x128xf32>
    %cst_286 = arith.constant 5.000000e-01 : f32
    %599 = vector.broadcast %cst_286 : f32 to vector<8x128xf32>
    %600 = arith.mulf %599, %598 : vector<8x128xf32>
    %cst_287 = arith.constant 5.000000e-01 : f32
    %601 = vector.broadcast %cst_287 : f32 to vector<8x128xf32>
    %602 = arith.addf %600, %601 : vector<8x128xf32>
    %603 = arith.mulf %584, %566 : vector<8x128xf32>
    %604 = arith.mulf %592, %594 : vector<8x128xf32>
    %605 = arith.addf %603, %604 : vector<8x128xf32>
    %606 = math.tanh %605 : vector<8x128xf32>
    %607 = arith.mulf %602, %606 : vector<8x128xf32>
    %c6_288 = arith.constant 6 : index
    %c0_289 = arith.constant 0 : index
    %c0_290 = arith.constant 0 : index
    %608 = vector.load %arg7[%c6_288, %c0_289, %c0_290] : memref<8x8x128xf32, #tpu.memory_space<vmem>>, vector<1x8x128xf32>
    %609 = vector.shape_cast %608 : vector<1x8x128xf32> to vector<8x128xf32>
    %610 = vector.shape_cast %607 : vector<8x128xf32> to vector<1x8x128xf32>
    tpu.vector_store %arg7[%c6_288, %c0_289, %c0_290], %610 {strides = array<i32>} : memref<8x8x128xf32, #tpu.memory_space<vmem>>, vector<1x8x128xf32>,
    %c7_291 = arith.constant 7 : index
    %c0_292 = arith.constant 0 : index
    %c0_293 = arith.constant 0 : index
    %611 = vector.load %arg11[%c7_291, %c0_292, %c0_293] : memref<8x8x512xf32, #tpu.memory_space<vmem>>, vector<1x8x512xf32>
    %612 = vector.shape_cast %611 : vector<1x8x512xf32> to vector<8x512xf32>
    %c0_294 = arith.constant 0 : index
    %c0_295 = arith.constant 0 : index
    %613 = vector.load %arg4[%c0_294, %c0_295] : memref<128x512xf32, #tpu.memory_space<vmem>>, vector<128x512xf32>
    %cst_296 = arith.constant dense<0.000000e+00> : vector<8x512xf32>
    %614 = tpu.matmul %607, %613, %cst_296 {dimension_numbers = #tpu.dot_dimension_numbers<[1], [0], [0], [1], [0, 0, 1, 1], [], []>} : vector<8x128xf32>, vector<128x512xf32>, vector<8x512xf32> -> vector<8x512xf32>
    %615 = arith.addf %612, %614 : vector<8x512xf32>
    %616 = vector.extract_strided_slice %615 {offsets = [0, 0], sizes = [8, 128], strides = [1, 1]} : vector<8x512xf32> to vector<8x128xf32>
    %cst_297 = arith.constant 5.000000e-01 : f32
    %617 = vector.broadcast %cst_297 : f32 to vector<8x128xf32>
    %618 = arith.mulf %617, %616 : vector<8x128xf32>
    %619 = math.tanh %618 : vector<8x128xf32>
    %cst_298 = arith.constant 5.000000e-01 : f32
    %620 = vector.broadcast %cst_298 : f32 to vector<8x128xf32>
    %621 = arith.mulf %620, %619 : vector<8x128xf32>
    %cst_299 = arith.constant 5.000000e-01 : f32
    %622 = vector.broadcast %cst_299 : f32 to vector<8x128xf32>
    %623 = arith.addf %621, %622 : vector<8x128xf32>
    %624 = vector.extract_strided_slice %615 {offsets = [0, 128], sizes = [8, 128], strides = [1, 1]} : vector<8x512xf32> to vector<8x128xf32>
    %cst_300 = arith.constant 5.000000e-01 : f32
    %625 = vector.broadcast %cst_300 : f32 to vector<8x128xf32>
    %626 = arith.mulf %625, %624 : vector<8x128xf32>
    %627 = math.tanh %626 : vector<8x128xf32>
    %cst_301 = arith.constant 5.000000e-01 : f32
    %628 = vector.broadcast %cst_301 : f32 to vector<8x128xf32>
    %629 = arith.mulf %628, %627 : vector<8x128xf32>
    %cst_302 = arith.constant 5.000000e-01 : f32
    %630 = vector.broadcast %cst_302 : f32 to vector<8x128xf32>
    %631 = arith.addf %629, %630 : vector<8x128xf32>
    %632 = vector.extract_strided_slice %615 {offsets = [0, 256], sizes = [8, 128], strides = [1, 1]} : vector<8x512xf32> to vector<8x128xf32>
    %633 = math.tanh %632 : vector<8x128xf32>
    %634 = vector.extract_strided_slice %615 {offsets = [0, 384], sizes = [8, 128], strides = [1, 1]} : vector<8x512xf32> to vector<8x128xf32>
    %cst_303 = arith.constant 5.000000e-01 : f32
    %635 = vector.broadcast %cst_303 : f32 to vector<8x128xf32>
    %636 = arith.mulf %635, %634 : vector<8x128xf32>
    %637 = math.tanh %636 : vector<8x128xf32>
    %cst_304 = arith.constant 5.000000e-01 : f32
    %638 = vector.broadcast %cst_304 : f32 to vector<8x128xf32>
    %639 = arith.mulf %638, %637 : vector<8x128xf32>
    %cst_305 = arith.constant 5.000000e-01 : f32
    %640 = vector.broadcast %cst_305 : f32 to vector<8x128xf32>
    %641 = arith.addf %639, %640 : vector<8x128xf32>
    %642 = arith.mulf %623, %605 : vector<8x128xf32>
    %643 = arith.mulf %631, %633 : vector<8x128xf32>
    %644 = arith.addf %642, %643 : vector<8x128xf32>
    %645 = math.tanh %644 : vector<8x128xf32>
    %646 = arith.mulf %641, %645 : vector<8x128xf32>
    %c7_306 = arith.constant 7 : index
    %c0_307 = arith.constant 0 : index
    %c0_308 = arith.constant 0 : index
    %647 = vector.load %arg7[%c7_306, %c0_307, %c0_308] : memref<8x8x128xf32, #tpu.memory_space<vmem>>, vector<1x8x128xf32>
    %648 = vector.shape_cast %647 : vector<1x8x128xf32> to vector<8x128xf32>
    %649 = vector.shape_cast %646 : vector<8x128xf32> to vector<1x8x128xf32>
    tpu.vector_store %arg7[%c7_306, %c0_307, %c0_308], %649 {strides = array<i32>} : memref<8x8x128xf32, #tpu.memory_space<vmem>>, vector<1x8x128xf32>,
    %c1_309 = arith.constant 1 : index
    %c0_310 = arith.constant 0 : index
    %c0_311 = arith.constant 0 : index
    %650 = vector.load %arg9[%c1_309, %c0_310, %c0_311] : memref<2x8x128xf32, #tpu.memory_space<vmem>>, vector<1x8x128xf32>
    %651 = vector.shape_cast %650 : vector<1x8x128xf32> to vector<8x128xf32>
    %652 = vector.shape_cast %646 : vector<8x128xf32> to vector<1x8x128xf32>
    tpu.vector_store %arg9[%c1_309, %c0_310, %c0_311], %652 {strides = array<i32>} : memref<2x8x128xf32, #tpu.memory_space<vmem>>, vector<1x8x128xf32>,
    %c1_312 = arith.constant 1 : index
    %c0_313 = arith.constant 0 : index
    %c0_314 = arith.constant 0 : index
    %653 = vector.load %arg10[%c1_312, %c0_313, %c0_314] : memref<2x8x128xf32, #tpu.memory_space<vmem>>, vector<1x8x128xf32>
    %654 = vector.shape_cast %653 : vector<1x8x128xf32> to vector<8x128xf32>
    %655 = vector.shape_cast %644 : vector<8x128xf32> to vector<1x8x128xf32>
    tpu.vector_store %arg10[%c1_312, %c0_313, %c0_314], %655 {strides = array<i32>} : memref<2x8x128xf32, #tpu.memory_space<vmem>>, vector<1x8x128xf32>,
    %c0_i32_315 = arith.constant 0 : i32
    %656 = arith.cmpi eq, %arg1, %c0_i32_315 : i32
    %657 = arith.extui %656 : i1 to i32
    %c0_i32_316 = arith.constant 0 : i32
    %658 = arith.cmpi ne, %657, %c0_i32_316 : i32
    scf.if %658 {
      %c0_317 = arith.constant 0 : index
      %c0_318 = arith.constant 0 : index
      %c0_319 = arith.constant 0 : index
      %659 = vector.load %arg9[%c0_317, %c0_318, %c0_319] : memref<2x8x128xf32, #tpu.memory_space<vmem>>, vector<2x8x128xf32>
      %c0_320 = arith.constant 0 : index
      %c0_321 = arith.constant 0 : index
      %c0_322 = arith.constant 0 : index
      %660 = vector.load %arg8[%c0_320, %c0_321, %c0_322] : memref<2x8x128xf32, #tpu.memory_space<vmem>>, vector<2x8x128xf32>
      tpu.vector_store %arg8[%c0_320, %c0_321, %c0_322], %659 {strides = array<i32>} : memref<2x8x128xf32, #tpu.memory_space<vmem>>, vector<2x8x128xf32>,
    } else {
    }
    return
  }
  func.func @transform_0(%arg0: i32, %arg1: i32) -> (i32, i32, i32) {
    %c0_i32 = arith.constant 0 : i32
    %c0_i32_0 = arith.constant 0 : i32
    return %arg1, %arg0, %c0_i32 : i32, i32, i32
  }
  func.func @transform_1(%arg0: i32, %arg1: i32) -> (i32, i32) {
    %c0_i32 = arith.constant 0 : i32
    %c0_i32_0 = arith.constant 0 : i32
    %c0_i32_1 = arith.constant 0 : i32
    return %c0_i32, %c0_i32_0 : i32, i32
  }
  func.func @transform_2(%arg0: i32, %arg1: i32) -> (i32, i32) {
    %c0_i32 = arith.constant 0 : i32
    %c0_i32_0 = arith.constant 0 : i32
    %c0_i32_1 = arith.constant 0 : i32
    return %c0_i32, %c0_i32_0 : i32, i32
  }
  func.func @transform_3(%arg0: i32, %arg1: i32) -> (i32, i32) {
    %c0_i32 = arith.constant 0 : i32
    %c0_i32_0 = arith.constant 0 : i32
    %c0_i32_1 = arith.constant 0 : i32
    return %c0_i32, %c0_i32_0 : i32, i32
  }
  func.func @transform_4(%arg0: i32, %arg1: i32) -> (i32, i32) {
    %c0_i32 = arith.constant 0 : i32
    %c0_i32_0 = arith.constant 0 : i32
    %c0_i32_1 = arith.constant 0 : i32
    return %c0_i32, %c0_i32_0 : i32, i32
  }
  func.func @transform_5(%arg0: i32, %arg1: i32) -> (i32, i32, i32) {
    %c0_i32 = arith.constant 0 : i32
    %c0_i32_0 = arith.constant 0 : i32
    return %arg1, %arg0, %c0_i32 : i32, i32, i32
  }
  func.func @transform_6(%arg0: i32, %arg1: i32) -> (i32, i32, i32) {
    %c0_i32 = arith.constant 0 : i32
    %c0_i32_0 = arith.constant 0 : i32
    %c0_i32_1 = arith.constant 0 : i32
    return %c0_i32, %arg0, %c0_i32_0 : i32, i32, i32
  }
}

</mosaic_0001>

<bundles_post_ra>
// kernel: tpu_custom_call.1
= control target key start
LH: loop header
LB: loop body
LE: loop exit
PB: predicated region body
PF: predicated region fallthrough
CT: control target
= control target key end

     0   :  { %12 = vsyncpa [#allocation7], 0  ;;  %s5340_s0 = inlined_call_operand.hbm [shape: f32[8,8,512], index: 0, kind: input, shape index: {}]   ;;  %s5341_s1 = inlined_call_operand.hbm [shape: f32[128,512], index: 1, kind: input, shape index: {}]   ;;  %s5342_s2 = inlined_call_operand.hbm [shape: f32[128,512], index: 2, kind: input, shape index: {}]   ;;  %s5343_s3 = inlined_call_operand.hbm [shape: f32[128,512], index: 3, kind: input, shape index: {}]   ;;  %s5344_s4 = inlined_call_operand.hbm [shape: f32[1,512], index: 4, kind: input, shape index: {}]   ;;  %s5345_s5 = inlined_call_operand.hbm [shape: f32[8,8,128], index: 5, kind: output, shape index: {0}]   ;;  %s5346_s6 = inlined_call_operand.hbm [shape: f32[2,8,128], index: 6, kind: output, shape index: {1}]  }
   0x1   :  { %13 = vsyncpa [#allocation10], 0 }
   0x2   :  { %14 = vsyncpa [#allocation13], 0 }
   0x3   :  { %15 = vsyncpa [#allocation8], 0 }
   0x4   :  { %16 = vsyncpa [#allocation17], 0  ;;  %s34_s23 = sshll.u32 %s5341_s1, 4  ;;  %s3556_s24 = smov [#allocation9]   ;;  %s35_s23 = int_to_ptr.hbm [resolvable:$true] %s34_s23 }
   0x5   :  { %s36_s25 = sshll.u32 %s3556_s24, 4  ;;  %s60_s28 = sshll.u32 %s5343_s3, 4  ;;  %s37_s25 = int_to_ptr.vmem [resolvable:$true] %s36_s25  ;;  %s61_s28 = int_to_ptr.hbm [resolvable:$true] %s60_s28 }
   0x6   :  { %s3557_s29 = smov 512   ;;  %s3558_s30 = smov 32  }
   0x7   :  { %42 = dma.hbm_to_vmem [thread:$0]  %s35_s23, 8192, %s37_s25, [#allocation10], %s3557_s29, %s3557_s29, %s3558_s30  }
   0x8   :  { %s3559_s7 = smov [#allocation12]   ;;  %s21_s11 = sshll.u32 %s5340_s0, 4  ;;  %s22_s11 = int_to_ptr.hbm [resolvable:$true] %s21_s11 }
   0x9   :  { %s62_s8 = sshll.u32 %s3559_s7, 4  ;;  %s47_s13 = sshll.u32 %s5342_s2, 4  ;;  %s63_s8 = int_to_ptr.vmem [resolvable:$true] %s62_s8  ;;  %s48_s13 = int_to_ptr.hbm [resolvable:$true] %s47_s13 }
   0xa   :  { %68 = dma.hbm_to_vmem [thread:$0]  %s61_s28, 8192, %s63_s8, [#allocation13], %s3557_s29, %s3557_s29, %s3558_s30  }
   0xb   :  { %s3560_s14 = smov [#allocation6]   ;;  %s3561_s3 = smov [#allocation11]  }
   0xc   :  { %s23_s15 = sshll.u32 %s3560_s14, 4  ;;  %s49_s16 = sshll.u32 %s3561_s3, 4  ;;  %s24_s15 = int_to_ptr.vmem [resolvable:$true] %s23_s15  ;;  %s50_s16 = int_to_ptr.vmem [resolvable:$true] %s49_s16 }
   0xd   :  { %29 = dma.hbm_to_vmem [thread:$0]  %s22_s11, 4096, %s24_s15, [#allocation7], %s3557_s29, %s3557_s29, %s3558_s30  }
   0xe   :  { %s74_s19 = sshll.u32 %s5344_s4, 4  ;;  %s3562_s0 = smov [#allocation14]   ;;  %s75_s19 = int_to_ptr.hbm [resolvable:$true] %s74_s19 }
   0xf   :  { %55 = dma.hbm_to_vmem [thread:$0]  %s48_s13, 8192, %s50_s16, [#allocation10], %s3557_s29, %s3557_s29, %s3558_s30  }
  0x10   :  { %s76_s20 = sshll.u32 %s3562_s0, 4  ;;  %s77_s20 = int_to_ptr.vmem [resolvable:$true] %s76_s20 }
  0x11   :  { %79 = dma.hbm_to_vmem [thread:$0]  %s75_s19, 64, %s77_s20, [#allocation13]  }
  0x12   :  { %3546 = dma.done.wait [#allocation7], 4096  }
  0x13   :  { %3547 = vsyncadd [#allocation7], 4294963200 }
  0x14   :  { %3548 = dma.done.wait [#allocation10], 16384  }
  0x15   :  { %3549 = vsyncadd [#allocation10], 4294950912 }
  0x16   :  { %3550 = dma.done.wait [#allocation13], 8256  }
  0x17   :  { %3551 = vsyncadd [#allocation13], 4294959040  ;;  %v3618_v0 = vld [vmem:[#allocation9 + $0x1e0] sm:$0xff]  ;;  %v3620_v1 = vld [vmem:[#allocation9 + $0x1e8] sm:$0xff]  ;;  %v5349_v63 = vmov 0.0   ;;  %s3564_s2 = smov [#allocation15]  }
  0x18   :  { %v3622_v2 = vld [vmem:[#allocation9 + $0x1f0] sm:$0xff]  ;;  %178 = vmatpush.msra.mxu0 %v3618_v0  ;;  %198 = vmatpush.msra.mxu1 %v3620_v1  ;;  %v3626_v3 = vld [vmem:[#allocation9 + $0x1c0] sm:$0xff]  ;;  %v3628_v4 = vld [vmem:[#allocation9 + $0x1c8] sm:$0xff]  ;;  %s3171_s4 = sshll.u32 %s3564_s2, 4  ;;  %s3173_s23 = sshll.u32 %s5345_s5, 4  ;;  %s3172_s4 = int_to_ptr.vmem [resolvable:$true] %s3171_s4  ;;  %s3174_s23 = int_to_ptr.hbm [resolvable:$true] %s3173_s23 }
  0x19   :  { %v3630_v5 = vld [vmem:[#allocation9 + $0x1d0] sm:$0xff]  ;;  %218 = vmatpush.msra.mxu2 %v3622_v2  ;;  %v3633_v6 = vld [vmem:[#allocation9 + $0x1a0] sm:$0xff]  ;;  %v3635_v7 = vld [vmem:[#allocation9 + $0x1a8] sm:$0xff]  ;;  %s3565_s24 = smov [#allocation16]   ;;  %s3186_s28 = sshll.u32 %s5346_s6, 4  ;;  %s3187_s28 = int_to_ptr.hbm [resolvable:$true] %s3186_s28 }
  0x1a   :  { %179 = vmatpush.msra.mxu0 %v3626_v3  ;;  %199 = vmatpush.msra.mxu1 %v3628_v4  ;;  %v3639_v8 = vld [vmem:[#allocation9 + $0x1b0] sm:$0xff]  ;;  %v3641_v9 = vld [vmem:[#allocation9 + $0x1f8] sm:$0xff]  ;;  %v3645_v10 = vld [vmem:[#allocation9 + $0x180] sm:$0xff]  ;;  %s3184_s25 = sshll.u32 %s3565_s24, 4  ;;  %s3566_s29 = smov 128   ;;  %s3185_s25 = int_to_ptr.vmem [resolvable:$true] %s3184_s25 }
  0x1b   :  { %219 = vmatpush.msra.mxu2 %v3630_v5  ;;  %238 = vmatpush.msra.mxu3 %v3641_v9  ;;  %v3647_v11 = vld [vmem:[#allocation9 + $0x188] sm:$0xff]  ;;  %v3649_v12 = vld [vmem:[#allocation9 + $0x1d8] sm:$0xff]  ;;  %v3653_v13 = vld [vmem:[#allocation9 + $0x190] sm:$0xff]  ;;  %s3567_s30 = smov 8  }
  0x1c   :  { %180 = vmatpush.msra.mxu0 %v3633_v6  ;;  %200 = vmatpush.msra.mxu1 %v3635_v7  ;;  %v3655_v14 = vld [vmem:[#allocation9 + $0x1b8] sm:$0xff]  ;;  %v3659_v15 = vld [vmem:[#allocation9 + $0x160] sm:$0xff]  ;;  %v3661_v16 = vld [vmem:[#allocation9 + $0x168] sm:$0xff] }
  0x1d   :  { %220 = vmatpush.msra.mxu2 %v3639_v8  ;;  %239 = vmatpush.msra.mxu3 %v3649_v12  ;;  %v3665_v17 = vld [vmem:[#allocation9 + $0x170] sm:$0xff]  ;;  %v3667_v18 = vld [vmem:[#allocation9 + $0x198] sm:$0xff]  ;;  %v3671_v19 = vld [vmem:[#allocation9 + $0x140] sm:$0xff] }
  0x1e   :  { %181 = vmatpush.msra.mxu0 %v3645_v10  ;;  %201 = vmatpush.msra.mxu1 %v3647_v11  ;;  %v3673_v20 = vld [vmem:[#allocation9 + $0x148] sm:$0xff]  ;;  %v3677_v21 = vld [vmem:[#allocation9 + $0x150] sm:$0xff]  ;;  %v3679_v22 = vld [vmem:[#allocation9 + $0x178] sm:$0xff] }
  0x1f   :  { %221 = vmatpush.msra.mxu2 %v3653_v13  ;;  %240 = vmatpush.msra.mxu3 %v3655_v14  ;;  %v3683_v23 = vld [vmem:[#allocation9 + $0x120] sm:$0xff]  ;;  %v3685_v24 = vld [vmem:[#allocation9 + $0x128] sm:$0xff]  ;;  %v3689_v25 = vld [vmem:[#allocation9 + $0x130] sm:$0xff] }
  0x20   :  { %182 = vmatpush.msra.mxu0 %v3659_v15  ;;  %202 = vmatpush.msra.mxu1 %v3661_v16  ;;  %v3691_v26 = vld [vmem:[#allocation9 + $0x158] sm:$0xff]  ;;  %v3695_v27 = vld [vmem:[#allocation9 + $0x100] sm:$0xff]  ;;  %v3697_v28 = vld [vmem:[#allocation9 + $0x108] sm:$0xff] }
  0x21   :  { %222 = vmatpush.msra.mxu2 %v3665_v17  ;;  %241 = vmatpush.msra.mxu3 %v3667_v18  ;;  %v3701_v29 = vld [vmem:[#allocation9 + $0x110] sm:$0xff]  ;;  %v3703_v30 = vld [vmem:[#allocation9 + $0x138] sm:$0xff]  ;;  %v3707_v31 = vld [vmem:[#allocation9 + $0xe0] sm:$0xff] }
  0x22   :  { %183 = vmatpush.msra.mxu0 %v3671_v19  ;;  %203 = vmatpush.msra.mxu1 %v3673_v20  ;;  %v3709_v32 = vld [vmem:[#allocation9 + $0xe8] sm:$0xff]  ;;  %v3713_v33 = vld [vmem:[#allocation9 + $0xf0] sm:$0xff]  ;;  %v3715_v34 = vld [vmem:[#allocation9 + $0x118] sm:$0xff] }
  0x23   :  { %223 = vmatpush.msra.mxu2 %v3677_v21  ;;  %242 = vmatpush.msra.mxu3 %v3679_v22  ;;  %v3719_v35 = vld [vmem:[#allocation9 + $0xc0] sm:$0xff]  ;;  %v3721_v36 = vld [vmem:[#allocation9 + $0xc8] sm:$0xff]  ;;  %v3725_v37 = vld [vmem:[#allocation9 + $0xd0] sm:$0xff] }
  0x24   :  { %184 = vmatpush.msra.mxu0 %v3683_v23  ;;  %204 = vmatpush.msra.mxu1 %v3685_v24  ;;  %v3727_v38 = vld [vmem:[#allocation9 + $0xf8] sm:$0xff]  ;;  %v3731_v39 = vld [vmem:[#allocation9 + $0xa0] sm:$0xff]  ;;  %v3733_v40 = vld [vmem:[#allocation9 + $0xa8] sm:$0xff] }
  0x25   :  { %224 = vmatpush.msra.mxu2 %v3689_v25  ;;  %243 = vmatpush.msra.mxu3 %v3691_v26  ;;  %v3737_v41 = vld [vmem:[#allocation9 + $0xb0] sm:$0xff]  ;;  %v3739_v42 = vld [vmem:[#allocation9 + $0xd8] sm:$0xff]  ;;  %v3743_v43 = vld [vmem:[#allocation9 + $0x80] sm:$0xff] }
  0x26   :  { %185 = vmatpush.msra.mxu0 %v3695_v27  ;;  %205 = vmatpush.msra.mxu1 %v3697_v28  ;;  %5495 = vst [vmem:[#allocation23_spill] sm:$0xff] %v3743_v43  ;;  %v3745_v44 = vld [vmem:[#allocation9 + $0x88] sm:$0xff]  ;;  %v3749_v45 = vld [vmem:[#allocation9 + $0x90] sm:$0xff]  ;;  %v3751_v46 = vld [vmem:[#allocation9 + $0xb8] sm:$0xff] }
  0x27   :  { %225 = vmatpush.msra.mxu2 %v3701_v29  ;;  %244 = vmatpush.msra.mxu3 %v3703_v30  ;;  %5496 = vst [vmem:[#allocation24_spill] sm:$0xff] %v3745_v44  ;;  %v3755_v47 = vld [vmem:[#allocation9 + $0x60] sm:$0xff]  ;;  %v3757_v48 = vld [vmem:[#allocation9 + $0x68] sm:$0xff]  ;;  %v3761_v49 = vld [vmem:[#allocation9 + $0x70] sm:$0xff] }
  0x28   :  { %186 = vmatpush.msra.mxu0 %v3707_v31  ;;  %206 = vmatpush.msra.mxu1 %v3709_v32  ;;  %5497 = vst [vmem:[#allocation25_spill] sm:$0xff] %v3749_v45  ;;  %v3763_v50 = vld [vmem:[#allocation9 + $0x98] sm:$0xff]  ;;  %v3767_v51 = vld [vmem:[#allocation9 + $0x40] sm:$0xff]  ;;  %v3769_v52 = vld [vmem:[#allocation9 + $0x48] sm:$0xff] }
  0x29   :  { %226 = vmatpush.msra.mxu2 %v3713_v33  ;;  %245 = vmatpush.msra.mxu3 %v3715_v34  ;;  %5498 = vst [vmem:[#allocation26_spill] sm:$0xff] %v3755_v47  ;;  %v3773_v53 = vld [vmem:[#allocation9 + $0x50] sm:$0xff]  ;;  %v3775_v54 = vld [vmem:[#allocation9 + $0x78] sm:$0xff]  ;;  %v3779_v55 = vld [vmem:[#allocation9 + $0x20] sm:$0xff] }
  0x2a   :  { %187 = vmatpush.msra.mxu0 %v3719_v35  ;;  %207 = vmatpush.msra.mxu1 %v3721_v36  ;;  %5499 = vst [vmem:[#allocation27_spill] sm:$0xff] %v3757_v48  ;;  %v3781_v56 = vld [vmem:[#allocation9 + $0x28] sm:$0xff]  ;;  %v3785_v57 = vld [vmem:[#allocation9 + $0x30] sm:$0xff]  ;;  %v3787_v58 = vld [vmem:[#allocation9 + $0x58] sm:$0xff] }
  0x2b   :  { %227 = vmatpush.msra.mxu2 %v3725_v37  ;;  %246 = vmatpush.msra.mxu3 %v3727_v38  ;;  %5500 = vst [vmem:[#allocation28_spill] sm:$0xff] %v3761_v49  ;;  %v3791_v59 = vld [vmem:[#allocation9] sm:$0xff]  ;;  %v3793_v60 = vld [vmem:[#allocation9 + $0x8] sm:$0xff]  ;;  %v3797_v61 = vld [vmem:[#allocation9 + $0x10] sm:$0xff] }
  0x2c   :  { %188 = vmatpush.msra.mxu0 %v3731_v39  ;;  %208 = vmatpush.msra.mxu1 %v3733_v40  ;;  %5501 = vst [vmem:[#allocation29_spill] sm:$0xff] %v3763_v50  ;;  %v3803_v62 = vld [vmem:[#allocation9 + $0x38] sm:$0xff] }
  0x2d   :  { %228 = vmatpush.msra.mxu2 %v3737_v41  ;;  %247 = vmatpush.msra.mxu3 %v3739_v42  ;;  %5502 = vst [vmem:[#allocation30_spill] sm:$0xff] %v3767_v51 }
  0x2e   :  { %189 = vmatpush.msra.mxu0 %v3743_v43  ;;  %209 = vmatpush.msra.mxu1 %v3745_v44  ;;  %5503 = vst [vmem:[#allocation31_spill] sm:$0xff] %v3769_v52 }
  0x2f   :  { %229 = vmatpush.msra.mxu2 %v3749_v45  ;;  %248 = vmatpush.msra.mxu3 %v3751_v46  ;;  %5504 = vst [vmem:[#allocation32_spill] sm:$0xff] %v3773_v53 }
  0x30   :  { %190 = vmatpush.msra.mxu0 %v3755_v47  ;;  %210 = vmatpush.msra.mxu1 %v3757_v48  ;;  %5505 = vst [vmem:[#allocation33_spill] sm:$0xff] %v3775_v54 }
  0x31   :  { %230 = vmatpush.msra.mxu2 %v3761_v49  ;;  %249 = vmatpush.msra.mxu3 %v3763_v50  ;;  %5506 = vst [vmem:[#allocation34_spill] sm:$0xff] %v3779_v55 }
  0x32   :  { %5507 = vst [vmem:[#allocation35_spill] sm:$0xff] %v3781_v56  ;;  %191 = vmatpush.msra.mxu0 %v3767_v51  ;;  %211 = vmatpush.msra.mxu1 %v3769_v52 }
  0x33   :  { %5508 = vst [vmem:[#allocation36_spill] sm:$0xff] %v3785_v57  ;;  %231 = vmatpush.msra.mxu2 %v3773_v53  ;;  %250 = vmatpush.msra.mxu3 %v3775_v54 }
  0x34   :  { %5509 = vst [vmem:[#allocation37_spill] sm:$0xff] %v3787_v58  ;;  %192 = vmatpush.msra.mxu0 %v3779_v55  ;;  %212 = vmatpush.msra.mxu1 %v3781_v56  ;;  %v3809_v56 = vld [vmem:[#allocation9 + $0x18] sm:$0xff] }
  0x35   :  { %5510 = vst [vmem:[#allocation38_spill] sm:$0xff] %v3791_v59  ;;  %232 = vmatpush.msra.mxu2 %v3785_v57  ;;  %251 = vmatpush.msra.mxu3 %v3787_v58 }
  0x36   :  { %5511 = vst [vmem:[#allocation39_spill] sm:$0xff] %v3793_v60  ;;  %193 = vmatpush.msra.mxu0 %v3791_v59  ;;  %213 = vmatpush.msra.mxu1 %v3793_v60 }
  0x37   :  { %5512 = vst [vmem:[#allocation40_spill] sm:$0xff] %v3797_v61  ;;  %233 = vmatpush.msra.mxu2 %v3797_v61  ;;  %194 = vmatmul.f32.vlgmr.msra.gmra.mxu0 %v5349_v63 }
  0x38   :  { %5513 = vst [vmem:[#allocation41_spill] sm:$0xff] %v3803_v62  ;;  %214 = vmatmul.f32.vlgmr.msra.gmra.mxu1 %v5349_v63  ;;  %234 = vmatmul.f32.vlgmr.msra.gmra.mxu2 %v5349_v63 }
  0x39   :  { %5514 = vst [vmem:[#allocation42_spill] sm:$0xff] %v3809_v56  ;;  %252 = vmatpush.msra.mxu3 %v3803_v62  ;;  %350 = vmatpush.msrb.mxu0 %v3618_v0 }
  0x3a   :  { %370 = vmatpush.msrb.mxu1 %v3620_v1  ;;  %390 = vmatpush.msrb.mxu2 %v3622_v2 }
  0x3b   :  { %253 = vmatpush.msra.mxu3 %v3809_v56  ;;  %351 = vmatpush.msrb.mxu0 %v3626_v3 }
  0x3c   :  { %254 = vmatmul.f32.vlgmr.msra.gmra.mxu3 %v5349_v63  ;;  %371 = vmatpush.msrb.mxu1 %v3628_v4  ;;  %v5515_v63 = vld [vmem:[#allocation35_spill] sm:$0xff] }
  0x3d   :  { %410 = vmatpush.msrb.mxu3 %v3641_v9  ;;  %391 = vmatpush.msrb.mxu2 %v3630_v5 }
  0x3e   :  { %352 = vmatpush.msrb.mxu0 %v3633_v6  ;;  %372 = vmatpush.msrb.mxu1 %v3635_v7 }
  0x3f   :  { %411 = vmatpush.msrb.mxu3 %v3649_v12  ;;  %392 = vmatpush.msrb.mxu2 %v3639_v8 }
  0x40   :  { %353 = vmatpush.msrb.mxu0 %v3645_v10  ;;  %373 = vmatpush.msrb.mxu1 %v3647_v11 }
  0x41   :  { %412 = vmatpush.msrb.mxu3 %v3655_v14  ;;  %393 = vmatpush.msrb.mxu2 %v3653_v13 }
  0x42   :  { %354 = vmatpush.msrb.mxu0 %v3659_v15  ;;  %374 = vmatpush.msrb.mxu1 %v3661_v16 }
  0x43   :  { %413 = vmatpush.msrb.mxu3 %v3667_v18  ;;  %394 = vmatpush.msrb.mxu2 %v3665_v17 }
  0x44   :  { %355 = vmatpush.msrb.mxu0 %v3671_v19  ;;  %375 = vmatpush.msrb.mxu1 %v3673_v20 }
  0x45   :  { %414 = vmatpush.msrb.mxu3 %v3679_v22  ;;  %395 = vmatpush.msrb.mxu2 %v3677_v21 }
  0x46   :  { %356 = vmatpush.msrb.mxu0 %v3683_v23  ;;  %376 = vmatpush.msrb.mxu1 %v3685_v24 }
  0x47   :  { %415 = vmatpush.msrb.mxu3 %v3691_v26  ;;  %396 = vmatpush.msrb.mxu2 %v3689_v25 }
  0x48   :  { %357 = vmatpush.msrb.mxu0 %v3695_v27  ;;  %377 = vmatpush.msrb.mxu1 %v3697_v28 }
  0x49   :  { %416 = vmatpush.msrb.mxu3 %v3703_v30  ;;  %397 = vmatpush.msrb.mxu2 %v3701_v29 }
  0x4a   :  { %358 = vmatpush.msrb.mxu0 %v3707_v31  ;;  %378 = vmatpush.msrb.mxu1 %v3709_v32 }
  0x4b   :  { %417 = vmatpush.msrb.mxu3 %v3715_v34  ;;  %398 = vmatpush.msrb.mxu2 %v3713_v33 }
  0x4c   :  { %359 = vmatpush.msrb.mxu0 %v3719_v35  ;;  %379 = vmatpush.msrb.mxu1 %v3721_v36 }
  0x4d   :  { %418 = vmatpush.msrb.mxu3 %v3727_v38  ;;  %399 = vmatpush.msrb.mxu2 %v3725_v37 }
  0x4e   :  { %360 = vmatpush.msrb.mxu0 %v3731_v39  ;;  %380 = vmatpush.msrb.mxu1 %v3733_v40 }
  0x4f   :  { %419 = vmatpush.msrb.mxu3 %v3739_v42  ;;  %400 = vmatpush.msrb.mxu2 %v3737_v41 }
  0x50   :  { %361 = vmatpush.msrb.mxu0 %v3743_v43  ;;  %381 = vmatpush.msrb.mxu1 %v3745_v44 }
  0x51   :  { %420 = vmatpush.msrb.mxu3 %v3751_v46  ;;  %401 = vmatpush.msrb.mxu2 %v3749_v45 }
  0x52   :  { %362 = vmatpush.msrb.mxu0 %v3755_v47  ;;  %382 = vmatpush.msrb.mxu1 %v3757_v48 }
  0x53   :  { %421 = vmatpush.msrb.mxu3 %v3763_v50  ;;  %402 = vmatpush.msrb.mxu2 %v3761_v49 }
  0x54   :  { %363 = vmatpush.msrb.mxu0 %v3767_v51  ;;  %383 = vmatpush.msrb.mxu1 %v3769_v52 }
  0x55   :  { %422 = vmatpush.msrb.mxu3 %v3775_v54  ;;  %403 = vmatpush.msrb.mxu2 %v3773_v53 }
  0x56   :  { %364 = vmatpush.msrb.mxu0 %v3779_v55  ;;  %384 = vmatpush.msrb.mxu1 %v5515_v63 }
  0x57   :  { %423 = vmatpush.msrb.mxu3 %v3787_v58  ;;  %404 = vmatpush.msrb.mxu2 %v3785_v57 }
  0x58   :  { %365 = vmatpush.msrb.mxu0 %v3791_v59  ;;  %385 = vmatpush.msrb.mxu1 %v3793_v60 }
  0x59   :  { %424 = vmatpush.msrb.mxu3 %v3803_v62  ;;  %405 = vmatpush.msrb.mxu2 %v3797_v61 }
  0x5a   :  { %523 = vmatpush.msra.mxu0 %v3618_v0  ;;  %543 = vmatpush.msra.mxu1 %v3620_v1 }
  0x5b   :  { %425 = vmatpush.msrb.mxu3 %v3809_v56  ;;  %563 = vmatpush.msra.mxu2 %v3622_v2 }
  0x5c   :  { %524 = vmatpush.msra.mxu0 %v3626_v3  ;;  %544 = vmatpush.msra.mxu1 %v3628_v4 }
  0x5d   :  { %583 = vmatpush.msra.mxu3 %v3641_v9  ;;  %564 = vmatpush.msra.mxu2 %v3630_v5 }
  0x5e   :  { %525 = vmatpush.msra.mxu0 %v3633_v6  ;;  %545 = vmatpush.msra.mxu1 %v3635_v7 }
  0x5f   :  { %584 = vmatpush.msra.mxu3 %v3649_v12  ;;  %565 = vmatpush.msra.mxu2 %v3639_v8 }
  0x60   :  { %526 = vmatpush.msra.mxu0 %v3645_v10  ;;  %546 = vmatpush.msra.mxu1 %v3647_v11 }
  0x61   :  { %585 = vmatpush.msra.mxu3 %v3655_v14  ;;  %566 = vmatpush.msra.mxu2 %v3653_v13 }
  0x62   :  { %527 = vmatpush.msra.mxu0 %v3659_v15  ;;  %547 = vmatpush.msra.mxu1 %v3661_v16 }
  0x63   :  { %586 = vmatpush.msra.mxu3 %v3667_v18  ;;  %567 = vmatpush.msra.mxu2 %v3665_v17 }
  0x64   :  { %528 = vmatpush.msra.mxu0 %v3671_v19  ;;  %548 = vmatpush.msra.mxu1 %v3673_v20 }
  0x65   :  { %587 = vmatpush.msra.mxu3 %v3679_v22  ;;  %568 = vmatpush.msra.mxu2 %v3677_v21 }
  0x66   :  { %529 = vmatpush.msra.mxu0 %v3683_v23  ;;  %549 = vmatpush.msra.mxu1 %v3685_v24 }
  0x67   :  { %588 = vmatpush.msra.mxu3 %v3691_v26  ;;  %569 = vmatpush.msra.mxu2 %v3689_v25 }
  0x68   :  { %530 = vmatpush.msra.mxu0 %v3695_v27  ;;  %550 = vmatpush.msra.mxu1 %v3697_v28 }
  0x69   :  { %589 = vmatpush.msra.mxu3 %v3703_v30  ;;  %570 = vmatpush.msra.mxu2 %v3701_v29 }
  0x6a   :  { %531 = vmatpush.msra.mxu0 %v3707_v31  ;;  %551 = vmatpush.msra.mxu1 %v3709_v32 }
  0x6b   :  { %590 = vmatpush.msra.mxu3 %v3715_v34  ;;  %571 = vmatpush.msra.mxu2 %v3713_v33 }
  0x6c   :  { %532 = vmatpush.msra.mxu0 %v3719_v35  ;;  %552 = vmatpush.msra.mxu1 %v3721_v36 }
  0x6d   :  { %591 = vmatpush.msra.mxu3 %v3727_v38  ;;  %572 = vmatpush.msra.mxu2 %v3725_v37 }
  0x6e   :  { %533 = vmatpush.msra.mxu0 %v3731_v39  ;;  %553 = vmatpush.msra.mxu1 %v3733_v40 }
  0x6f   :  { %592 = vmatpush.msra.mxu3 %v3739_v42  ;;  %573 = vmatpush.msra.mxu2 %v3737_v41 }
  0x70   :  { %534 = vmatpush.msra.mxu0 %v3743_v43  ;;  %554 = vmatpush.msra.mxu1 %v3745_v44 }
  0x71   :  { %593 = vmatpush.msra.mxu3 %v3751_v46  ;;  %574 = vmatpush.msra.mxu2 %v3749_v45 }
  0x72   :  { %535 = vmatpush.msra.mxu0 %v3755_v47  ;;  %555 = vmatpush.msra.mxu1 %v3757_v48 }
  0x73   :  { %594 = vmatpush.msra.mxu3 %v3763_v50  ;;  %575 = vmatpush.msra.mxu2 %v3761_v49 }
  0x74   :  { %536 = vmatpush.msra.mxu0 %v3767_v51  ;;  %556 = vmatpush.msra.mxu1 %v3769_v52  ;;  %v110_v52 = vld [vmem:[#allocation6] sm:$0xff] }
  0x75   :  { %595 = vmatpush.msra.mxu3 %v3775_v54  ;;  %576 = vmatpush.msra.mxu2 %v3773_v53  ;;  %v111_v53 = vld [vmem:[#allocation6 + $0x8] sm:$0xff] }
  0x76   :  { %537 = vmatpush.msra.mxu0 %v3779_v55  ;;  %557 = vmatpush.msra.mxu1 %v5515_v63 }
  0x77   :  { %596 = vmatpush.msra.mxu3 %v3787_v58  ;;  %577 = vmatpush.msra.mxu2 %v3785_v57  ;;  %v112_v57 = vld [vmem:[#allocation6 + $0x10] sm:$0xff] }
  0x78   :  { %538 = vmatpush.msra.mxu0 %v3791_v59  ;;  %558 = vmatpush.msra.mxu1 %v3793_v60  ;;  %v113_v59 = vld [vmem:[#allocation6 + $0x18] sm:$0xff] }
  0x79   :  { %597 = vmatpush.msra.mxu3 %v3803_v62  ;;  %578 = vmatpush.msra.mxu2 %v3797_v61 }
  0x7b   :  { %598 = vmatpush.msra.mxu3 %v3809_v56 }
  0xb4   :  { %v195_v51 = vpop.f32.mrf.mxu0 }
  0xb5   :  { %v258_v58 = vadd.f32 %v195_v51, %v110_v52  ;;  %v215_v54 = vpop.f32.mrf.mxu1 }
  0xb6   :  { %v259_v55 = vadd.f32 %v215_v54, %v111_v53 }
  0xb7   :  { %v262_v49 = vmul.f32 0.5, %v258_v58 }
  0xb8   :  { %v266_v63 = vmul.f32 0.5, %v259_v55 }
  0xb9   :  { %3218 = vtanh.f32 %v262_v49 }
  0xba   :  { %3220 = vtanh.f32 %v266_v63  ;;  %v4024_v63 = vld [vmem:[#allocation9 + $0x1e8] sm:$0xff] }
  0xbb   :  { %v235_v62 = vpop.f32.mrf.mxu2 }
  0xbc   :  { %v260_v48 = vadd.f32 %v235_v62, %v112_v57 }
  0xbe   :  { %3222 = vtanh.f32 %v260_v48 }
  0xbf   :  { %v3219_v60 = vpop.eup %3218  ;;  %v255_v47 = vpop.f32.mrf.mxu3 }
  0xc0   :  { %v3221_v61 = vpop.eup %3220  ;;  %v264_v50 = vmul.f32 0.5, %v3219_v60  ;;  %v261_v56 = vadd.f32 %v255_v47, %v113_v59  ;;  %v455_v59 = vld [vmem:[#allocation6 + $0x40] sm:$0xff]  ;;  %v456_v60 = vld [vmem:[#allocation6 + $0x48] sm:$0xff] }
  0xc1   :  { %v268_v45 = vmul.f32 0.5, %v3221_v61  ;;  %v4022_v61 = vld [vmem:[#allocation9 + $0x1e0] sm:$0xff] }
  0xc2   :  { %v265_v44 = vadd.f32 0.5, %v264_v50  ;;  %v271_v43 = vmul.f32 0.5, %v261_v56 }
  0xc3   :  { %v269_v51 = vadd.f32 0.5, %v268_v45 }
  0xc4   :  { %v3223_v52 = vpop.eup %3222  ;;  %v275_v53 = vmul.f32 0.0, %v265_v44  ;;  %3224 = vtanh.f32 %v271_v43 }
  0xc5   :  { %v276_v54 = vmul.f32 %v3223_v52, %v269_v51  ;;  %v4026_v51 = vld [vmem:[#allocation9 + $0x1f0] sm:$0xff] }
  0xc7   :  { %v3942_v49 = vadd.f32 %v276_v54, %v275_v53  ;;  %v4030_v54 = vld [vmem:[#allocation9 + $0x1f8] sm:$0xff] }
  0xc9   :  { %3226 = vtanh.f32 %v3942_v49 }
  0xca   :  { %v3225_v55 = vpop.eup %3224 }
  0xcb   :  { %v273_v57 = vmul.f32 0.5, %v3225_v55 }
  0xcd   :  { %v274_v48 = vadd.f32 0.5, %v273_v57 }
  0xcf   :  { %v3227_v58 = vpop.eup %3226 }
  0xd0   :  { %v3945_v62 = vmul.f32 %v3227_v58, %v274_v48  ;;  %v457_v58 = vld [vmem:[#allocation6 + $0x50] sm:$0xff] }
  0xd2   :  { %5516 = vst [vmem:[#allocation43_spill] sm:$0xff] %v3945_v62  ;;  %366 = vmatmul.f32.vlgmr.msrb.gmra.mxu0 %v3945_v62  ;;  %386 = vmatmul.f32.vlgmr.msrb.gmra.mxu1 %v3945_v62 }
  0xd3   :  { %406 = vmatmul.f32.vlgmr.msrb.gmra.mxu2 %v3945_v62  ;;  %426 = vmatmul.f32.vlgmr.msrb.gmra.mxu3 %v3945_v62  ;;  %v4215_v62 = vld [vmem:[#allocation9 + $0x10] sm:$0xff] }
  0xd4   :  { %696 = vmatpush.msrb.mxu0 %v3618_v0  ;;  %716 = vmatpush.msrb.mxu1 %v3620_v1  ;;  %v5517_v0 = vld [vmem:[#allocation23_spill] sm:$0xff]  ;;  %v5518_v1 = vld [vmem:[#allocation24_spill] sm:$0xff]  ;;  %5558 = vst [vmem:[#allocation45_spill] sm:$0xff] %v4215_v62 }
  0xd5   :  { %736 = vmatpush.msrb.mxu2 %v3622_v2  ;;  %756 = vmatpush.msrb.mxu3 %v3641_v9  ;;  %v5519_v2 = vld [vmem:[#allocation25_spill] sm:$0xff]  ;;  %v5526_v9 = vld [vmem:[#allocation31_spill] sm:$0xff]  ;;  %5538 = vst [vmem:[#allocation24_spill] sm:$0xff] %v4022_v61 }
  0xd6   :  { %697 = vmatpush.msrb.mxu0 %v3626_v3  ;;  %717 = vmatpush.msrb.mxu1 %v3628_v4  ;;  %v5520_v3 = vld [vmem:[#allocation29_spill] sm:$0xff]  ;;  %v5521_v4 = vld [vmem:[#allocation26_spill] sm:$0xff] }
  0xd7   :  { %737 = vmatpush.msrb.mxu2 %v3630_v5  ;;  %757 = vmatpush.msrb.mxu3 %v3649_v12  ;;  %v5522_v5 = vld [vmem:[#allocation27_spill] sm:$0xff]  ;;  %v5529_v12 = vld [vmem:[#allocation34_spill] sm:$0xff] }
  0xd8   :  { %698 = vmatpush.msrb.mxu0 %v3633_v6  ;;  %718 = vmatpush.msrb.mxu1 %v3635_v7  ;;  %v5523_v6 = vld [vmem:[#allocation28_spill] sm:$0xff]  ;;  %v5524_v7 = vld [vmem:[#allocation33_spill] sm:$0xff] }
  0xd9   :  { %738 = vmatpush.msrb.mxu2 %v3639_v8  ;;  %758 = vmatpush.msrb.mxu3 %v3655_v14  ;;  %v5525_v8 = vld [vmem:[#allocation30_spill] sm:$0xff]  ;;  %v5531_v14 = vld [vmem:[#allocation36_spill] sm:$0xff] }
  0xda   :  { %699 = vmatpush.msrb.mxu0 %v3645_v10  ;;  %719 = vmatpush.msrb.mxu1 %v3647_v11  ;;  %v5527_v10 = vld [vmem:[#allocation32_spill] sm:$0xff]  ;;  %v5528_v11 = vld [vmem:[#allocation37_spill] sm:$0xff] }
  0xdb   :  { %739 = vmatpush.msrb.mxu2 %v3653_v13  ;;  %759 = vmatpush.msrb.mxu3 %v3667_v18  ;;  %v5530_v13 = vld [vmem:[#allocation35_spill] sm:$0xff]  ;;  %v5535_v18 = vld [vmem:[#allocation40_spill] sm:$0xff] }
  0xdc   :  { %700 = vmatpush.msrb.mxu0 %v3659_v15  ;;  %720 = vmatpush.msrb.mxu1 %v3661_v16  ;;  %v5532_v15 = vld [vmem:[#allocation41_spill] sm:$0xff]  ;;  %v5533_v16 = vld [vmem:[#allocation38_spill] sm:$0xff] }
  0xdd   :  { %740 = vmatpush.msrb.mxu2 %v3665_v17  ;;  %760 = vmatpush.msrb.mxu3 %v3679_v22  ;;  %v5534_v17 = vld [vmem:[#allocation39_spill] sm:$0xff] }
  0xde   :  { %701 = vmatpush.msrb.mxu0 %v3671_v19  ;;  %721 = vmatpush.msrb.mxu1 %v3673_v20  ;;  %v5536_v19 = vld [vmem:[#allocation42_spill] sm:$0xff]  ;;  %v282_v20 = vld [vmem:[#allocation6 + $0x20] sm:$0xff] }
  0xdf   :  { %741 = vmatpush.msrb.mxu2 %v3677_v21  ;;  %761 = vmatpush.msrb.mxu3 %v3691_v26  ;;  %v283_v21 = vld [vmem:[#allocation6 + $0x28] sm:$0xff] }
  0xe0   :  { %702 = vmatpush.msrb.mxu0 %v3683_v23  ;;  %722 = vmatpush.msrb.mxu1 %v3685_v24 }
  0xe1   :  { %742 = vmatpush.msrb.mxu2 %v3689_v25  ;;  %762 = vmatpush.msrb.mxu3 %v3703_v30 }
  0xe2   :  { %703 = vmatpush.msrb.mxu0 %v3695_v27  ;;  %723 = vmatpush.msrb.mxu1 %v3697_v28  ;;  %v284_v28 = vld [vmem:[#allocation6 + $0x30] sm:$0xff] }
  0xe3   :  { %743 = vmatpush.msrb.mxu2 %v3701_v29  ;;  %763 = vmatpush.msrb.mxu3 %v3715_v34  ;;  %v285_v29 = vld [vmem:[#allocation6 + $0x38] sm:$0xff] }
  0xe4   :  { %704 = vmatpush.msrb.mxu0 %v3707_v31  ;;  %724 = vmatpush.msrb.mxu1 %v3709_v32 }
  0xe5   :  { %744 = vmatpush.msrb.mxu2 %v3713_v33  ;;  %764 = vmatpush.msrb.mxu3 %v3727_v38 }
  0xe6   :  { %705 = vmatpush.msrb.mxu0 %v3719_v35  ;;  %725 = vmatpush.msrb.mxu1 %v3721_v36 }
  0xe7   :  { %745 = vmatpush.msrb.mxu2 %v3725_v37  ;;  %765 = vmatpush.msrb.mxu3 %v3739_v42 }
  0xe8   :  { %706 = vmatpush.msrb.mxu0 %v3731_v39  ;;  %726 = vmatpush.msrb.mxu1 %v3733_v40 }
  0xe9   :  { %746 = vmatpush.msrb.mxu2 %v3737_v41  ;;  %766 = vmatpush.msrb.mxu3 %v3751_v46 }
  0xea   :  { %707 = vmatpush.msrb.mxu0 %v5517_v0  ;;  %727 = vmatpush.msrb.mxu1 %v5518_v1  ;;  %v458_v0 = vld [vmem:[#allocation6 + $0x58] sm:$0xff] }
  0xeb   :  { %747 = vmatpush.msrb.mxu2 %v5519_v2  ;;  %767 = vmatpush.msrb.mxu3 %v5520_v3 }
  0xec   :  { %708 = vmatpush.msrb.mxu0 %v5521_v4  ;;  %728 = vmatpush.msrb.mxu1 %v5522_v5 }
  0xed   :  { %748 = vmatpush.msrb.mxu2 %v5523_v6  ;;  %768 = vmatpush.msrb.mxu3 %v5524_v7 }
  0xee   :  { %709 = vmatpush.msrb.mxu0 %v5525_v8  ;;  %729 = vmatpush.msrb.mxu1 %v5526_v9 }
  0xef   :  { %749 = vmatpush.msrb.mxu2 %v5527_v10  ;;  %769 = vmatpush.msrb.mxu3 %v5528_v11 }
  0xf0   :  { %710 = vmatpush.msrb.mxu0 %v5529_v12  ;;  %730 = vmatpush.msrb.mxu1 %v5530_v13 }
  0xf1   :  { %750 = vmatpush.msrb.mxu2 %v5531_v14  ;;  %770 = vmatpush.msrb.mxu3 %v5532_v15 }
  0xf2   :  { %711 = vmatpush.msrb.mxu0 %v5533_v16  ;;  %731 = vmatpush.msrb.mxu1 %v5534_v17 }
  0xf3   :  { %751 = vmatpush.msrb.mxu2 %v5535_v18  ;;  %771 = vmatpush.msrb.mxu3 %v5536_v19 }
 0x14f   :  { %v367_v22 = vpop.f32.mrf.mxu0  ;;  %v387_v23 = vpop.f32.mrf.mxu1 }
 0x150   :  { %v430_v24 = vadd.f32 %v367_v22, %v282_v20  ;;  %v431_v25 = vadd.f32 %v387_v23, %v283_v21  ;;  %v4043_v21 = vld [vmem:[#allocation9 + $0x1c0] sm:$0xff]  ;;  %v4045_v22 = vld [vmem:[#allocation9 + $0x1c8] sm:$0xff]  ;;  %v4047_v23 = vld [vmem:[#allocation9 + $0x1d0] sm:$0xff] }
 0x152   :  { %v434_v26 = vmul.f32 0.5, %v430_v24  ;;  %v438_v27 = vmul.f32 0.5, %v431_v25  ;;  %v4051_v24 = vld [vmem:[#allocation9 + $0x1d8] sm:$0xff]  ;;  %v4055_v25 = vld [vmem:[#allocation9 + $0x1a0] sm:$0xff] }
 0x154   :  { %3228 = vtanh.f32 %v434_v26  ;;  %v4057_v26 = vld [vmem:[#allocation9 + $0x1a8] sm:$0xff] }
 0x155   :  { %3230 = vtanh.f32 %v438_v27  ;;  %v4059_v27 = vld [vmem:[#allocation9 + $0x1b0] sm:$0xff] }
 0x156   :  { %v407_v30 = vpop.f32.mrf.mxu2  ;;  %v427_v31 = vpop.f32.mrf.mxu3 }
 0x157   :  { %v432_v32 = vadd.f32 %v407_v30, %v284_v28  ;;  %v433_v33 = vadd.f32 %v427_v31, %v285_v29  ;;  %v4063_v28 = vld [vmem:[#allocation9 + $0x1b8] sm:$0xff]  ;;  %v4067_v29 = vld [vmem:[#allocation9 + $0x180] sm:$0xff]  ;;  %v4069_v30 = vld [vmem:[#allocation9 + $0x188] sm:$0xff] }
 0x158   :  { %v4071_v31 = vld [vmem:[#allocation9 + $0x190] sm:$0xff] }
 0x159   :  { %3232 = vtanh.f32 %v432_v32  ;;  %v443_v34 = vmul.f32 0.5, %v433_v33  ;;  %v4075_v32 = vld [vmem:[#allocation9 + $0x198] sm:$0xff]  ;;  %v4079_v33 = vld [vmem:[#allocation9 + $0x160] sm:$0xff] }
 0x15a   :  { %v3229_v35 = vpop.eup %3228 }
 0x15b   :  { %v3231_v36 = vpop.eup %3230  ;;  %v436_v37 = vmul.f32 0.5, %v3229_v35  ;;  %3234 = vtanh.f32 %v443_v34  ;;  %v4081_v34 = vld [vmem:[#allocation9 + $0x168] sm:$0xff]  ;;  %v4083_v35 = vld [vmem:[#allocation9 + $0x170] sm:$0xff] }
 0x15c   :  { %v440_v38 = vmul.f32 0.5, %v3231_v36  ;;  %v4087_v36 = vld [vmem:[#allocation9 + $0x178] sm:$0xff] }
 0x15d   :  { %v437_v39 = vadd.f32 0.5, %v436_v37  ;;  %v4091_v37 = vld [vmem:[#allocation9 + $0x140] sm:$0xff] }
 0x15e   :  { %v441_v40 = vadd.f32 0.5, %v440_v38  ;;  %v4093_v38 = vld [vmem:[#allocation9 + $0x148] sm:$0xff] }
 0x15f   :  { %v3233_v41 = vpop.eup %3232  ;;  %v447_v42 = vmul.f32 %v437_v39, %v3942_v49  ;;  %v4095_v39 = vld [vmem:[#allocation9 + $0x150] sm:$0xff] }
 0x160   :  { %v448_v43 = vmul.f32 %v3233_v41, %v441_v40  ;;  %v4099_v40 = vld [vmem:[#allocation9 + $0x158] sm:$0xff]  ;;  %v4103_v41 = vld [vmem:[#allocation9 + $0x120] sm:$0xff] }
 0x161   :  { %v3235_v44 = vpop.eup %3234 }
 0x162   :  { %v449_v45 = vadd.f32 %v448_v43, %v447_v42  ;;  %v445_v46 = vmul.f32 0.5, %v3235_v44  ;;  %v4105_v42 = vld [vmem:[#allocation9 + $0x128] sm:$0xff]  ;;  %v4107_v43 = vld [vmem:[#allocation9 + $0x130] sm:$0xff]  ;;  %v4111_v44 = vld [vmem:[#allocation9 + $0x138] sm:$0xff] }
 0x164   :  { %3236 = vtanh.f32 %v449_v45  ;;  %v446_v47 = vadd.f32 0.5, %v445_v46  ;;  %v4117_v46 = vld [vmem:[#allocation9 + $0x108] sm:$0xff] }
 0x16a   :  { %v3237_v50 = vpop.eup %3236 }
 0x16b   :  { %v4016_v56 = vmul.f32 %v3237_v50, %v446_v47  ;;  %v4119_v47 = vld [vmem:[#allocation9 + $0x110] sm:$0xff]  ;;  %v4123_v50 = vld [vmem:[#allocation9 + $0x118] sm:$0xff] }
 0x16d   :  { %5537 = vst [vmem:[#allocation23_spill] sm:$0xff] %v4016_v56  ;;  %539 = vmatmul.f32.vlgmr.msra.gmra.mxu0 %v4016_v56  ;;  %559 = vmatmul.f32.vlgmr.msra.gmra.mxu1 %v4016_v56 }
 0x16e   :  { %579 = vmatmul.f32.vlgmr.msra.gmra.mxu2 %v4016_v56  ;;  %599 = vmatmul.f32.vlgmr.msra.gmra.mxu3 %v4016_v56  ;;  %v4213_v56 = vld [vmem:[#allocation9 + $0x8] sm:$0xff] }
 0x16f   :  { %869 = vmatpush.msra.mxu0 %v4022_v61  ;;  %889 = vmatpush.msra.mxu1 %v4024_v63  ;;  %5557 = vst [vmem:[#allocation44_spill] sm:$0xff] %v4213_v56 }
 0x170   :  { %909 = vmatpush.msra.mxu2 %v4026_v51  ;;  %929 = vmatpush.msra.mxu3 %v4030_v54 }
 0x171   :  { %870 = vmatpush.msra.mxu0 %v4043_v21  ;;  %890 = vmatpush.msra.mxu1 %v4045_v22 }
 0x172   :  { %910 = vmatpush.msra.mxu2 %v4047_v23  ;;  %930 = vmatpush.msra.mxu3 %v4051_v24 }
 0x173   :  { %871 = vmatpush.msra.mxu0 %v4055_v25  ;;  %891 = vmatpush.msra.mxu1 %v4057_v26 }
 0x174   :  { %911 = vmatpush.msra.mxu2 %v4059_v27  ;;  %931 = vmatpush.msra.mxu3 %v4063_v28 }
 0x175   :  { %872 = vmatpush.msra.mxu0 %v4067_v29  ;;  %892 = vmatpush.msra.mxu1 %v4069_v30 }
 0x176   :  { %912 = vmatpush.msra.mxu2 %v4071_v31  ;;  %932 = vmatpush.msra.mxu3 %v4075_v32 }
 0x177   :  { %873 = vmatpush.msra.mxu0 %v4079_v33  ;;  %893 = vmatpush.msra.mxu1 %v4081_v34 }
 0x178   :  { %913 = vmatpush.msra.mxu2 %v4083_v35  ;;  %933 = vmatpush.msra.mxu3 %v4087_v36 }
 0x179   :  { %874 = vmatpush.msra.mxu0 %v4091_v37  ;;  %894 = vmatpush.msra.mxu1 %v4093_v38 }
 0x17a   :  { %914 = vmatpush.msra.mxu2 %v4095_v39  ;;  %934 = vmatpush.msra.mxu3 %v4099_v40 }
 0x17b   :  { %875 = vmatpush.msra.mxu0 %v4103_v41  ;;  %895 = vmatpush.msra.mxu1 %v4105_v42 }
 0x17c   :  { %915 = vmatpush.msra.mxu2 %v4107_v43  ;;  %935 = vmatpush.msra.mxu3 %v4111_v44 }
 0x17d   :  { %896 = vmatpush.msra.mxu1 %v4117_v46 }
 0x17e   :  { %916 = vmatpush.msra.mxu2 %v4119_v47  ;;  %936 = vmatpush.msra.mxu3 %v4123_v50 }
 0x1ea   :  { %v540_v52 = vpop.f32.mrf.mxu0  ;;  %v560_v53 = vpop.f32.mrf.mxu1 }
 0x1eb   :  { %v603_v49 = vadd.f32 %v540_v52, %v455_v59  ;;  %v604_v55 = vadd.f32 %v560_v53, %v456_v60  ;;  %v4127_v59 = vld [vmem:[#allocation9 + $0xe0] sm:$0xff]  ;;  %v4129_v60 = vld [vmem:[#allocation9 + $0xe8] sm:$0xff]  ;;  %v4131_v52 = vld [vmem:[#allocation9 + $0xf0] sm:$0xff] }
 0x1ec   :  { %897 = vmatpush.msra.mxu1 %v4129_v60  ;;  %v4135_v53 = vld [vmem:[#allocation9 + $0xf8] sm:$0xff]  ;;  %917 = vmatpush.msra.mxu2 %v4131_v52 }
 0x1ed   :  { %v607_v57 = vmul.f32 0.5, %v603_v49  ;;  %v611_v48 = vmul.f32 0.5, %v604_v55  ;;  %937 = vmatpush.msra.mxu3 %v4135_v53  ;;  %v4139_v49 = vld [vmem:[#allocation9 + $0xc0] sm:$0xff]  ;;  %v4141_v55 = vld [vmem:[#allocation9 + $0xc8] sm:$0xff] }
 0x1ee   :  { %898 = vmatpush.msra.mxu1 %v4141_v55 }
 0x1ef   :  { %3238 = vtanh.f32 %v607_v57  ;;  %v4143_v57 = vld [vmem:[#allocation9 + $0xd0] sm:$0xff] }
 0x1f0   :  { %3240 = vtanh.f32 %v611_v48  ;;  %v4147_v48 = vld [vmem:[#allocation9 + $0xd8] sm:$0xff]  ;;  %918 = vmatpush.msra.mxu2 %v4143_v57 }
 0x1f1   :  { %v580_v1 = vpop.f32.mrf.mxu2  ;;  %v600_v2 = vpop.f32.mrf.mxu3  ;;  %938 = vmatpush.msra.mxu3 %v4147_v48 }
 0x1f2   :  { %v605_v3 = vadd.f32 %v580_v1, %v457_v58  ;;  %v606_v4 = vadd.f32 %v600_v2, %v458_v0  ;;  %v4151_v58 = vld [vmem:[#allocation9 + $0xa0] sm:$0xff]  ;;  %v4153_v0 = vld [vmem:[#allocation9 + $0xa8] sm:$0xff]  ;;  %v4155_v1 = vld [vmem:[#allocation9 + $0xb0] sm:$0xff] }
 0x1f3   :  { %899 = vmatpush.msra.mxu1 %v4153_v0  ;;  %v4159_v2 = vld [vmem:[#allocation9 + $0xb8] sm:$0xff]  ;;  %919 = vmatpush.msra.mxu2 %v4155_v1 }
 0x1f4   :  { %3242 = vtanh.f32 %v605_v3  ;;  %v616_v5 = vmul.f32 0.5, %v606_v4  ;;  %939 = vmatpush.msra.mxu3 %v4159_v2  ;;  %v4163_v3 = vld [vmem:[#allocation9 + $0x80] sm:$0xff]  ;;  %v4165_v4 = vld [vmem:[#allocation9 + $0x88] sm:$0xff] }
 0x1f5   :  { %v3239_v6 = vpop.eup %3238  ;;  %5540 = vst [vmem:[#allocation29_spill] sm:$0xff] %v4163_v3  ;;  %900 = vmatpush.msra.mxu1 %v4165_v4 }
 0x1f6   :  { %v3241_v7 = vpop.eup %3240  ;;  %v609_v8 = vmul.f32 0.5, %v3239_v6  ;;  %3244 = vtanh.f32 %v616_v5  ;;  %5541 = vst [vmem:[#allocation26_spill] sm:$0xff] %v4165_v4  ;;  %v4167_v5 = vld [vmem:[#allocation9 + $0x90] sm:$0xff]  ;;  %v4171_v6 = vld [vmem:[#allocation9 + $0x98] sm:$0xff] }
 0x1f7   :  { %v613_v9 = vmul.f32 0.5, %v3241_v7  ;;  %5542 = vst [vmem:[#allocation27_spill] sm:$0xff] %v4167_v5  ;;  %920 = vmatpush.msra.mxu2 %v4167_v5  ;;  %940 = vmatpush.msra.mxu3 %v4171_v6  ;;  %v4175_v7 = vld [vmem:[#allocation9 + $0x60] sm:$0xff] }
 0x1f8   :  { %v610_v10 = vadd.f32 0.5, %v609_v8  ;;  %5543 = vst [vmem:[#allocation28_spill] sm:$0xff] %v4171_v6  ;;  %v4177_v8 = vld [vmem:[#allocation9 + $0x68] sm:$0xff] }
 0x1f9   :  { %v614_v11 = vadd.f32 0.5, %v613_v9  ;;  %5544 = vst [vmem:[#allocation33_spill] sm:$0xff] %v4175_v7  ;;  %v4179_v9 = vld [vmem:[#allocation9 + $0x70] sm:$0xff]  ;;  %901 = vmatpush.msra.mxu1 %v4177_v8 }
 0x1fa   :  { %v3243_v12 = vpop.eup %3242  ;;  %v620_v13 = vmul.f32 %v610_v10, %v449_v45  ;;  %v4115_v45 = vld [vmem:[#allocation9 + $0x100] sm:$0xff]  ;;  %5545 = vst [vmem:[#allocation30_spill] sm:$0xff] %v4177_v8  ;;  %v4183_v10 = vld [vmem:[#allocation9 + $0x78] sm:$0xff]  ;;  %921 = vmatpush.msra.mxu2 %v4179_v9 }
 0x1fb   :  { %v621_v14 = vmul.f32 %v3243_v12, %v614_v11  ;;  %876 = vmatpush.msra.mxu0 %v4115_v45  ;;  %5546 = vst [vmem:[#allocation31_spill] sm:$0xff] %v4179_v9  ;;  %941 = vmatpush.msra.mxu3 %v4183_v10  ;;  %v4187_v11 = vld [vmem:[#allocation9 + $0x40] sm:$0xff]  ;;  %v4189_v12 = vld [vmem:[#allocation9 + $0x48] sm:$0xff] }
 0x1fc   :  { %v3245_v15 = vpop.eup %3244  ;;  %5547 = vst [vmem:[#allocation32_spill] sm:$0xff] %v4183_v10  ;;  %902 = vmatpush.msra.mxu1 %v4189_v12 }
 0x1fd   :  { %v4034_v16 = vadd.f32 %v621_v14, %v620_v13  ;;  %v618_v17 = vmul.f32 0.5, %v3245_v15  ;;  %877 = vmatpush.msra.mxu0 %v4127_v59  ;;  %5548 = vst [vmem:[#allocation37_spill] sm:$0xff] %v4187_v11  ;;  %v4191_v13 = vld [vmem:[#allocation9 + $0x50] sm:$0xff]  ;;  %v4195_v14 = vld [vmem:[#allocation9 + $0x58] sm:$0xff]  ;;  %v4199_v15 = vld [vmem:[#allocation9 + $0x20] sm:$0xff] }
 0x1fe   :  { %5549 = vst [vmem:[#allocation34_spill] sm:$0xff] %v4189_v12  ;;  %922 = vmatpush.msra.mxu2 %v4191_v13  ;;  %942 = vmatpush.msra.mxu3 %v4195_v14 }
 0x1ff   :  { %3246 = vtanh.f32 %v4034_v16  ;;  %v619_v18 = vadd.f32 0.5, %v618_v17  ;;  %878 = vmatpush.msra.mxu0 %v4139_v49  ;;  %5550 = vst [vmem:[#allocation35_spill] sm:$0xff] %v4191_v13  ;;  %v4201_v17 = vld [vmem:[#allocation9 + $0x28] sm:$0xff] }
 0x200   :  { %5551 = vst [vmem:[#allocation36_spill] sm:$0xff] %v4195_v14  ;;  %903 = vmatpush.msra.mxu1 %v4201_v17  ;;  %v4219_v14 = vld [vmem:[#allocation9 + $0x18] sm:$0xff] }
 0x201   :  { %879 = vmatpush.msra.mxu0 %v4151_v58  ;;  %5552 = vst [vmem:[#allocation41_spill] sm:$0xff] %v4199_v15 }
 0x202   :  { %5553 = vst [vmem:[#allocation38_spill] sm:$0xff] %v4201_v17  ;;  %904 = vmatpush.msra.mxu1 %v4213_v56  ;;  %v629_v17 = vld [vmem:[#allocation6 + $0x68] sm:$0xff] }
 0x203   :  { %880 = vmatpush.msra.mxu0 %v4163_v3  ;;  %5559 = vst [vmem:[#allocation46_spill] sm:$0xff] %v4219_v14 }
 0x205   :  { %v3247_v19 = vpop.eup %3246  ;;  %881 = vmatpush.msra.mxu0 %v4175_v7 }
 0x206   :  { %v4037_v20 = vmul.f32 %v3247_v19, %v619_v18  ;;  %v4203_v18 = vld [vmem:[#allocation9 + $0x30] sm:$0xff]  ;;  %v4207_v19 = vld [vmem:[#allocation9 + $0x38] sm:$0xff] }
 0x207   :  { %882 = vmatpush.msra.mxu0 %v4187_v11  ;;  %5554 = vst [vmem:[#allocation39_spill] sm:$0xff] %v4203_v18  ;;  %923 = vmatpush.msra.mxu2 %v4203_v18 }
 0x208   :  { %5539 = vst [vmem:[#allocation25_spill] sm:$0xff] %v4037_v20  ;;  %712 = vmatmul.f32.vlgmr.msrb.gmra.mxu0 %v4037_v20  ;;  %732 = vmatmul.f32.vlgmr.msrb.gmra.mxu1 %v4037_v20 }
 0x209   :  { %752 = vmatmul.f32.vlgmr.msrb.gmra.mxu2 %v4037_v20  ;;  %772 = vmatmul.f32.vlgmr.msrb.gmra.mxu3 %v4037_v20  ;;  %5555 = vst [vmem:[#allocation40_spill] sm:$0xff] %v4207_v19  ;;  %v4211_v20 = vld [vmem:[#allocation9] sm:$0xff] }
 0x20a   :  { %883 = vmatpush.msra.mxu0 %v4199_v15  ;;  %943 = vmatpush.msra.mxu3 %v4207_v19  ;;  %5556 = vst [vmem:[#allocation42_spill] sm:$0xff] %v4211_v20  ;;  %v628_v15 = vld [vmem:[#allocation6 + $0x60] sm:$0xff] }
 0x20b   :  { %924 = vmatpush.msra.mxu2 %v4215_v62  ;;  %1062 = vmatpush.msrb.mxu1 %v4024_v63 }
 0x20c   :  { %884 = vmatpush.msra.mxu0 %v4211_v20  ;;  %944 = vmatpush.msra.mxu3 %v4219_v14 }
 0x20d   :  { %1082 = vmatpush.msrb.mxu2 %v4026_v51  ;;  %1063 = vmatpush.msrb.mxu1 %v4045_v22 }
 0x20e   :  { %1042 = vmatpush.msrb.mxu0 %v4022_v61  ;;  %1102 = vmatpush.msrb.mxu3 %v4030_v54 }
 0x20f   :  { %1083 = vmatpush.msrb.mxu2 %v4047_v23  ;;  %1064 = vmatpush.msrb.mxu1 %v4057_v26 }
 0x210   :  { %1043 = vmatpush.msrb.mxu0 %v4043_v21  ;;  %1103 = vmatpush.msrb.mxu3 %v4051_v24 }
 0x211   :  { %1084 = vmatpush.msrb.mxu2 %v4059_v27  ;;  %1065 = vmatpush.msrb.mxu1 %v4069_v30 }
 0x212   :  { %1044 = vmatpush.msrb.mxu0 %v4055_v25  ;;  %1104 = vmatpush.msrb.mxu3 %v4063_v28 }
 0x213   :  { %1085 = vmatpush.msrb.mxu2 %v4071_v31  ;;  %1066 = vmatpush.msrb.mxu1 %v4081_v34 }
 0x214   :  { %1045 = vmatpush.msrb.mxu0 %v4067_v29  ;;  %1105 = vmatpush.msrb.mxu3 %v4075_v32 }
 0x215   :  { %1086 = vmatpush.msrb.mxu2 %v4083_v35  ;;  %1067 = vmatpush.msrb.mxu1 %v4093_v38 }
 0x216   :  { %1046 = vmatpush.msrb.mxu0 %v4079_v33  ;;  %1106 = vmatpush.msrb.mxu3 %v4087_v36 }
 0x217   :  { %1087 = vmatpush.msrb.mxu2 %v4095_v39  ;;  %1068 = vmatpush.msrb.mxu1 %v4105_v42 }
 0x218   :  { %1047 = vmatpush.msrb.mxu0 %v4091_v37  ;;  %1107 = vmatpush.msrb.mxu3 %v4099_v40 }
 0x219   :  { %1088 = vmatpush.msrb.mxu2 %v4107_v43  ;;  %1069 = vmatpush.msrb.mxu1 %v4117_v46 }
 0x21a   :  { %1048 = vmatpush.msrb.mxu0 %v4103_v41  ;;  %1108 = vmatpush.msrb.mxu3 %v4111_v44 }
 0x21b   :  { %1089 = vmatpush.msrb.mxu2 %v4119_v47  ;;  %1070 = vmatpush.msrb.mxu1 %v4129_v60 }
 0x21c   :  { %1049 = vmatpush.msrb.mxu0 %v4115_v45  ;;  %1109 = vmatpush.msrb.mxu3 %v4123_v50 }
 0x21d   :  { %1090 = vmatpush.msrb.mxu2 %v4131_v52  ;;  %1071 = vmatpush.msrb.mxu1 %v4141_v55 }
 0x21e   :  { %1050 = vmatpush.msrb.mxu0 %v4127_v59  ;;  %1110 = vmatpush.msrb.mxu3 %v4135_v53 }
 0x21f   :  { %1091 = vmatpush.msrb.mxu2 %v4143_v57  ;;  %1072 = vmatpush.msrb.mxu1 %v4153_v0 }
 0x220   :  { %1051 = vmatpush.msrb.mxu0 %v4139_v49  ;;  %1111 = vmatpush.msrb.mxu3 %v4147_v48 }
 0x221   :  { %1092 = vmatpush.msrb.mxu2 %v4155_v1  ;;  %1073 = vmatpush.msrb.mxu1 %v4165_v4 }
 0x222   :  { %1052 = vmatpush.msrb.mxu0 %v4151_v58  ;;  %1112 = vmatpush.msrb.mxu3 %v4159_v2 }
 0x223   :  { %1093 = vmatpush.msrb.mxu2 %v4167_v5  ;;  %1074 = vmatpush.msrb.mxu1 %v4177_v8 }
 0x224   :  { %1053 = vmatpush.msrb.mxu0 %v4163_v3  ;;  %1113 = vmatpush.msrb.mxu3 %v4171_v6 }
 0x225   :  { %1094 = vmatpush.msrb.mxu2 %v4179_v9  ;;  %1075 = vmatpush.msrb.mxu1 %v4189_v12 }
 0x226   :  { %1054 = vmatpush.msrb.mxu0 %v4175_v7  ;;  %1114 = vmatpush.msrb.mxu3 %v4183_v10  ;;  %v5567_v10 = vld [vmem:[#allocation42_spill] sm:$0xff] }
 0x227   :  { %1095 = vmatpush.msrb.mxu2 %v4191_v13 }
 0x228   :  { %1055 = vmatpush.msrb.mxu0 %v4187_v11  ;;  %v5568_v11 = vld [vmem:[#allocation44_spill] sm:$0xff] }
 0x285   :  { %v713_v19 = vpop.f32.mrf.mxu0  ;;  %v733_v18 = vpop.f32.mrf.mxu1 }
 0x286   :  { %v776_v20 = vadd.f32 %v713_v19, %v628_v15  ;;  %v777_v56 = vadd.f32 %v733_v18, %v629_v17  ;;  %v630_v15 = vld [vmem:[#allocation6 + $0x70] sm:$0xff]  ;;  %v631_v17 = vld [vmem:[#allocation6 + $0x78] sm:$0xff] }
 0x288   :  { %v780_v14 = vmul.f32 0.5, %v776_v20  ;;  %v784_v61 = vmul.f32 0.5, %v777_v56 }
 0x28a   :  { %3248 = vtanh.f32 %v780_v14 }
 0x28b   :  { %3250 = vtanh.f32 %v784_v61 }
 0x28c   :  { %v753_v56 = vpop.f32.mrf.mxu2  ;;  %v773_v20 = vpop.f32.mrf.mxu3 }
 0x28d   :  { %v778_v18 = vadd.f32 %v753_v56, %v630_v15  ;;  %v779_v19 = vadd.f32 %v773_v20, %v631_v17 }
 0x28f   :  { %3252 = vtanh.f32 %v778_v18  ;;  %v789_v61 = vmul.f32 0.5, %v779_v19 }
 0x290   :  { %v3249_v14 = vpop.eup %3248 }
 0x291   :  { %v3251_v15 = vpop.eup %3250  ;;  %v782_v17 = vmul.f32 0.5, %v3249_v14  ;;  %3254 = vtanh.f32 %v789_v61 }
 0x292   :  { %v786_v56 = vmul.f32 0.5, %v3251_v15 }
 0x293   :  { %v783_v20 = vadd.f32 0.5, %v782_v17 }
 0x294   :  { %v787_v18 = vadd.f32 0.5, %v786_v56 }
 0x295   :  { %v3253_v19 = vpop.eup %3252  ;;  %v793_v14 = vmul.f32 %v783_v20, %v4034_v16  ;;  %v5561_v20 = vld [vmem:[#allocation36_spill] sm:$0xff] }
 0x296   :  { %v794_v61 = vmul.f32 %v3253_v19, %v787_v18  ;;  %1115 = vmatpush.msrb.mxu3 %v5561_v20  ;;  %v5562_v19 = vld [vmem:[#allocation41_spill] sm:$0xff] }
 0x297   :  { %v3255_v15 = vpop.eup %3254  ;;  %1056 = vmatpush.msrb.mxu0 %v5562_v19 }
 0x298   :  { %v4264_v17 = vadd.f32 %v794_v61, %v793_v14  ;;  %v791_v16 = vmul.f32 0.5, %v3255_v15  ;;  %v5563_v14 = vld [vmem:[#allocation38_spill] sm:$0xff]  ;;  %v5565_v15 = vld [vmem:[#allocation39_spill] sm:$0xff] }
 0x299   :  { %1076 = vmatpush.msrb.mxu1 %v5563_v14  ;;  %1096 = vmatpush.msrb.mxu2 %v5565_v15 }
 0x29a   :  { %5560 = vst [vmem:[#allocation47_spill] sm:$0xff] %v4264_v17  ;;  %3256 = vtanh.f32 %v4264_v17  ;;  %v792_v56 = vadd.f32 0.5, %v791_v16  ;;  %v5566_v17 = vld [vmem:[#allocation40_spill] sm:$0xff]  ;;  %1057 = vmatpush.msrb.mxu0 %v5567_v10  ;;  %v5569_v16 = vld [vmem:[#allocation46_spill] sm:$0xff] }
 0x29b   :  { %1116 = vmatpush.msrb.mxu3 %v5566_v17  ;;  %1077 = vmatpush.msrb.mxu1 %v5568_v11 }
 0x29c   :  { %1097 = vmatpush.msrb.mxu2 %v4215_v62 }
 0x29d   :  { %1117 = vmatpush.msrb.mxu3 %v5569_v16 }
 0x2a0   :  { %v3257_v18 = vpop.eup %3256 }
 0x2a1   :  { %v4285_v61 = vmul.f32 %v3257_v18, %v792_v56  ;;  %v5570_v56 = vld [vmem:[#allocation24_spill] sm:$0xff] }
 0x2a2   :  { %v5571_v18 = vld [vmem:[#allocation32_spill] sm:$0xff] }
 0x2a3   :  { %5564 = vst [vmem:[#allocation48_spill] sm:$0xff] %v4285_v61  ;;  %885 = vmatmul.f32.vlgmr.msra.gmra.mxu0 %v4285_v61  ;;  %905 = vmatmul.f32.vlgmr.msra.gmra.mxu1 %v4285_v61 }
 0x2a4   :  { %925 = vmatmul.f32.vlgmr.msra.gmra.mxu2 %v4285_v61  ;;  %945 = vmatmul.f32.vlgmr.msra.gmra.mxu3 %v4285_v61  ;;  %v5572_v61 = vld [vmem:[#allocation37_spill] sm:$0xff] }
 0x2a5   :  { %1215 = vmatpush.msra.mxu0 %v5570_v56  ;;  %1235 = vmatpush.msra.mxu1 %v4024_v63 }
 0x2a6   :  { %1255 = vmatpush.msra.mxu2 %v4026_v51  ;;  %1275 = vmatpush.msra.mxu3 %v4030_v54 }
 0x2a7   :  { %1216 = vmatpush.msra.mxu0 %v4043_v21  ;;  %1236 = vmatpush.msra.mxu1 %v4045_v22 }
 0x2a8   :  { %1256 = vmatpush.msra.mxu2 %v4047_v23  ;;  %1276 = vmatpush.msra.mxu3 %v4051_v24 }
 0x2a9   :  { %1217 = vmatpush.msra.mxu0 %v4055_v25  ;;  %1237 = vmatpush.msra.mxu1 %v4057_v26 }
 0x2aa   :  { %1257 = vmatpush.msra.mxu2 %v4059_v27  ;;  %1277 = vmatpush.msra.mxu3 %v4063_v28 }
 0x2ab   :  { %1218 = vmatpush.msra.mxu0 %v4067_v29  ;;  %1238 = vmatpush.msra.mxu1 %v4069_v30 }
 0x2ac   :  { %1258 = vmatpush.msra.mxu2 %v4071_v31  ;;  %1278 = vmatpush.msra.mxu3 %v4075_v32 }
 0x2ad   :  { %1219 = vmatpush.msra.mxu0 %v4079_v33  ;;  %1239 = vmatpush.msra.mxu1 %v4081_v34 }
 0x2ae   :  { %1259 = vmatpush.msra.mxu2 %v4083_v35  ;;  %1279 = vmatpush.msra.mxu3 %v4087_v36 }
 0x2af   :  { %1220 = vmatpush.msra.mxu0 %v4091_v37  ;;  %1240 = vmatpush.msra.mxu1 %v4093_v38 }
 0x2b0   :  { %1260 = vmatpush.msra.mxu2 %v4095_v39  ;;  %1280 = vmatpush.msra.mxu3 %v4099_v40 }
 0x2b1   :  { %1221 = vmatpush.msra.mxu0 %v4103_v41  ;;  %1241 = vmatpush.msra.mxu1 %v4105_v42 }
 0x2b2   :  { %1261 = vmatpush.msra.mxu2 %v4107_v43  ;;  %1281 = vmatpush.msra.mxu3 %v4111_v44 }
 0x2b3   :  { %1222 = vmatpush.msra.mxu0 %v4115_v45  ;;  %1242 = vmatpush.msra.mxu1 %v4117_v46 }
 0x2b4   :  { %1262 = vmatpush.msra.mxu2 %v4119_v47  ;;  %1282 = vmatpush.msra.mxu3 %v4123_v50 }
 0x2b5   :  { %1223 = vmatpush.msra.mxu0 %v4127_v59  ;;  %1243 = vmatpush.msra.mxu1 %v4129_v60 }
 0x2b6   :  { %1263 = vmatpush.msra.mxu2 %v4131_v52  ;;  %1283 = vmatpush.msra.mxu3 %v4135_v53 }
 0x2b7   :  { %1224 = vmatpush.msra.mxu0 %v4139_v49  ;;  %1244 = vmatpush.msra.mxu1 %v4141_v55 }
 0x2b8   :  { %1264 = vmatpush.msra.mxu2 %v4143_v57  ;;  %1284 = vmatpush.msra.mxu3 %v4147_v48 }
 0x2b9   :  { %1225 = vmatpush.msra.mxu0 %v4151_v58  ;;  %1245 = vmatpush.msra.mxu1 %v4153_v0 }
 0x2ba   :  { %1265 = vmatpush.msra.mxu2 %v4155_v1  ;;  %1285 = vmatpush.msra.mxu3 %v4159_v2 }
 0x2bb   :  { %1226 = vmatpush.msra.mxu0 %v4163_v3  ;;  %1246 = vmatpush.msra.mxu1 %v4165_v4 }
 0x2bc   :  { %1266 = vmatpush.msra.mxu2 %v4167_v5  ;;  %1286 = vmatpush.msra.mxu3 %v4171_v6 }
 0x2bd   :  { %1227 = vmatpush.msra.mxu0 %v4175_v7  ;;  %1247 = vmatpush.msra.mxu1 %v4177_v8  ;;  %v804_v8 = vld [vmem:[#allocation6 + $0x98] sm:$0xff] }
 0x2be   :  { %1267 = vmatpush.msra.mxu2 %v4179_v9  ;;  %1287 = vmatpush.msra.mxu3 %v5571_v18 }
 0x2bf   :  { %1228 = vmatpush.msra.mxu0 %v5572_v61  ;;  %1248 = vmatpush.msra.mxu1 %v4189_v12  ;;  %v801_v12 = vld [vmem:[#allocation6 + $0x80] sm:$0xff] }
 0x2c0   :  { %1268 = vmatpush.msra.mxu2 %v4191_v13  ;;  %1288 = vmatpush.msra.mxu3 %v5561_v20  ;;  %v802_v13 = vld [vmem:[#allocation6 + $0x88] sm:$0xff] }
 0x2c1   :  { %1229 = vmatpush.msra.mxu0 %v5562_v19  ;;  %1249 = vmatpush.msra.mxu1 %v5563_v14 }
 0x2c2   :  { %1269 = vmatpush.msra.mxu2 %v5565_v15  ;;  %1289 = vmatpush.msra.mxu3 %v5566_v17  ;;  %v803_v15 = vld [vmem:[#allocation6 + $0x90] sm:$0xff] }
 0x2c3   :  { %1230 = vmatpush.msra.mxu0 %v5567_v10  ;;  %1250 = vmatpush.msra.mxu1 %v5568_v11 }
 0x2c4   :  { %1270 = vmatpush.msra.mxu2 %v4215_v62  ;;  %1290 = vmatpush.msra.mxu3 %v5569_v16 }
 0x320   :  { %v886_v61 = vpop.f32.mrf.mxu0  ;;  %v906_v20 = vpop.f32.mrf.mxu1 }
 0x321   :  { %v949_v18 = vadd.f32 %v886_v61, %v801_v12  ;;  %v950_v19 = vadd.f32 %v906_v20, %v802_v13  ;;  %v5573_v20 = vld [vmem:[#allocation47_spill] sm:$0xff] }
 0x323   :  { %v953_v9 = vmul.f32 0.5, %v949_v18  ;;  %v957_v14 = vmul.f32 0.5, %v950_v19 }
 0x325   :  { %3258 = vtanh.f32 %v953_v9 }
 0x326   :  { %3260 = vtanh.f32 %v957_v14 }
 0x327   :  { %v926_v17 = vpop.f32.mrf.mxu2  ;;  %v946_v10 = vpop.f32.mrf.mxu3 }
 0x328   :  { %v951_v7 = vadd.f32 %v926_v17, %v803_v15  ;;  %v952_v11 = vadd.f32 %v946_v10, %v804_v8  ;;  %v1562_v15 = vld [vmem:[#allocation12 + $0x1e0] sm:$0xff] }
 0x32a   :  { %3262 = vtanh.f32 %v951_v7  ;;  %v962_v62 = vmul.f32 0.5, %v952_v11 }
 0x32b   :  { %v3259_v6 = vpop.eup %3258 }
 0x32c   :  { %v3261_v16 = vpop.eup %3260  ;;  %v955_v5 = vmul.f32 0.5, %v3259_v6  ;;  %3264 = vtanh.f32 %v962_v62  ;;  %v5574_v62 = vld [vmem:[#allocation29_spill] sm:$0xff] }
 0x32d   :  { %v959_v4 = vmul.f32 0.5, %v3261_v16  ;;  %v1563_v16 = vld [vmem:[#allocation12 + $0x1e8] sm:$0xff] }
 0x32e   :  { %v956_v3 = vadd.f32 0.5, %v955_v5 }
 0x32f   :  { %v960_v12 = vadd.f32 0.5, %v959_v4 }
 0x330   :  { %v3263_v13 = vpop.eup %3262  ;;  %v966_v19 = vmul.f32 %v956_v3, %v5573_v20  ;;  %v1559_v20 = vld [vmem:[#allocation12 + $0x1c8] sm:$0xff] }
 0x331   :  { %v967_v9 = vmul.f32 %v3263_v13, %v960_v12  ;;  %v1565_v12 = vld [vmem:[#allocation12 + $0x1f8] sm:$0xff]  ;;  %v1558_v13 = vld [vmem:[#allocation12 + $0x1c0] sm:$0xff] }
 0x332   :  { %v3265_v61 = vpop.eup %3264 }
 0x333   :  { %v4362_v18 = vadd.f32 %v967_v9, %v966_v19  ;;  %v964_v17 = vmul.f32 0.5, %v3265_v61  ;;  %v1560_v19 = vld [vmem:[#allocation12 + $0x1d0] sm:$0xff]  ;;  %v1561_v9 = vld [vmem:[#allocation12 + $0x1d8] sm:$0xff]  ;;  %v1554_v61 = vld [vmem:[#allocation12 + $0x1a0] sm:$0xff] }
 0x335   :  { %3266 = vtanh.f32 %v4362_v18  ;;  %v965_v8 = vadd.f32 0.5, %v964_v17  ;;  %v1556_v17 = vld [vmem:[#allocation12 + $0x1b0] sm:$0xff] }
 0x33b   :  { %v3267_v7 = vpop.eup %3266 }
 0x33c   :  { %v4365_v10 = vmul.f32 %v3267_v7, %v965_v8  ;;  %v1557_v8 = vld [vmem:[#allocation12 + $0x1b8] sm:$0xff]  ;;  %v1550_v7 = vld [vmem:[#allocation12 + $0x180] sm:$0xff] }
 0x33e   :  { %1058 = vmatmul.f32.vlgmr.msrb.gmra.mxu0 %v4365_v10  ;;  %1078 = vmatmul.f32.vlgmr.msrb.gmra.mxu1 %v4365_v10 }
 0x33f   :  { %1098 = vmatmul.f32.vlgmr.msrb.gmra.mxu2 %v4365_v10  ;;  %1118 = vmatmul.f32.vlgmr.msrb.gmra.mxu3 %v4365_v10 }
 0x340   :  { %1388 = vmatpush.msrb.mxu0 %v5570_v56  ;;  %1408 = vmatpush.msrb.mxu1 %v4024_v63  ;;  %v5575_v63 = vld [vmem:[#allocation26_spill] sm:$0xff] }
 0x341   :  { %1428 = vmatpush.msrb.mxu2 %v4026_v51  ;;  %1448 = vmatpush.msrb.mxu3 %v4030_v54  ;;  %v5576_v51 = vld [vmem:[#allocation27_spill] sm:$0xff]  ;;  %v5577_v54 = vld [vmem:[#allocation28_spill] sm:$0xff] }
 0x342   :  { %1389 = vmatpush.msrb.mxu0 %v4043_v21  ;;  %1409 = vmatpush.msrb.mxu1 %v4045_v22  ;;  %v5578_v21 = vld [vmem:[#allocation33_spill] sm:$0xff]  ;;  %v5579_v22 = vld [vmem:[#allocation30_spill] sm:$0xff] }
 0x343   :  { %1429 = vmatpush.msrb.mxu2 %v4047_v23  ;;  %1449 = vmatpush.msrb.mxu3 %v4051_v24  ;;  %v5580_v23 = vld [vmem:[#allocation31_spill] sm:$0xff]  ;;  %v5581_v24 = vld [vmem:[#allocation32_spill] sm:$0xff] }
 0x344   :  { %1390 = vmatpush.msrb.mxu0 %v4055_v25  ;;  %1410 = vmatpush.msrb.mxu1 %v4057_v26  ;;  %v5582_v25 = vld [vmem:[#allocation37_spill] sm:$0xff]  ;;  %v5583_v26 = vld [vmem:[#allocation34_spill] sm:$0xff] }
 0x345   :  { %1430 = vmatpush.msrb.mxu2 %v4059_v27  ;;  %1450 = vmatpush.msrb.mxu3 %v4063_v28  ;;  %v5584_v27 = vld [vmem:[#allocation35_spill] sm:$0xff]  ;;  %v5585_v28 = vld [vmem:[#allocation36_spill] sm:$0xff] }
 0x346   :  { %1391 = vmatpush.msrb.mxu0 %v4067_v29  ;;  %1411 = vmatpush.msrb.mxu1 %v4069_v30  ;;  %v5586_v29 = vld [vmem:[#allocation41_spill] sm:$0xff]  ;;  %v5587_v30 = vld [vmem:[#allocation38_spill] sm:$0xff] }
 0x347   :  { %1431 = vmatpush.msrb.mxu2 %v4071_v31  ;;  %1451 = vmatpush.msrb.mxu3 %v4075_v32  ;;  %v5588_v31 = vld [vmem:[#allocation39_spill] sm:$0xff]  ;;  %v5589_v32 = vld [vmem:[#allocation40_spill] sm:$0xff] }
 0x348   :  { %1392 = vmatpush.msrb.mxu0 %v4079_v33  ;;  %1412 = vmatpush.msrb.mxu1 %v4081_v34  ;;  %v5590_v33 = vld [vmem:[#allocation42_spill] sm:$0xff]  ;;  %v5591_v34 = vld [vmem:[#allocation44_spill] sm:$0xff] }
 0x349   :  { %1432 = vmatpush.msrb.mxu2 %v4083_v35  ;;  %1452 = vmatpush.msrb.mxu3 %v4087_v36  ;;  %v5592_v35 = vld [vmem:[#allocation45_spill] sm:$0xff]  ;;  %v5593_v36 = vld [vmem:[#allocation46_spill] sm:$0xff] }
 0x34a   :  { %1393 = vmatpush.msrb.mxu0 %v4091_v37  ;;  %1413 = vmatpush.msrb.mxu1 %v4093_v38  ;;  %v974_v37 = vld [vmem:[#allocation6 + $0xa0] sm:$0xff]  ;;  %v975_v38 = vld [vmem:[#allocation6 + $0xa8] sm:$0xff]  ;;  %v1564_v56 = vld [vmem:[#allocation12 + $0x1f0] sm:$0xff] }
 0x34b   :  { %1433 = vmatpush.msrb.mxu2 %v4095_v39  ;;  %1453 = vmatpush.msrb.mxu3 %v4099_v40 }
 0x34c   :  { %1394 = vmatpush.msrb.mxu0 %v4103_v41  ;;  %1414 = vmatpush.msrb.mxu1 %v4105_v42 }
 0x34d   :  { %1434 = vmatpush.msrb.mxu2 %v4107_v43  ;;  %1454 = vmatpush.msrb.mxu3 %v4111_v44 }
 0x34e   :  { %1395 = vmatpush.msrb.mxu0 %v4115_v45  ;;  %1415 = vmatpush.msrb.mxu1 %v4117_v46  ;;  %v976_v45 = vld [vmem:[#allocation6 + $0xb0] sm:$0xff]  ;;  %v977_v46 = vld [vmem:[#allocation6 + $0xb8] sm:$0xff] }
 0x34f   :  { %1435 = vmatpush.msrb.mxu2 %v4119_v47  ;;  %1455 = vmatpush.msrb.mxu3 %v4123_v50 }
 0x350   :  { %1396 = vmatpush.msrb.mxu0 %v4127_v59  ;;  %1416 = vmatpush.msrb.mxu1 %v4129_v60 }
 0x351   :  { %1436 = vmatpush.msrb.mxu2 %v4131_v52  ;;  %1456 = vmatpush.msrb.mxu3 %v4135_v53 }
 0x352   :  { %1397 = vmatpush.msrb.mxu0 %v4139_v49  ;;  %1417 = vmatpush.msrb.mxu1 %v4141_v55 }
 0x353   :  { %1437 = vmatpush.msrb.mxu2 %v4143_v57  ;;  %1457 = vmatpush.msrb.mxu3 %v4147_v48 }
 0x354   :  { %1398 = vmatpush.msrb.mxu0 %v4151_v58  ;;  %1418 = vmatpush.msrb.mxu1 %v4153_v0 }
 0x355   :  { %1438 = vmatpush.msrb.mxu2 %v4155_v1  ;;  %1458 = vmatpush.msrb.mxu3 %v4159_v2 }
 0x356   :  { %1399 = vmatpush.msrb.mxu0 %v5574_v62  ;;  %1419 = vmatpush.msrb.mxu1 %v5575_v63  ;;  %v1551_v62 = vld [vmem:[#allocation12 + $0x188] sm:$0xff]  ;;  %v1552_v63 = vld [vmem:[#allocation12 + $0x190] sm:$0xff] }
 0x357   :  { %1439 = vmatpush.msrb.mxu2 %v5576_v51  ;;  %1459 = vmatpush.msrb.mxu3 %v5577_v54  ;;  %v1553_v51 = vld [vmem:[#allocation12 + $0x198] sm:$0xff]  ;;  %v1546_v54 = vld [vmem:[#allocation12 + $0x160] sm:$0xff] }
 0x358   :  { %1400 = vmatpush.msrb.mxu0 %v5578_v21  ;;  %1420 = vmatpush.msrb.mxu1 %v5579_v22  ;;  %v1547_v21 = vld [vmem:[#allocation12 + $0x168] sm:$0xff]  ;;  %v1548_v22 = vld [vmem:[#allocation12 + $0x170] sm:$0xff] }
 0x359   :  { %1440 = vmatpush.msrb.mxu2 %v5580_v23  ;;  %1460 = vmatpush.msrb.mxu3 %v5581_v24  ;;  %v1549_v23 = vld [vmem:[#allocation12 + $0x178] sm:$0xff]  ;;  %v1542_v24 = vld [vmem:[#allocation12 + $0x140] sm:$0xff] }
 0x35a   :  { %1401 = vmatpush.msrb.mxu0 %v5582_v25  ;;  %1421 = vmatpush.msrb.mxu1 %v5583_v26  ;;  %v1543_v25 = vld [vmem:[#allocation12 + $0x148] sm:$0xff]  ;;  %v1544_v26 = vld [vmem:[#allocation12 + $0x150] sm:$0xff] }
 0x35b   :  { %1441 = vmatpush.msrb.mxu2 %v5584_v27  ;;  %1461 = vmatpush.msrb.mxu3 %v5585_v28  ;;  %v1545_v27 = vld [vmem:[#allocation12 + $0x158] sm:$0xff]  ;;  %v1538_v28 = vld [vmem:[#allocation12 + $0x120] sm:$0xff] }
 0x35c   :  { %1402 = vmatpush.msrb.mxu0 %v5586_v29  ;;  %1422 = vmatpush.msrb.mxu1 %v5587_v30  ;;  %v1539_v29 = vld [vmem:[#allocation12 + $0x128] sm:$0xff]  ;;  %v1540_v30 = vld [vmem:[#allocation12 + $0x130] sm:$0xff] }
 0x35d   :  { %1442 = vmatpush.msrb.mxu2 %v5588_v31  ;;  %1462 = vmatpush.msrb.mxu3 %v5589_v32  ;;  %v1541_v31 = vld [vmem:[#allocation12 + $0x138] sm:$0xff]  ;;  %v1534_v32 = vld [vmem:[#allocation12 + $0x100] sm:$0xff] }
 0x35e   :  { %1403 = vmatpush.msrb.mxu0 %v5590_v33  ;;  %1423 = vmatpush.msrb.mxu1 %v5591_v34  ;;  %v1535_v33 = vld [vmem:[#allocation12 + $0x108] sm:$0xff]  ;;  %v1536_v34 = vld [vmem:[#allocation12 + $0x110] sm:$0xff] }
 0x35f   :  { %1443 = vmatpush.msrb.mxu2 %v5592_v35  ;;  %1463 = vmatpush.msrb.mxu3 %v5593_v36  ;;  %v1537_v35 = vld [vmem:[#allocation12 + $0x118] sm:$0xff]  ;;  %v1530_v36 = vld [vmem:[#allocation12 + $0xe0] sm:$0xff] }
 0x3bb   :  { %v1059_v39 = vpop.f32.mrf.mxu0  ;;  %v1079_v40 = vpop.f32.mrf.mxu1 }
 0x3bc   :  { %v1122_v41 = vadd.f32 %v1059_v39, %v974_v37  ;;  %v1123_v42 = vadd.f32 %v1079_v40, %v975_v38  ;;  %v1531_v37 = vld [vmem:[#allocation12 + $0xe8] sm:$0xff]  ;;  %v1532_v38 = vld [vmem:[#allocation12 + $0xf0] sm:$0xff]  ;;  %v1533_v39 = vld [vmem:[#allocation12 + $0xf8] sm:$0xff] }
 0x3bd   :  { %v1526_v40 = vld [vmem:[#allocation12 + $0xc0] sm:$0xff] }
 0x3be   :  { %v1126_v43 = vmul.f32 0.5, %v1122_v41  ;;  %v1130_v44 = vmul.f32 0.5, %v1123_v42  ;;  %v1527_v41 = vld [vmem:[#allocation12 + $0xc8] sm:$0xff]  ;;  %v1528_v42 = vld [vmem:[#allocation12 + $0xd0] sm:$0xff] }
 0x3c0   :  { %3268 = vtanh.f32 %v1126_v43  ;;  %v1529_v43 = vld [vmem:[#allocation12 + $0xd8] sm:$0xff] }
 0x3c1   :  { %3270 = vtanh.f32 %v1130_v44  ;;  %v1522_v44 = vld [vmem:[#allocation12 + $0xa0] sm:$0xff] }
 0x3c2   :  { %v1099_v47 = vpop.f32.mrf.mxu2  ;;  %v1119_v50 = vpop.f32.mrf.mxu3 }
 0x3c3   :  { %v1124_v59 = vadd.f32 %v1099_v47, %v976_v45  ;;  %v1125_v60 = vadd.f32 %v1119_v50, %v977_v46  ;;  %v1523_v45 = vld [vmem:[#allocation12 + $0xa8] sm:$0xff]  ;;  %v1524_v46 = vld [vmem:[#allocation12 + $0xb0] sm:$0xff]  ;;  %v1525_v47 = vld [vmem:[#allocation12 + $0xb8] sm:$0xff] }
 0x3c4   :  { %v1518_v50 = vld [vmem:[#allocation12 + $0x80] sm:$0xff] }
 0x3c5   :  { %3272 = vtanh.f32 %v1124_v59  ;;  %v1135_v52 = vmul.f32 0.5, %v1125_v60  ;;  %v1519_v59 = vld [vmem:[#allocation12 + $0x88] sm:$0xff]  ;;  %v1520_v60 = vld [vmem:[#allocation12 + $0x90] sm:$0xff] }
 0x3c6   :  { %v3269_v53 = vpop.eup %3268 }
 0x3c7   :  { %v3271_v49 = vpop.eup %3270  ;;  %v1128_v55 = vmul.f32 0.5, %v3269_v53  ;;  %3274 = vtanh.f32 %v1135_v52  ;;  %v1521_v52 = vld [vmem:[#allocation12 + $0x98] sm:$0xff]  ;;  %v1147_v53 = vld [vmem:[#allocation6 + $0xc0] sm:$0xff] }
 0x3c8   :  { %v1132_v57 = vmul.f32 0.5, %v3271_v49  ;;  %v1148_v49 = vld [vmem:[#allocation6 + $0xc8] sm:$0xff] }
 0x3c9   :  { %v1129_v48 = vadd.f32 0.5, %v1128_v55  ;;  %v1514_v55 = vld [vmem:[#allocation12 + $0x60] sm:$0xff] }
 0x3ca   :  { %v1133_v58 = vadd.f32 0.5, %v1132_v57  ;;  %v1515_v57 = vld [vmem:[#allocation12 + $0x68] sm:$0xff] }
 0x3cb   :  { %v3273_v0 = vpop.eup %3272  ;;  %v1139_v1 = vmul.f32 %v1129_v48, %v4362_v18  ;;  %v1555_v18 = vld [vmem:[#allocation12 + $0x1a8] sm:$0xff]  ;;  %v1516_v48 = vld [vmem:[#allocation12 + $0x70] sm:$0xff] }
 0x3cc   :  { %v1140_v2 = vmul.f32 %v3273_v0, %v1133_v58 }
 0x3cd   :  { %v3275_v3 = vpop.eup %3274 }
 0x3ce   :  { %v4436_v4 = vadd.f32 %v1140_v2, %v1139_v1  ;;  %v1137_v5 = vmul.f32 0.5, %v3275_v3  ;;  %v1517_v1 = vld [vmem:[#allocation12 + $0x78] sm:$0xff]  ;;  %v1510_v2 = vld [vmem:[#allocation12 + $0x40] sm:$0xff]  ;;  %v1511_v3 = vld [vmem:[#allocation12 + $0x48] sm:$0xff] }
 0x3d0   :  { %3276 = vtanh.f32 %v4436_v4  ;;  %v1138_v6 = vadd.f32 0.5, %v1137_v5 }
 0x3d6   :  { %v3277_v11 = vpop.eup %3276 }
 0x3d7   :  { %v4439_v14 = vmul.f32 %v3277_v11, %v1138_v6  ;;  %v1512_v11 = vld [vmem:[#allocation12 + $0x50] sm:$0xff] }
 0x3d9   :  { %1231 = vmatmul.f32.vlgmr.msra.gmra.mxu0 %v4439_v14  ;;  %1251 = vmatmul.f32.vlgmr.msra.gmra.mxu1 %v4439_v14 }
 0x3da   :  { %1271 = vmatmul.f32.vlgmr.msra.gmra.mxu2 %v4439_v14  ;;  %1291 = vmatmul.f32.vlgmr.msra.gmra.mxu3 %v4439_v14 }
 0x3db   :  { %1576 = vmatpush.msra.mxu0 %v1562_v15  ;;  %1617 = vmatpush.msra.mxu1 %v1563_v16  ;;  %v1513_v15 = vld [vmem:[#allocation12 + $0x58] sm:$0xff]  ;;  %v1506_v16 = vld [vmem:[#allocation12 + $0x20] sm:$0xff] }
 0x3dc   :  { %1658 = vmatpush.msra.mxu2 %v1564_v56  ;;  %1699 = vmatpush.msra.mxu3 %v1565_v12  ;;  %v1507_v56 = vld [vmem:[#allocation12 + $0x28] sm:$0xff]  ;;  %v1508_v12 = vld [vmem:[#allocation12 + $0x30] sm:$0xff] }
 0x3dd   :  { %1577 = vmatpush.msra.mxu0 %v1558_v13  ;;  %1618 = vmatpush.msra.mxu1 %v1559_v20  ;;  %v1509_v13 = vld [vmem:[#allocation12 + $0x38] sm:$0xff] }
 0x3de   :  { %1659 = vmatpush.msra.mxu2 %v1560_v19  ;;  %1700 = vmatpush.msra.mxu3 %v1561_v9  ;;  %v1502_v9 = vld [vmem:[#allocation12] sm:$0xff] }
 0x3df   :  { %1578 = vmatpush.msra.mxu0 %v1554_v61  ;;  %1619 = vmatpush.msra.mxu1 %v1555_v18  ;;  %v1503_v61 = vld [vmem:[#allocation12 + $0x8] sm:$0xff]  ;;  %v1504_v18 = vld [vmem:[#allocation12 + $0x10] sm:$0xff] }
 0x3e0   :  { %1660 = vmatpush.msra.mxu2 %v1556_v17  ;;  %1701 = vmatpush.msra.mxu3 %v1557_v8  ;;  %v1505_v17 = vld [vmem:[#allocation12 + $0x18] sm:$0xff]  ;;  %v1149_v8 = vld [vmem:[#allocation6 + $0xd0] sm:$0xff] }
 0x3e1   :  { %1579 = vmatpush.msra.mxu0 %v1550_v7  ;;  %1620 = vmatpush.msra.mxu1 %v1551_v62  ;;  %v1150_v7 = vld [vmem:[#allocation6 + $0xd8] sm:$0xff] }
 0x3e2   :  { %1661 = vmatpush.msra.mxu2 %v1552_v63  ;;  %1702 = vmatpush.msra.mxu3 %v1553_v51 }
 0x3e3   :  { %1580 = vmatpush.msra.mxu0 %v1546_v54  ;;  %1621 = vmatpush.msra.mxu1 %v1547_v21 }
 0x3e4   :  { %1662 = vmatpush.msra.mxu2 %v1548_v22  ;;  %1703 = vmatpush.msra.mxu3 %v1549_v23 }
 0x3e5   :  { %1581 = vmatpush.msra.mxu0 %v1542_v24  ;;  %1622 = vmatpush.msra.mxu1 %v1543_v25 }
 0x3e6   :  { %1663 = vmatpush.msra.mxu2 %v1544_v26  ;;  %1704 = vmatpush.msra.mxu3 %v1545_v27 }
 0x3e7   :  { %1582 = vmatpush.msra.mxu0 %v1538_v28  ;;  %1623 = vmatpush.msra.mxu1 %v1539_v29 }
 0x3e8   :  { %1664 = vmatpush.msra.mxu2 %v1540_v30  ;;  %1705 = vmatpush.msra.mxu3 %v1541_v31 }
 0x3e9   :  { %1583 = vmatpush.msra.mxu0 %v1534_v32  ;;  %1624 = vmatpush.msra.mxu1 %v1535_v33 }
 0x3ea   :  { %1665 = vmatpush.msra.mxu2 %v1536_v34  ;;  %1706 = vmatpush.msra.mxu3 %v1537_v35 }
 0x3eb   :  { %1584 = vmatpush.msra.mxu0 %v1530_v36  ;;  %1625 = vmatpush.msra.mxu1 %v1531_v37  ;;  %v5595_v37 = vld [vmem:[#allocation23_spill] sm:$0xff] }
 0x3ec   :  { %1666 = vmatpush.msra.mxu2 %v1532_v38  ;;  %1707 = vmatpush.msra.mxu3 %v1533_v39  ;;  %v5596_v38 = vld [vmem:[#allocation25_spill] sm:$0xff] }
 0x3ed   :  { %1585 = vmatpush.msra.mxu0 %v1526_v40  ;;  %1626 = vmatpush.msra.mxu1 %v1527_v41  ;;  %v4467_v39 = vld [vmem:[#allocation11 + $0x1e0] sm:$0xff]  ;;  %v4469_v40 = vld [vmem:[#allocation11 + $0x1e8] sm:$0xff]  ;;  %v4471_v41 = vld [vmem:[#allocation11 + $0x1f0] sm:$0xff] }
 0x3ee   :  { %1667 = vmatpush.msra.mxu2 %v1528_v42  ;;  %1708 = vmatpush.msra.mxu3 %v1529_v43  ;;  %v4475_v42 = vld [vmem:[#allocation11 + $0x1c0] sm:$0xff]  ;;  %v4477_v43 = vld [vmem:[#allocation11 + $0x1c8] sm:$0xff] }
 0x3ef   :  { %1586 = vmatpush.msra.mxu0 %v1522_v44  ;;  %1627 = vmatpush.msra.mxu1 %v1523_v45  ;;  %v4479_v44 = vld [vmem:[#allocation11 + $0x1d0] sm:$0xff]  ;;  %v4482_v45 = vld [vmem:[#allocation11 + $0x1f8] sm:$0xff] }
 0x3f0   :  { %1668 = vmatpush.msra.mxu2 %v1524_v46  ;;  %1709 = vmatpush.msra.mxu3 %v1525_v47  ;;  %v4484_v46 = vld [vmem:[#allocation11 + $0x1a0] sm:$0xff]  ;;  %v4486_v47 = vld [vmem:[#allocation11 + $0x1a8] sm:$0xff] }
 0x3f1   :  { %1587 = vmatpush.msra.mxu0 %v1518_v50  ;;  %1628 = vmatpush.msra.mxu1 %v1519_v59  ;;  %v4490_v50 = vld [vmem:[#allocation11 + $0x1b0] sm:$0xff]  ;;  %v4492_v59 = vld [vmem:[#allocation11 + $0x1d8] sm:$0xff] }
 0x3f2   :  { %1669 = vmatpush.msra.mxu2 %v1520_v60  ;;  %1710 = vmatpush.msra.mxu3 %v1521_v52  ;;  %v4500_v60 = vld [vmem:[#allocation11 + $0x180] sm:$0xff]  ;;  %v4502_v52 = vld [vmem:[#allocation11 + $0x188] sm:$0xff] }
 0x3f3   :  { %1588 = vmatpush.msra.mxu0 %v1514_v55  ;;  %1629 = vmatpush.msra.mxu1 %v1515_v57  ;;  %v4508_v55 = vld [vmem:[#allocation11 + $0x1b8] sm:$0xff]  ;;  %v4512_v57 = vld [vmem:[#allocation11 + $0x160] sm:$0xff] }
 0x3f4   :  { %1670 = vmatpush.msra.mxu2 %v1516_v48  ;;  %1711 = vmatpush.msra.mxu3 %v1517_v1  ;;  %v4514_v48 = vld [vmem:[#allocation11 + $0x168] sm:$0xff]  ;;  %v4524_v1 = vld [vmem:[#allocation11 + $0x140] sm:$0xff] }
 0x3f5   :  { %1589 = vmatpush.msra.mxu0 %v1510_v2  ;;  %1630 = vmatpush.msra.mxu1 %v1511_v3  ;;  %v4526_v2 = vld [vmem:[#allocation11 + $0x148] sm:$0xff]  ;;  %v4530_v3 = vld [vmem:[#allocation11 + $0x150] sm:$0xff] }
 0x3f6   :  { %1671 = vmatpush.msra.mxu2 %v1512_v11  ;;  %1712 = vmatpush.msra.mxu3 %v1513_v15  ;;  %v4542_v11 = vld [vmem:[#allocation11 + $0x128] sm:$0xff]  ;;  %v4546_v15 = vld [vmem:[#allocation11 + $0x130] sm:$0xff] }
 0x3f7   :  { %1590 = vmatpush.msra.mxu0 %v1506_v16  ;;  %1631 = vmatpush.msra.mxu1 %v1507_v56  ;;  %v4548_v16 = vld [vmem:[#allocation11 + $0x158] sm:$0xff]  ;;  %v4566_v56 = vld [vmem:[#allocation11 + $0x108] sm:$0xff] }
 0x3f8   :  { %1672 = vmatpush.msra.mxu2 %v1508_v12  ;;  %1713 = vmatpush.msra.mxu3 %v1509_v13  ;;  %v4568_v12 = vld [vmem:[#allocation11 + $0x110] sm:$0xff]  ;;  %v4572_v13 = vld [vmem:[#allocation11 + $0x138] sm:$0xff] }
 0x3f9   :  { %1591 = vmatpush.msra.mxu0 %v1502_v9  ;;  %1632 = vmatpush.msra.mxu1 %v1503_v61  ;;  %v4585_v9 = vld [vmem:[#allocation11 + $0x118] sm:$0xff] }
 0x3fa   :  { %1673 = vmatpush.msra.mxu2 %v1504_v18  ;;  %1714 = vmatpush.msra.mxu3 %v1505_v17  ;;  %v4588_v61 = vld [vmem:[#allocation11 + $0xf8] sm:$0xff]  ;;  %v4591_v18 = vld [vmem:[#allocation11 + $0xc0] sm:$0xff]  ;;  %v4593_v17 = vld [vmem:[#allocation11 + $0xc8] sm:$0xff] }
 0x456   :  { %v1232_v58 = vpop.f32.mrf.mxu0  ;;  %v1252_v0 = vpop.f32.mrf.mxu1 }
 0x457   :  { %v1295_v5 = vadd.f32 %v1232_v58, %v1147_v53  ;;  %v1296_v6 = vadd.f32 %v1252_v0, %v1148_v49  ;;  %v5597_v53 = vld [vmem:[#allocation48_spill] sm:$0xff]  ;;  %v4506_v49 = vld [vmem:[#allocation11 + $0x190] sm:$0xff] }
 0x458   :  { %v4518_v58 = vld [vmem:[#allocation11 + $0x170] sm:$0xff]  ;;  %v4520_v0 = vld [vmem:[#allocation11 + $0x198] sm:$0xff] }
 0x459   :  { %v1299_v20 = vmul.f32 0.5, %v1295_v5  ;;  %v1303_v19 = vmul.f32 0.5, %v1296_v6  ;;  %v4532_v5 = vld [vmem:[#allocation11 + $0x178] sm:$0xff]  ;;  %v4540_v6 = vld [vmem:[#allocation11 + $0x120] sm:$0xff] }
 0x45b   :  { %3278 = vtanh.f32 %v1299_v20  ;;  %v4576_v20 = vld [vmem:[#allocation11 + $0xe8] sm:$0xff] }
 0x45c   :  { %3280 = vtanh.f32 %v1303_v19  ;;  %v4580_v19 = vld [vmem:[#allocation11 + $0xf0] sm:$0xff] }
 0x45d   :  { %v1272_v62 = vpop.f32.mrf.mxu2  ;;  %v1292_v63 = vpop.f32.mrf.mxu3 }
 0x45e   :  { %v1297_v51 = vadd.f32 %v1272_v62, %v1149_v8  ;;  %v1298_v54 = vadd.f32 %v1292_v63, %v1150_v7  ;;  %v4595_v8 = vld [vmem:[#allocation11 + $0xd0] sm:$0xff]  ;;  %v4599_v7 = vld [vmem:[#allocation11 + $0xd8] sm:$0xff]  ;;  %v4602_v62 = vld [vmem:[#allocation11 + $0xa0] sm:$0xff] }
 0x45f   :  { %v4604_v63 = vld [vmem:[#allocation11 + $0xa8] sm:$0xff] }
 0x460   :  { %3282 = vtanh.f32 %v1297_v51  ;;  %v1308_v21 = vmul.f32 0.5, %v1298_v54  ;;  %v4606_v51 = vld [vmem:[#allocation11 + $0xb0] sm:$0xff]  ;;  %v4611_v54 = vld [vmem:[#allocation11 + $0xb8] sm:$0xff] }
 0x461   :  { %v3279_v22 = vpop.eup %3278 }
 0x462   :  { %v3281_v23 = vpop.eup %3280  ;;  %v1301_v24 = vmul.f32 0.5, %v3279_v22  ;;  %3284 = vtanh.f32 %v1308_v21  ;;  %v4614_v21 = vld [vmem:[#allocation11 + $0x80] sm:$0xff]  ;;  %v4616_v22 = vld [vmem:[#allocation11 + $0x88] sm:$0xff] }
 0x463   :  { %v1305_v25 = vmul.f32 0.5, %v3281_v23  ;;  %5598 = vst [vmem:[#allocation24_spill] sm:$0xff] %v4616_v22  ;;  %v4618_v23 = vld [vmem:[#allocation11 + $0x90] sm:$0xff] }
 0x464   :  { %v1302_v26 = vadd.f32 0.5, %v1301_v24  ;;  %5599 = vst [vmem:[#allocation47_spill] sm:$0xff] %v4618_v23  ;;  %v1320_v24 = vld [vmem:[#allocation6 + $0xe0] sm:$0xff] }
 0x465   :  { %v1306_v27 = vadd.f32 0.5, %v1305_v25  ;;  %v1321_v25 = vld [vmem:[#allocation6 + $0xe8] sm:$0xff] }
 0x466   :  { %v3283_v28 = vpop.eup %3282  ;;  %v1312_v29 = vmul.f32 %v1302_v26, %v4436_v4  ;;  %v5594_v4 = vld [vmem:[#allocation43_spill] sm:$0xff] }
 0x467   :  { %v1313_v30 = vmul.f32 %v3283_v28, %v1306_v27  ;;  %v4623_v26 = vld [vmem:[#allocation11 + $0x98] sm:$0xff]  ;;  %v4626_v27 = vld [vmem:[#allocation11 + $0x60] sm:$0xff]  ;;  %v4628_v28 = vld [vmem:[#allocation11 + $0x68] sm:$0xff] }
 0x468   :  { %v3285_v31 = vpop.eup %3284  ;;  %5600 = vst [vmem:[#allocation29_spill] sm:$0xff] %v4623_v26 }
 0x469   :  { %v4446_v32 = vadd.f32 %v1313_v30, %v1312_v29  ;;  %v1310_v33 = vmul.f32 0.5, %v3285_v31  ;;  %5601 = vst [vmem:[#allocation26_spill] sm:$0xff] %v4626_v27  ;;  %v4630_v29 = vld [vmem:[#allocation11 + $0x70] sm:$0xff]  ;;  %v4635_v30 = vld [vmem:[#allocation11 + $0x40] sm:$0xff]  ;;  %v4637_v31 = vld [vmem:[#allocation11 + $0x48] sm:$0xff] }
 0x46a   :  { %5602 = vst [vmem:[#allocation27_spill] sm:$0xff] %v4628_v28 }
 0x46b   :  { %3286 = vtanh.f32 %v4446_v32  ;;  %v1311_v34 = vadd.f32 0.5, %v1310_v33  ;;  %5603 = vst [vmem:[#allocation28_spill] sm:$0xff] %v4630_v29  ;;  %v4639_v33 = vld [vmem:[#allocation11 + $0x50] sm:$0xff] }
 0x471   :  { %v3287_v35 = vpop.eup %3286 }
 0x472   :  { %v4449_v36 = vmul.f32 %v3287_v35, %v1311_v34 }
 0x474   :  { %1404 = vmatmul.f32.vlgmr.msrb.gmra.mxu0 %v4449_v36  ;;  %1424 = vmatmul.f32.vlgmr.msrb.gmra.mxu1 %v4449_v36 }
 0x475   :  { %1444 = vmatmul.f32.vlgmr.msrb.gmra.mxu2 %v4449_v36  ;;  %1464 = vmatmul.f32.vlgmr.msrb.gmra.mxu3 %v4449_v36 }
 0x476   :  { %1844 = vmatpush.msrb.mxu0 %v4467_v39  ;;  %1864 = vmatpush.msrb.mxu1 %v4469_v40 }
 0x477   :  { %1884 = vmatpush.msrb.mxu2 %v4471_v41  ;;  %1904 = vmatpush.msrb.mxu3 %v4482_v45 }
 0x478   :  { %1845 = vmatpush.msrb.mxu0 %v4475_v42  ;;  %1865 = vmatpush.msrb.mxu1 %v4477_v43 }
 0x479   :  { %1885 = vmatpush.msrb.mxu2 %v4479_v44  ;;  %1905 = vmatpush.msrb.mxu3 %v4492_v59 }
 0x47a   :  { %1846 = vmatpush.msrb.mxu0 %v4484_v46  ;;  %1866 = vmatpush.msrb.mxu1 %v4486_v47 }
 0x47b   :  { %1886 = vmatpush.msrb.mxu2 %v4490_v50  ;;  %1906 = vmatpush.msrb.mxu3 %v4508_v55 }
 0x47c   :  { %1592 = vmatmul.f32.vlgmr.msra.gmra.mxu0 %v5594_v4  ;;  %1633 = vmatmul.f32.vlgmr.msra.gmra.mxu1 %v5594_v4 }
 0x47d   :  { %1674 = vmatmul.f32.vlgmr.msra.gmra.mxu2 %v5594_v4  ;;  %1715 = vmatmul.f32.vlgmr.msra.gmra.mxu3 %v5594_v4  ;;  %v4644_v4 = vld [vmem:[#allocation11 + $0x20] sm:$0xff] }
 0x47e   :  { %1847 = vmatpush.msrb.mxu0 %v4500_v60  ;;  %1867 = vmatpush.msrb.mxu1 %v4502_v52 }
 0x47f   :  { %1887 = vmatpush.msrb.mxu2 %v4506_v49  ;;  %1907 = vmatpush.msrb.mxu3 %v4520_v0 }
 0x480   :  { %1848 = vmatpush.msrb.mxu0 %v4512_v57  ;;  %1868 = vmatpush.msrb.mxu1 %v4514_v48 }
 0x481   :  { %1888 = vmatpush.msrb.mxu2 %v4518_v58  ;;  %1908 = vmatpush.msrb.mxu3 %v4532_v5 }
 0x482   :  { %1849 = vmatpush.msrb.mxu0 %v4524_v1  ;;  %1869 = vmatpush.msrb.mxu1 %v4526_v2 }
 0x483   :  { %1889 = vmatpush.msrb.mxu2 %v4530_v3  ;;  %1909 = vmatpush.msrb.mxu3 %v4548_v16 }
 0x484   :  { %1595 = vmatmul.f32.gmra.mxu0 %v5595_v37  ;;  %1636 = vmatmul.f32.gmra.mxu1 %v5595_v37 }
 0x485   :  { %1677 = vmatmul.f32.gmra.mxu2 %v5595_v37  ;;  %1718 = vmatmul.f32.gmra.mxu3 %v5595_v37  ;;  %v4646_v37 = vld [vmem:[#allocation11 + $0x28] sm:$0xff] }
 0x486   :  { %1850 = vmatpush.msrb.mxu0 %v4540_v6  ;;  %1870 = vmatpush.msrb.mxu1 %v4542_v11  ;;  %5604 = vst [vmem:[#allocation33_spill] sm:$0xff] %v4646_v37 }
 0x487   :  { %1890 = vmatpush.msrb.mxu2 %v4546_v15  ;;  %1910 = vmatpush.msrb.mxu3 %v4572_v13 }
 0x488   :  { %1871 = vmatpush.msrb.mxu1 %v4566_v56 }
 0x489   :  { %1891 = vmatpush.msrb.mxu2 %v4568_v12  ;;  %1911 = vmatpush.msrb.mxu3 %v4585_v9 }
 0x48a   :  { %1872 = vmatpush.msrb.mxu1 %v4576_v20 }
 0x48b   :  { %1892 = vmatpush.msrb.mxu2 %v4580_v19  ;;  %1912 = vmatpush.msrb.mxu3 %v4588_v61 }
 0x48c   :  { %1598 = vmatmul.f32.gmra.mxu0 %v5596_v38  ;;  %1639 = vmatmul.f32.gmra.mxu1 %v5596_v38 }
 0x48d   :  { %1680 = vmatmul.f32.gmra.mxu2 %v5596_v38  ;;  %1721 = vmatmul.f32.gmra.mxu3 %v5596_v38 }
 0x48e   :  { %1873 = vmatpush.msrb.mxu1 %v4593_v17  ;;  %1893 = vmatpush.msrb.mxu2 %v4595_v8 }
 0x48f   :  { %1913 = vmatpush.msrb.mxu3 %v4599_v7 }
 0x490   :  { %1874 = vmatpush.msrb.mxu1 %v4604_v63  ;;  %1894 = vmatpush.msrb.mxu2 %v4606_v51 }
 0x491   :  { %1914 = vmatpush.msrb.mxu3 %v4611_v54 }
 0x492   :  { %1875 = vmatpush.msrb.mxu1 %v4616_v22  ;;  %1895 = vmatpush.msrb.mxu2 %v4618_v23 }
 0x493   :  { %1915 = vmatpush.msrb.mxu3 %v4623_v26  ;;  %v4658_v26 = vld [vmem:[#allocation11 + $0x8] sm:$0xff] }
 0x494   :  { %1601 = vmatmul.f32.gmra.mxu0 %v5597_v53  ;;  %1642 = vmatmul.f32.gmra.mxu1 %v5597_v53 }
 0x495   :  { %1683 = vmatmul.f32.gmra.mxu2 %v5597_v53  ;;  %1724 = vmatmul.f32.gmra.mxu3 %v5597_v53 }
 0x496   :  { %1876 = vmatpush.msrb.mxu1 %v4628_v28  ;;  %1896 = vmatpush.msrb.mxu2 %v4630_v29  ;;  %v4650_v28 = vld [vmem:[#allocation11 + $0x30] sm:$0xff]  ;;  %v4656_v29 = vld [vmem:[#allocation11] sm:$0xff] }
 0x497   :  { %5605 = vst [vmem:[#allocation30_spill] sm:$0xff] %v4650_v28 }
 0x498   :  { %1877 = vmatpush.msrb.mxu1 %v4637_v31  ;;  %1897 = vmatpush.msrb.mxu2 %v4639_v33 }
 0x49a   :  { %1878 = vmatpush.msrb.mxu1 %v4646_v37  ;;  %1898 = vmatpush.msrb.mxu2 %v4650_v28 }
 0x49c   :  { %1604 = vmatmul.f32.gmra.mxu0 %v4365_v10  ;;  %1645 = vmatmul.f32.gmra.mxu1 %v4365_v10 }
 0x49d   :  { %1686 = vmatmul.f32.gmra.mxu2 %v4365_v10  ;;  %1727 = vmatmul.f32.gmra.mxu3 %v4365_v10  ;;  %v4564_v10 = vld [vmem:[#allocation11 + $0x100] sm:$0xff] }
 0x49e   :  { %1851 = vmatpush.msrb.mxu0 %v4564_v10  ;;  %1879 = vmatpush.msrb.mxu1 %v4658_v26 }
 0x4a0   :  { %2036 = vmatpush.msra.mxu1 %v4469_v40 }
 0x4a2   :  { %2037 = vmatpush.msra.mxu1 %v4477_v43 }
 0x4a4   :  { %1607 = vmatmul.f32.gmra.mxu0 %v4439_v14  ;;  %1648 = vmatmul.f32.gmra.mxu1 %v4439_v14 }
 0x4a5   :  { %1689 = vmatmul.f32.gmra.mxu2 %v4439_v14  ;;  %1730 = vmatmul.f32.gmra.mxu3 %v4439_v14  ;;  %v4574_v14 = vld [vmem:[#allocation11 + $0xe0] sm:$0xff] }
 0x4a6   :  { %1852 = vmatpush.msrb.mxu0 %v4574_v14  ;;  %2038 = vmatpush.msra.mxu1 %v4486_v47 }
 0x4a8   :  { %1853 = vmatpush.msrb.mxu0 %v4591_v18  ;;  %2039 = vmatpush.msra.mxu1 %v4502_v52 }
 0x4aa   :  { %1854 = vmatpush.msrb.mxu0 %v4602_v62  ;;  %2040 = vmatpush.msra.mxu1 %v4514_v48 }
 0x4ac   :  { %1610 = vmatmul.f32.gmra.mxu0 %v4449_v36  ;;  %1651 = vmatmul.f32.gmra.mxu1 %v4449_v36 }
 0x4ad   :  { %1692 = vmatmul.f32.gmra.mxu2 %v4449_v36  ;;  %1733 = vmatmul.f32.gmra.mxu3 %v4449_v36  ;;  %v4642_v36 = vld [vmem:[#allocation11 + $0x78] sm:$0xff] }
 0x4ae   :  { %1855 = vmatpush.msrb.mxu0 %v4614_v21  ;;  %1916 = vmatpush.msrb.mxu3 %v4642_v36 }
 0x4af   :  { %2041 = vmatpush.msra.mxu1 %v4526_v2 }
 0x4b0   :  { %1856 = vmatpush.msrb.mxu0 %v4626_v27  ;;  %v4652_v27 = vld [vmem:[#allocation11 + $0x58] sm:$0xff] }
 0x4b1   :  { %5606 = vst [vmem:[#allocation31_spill] sm:$0xff] %v4652_v27  ;;  %1917 = vmatpush.msrb.mxu3 %v4652_v27  ;;  %2042 = vmatpush.msra.mxu1 %v4542_v11 }
 0x4b2   :  { %1857 = vmatpush.msrb.mxu0 %v4635_v30 }
 0x4b3   :  { %2043 = vmatpush.msra.mxu1 %v4566_v56 }
 0x4b4   :  { %1858 = vmatpush.msrb.mxu0 %v4644_v4 }
 0x4b5   :  { %2044 = vmatpush.msra.mxu1 %v4576_v20 }
 0x4b6   :  { %1859 = vmatpush.msrb.mxu0 %v4656_v29 }
 0x4b7   :  { %2045 = vmatpush.msra.mxu1 %v4593_v17 }
 0x4b8   :  { %2016 = vmatpush.msra.mxu0 %v4467_v39 }
 0x4b9   :  { %2046 = vmatpush.msra.mxu1 %v4604_v63 }
 0x4ba   :  { %2017 = vmatpush.msra.mxu0 %v4475_v42 }
 0x4bc   :  { %2018 = vmatpush.msra.mxu0 %v4484_v46 }
 0x4be   :  { %2019 = vmatpush.msra.mxu0 %v4500_v60 }
 0x4c0   :  { %2020 = vmatpush.msra.mxu0 %v4512_v57 }
 0x4c2   :  { %2021 = vmatpush.msra.mxu0 %v4524_v1 }
 0x4c4   :  { %2022 = vmatpush.msra.mxu0 %v4540_v6 }
 0x4c6   :  { %2023 = vmatpush.msra.mxu0 %v4564_v10 }
 0x4c8   :  { %2024 = vmatpush.msra.mxu0 %v4574_v14 }
 0x4ca   :  { %2025 = vmatpush.msra.mxu0 %v4591_v18 }
 0x4cc   :  { %2026 = vmatpush.msra.mxu0 %v4602_v62 }
 0x4ce   :  { %2027 = vmatpush.msra.mxu0 %v4614_v21 }
 0x4f1   :  { %v1405_v34 = vpop.f32.mrf.mxu0  ;;  %v1425_v35 = vpop.f32.mrf.mxu1 }
 0x4f2   :  { %v1468_v38 = vadd.f32 %v1405_v34, %v1320_v24  ;;  %v1469_v53 = vadd.f32 %v1425_v35, %v1321_v25  ;;  %v4662_v24 = vld [vmem:[#allocation11 + $0x10] sm:$0xff]  ;;  %v4664_v25 = vld [vmem:[#allocation11 + $0x38] sm:$0xff] }
 0x4f3   :  { %5607 = vst [vmem:[#allocation32_spill] sm:$0xff] %v4662_v24  ;;  %v1322_v34 = vld [vmem:[#allocation6 + $0xf0] sm:$0xff]  ;;  %v1323_v35 = vld [vmem:[#allocation6 + $0xf8] sm:$0xff]  ;;  %1899 = vmatpush.msrb.mxu2 %v4662_v24  ;;  %1918 = vmatpush.msrb.mxu3 %v4664_v25 }
 0x4f4   :  { %v1472_v23 = vmul.f32 0.5, %v1468_v38  ;;  %v1476_v22 = vmul.f32 0.5, %v1469_v53  ;;  %v4670_v38 = vld [vmem:[#allocation11 + $0x18] sm:$0xff] }
 0x4f5   :  { %1919 = vmatpush.msrb.mxu3 %v4670_v38  ;;  %2056 = vmatpush.msra.mxu2 %v4471_v41 }
 0x4f6   :  { %3288 = vtanh.f32 %v1472_v23 }
 0x4f7   :  { %3290 = vtanh.f32 %v1476_v22  ;;  %2076 = vmatpush.msra.mxu3 %v4482_v45  ;;  %2057 = vmatpush.msra.mxu2 %v4479_v44 }
 0x4f8   :  { %v1445_v53 = vpop.f32.mrf.mxu2  ;;  %v1465_v37 = vpop.f32.mrf.mxu3 }
 0x4f9   :  { %v1470_v23 = vadd.f32 %v1445_v53, %v1322_v34  ;;  %v1471_v28 = vadd.f32 %v1465_v37, %v1323_v35  ;;  %2077 = vmatpush.msra.mxu3 %v4492_v59  ;;  %2058 = vmatpush.msra.mxu2 %v4490_v50 }
 0x4fb   :  { %3292 = vtanh.f32 %v1470_v23  ;;  %v1481_v22 = vmul.f32 0.5, %v1471_v28  ;;  %2078 = vmatpush.msra.mxu3 %v4508_v55  ;;  %2059 = vmatpush.msra.mxu2 %v4506_v49 }
 0x4fc   :  { %v3289_v24 = vpop.eup %3288 }
 0x4fd   :  { %v3291_v37 = vpop.eup %3290  ;;  %v1474_v34 = vmul.f32 0.5, %v3289_v24  ;;  %3294 = vtanh.f32 %v1481_v22  ;;  %2079 = vmatpush.msra.mxu3 %v4520_v0  ;;  %2060 = vmatpush.msra.mxu2 %v4518_v58 }
 0x4fe   :  { %v1478_v35 = vmul.f32 0.5, %v3291_v37 }
 0x4ff   :  { %v1475_v28 = vadd.f32 0.5, %v1474_v34  ;;  %2080 = vmatpush.msra.mxu3 %v4532_v5  ;;  %2061 = vmatpush.msra.mxu2 %v4530_v3 }
 0x500   :  { %v1479_v53 = vadd.f32 0.5, %v1478_v35 }
 0x501   :  { %v3293_v24 = vpop.eup %3292  ;;  %v1485_v23 = vmul.f32 %v1475_v28, %v4446_v32  ;;  %2081 = vmatpush.msra.mxu3 %v4548_v16  ;;  %2062 = vmatpush.msra.mxu2 %v4546_v15 }
 0x502   :  { %v1486_v22 = vmul.f32 %v3293_v24, %v1479_v53  ;;  %v5608_v24 = vld [vmem:[#allocation24_spill] sm:$0xff] }
 0x503   :  { %v3295_v37 = vpop.eup %3294  ;;  %2082 = vmatpush.msra.mxu3 %v4572_v13  ;;  %2063 = vmatpush.msra.mxu2 %v4568_v12 }
 0x504   :  { %v1487_v34 = vadd.f32 %v1486_v22, %v1485_v23  ;;  %v1483_v32 = vmul.f32 0.5, %v3295_v37  ;;  %2047 = vmatpush.msra.mxu1 %v5608_v24  ;;  %v5609_v23 = vld [vmem:[#allocation47_spill] sm:$0xff]  ;;  %v5610_v22 = vld [vmem:[#allocation29_spill] sm:$0xff]  ;;  %v5611_v37 = vld [vmem:[#allocation26_spill] sm:$0xff] }
 0x505   :  { %2083 = vmatpush.msra.mxu3 %v4585_v9  ;;  %2064 = vmatpush.msra.mxu2 %v4580_v19 }
 0x506   :  { %3296 = vtanh.f32 %v1487_v34  ;;  %v1484_v35 = vadd.f32 0.5, %v1483_v32  ;;  %2028 = vmatpush.msra.mxu0 %v5611_v37  ;;  %v5612_v34 = vld [vmem:[#allocation27_spill] sm:$0xff]  ;;  %v5613_v32 = vld [vmem:[#allocation28_spill] sm:$0xff] }
 0x507   :  { %2084 = vmatpush.msra.mxu3 %v4588_v61  ;;  %2065 = vmatpush.msra.mxu2 %v4595_v8 }
 0x508   :  { %2048 = vmatpush.msra.mxu1 %v5612_v34  ;;  %2029 = vmatpush.msra.mxu0 %v4635_v30 }
 0x509   :  { %2085 = vmatpush.msra.mxu3 %v4599_v7  ;;  %2066 = vmatpush.msra.mxu2 %v4606_v51 }
 0x50a   :  { %2049 = vmatpush.msra.mxu1 %v4637_v31  ;;  %2030 = vmatpush.msra.mxu0 %v4644_v4 }
 0x50b   :  { %2086 = vmatpush.msra.mxu3 %v4611_v54  ;;  %2067 = vmatpush.msra.mxu2 %v5609_v23 }
 0x50c   :  { %v3297_v28 = vpop.eup %3296  ;;  %2031 = vmatpush.msra.mxu0 %v4656_v29 }
 0x50d   :  { %v1489_v53 = vmul.f32 %v3297_v28, %v1484_v35  ;;  %2087 = vmatpush.msra.mxu3 %v5610_v22  ;;  %2068 = vmatpush.msra.mxu2 %v5613_v32  ;;  %v5614_v35 = vmov 0.0   ;;  %v5615_v28 = vld [vmem:[#allocation33_spill] sm:$0xff] }
 0x50e   :  { %2050 = vmatpush.msra.mxu1 %v5615_v28 }
 0x50f   :  { %3165 = vst [vmem:[#allocation16] sm:$0xff] %v1489_v53  ;;  %1613 = vmatmul.f32.gmra.mxu0 %v1489_v53  ;;  %1654 = vmatmul.f32.gmra.mxu1 %v1489_v53 }
 0x510   :  { %1695 = vmatmul.f32.gmra.mxu2 %v1489_v53  ;;  %1736 = vmatmul.f32.gmra.mxu3 %v1489_v53  ;;  %v5616_v53 = vld [vmem:[#allocation30_spill] sm:$0xff] }
 0x511   :  { %2088 = vmatpush.msra.mxu3 %v4642_v36  ;;  %2069 = vmatpush.msra.mxu2 %v4639_v33 }
 0x512   :  { %2051 = vmatpush.msra.mxu1 %v4658_v26 }
 0x513   :  { %2089 = vmatpush.msra.mxu3 %v4652_v27  ;;  %2070 = vmatpush.msra.mxu2 %v5616_v53  ;;  %v5617_v27 = vld [vmem:[#allocation32_spill] sm:$0xff] }
 0x515   :  { %2090 = vmatpush.msra.mxu3 %v4664_v25  ;;  %2071 = vmatpush.msra.mxu2 %v5617_v27 }
 0x517   :  { %1860 = vmatmul.f32.vlgmr.msrb.gmra.mxu0 %v5614_v35  ;;  %1880 = vmatmul.f32.vlgmr.msrb.gmra.mxu1 %v5614_v35 }
 0x518   :  { %1900 = vmatmul.f32.vlgmr.msrb.gmra.mxu2 %v5614_v35  ;;  %1920 = vmatmul.f32.vlgmr.msrb.gmra.mxu3 %v5614_v35 }
 0x519   :  { %2091 = vmatpush.msra.mxu3 %v4670_v38  ;;  %2189 = vmatpush.msrb.mxu0 %v4467_v39  ;;  %v5618_v39 = vld [vmem:[#allocation31_spill] sm:$0xff] }
 0x51a   :  { %2209 = vmatpush.msrb.mxu1 %v4469_v40  ;;  %2229 = vmatpush.msrb.mxu2 %v4471_v41  ;;  %v1593_v40 = vpop.f32.mrf.mxu0  ;;  %v1634_v41 = vpop.f32.mrf.mxu1 }
 0x51b   :  { %2249 = vmatpush.msrb.mxu3 %v4482_v45  ;;  %2190 = vmatpush.msrb.mxu0 %v4475_v42  ;;  %v1675_v42 = vpop.f32.mrf.mxu2 }
 0x51c   :  { %2210 = vmatpush.msrb.mxu1 %v4477_v43  ;;  %2230 = vmatpush.msrb.mxu2 %v4479_v44  ;;  %v1716_v43 = vpop.f32.mrf.mxu3 }
 0x51d   :  { %2250 = vmatpush.msrb.mxu3 %v4492_v59  ;;  %2191 = vmatpush.msrb.mxu0 %v4484_v46 }
 0x51e   :  { %2211 = vmatpush.msrb.mxu1 %v4486_v47  ;;  %2231 = vmatpush.msrb.mxu2 %v4490_v50 }
 0x51f   :  { %2251 = vmatpush.msrb.mxu3 %v4508_v55  ;;  %2192 = vmatpush.msrb.mxu0 %v4500_v60 }
 0x520   :  { %2212 = vmatpush.msrb.mxu1 %v4502_v52  ;;  %2232 = vmatpush.msrb.mxu2 %v4506_v49 }
 0x521   :  { %2252 = vmatpush.msrb.mxu3 %v4520_v0  ;;  %2193 = vmatpush.msrb.mxu0 %v4512_v57 }
 0x522   :  { %2213 = vmatpush.msrb.mxu1 %v4514_v48  ;;  %2233 = vmatpush.msrb.mxu2 %v4518_v58  ;;  %v4808_v44 = vpop.f32.mrf.mxu0  ;;  %v4810_v45 = vpop.f32.mrf.mxu1 }
 0x523   :  { %2253 = vmatpush.msrb.mxu3 %v4532_v5  ;;  %2194 = vmatpush.msrb.mxu0 %v4524_v1  ;;  %v4812_v46 = vpop.f32.mrf.mxu2 }
 0x524   :  { %2214 = vmatpush.msrb.mxu1 %v4526_v2  ;;  %2234 = vmatpush.msrb.mxu2 %v4530_v3  ;;  %v4814_v47 = vpop.f32.mrf.mxu3 }
 0x525   :  { %2254 = vmatpush.msrb.mxu3 %v4548_v16  ;;  %2195 = vmatpush.msrb.mxu0 %v4540_v6 }
 0x526   :  { %2215 = vmatpush.msrb.mxu1 %v4542_v11  ;;  %2235 = vmatpush.msrb.mxu2 %v4546_v15 }
 0x527   :  { %2255 = vmatpush.msrb.mxu3 %v4572_v13  ;;  %2196 = vmatpush.msrb.mxu0 %v4564_v10 }
 0x528   :  { %2216 = vmatpush.msrb.mxu1 %v4566_v56  ;;  %2236 = vmatpush.msrb.mxu2 %v4568_v12  ;;  %v1566_v12 = vld [vmem:[#allocation14] sm:$0xf] }
 0x529   :  { %2256 = vmatpush.msrb.mxu3 %v4585_v9  ;;  %2197 = vmatpush.msrb.mxu0 %v4574_v14 }
 0x52a   :  { %2217 = vmatpush.msrb.mxu1 %v4576_v20  ;;  %2237 = vmatpush.msrb.mxu2 %v4580_v19  ;;  %v4816_v50 = vpop.f32.mrf.mxu0  ;;  %v4818_v59 = vpop.f32.mrf.mxu1  ;;  %v4860_v20 = vperm.slane %v1566_v12, 0  ;;  %v4862_v19 = vperm.slane %v1566_v12, 1 }
 0x52b   :  { %2257 = vmatpush.msrb.mxu3 %v4588_v61  ;;  %2198 = vmatpush.msrb.mxu0 %v4591_v18  ;;  %v4820_v60 = vpop.f32.mrf.mxu2 }
 0x52c   :  { %2218 = vmatpush.msrb.mxu1 %v4593_v17  ;;  %2238 = vmatpush.msrb.mxu2 %v4595_v8  ;;  %v4822_v52 = vpop.f32.mrf.mxu3  ;;  %5637 = vst [vmem:[#allocation29_spill] sm:$0xff] %v4860_v20  ;;  %v1594_v9 = vadd.f32 %v1593_v40, %v4860_v20  ;;  %v1635_v61 = vadd.f32 %v1634_v41, %v4862_v19 }
 0x52d   :  { %2258 = vmatpush.msrb.mxu3 %v4599_v7  ;;  %2199 = vmatpush.msrb.mxu0 %v4602_v62  ;;  %5638 = vst [vmem:[#allocation26_spill] sm:$0xff] %v4862_v19 }
 0x52e   :  { %2219 = vmatpush.msrb.mxu1 %v4604_v63  ;;  %2239 = vmatpush.msrb.mxu2 %v4606_v51  ;;  %v4870_v51 = vperm.slane %v1566_v12, 2 }
 0x52f   :  { %2259 = vmatpush.msrb.mxu3 %v4611_v54  ;;  %2200 = vmatpush.msrb.mxu0 %v4614_v21  ;;  %v4872_v54 = vperm.slane %v1566_v12, 3 }
 0x530   :  { %2220 = vmatpush.msrb.mxu1 %v5608_v24  ;;  %2240 = vmatpush.msrb.mxu2 %v5609_v23  ;;  %5641 = vst [vmem:[#allocation33_spill] sm:$0xff] %v4870_v51 }
 0x531   :  { %2260 = vmatpush.msrb.mxu3 %v5610_v22  ;;  %2201 = vmatpush.msrb.mxu0 %v5611_v37  ;;  %5642 = vst [vmem:[#allocation30_spill] sm:$0xff] %v4872_v54 }
 0x532   :  { %2221 = vmatpush.msrb.mxu1 %v5612_v34  ;;  %2241 = vmatpush.msrb.mxu2 %v5613_v32  ;;  %v4824_v49 = vpop.f32.mrf.mxu0  ;;  %v4826_v55 = vpop.f32.mrf.mxu1 }
 0x533   :  { %2261 = vmatpush.msrb.mxu3 %v4642_v36  ;;  %2202 = vmatpush.msrb.mxu0 %v4635_v30  ;;  %5619 = vst [vmem:[#allocation37_spill] sm:$0xff] %v4824_v49  ;;  %v4828_v57 = vpop.f32.mrf.mxu2  ;;  %v5043_v49 = vld [vmem:[#allocation11 + $0x40] sm:$0xff] }
 0x534   :  { %2222 = vmatpush.msrb.mxu1 %v4637_v31  ;;  %2242 = vmatpush.msrb.mxu2 %v4639_v33  ;;  %5620 = vst [vmem:[#allocation34_spill] sm:$0xff] %v4826_v55  ;;  %v4830_v48 = vpop.f32.mrf.mxu3  ;;  %v5039_v55 = vld [vmem:[#allocation11 + $0x78] sm:$0xff] }
 0x535   :  { %2262 = vmatpush.msrb.mxu3 %v5618_v39  ;;  %2203 = vmatpush.msrb.mxu0 %v4644_v4  ;;  %5621 = vst [vmem:[#allocation35_spill] sm:$0xff] %v4828_v57  ;;  %v5035_v57 = vld [vmem:[#allocation11 + $0x70] sm:$0xff] }
 0x536   :  { %2223 = vmatpush.msrb.mxu1 %v5615_v28  ;;  %2243 = vmatpush.msrb.mxu2 %v5616_v53  ;;  %5622 = vst [vmem:[#allocation36_spill] sm:$0xff] %v4830_v48  ;;  %v5033_v48 = vld [vmem:[#allocation11 + $0x68] sm:$0xff] }
 0x537   :  { %2263 = vmatpush.msrb.mxu3 %v4664_v25  ;;  %2204 = vmatpush.msrb.mxu0 %v4656_v29  ;;  %v1717_v29 = vadd.f32 %v1716_v43, %v4872_v54  ;;  %5650 = vst [vmem:[#allocation54_spill] sm:$0xff] %v5033_v48 }
 0x538   :  { %2224 = vmatpush.msrb.mxu1 %v4658_v26  ;;  %2244 = vmatpush.msrb.mxu2 %v5617_v27  ;;  %v1676_v27 = vadd.f32 %v1675_v42, %v4870_v51  ;;  %5651 = vst [vmem:[#allocation55_spill] sm:$0xff] %v5035_v57 }
 0x539   :  { %2264 = vmatpush.msrb.mxu3 %v4670_v38  ;;  %5652 = vst [vmem:[#allocation56_spill] sm:$0xff] %v5043_v49 }
 0x53a   :  { %v4832_v58 = vpop.f32.mrf.mxu0  ;;  %v4834_v0 = vpop.f32.mrf.mxu1 }
 0x53b   :  { %5623 = vst [vmem:[#allocation41_spill] sm:$0xff] %v4832_v58  ;;  %v4836_v1 = vpop.f32.mrf.mxu2  ;;  %v5031_v58 = vld [vmem:[#allocation11 + $0x60] sm:$0xff] }
 0x53c   :  { %5624 = vst [vmem:[#allocation38_spill] sm:$0xff] %v4834_v0  ;;  %v4838_v2 = vpop.f32.mrf.mxu3  ;;  %v5027_v0 = vld [vmem:[#allocation11 + $0x98] sm:$0xff] }
 0x53d   :  { %5625 = vst [vmem:[#allocation39_spill] sm:$0xff] %v4836_v1  ;;  %v5023_v1 = vld [vmem:[#allocation11 + $0x90] sm:$0xff] }
 0x53e   :  { %5626 = vst [vmem:[#allocation40_spill] sm:$0xff] %v4838_v2  ;;  %v5021_v2 = vld [vmem:[#allocation11 + $0x88] sm:$0xff] }
 0x53f   :  { %5647 = vst [vmem:[#allocation51_spill] sm:$0xff] %v5023_v1 }
 0x540   :  { %5648 = vst [vmem:[#allocation52_spill] sm:$0xff] %v5027_v0 }
 0x541   :  { %5649 = vst [vmem:[#allocation53_spill] sm:$0xff] %v5031_v58 }
 0x542   :  { %v4840_v3 = vpop.f32.mrf.mxu0  ;;  %v4842_v5 = vpop.f32.mrf.mxu1 }
 0x543   :  { %5627 = vst [vmem:[#allocation42_spill] sm:$0xff] %v4840_v3  ;;  %v4844_v6 = vpop.f32.mrf.mxu2  ;;  %v5019_v3 = vld [vmem:[#allocation11 + $0x80] sm:$0xff] }
 0x544   :  { %5628 = vst [vmem:[#allocation44_spill] sm:$0xff] %v4842_v5  ;;  %v4846_v11 = vpop.f32.mrf.mxu3  ;;  %v5015_v5 = vld [vmem:[#allocation11 + $0xb8] sm:$0xff] }
 0x545   :  { %5629 = vst [vmem:[#allocation45_spill] sm:$0xff] %v4844_v6  ;;  %v5011_v6 = vld [vmem:[#allocation11 + $0xb0] sm:$0xff] }
 0x546   :  { %5630 = vst [vmem:[#allocation46_spill] sm:$0xff] %v4846_v11  ;;  %v5009_v11 = vld [vmem:[#allocation11 + $0xa8] sm:$0xff] }
 0x547   :  { %5646 = vst [vmem:[#allocation50_spill] sm:$0xff] %v5015_v5 }
 0x54a   :  { %v4848_v15 = vpop.f32.mrf.mxu0  ;;  %v4850_v16 = vpop.f32.mrf.mxu1 }
 0x54b   :  { %5631 = vst [vmem:[#allocation43_spill] sm:$0xff] %v4848_v15  ;;  %v4852_v10 = vpop.f32.mrf.mxu2  ;;  %v5007_v15 = vld [vmem:[#allocation11 + $0xa0] sm:$0xff] }
 0x54c   :  { %5632 = vst [vmem:[#allocation23_spill] sm:$0xff] %v4850_v16  ;;  %v4854_v56 = vpop.f32.mrf.mxu3  ;;  %v5003_v16 = vld [vmem:[#allocation11 + $0xd8] sm:$0xff] }
 0x54d   :  { %5633 = vst [vmem:[#allocation25_spill] sm:$0xff] %v4852_v10  ;;  %v4999_v10 = vld [vmem:[#allocation11 + $0xd0] sm:$0xff] }
 0x54e   :  { %5634 = vst [vmem:[#allocation48_spill] sm:$0xff] %v4854_v56  ;;  %v4997_v56 = vld [vmem:[#allocation11 + $0xc8] sm:$0xff] }
 0x54f   :  { %5645 = vst [vmem:[#allocation49_spill] sm:$0xff] %v5003_v16 }
 0x58c   :  { %v4856_v13 = vpop.f32.mrf.mxu0  ;;  %v4858_v14 = vpop.f32.mrf.mxu1 }
 0x58d   :  { %5635 = vst [vmem:[#allocation24_spill] sm:$0xff] %v4856_v13  ;;  %v4995_v13 = vld [vmem:[#allocation11 + $0xc0] sm:$0xff] }
 0x58e   :  { %5636 = vst [vmem:[#allocation47_spill] sm:$0xff] %v4858_v14  ;;  %v4991_v14 = vld [vmem:[#allocation11 + $0xf8] sm:$0xff] }
 0x58f   :  { %5644 = vst [vmem:[#allocation31_spill] sm:$0xff] %v4991_v14 }
 0x593   :  { %v4866_v18 = vpop.f32.mrf.mxu2  ;;  %v4868_v17 = vpop.f32.mrf.mxu3 }
 0x594   :  { %5639 = vst [vmem:[#allocation27_spill] sm:$0xff] %v4866_v18  ;;  %v1861_v8 = vpop.f32.mrf.mxu0  ;;  %v1881_v7 = vpop.f32.mrf.mxu1  ;;  %v4987_v18 = vld [vmem:[#allocation11 + $0xf0] sm:$0xff] }
 0x595   :  { %5640 = vst [vmem:[#allocation28_spill] sm:$0xff] %v4868_v17  ;;  %v1924_v62 = vadd.f32 %v1861_v8, %v1594_v9  ;;  %v1925_v63 = vadd.f32 %v1881_v7, %v1635_v61  ;;  %v1597_v9 = vadd.f32 %v4808_v44, %v4860_v20  ;;  %v1638_v61 = vadd.f32 %v4810_v45, %v4862_v19  ;;  %v4880_v8 = vld [vmem:[#allocation11 + $0x1e0] sm:$0xff]  ;;  %v4882_v7 = vld [vmem:[#allocation11 + $0x1e8] sm:$0xff] }
 0x596   :  { %v4985_v17 = vld [vmem:[#allocation11 + $0xe8] sm:$0xff] }
 0x597   :  { %v1928_v21 = vmul.f32 0.5, %v1924_v62  ;;  %v1932_v26 = vmul.f32 0.5, %v1925_v63  ;;  %v4884_v62 = vld [vmem:[#allocation11 + $0x1f0] sm:$0xff] }
 0x599   :  { %3298 = vtanh.f32 %v1928_v21 }
 0x59a   :  { %3300 = vtanh.f32 %v1932_v26  ;;  %v4888_v26 = vld [vmem:[#allocation11 + $0x1f8] sm:$0xff] }
 0x59b   :  { %v1901_v30 = vpop.f32.mrf.mxu2  ;;  %v1921_v31 = vpop.f32.mrf.mxu3 }
 0x59c   :  { %v1926_v33 = vadd.f32 %v1901_v30, %v1676_v27  ;;  %v1927_v36 = vadd.f32 %v1921_v31, %v1717_v29  ;;  %v1679_v30 = vadd.f32 %v4812_v46, %v4870_v51  ;;  %v1720_v31 = vadd.f32 %v4814_v47, %v4872_v54 }
 0x59e   :  { %3302 = vtanh.f32 %v1926_v33  ;;  %v1937_v4 = vmul.f32 0.5, %v1927_v36 }
 0x59f   :  { %v3299_v38 = vpop.eup %3298 }
 0x5a0   :  { %v3301_v24 = vpop.eup %3300  ;;  %v1930_v23 = vmul.f32 0.5, %v3299_v38  ;;  %3304 = vtanh.f32 %v1937_v4 }
 0x5a1   :  { %v1934_v22 = vmul.f32 0.5, %v3301_v24 }
 0x5a2   :  { %v1931_v37 = vadd.f32 0.5, %v1930_v23 }
 0x5a3   :  { %v1935_v34 = vadd.f32 0.5, %v1934_v22 }
 0x5a4   :  { %v3303_v32 = vpop.eup %3302  ;;  %v1941_v35 = vmul.f32 0.0, %v1931_v37 }
 0x5a5   :  { %v1942_v28 = vmul.f32 %v3303_v32, %v1935_v34 }
 0x5a6   :  { %v3305_v53 = vpop.eup %3304 }
 0x5a7   :  { %v1943_v40 = vadd.f32 %v1942_v28, %v1941_v35  ;;  %v1939_v41 = vmul.f32 0.5, %v3305_v53 }
 0x5a9   :  { %3306 = vtanh.f32 %v1943_v40  ;;  %v1940_v42 = vadd.f32 0.5, %v1939_v41 }
 0x5af   :  { %v3307_v43 = vpop.eup %3306 }
 0x5b0   :  { %v1945_v12 = vmul.f32 %v3307_v43, %v1940_v42 }
 0x5b2   :  { %1946 = vst [vmem:[#allocation15] sm:$0xff] %v1945_v12  ;;  %2032 = vmatmul.f32.vlgmr.msra.gmra.mxu0 %v1945_v12  ;;  %2052 = vmatmul.f32.vlgmr.msra.gmra.mxu1 %v1945_v12 }
 0x5b3   :  { %2072 = vmatmul.f32.vlgmr.msra.gmra.mxu2 %v1945_v12  ;;  %2092 = vmatmul.f32.vlgmr.msra.gmra.mxu3 %v1945_v12 }
 0x5b4   :  { %2362 = vmatpush.msra.mxu0 %v4880_v8  ;;  %2382 = vmatpush.msra.mxu1 %v4882_v7 }
 0x5b5   :  { %2402 = vmatpush.msra.mxu2 %v4884_v62  ;;  %2422 = vmatpush.msra.mxu3 %v4888_v26 }
 0x62f   :  { %v2033_v63 = vpop.f32.mrf.mxu0  ;;  %v2053_v21 = vpop.f32.mrf.mxu1 }
 0x630   :  { %v2096_v27 = vadd.f32 %v2033_v63, %v1597_v9  ;;  %v2097_v29 = vadd.f32 %v2053_v21, %v1638_v61  ;;  %v4899_v61 = vld [vmem:[#allocation11 + $0x1c0] sm:$0xff]  ;;  %v4901_v63 = vld [vmem:[#allocation11 + $0x1c8] sm:$0xff]  ;;  %v4907_v21 = vld [vmem:[#allocation11 + $0x1d8] sm:$0xff] }
 0x631   :  { %2363 = vmatpush.msra.mxu0 %v4899_v61  ;;  %2383 = vmatpush.msra.mxu1 %v4901_v63 }
 0x632   :  { %v2100_v44 = vmul.f32 0.5, %v2096_v27  ;;  %v2104_v45 = vmul.f32 0.5, %v2097_v29  ;;  %2423 = vmatpush.msra.mxu3 %v4907_v21  ;;  %v4911_v27 = vld [vmem:[#allocation11 + $0x1a0] sm:$0xff]  ;;  %v4913_v29 = vld [vmem:[#allocation11 + $0x1a8] sm:$0xff] }
 0x633   :  { %2364 = vmatpush.msra.mxu0 %v4911_v27  ;;  %2384 = vmatpush.msra.mxu1 %v4913_v29 }
 0x634   :  { %3308 = vtanh.f32 %v2100_v44  ;;  %v4915_v44 = vld [vmem:[#allocation11 + $0x1b0] sm:$0xff] }
 0x635   :  { %3310 = vtanh.f32 %v2104_v45  ;;  %v4919_v45 = vld [vmem:[#allocation11 + $0x1b8] sm:$0xff] }
 0x636   :  { %v2073_v33 = vpop.f32.mrf.mxu2  ;;  %v2093_v36 = vpop.f32.mrf.mxu3  ;;  %2424 = vmatpush.msra.mxu3 %v4919_v45 }
 0x637   :  { %v2098_v4 = vadd.f32 %v2073_v33, %v1679_v30  ;;  %v2099_v38 = vadd.f32 %v2093_v36, %v1720_v31  ;;  %v4923_v30 = vld [vmem:[#allocation11 + $0x180] sm:$0xff]  ;;  %v4925_v31 = vld [vmem:[#allocation11 + $0x188] sm:$0xff]  ;;  %v4927_v33 = vld [vmem:[#allocation11 + $0x190] sm:$0xff] }
 0x638   :  { %2365 = vmatpush.msra.mxu0 %v4923_v30  ;;  %2385 = vmatpush.msra.mxu1 %v4925_v31  ;;  %v4931_v36 = vld [vmem:[#allocation11 + $0x198] sm:$0xff] }
 0x639   :  { %3312 = vtanh.f32 %v2098_v4  ;;  %v2109_v24 = vmul.f32 0.5, %v2099_v38  ;;  %2425 = vmatpush.msra.mxu3 %v4931_v36  ;;  %v4935_v4 = vld [vmem:[#allocation11 + $0x160] sm:$0xff]  ;;  %v4937_v38 = vld [vmem:[#allocation11 + $0x168] sm:$0xff] }
 0x63a   :  { %v3309_v23 = vpop.eup %3308  ;;  %2366 = vmatpush.msra.mxu0 %v4935_v4  ;;  %2386 = vmatpush.msra.mxu1 %v4937_v38 }
 0x63b   :  { %v3311_v22 = vpop.eup %3310  ;;  %v2102_v37 = vmul.f32 0.5, %v3309_v23  ;;  %3314 = vtanh.f32 %v2109_v24  ;;  %v4939_v24 = vld [vmem:[#allocation11 + $0x170] sm:$0xff]  ;;  %v4943_v23 = vld [vmem:[#allocation11 + $0x178] sm:$0xff] }
 0x63c   :  { %v2106_v34 = vmul.f32 0.5, %v3311_v22  ;;  %2426 = vmatpush.msra.mxu3 %v4943_v23  ;;  %v4947_v22 = vld [vmem:[#allocation11 + $0x140] sm:$0xff] }
 0x63d   :  { %v2103_v32 = vadd.f32 0.5, %v2102_v37  ;;  %v4949_v37 = vld [vmem:[#allocation11 + $0x148] sm:$0xff]  ;;  %2367 = vmatpush.msra.mxu0 %v4947_v22 }
 0x63e   :  { %v2107_v35 = vadd.f32 0.5, %v2106_v34  ;;  %v4951_v34 = vld [vmem:[#allocation11 + $0x150] sm:$0xff]  ;;  %2387 = vmatpush.msra.mxu1 %v4949_v37 }
 0x63f   :  { %v3313_v28 = vpop.eup %3312  ;;  %v2113_v53 = vmul.f32 %v2103_v32, %v1943_v40  ;;  %v4903_v40 = vld [vmem:[#allocation11 + $0x1d0] sm:$0xff]  ;;  %v4955_v32 = vld [vmem:[#allocation11 + $0x158] sm:$0xff] }
 0x640   :  { %v2114_v46 = vmul.f32 %v3313_v28, %v2107_v35  ;;  %2403 = vmatpush.msra.mxu2 %v4903_v40  ;;  %2427 = vmatpush.msra.mxu3 %v4955_v32  ;;  %v4959_v35 = vld [vmem:[#allocation11 + $0x120] sm:$0xff]  ;;  %v4961_v28 = vld [vmem:[#allocation11 + $0x128] sm:$0xff] }
 0x641   :  { %v3315_v41 = vpop.eup %3314  ;;  %2368 = vmatpush.msra.mxu0 %v4959_v35  ;;  %2388 = vmatpush.msra.mxu1 %v4961_v28 }
 0x642   :  { %v4896_v42 = vadd.f32 %v2114_v46, %v2113_v53  ;;  %v2111_v47 = vmul.f32 0.5, %v3315_v41  ;;  %2404 = vmatpush.msra.mxu2 %v4915_v44  ;;  %v4963_v53 = vld [vmem:[#allocation11 + $0x130] sm:$0xff]  ;;  %v4967_v46 = vld [vmem:[#allocation11 + $0x138] sm:$0xff]  ;;  %v4971_v41 = vld [vmem:[#allocation11 + $0x100] sm:$0xff] }
 0x643   :  { %2428 = vmatpush.msra.mxu3 %v4967_v46  ;;  %2369 = vmatpush.msra.mxu0 %v4971_v41 }
 0x644   :  { %3316 = vtanh.f32 %v4896_v42  ;;  %v2112_v43 = vadd.f32 0.5, %v2111_v47  ;;  %2405 = vmatpush.msra.mxu2 %v4927_v33  ;;  %v4973_v47 = vld [vmem:[#allocation11 + $0x108] sm:$0xff] }
 0x645   :  { %2389 = vmatpush.msra.mxu1 %v4973_v47 }
 0x646   :  { %2406 = vmatpush.msra.mxu2 %v4939_v24 }
 0x647   :  { %2390 = vmatpush.msra.mxu1 %v4985_v17 }
 0x648   :  { %2407 = vmatpush.msra.mxu2 %v4951_v34 }
 0x649   :  { %2391 = vmatpush.msra.mxu1 %v4997_v56 }
 0x64a   :  { %v3317_v12 = vpop.eup %3316  ;;  %2408 = vmatpush.msra.mxu2 %v4963_v53 }
 0x64b   :  { %v2117_v9 = vmul.f32 %v3317_v12, %v2112_v43  ;;  %v4975_v43 = vld [vmem:[#allocation11 + $0x110] sm:$0xff]  ;;  %v4979_v12 = vld [vmem:[#allocation11 + $0x118] sm:$0xff]  ;;  %2392 = vmatpush.msra.mxu1 %v5009_v11 }
 0x64c   :  { %5643 = vst [vmem:[#allocation32_spill] sm:$0xff] %v4979_v12  ;;  %2409 = vmatpush.msra.mxu2 %v4975_v43  ;;  %2429 = vmatpush.msra.mxu3 %v4979_v12 }
 0x64d   :  { %2119 = vst [vmem:[#allocation15 + $0x8] sm:$0xff] %v2117_v9  ;;  %2205 = vmatmul.f32.vlgmr.msrb.gmra.mxu0 %v2117_v9  ;;  %2225 = vmatmul.f32.vlgmr.msrb.gmra.mxu1 %v2117_v9 }
 0x64e   :  { %2245 = vmatmul.f32.vlgmr.msrb.gmra.mxu2 %v2117_v9  ;;  %2265 = vmatmul.f32.vlgmr.msrb.gmra.mxu3 %v2117_v9  ;;  %v4983_v9 = vld [vmem:[#allocation11 + $0xe0] sm:$0xff] }
 0x64f   :  { %2370 = vmatpush.msra.mxu0 %v4983_v9  ;;  %2410 = vmatpush.msra.mxu2 %v4987_v18 }
 0x650   :  { %2430 = vmatpush.msra.mxu3 %v4991_v14  ;;  %2393 = vmatpush.msra.mxu1 %v5021_v2 }
 0x651   :  { %2371 = vmatpush.msra.mxu0 %v4995_v13  ;;  %2411 = vmatpush.msra.mxu2 %v4999_v10 }
 0x652   :  { %2431 = vmatpush.msra.mxu3 %v5003_v16  ;;  %2394 = vmatpush.msra.mxu1 %v5033_v48  ;;  %v5053_v48 = vld [vmem:[#allocation11 + $0x20] sm:$0xff] }
 0x653   :  { %2372 = vmatpush.msra.mxu0 %v5007_v15  ;;  %2412 = vmatpush.msra.mxu2 %v5011_v6  ;;  %5655 = vst [vmem:[#allocation59_spill] sm:$0xff] %v5053_v48 }
 0x654   :  { %2432 = vmatpush.msra.mxu3 %v5015_v5 }
 0x655   :  { %2373 = vmatpush.msra.mxu0 %v5019_v3  ;;  %2413 = vmatpush.msra.mxu2 %v5023_v1  ;;  %v5045_v1 = vld [vmem:[#allocation11 + $0x48] sm:$0xff] }
 0x656   :  { %2433 = vmatpush.msra.mxu3 %v5027_v0  ;;  %5653 = vst [vmem:[#allocation57_spill] sm:$0xff] %v5045_v1  ;;  %v5047_v0 = vld [vmem:[#allocation11 + $0x50] sm:$0xff]  ;;  %2395 = vmatpush.msra.mxu1 %v5045_v1  ;;  %v5065_v1 = vld [vmem:[#allocation11 + $0x8] sm:$0xff] }
 0x657   :  { %2374 = vmatpush.msra.mxu0 %v5031_v58  ;;  %2414 = vmatpush.msra.mxu2 %v5035_v57  ;;  %5654 = vst [vmem:[#allocation58_spill] sm:$0xff] %v5047_v0  ;;  %v5055_v58 = vld [vmem:[#allocation11 + $0x28] sm:$0xff]  ;;  %v5057_v57 = vld [vmem:[#allocation11 + $0x30] sm:$0xff] }
 0x658   :  { %2434 = vmatpush.msra.mxu3 %v5039_v55  ;;  %5656 = vst [vmem:[#allocation60_spill] sm:$0xff] %v5055_v58  ;;  %2396 = vmatpush.msra.mxu1 %v5055_v58 }
 0x659   :  { %2375 = vmatpush.msra.mxu0 %v5043_v49  ;;  %2415 = vmatpush.msra.mxu2 %v5047_v0  ;;  %5657 = vst [vmem:[#allocation61_spill] sm:$0xff] %v5057_v57  ;;  %v5063_v49 = vld [vmem:[#allocation11] sm:$0xff]  ;;  %v5067_v0 = vld [vmem:[#allocation11 + $0x10] sm:$0xff] }
 0x65a   :  { %2435 = vmatpush.msra.mxu3 %v5618_v39  ;;  %5658 = vst [vmem:[#allocation62_spill] sm:$0xff] %v5063_v49  ;;  %2397 = vmatpush.msra.mxu1 %v5065_v1  ;;  %v5071_v39 = vld [vmem:[#allocation11 + $0x18] sm:$0xff] }
 0x65b   :  { %2376 = vmatpush.msra.mxu0 %v5053_v48  ;;  %2416 = vmatpush.msra.mxu2 %v5057_v57  ;;  %5659 = vst [vmem:[#allocation63_spill] sm:$0xff] %v5065_v1  ;;  %v1600_v57 = vadd.f32 %v4816_v50, %v4860_v20 }
 0x65c   :  { %2436 = vmatpush.msra.mxu3 %v4664_v25  ;;  %5660 = vst [vmem:[#allocation64_spill] sm:$0xff] %v5067_v0  ;;  %v1641_v25 = vadd.f32 %v4818_v59, %v4862_v19  ;;  %2555 = vmatpush.msrb.mxu1 %v4882_v7 }
 0x65d   :  { %2377 = vmatpush.msra.mxu0 %v5063_v49  ;;  %2417 = vmatpush.msra.mxu2 %v5067_v0 }
 0x65e   :  { %2437 = vmatpush.msra.mxu3 %v5071_v39  ;;  %2556 = vmatpush.msrb.mxu1 %v4901_v63 }
 0x65f   :  { %2535 = vmatpush.msrb.mxu0 %v4880_v8  ;;  %2575 = vmatpush.msrb.mxu2 %v4884_v62 }
 0x660   :  { %2595 = vmatpush.msrb.mxu3 %v4888_v26  ;;  %2557 = vmatpush.msrb.mxu1 %v4913_v29 }
 0x661   :  { %2536 = vmatpush.msrb.mxu0 %v4899_v61  ;;  %2576 = vmatpush.msrb.mxu2 %v4903_v40 }
 0x662   :  { %2596 = vmatpush.msrb.mxu3 %v4907_v21  ;;  %2558 = vmatpush.msrb.mxu1 %v4925_v31 }
 0x663   :  { %2537 = vmatpush.msrb.mxu0 %v4911_v27  ;;  %2577 = vmatpush.msrb.mxu2 %v4915_v44 }
 0x664   :  { %2597 = vmatpush.msrb.mxu3 %v4919_v45  ;;  %2559 = vmatpush.msrb.mxu1 %v4937_v38 }
 0x665   :  { %2538 = vmatpush.msrb.mxu0 %v4923_v30  ;;  %2578 = vmatpush.msrb.mxu2 %v4927_v33 }
 0x666   :  { %2598 = vmatpush.msrb.mxu3 %v4931_v36  ;;  %2560 = vmatpush.msrb.mxu1 %v4949_v37 }
 0x667   :  { %2539 = vmatpush.msrb.mxu0 %v4935_v4  ;;  %2579 = vmatpush.msrb.mxu2 %v4939_v24 }
 0x668   :  { %2599 = vmatpush.msrb.mxu3 %v4943_v23  ;;  %2561 = vmatpush.msrb.mxu1 %v4961_v28 }
 0x669   :  { %2540 = vmatpush.msrb.mxu0 %v4947_v22  ;;  %2580 = vmatpush.msrb.mxu2 %v4951_v34 }
 0x66a   :  { %2600 = vmatpush.msrb.mxu3 %v4955_v32  ;;  %2562 = vmatpush.msrb.mxu1 %v4973_v47 }
 0x66b   :  { %2541 = vmatpush.msrb.mxu0 %v4959_v35  ;;  %2581 = vmatpush.msrb.mxu2 %v4963_v53 }
 0x66c   :  { %2601 = vmatpush.msrb.mxu3 %v4967_v46  ;;  %2563 = vmatpush.msrb.mxu1 %v4985_v17 }
 0x66d   :  { %2542 = vmatpush.msrb.mxu0 %v4971_v41  ;;  %2582 = vmatpush.msrb.mxu2 %v4975_v43 }
 0x66e   :  { %2602 = vmatpush.msrb.mxu3 %v4979_v12  ;;  %2564 = vmatpush.msrb.mxu1 %v4997_v56  ;;  %v5673_v12 = vld [vmem:[#allocation63_spill] sm:$0xff] }
 0x66f   :  { %2543 = vmatpush.msrb.mxu0 %v4983_v9  ;;  %2583 = vmatpush.msrb.mxu2 %v4987_v18 }
 0x670   :  { %2603 = vmatpush.msrb.mxu3 %v4991_v14  ;;  %2565 = vmatpush.msrb.mxu1 %v5009_v11  ;;  %v5672_v14 = vld [vmem:[#allocation62_spill] sm:$0xff] }
 0x671   :  { %2544 = vmatpush.msrb.mxu0 %v4995_v13  ;;  %2584 = vmatpush.msrb.mxu2 %v4999_v10 }
 0x672   :  { %2604 = vmatpush.msrb.mxu3 %v5003_v16  ;;  %2566 = vmatpush.msrb.mxu1 %v5021_v2  ;;  %v5670_v16 = vld [vmem:[#allocation60_spill] sm:$0xff] }
 0x673   :  { %2545 = vmatpush.msrb.mxu0 %v5007_v15  ;;  %2585 = vmatpush.msrb.mxu2 %v5011_v6 }
 0x674   :  { %2605 = vmatpush.msrb.mxu3 %v5015_v5  ;;  %v5669_v5 = vld [vmem:[#allocation58_spill] sm:$0xff] }
 0x675   :  { %2546 = vmatpush.msrb.mxu0 %v5019_v3 }
 0x6ca   :  { %v2206_v58 = vpop.f32.mrf.mxu0  ;;  %v2226_v49 = vpop.f32.mrf.mxu1 }
 0x6cb   :  { %v2269_v1 = vadd.f32 %v2206_v58, %v1600_v57  ;;  %v2270_v0 = vadd.f32 %v2226_v49, %v1641_v25  ;;  %v1682_v49 = vadd.f32 %v4820_v60, %v4870_v51  ;;  %v1723_v57 = vadd.f32 %v4822_v52, %v4872_v54 }
 0x6cd   :  { %v2273_v50 = vmul.f32 0.5, %v2269_v1  ;;  %v2277_v59 = vmul.f32 0.5, %v2270_v0 }
 0x6cf   :  { %3318 = vtanh.f32 %v2273_v50 }
 0x6d0   :  { %3320 = vtanh.f32 %v2277_v59 }
 0x6d1   :  { %v2246_v58 = vpop.f32.mrf.mxu2  ;;  %v2266_v0 = vpop.f32.mrf.mxu3 }
 0x6d2   :  { %v2271_v1 = vadd.f32 %v2246_v58, %v1682_v49  ;;  %v2272_v25 = vadd.f32 %v2266_v0, %v1723_v57 }
 0x6d4   :  { %3322 = vtanh.f32 %v2271_v1  ;;  %v2282_v60 = vmul.f32 0.5, %v2272_v25 }
 0x6d5   :  { %v3319_v52 = vpop.eup %3318 }
 0x6d6   :  { %v3321_v50 = vpop.eup %3320  ;;  %v2275_v59 = vmul.f32 0.5, %v3319_v52  ;;  %3324 = vtanh.f32 %v2282_v60 }
 0x6d7   :  { %v2279_v49 = vmul.f32 0.5, %v3321_v50  ;;  %v5662_v50 = vld [vmem:[#allocation51_spill] sm:$0xff] }
 0x6d8   :  { %v2276_v57 = vadd.f32 0.5, %v2275_v59  ;;  %2586 = vmatpush.msrb.mxu2 %v5662_v50  ;;  %v5663_v59 = vld [vmem:[#allocation52_spill] sm:$0xff] }
 0x6d9   :  { %v2280_v58 = vadd.f32 0.5, %v2279_v49  ;;  %2606 = vmatpush.msrb.mxu3 %v5663_v59  ;;  %v5664_v49 = vld [vmem:[#allocation53_spill] sm:$0xff] }
 0x6da   :  { %v3323_v0 = vpop.eup %3322  ;;  %v2286_v1 = vmul.f32 %v2276_v57, %v4896_v42  ;;  %2547 = vmatpush.msrb.mxu0 %v5664_v49  ;;  %v5665_v57 = vld [vmem:[#allocation54_spill] sm:$0xff] }
 0x6db   :  { %v2287_v25 = vmul.f32 %v3323_v0, %v2280_v58  ;;  %2567 = vmatpush.msrb.mxu1 %v5665_v57  ;;  %v5666_v58 = vld [vmem:[#allocation55_spill] sm:$0xff]  ;;  %2607 = vmatpush.msrb.mxu3 %v5039_v55  ;;  %v5667_v0 = vld [vmem:[#allocation56_spill] sm:$0xff] }
 0x6dc   :  { %v3325_v60 = vpop.eup %3324  ;;  %2587 = vmatpush.msrb.mxu2 %v5666_v58  ;;  %2548 = vmatpush.msrb.mxu0 %v5667_v0 }
 0x6dd   :  { %v5124_v52 = vadd.f32 %v2287_v25, %v2286_v1  ;;  %v2284_v42 = vmul.f32 0.5, %v3325_v60  ;;  %v5668_v1 = vld [vmem:[#allocation57_spill] sm:$0xff] }
 0x6de   :  { %2568 = vmatpush.msrb.mxu1 %v5668_v1  ;;  %2588 = vmatpush.msrb.mxu2 %v5669_v5 }
 0x6df   :  { %5661 = vst [vmem:[#allocation65_spill] sm:$0xff] %v5124_v52  ;;  %3326 = vtanh.f32 %v5124_v52  ;;  %v2285_v25 = vadd.f32 0.5, %v2284_v42  ;;  %2549 = vmatpush.msrb.mxu0 %v5053_v48  ;;  %v5671_v52 = vld [vmem:[#allocation61_spill] sm:$0xff]  ;;  %v5674_v42 = vld [vmem:[#allocation64_spill] sm:$0xff] }
 0x6e0   :  { %2569 = vmatpush.msrb.mxu1 %v5670_v16  ;;  %2589 = vmatpush.msrb.mxu2 %v5671_v52 }
 0x6e1   :  { %2550 = vmatpush.msrb.mxu0 %v5672_v14 }
 0x6e2   :  { %2570 = vmatpush.msrb.mxu1 %v5673_v12  ;;  %2590 = vmatpush.msrb.mxu2 %v5674_v42 }
 0x6e5   :  { %v3327_v60 = vpop.eup %3326 }
 0x6e6   :  { %v2290_v59 = vmul.f32 %v3327_v60, %v2285_v25  ;;  %v5199_v25 = vld [vmem:[#allocation11 + $0x38] sm:$0xff]  ;;  %v5675_v60 = vld [vmem:[#allocation37_spill] sm:$0xff] }
 0x6e8   :  { %2292 = vst [vmem:[#allocation15 + $0x10] sm:$0xff] %v2290_v59  ;;  %2378 = vmatmul.f32.vlgmr.msra.gmra.mxu0 %v2290_v59  ;;  %2398 = vmatmul.f32.vlgmr.msra.gmra.mxu1 %v2290_v59 }
 0x6e9   :  { %2418 = vmatmul.f32.vlgmr.msra.gmra.mxu2 %v2290_v59  ;;  %2438 = vmatmul.f32.vlgmr.msra.gmra.mxu3 %v2290_v59  ;;  %v5196_v59 = vld [vmem:[#allocation11 + $0x58] sm:$0xff] }
 0x6ea   :  { %2708 = vmatpush.msra.mxu0 %v4880_v8  ;;  %2728 = vmatpush.msra.mxu1 %v4882_v7 }
 0x6eb   :  { %2748 = vmatpush.msra.mxu2 %v4884_v62  ;;  %2608 = vmatpush.msrb.mxu3 %v5196_v59 }
 0x6ec   :  { %2709 = vmatpush.msra.mxu0 %v4899_v61  ;;  %2729 = vmatpush.msra.mxu1 %v4901_v63 }
 0x6ed   :  { %2749 = vmatpush.msra.mxu2 %v4903_v40  ;;  %2609 = vmatpush.msrb.mxu3 %v5199_v25 }
 0x6ee   :  { %2710 = vmatpush.msra.mxu0 %v4911_v27  ;;  %2730 = vmatpush.msra.mxu1 %v4913_v29 }
 0x6ef   :  { %2750 = vmatpush.msra.mxu2 %v4915_v44  ;;  %2610 = vmatpush.msrb.mxu3 %v5071_v39 }
 0x6f0   :  { %2711 = vmatpush.msra.mxu0 %v4923_v30  ;;  %2731 = vmatpush.msra.mxu1 %v4925_v31 }
 0x6f1   :  { %2751 = vmatpush.msra.mxu2 %v4927_v33  ;;  %2768 = vmatpush.msra.mxu3 %v4888_v26 }
 0x6f2   :  { %2712 = vmatpush.msra.mxu0 %v4935_v4  ;;  %2732 = vmatpush.msra.mxu1 %v4937_v38 }
 0x6f3   :  { %2752 = vmatpush.msra.mxu2 %v4939_v24  ;;  %2769 = vmatpush.msra.mxu3 %v4907_v21 }
 0x6f4   :  { %2713 = vmatpush.msra.mxu0 %v4947_v22  ;;  %2733 = vmatpush.msra.mxu1 %v4949_v37 }
 0x6f5   :  { %2753 = vmatpush.msra.mxu2 %v4951_v34  ;;  %2770 = vmatpush.msra.mxu3 %v4919_v45 }
 0x6f6   :  { %2714 = vmatpush.msra.mxu0 %v4959_v35  ;;  %2734 = vmatpush.msra.mxu1 %v4961_v28 }
 0x6f7   :  { %2754 = vmatpush.msra.mxu2 %v4963_v53  ;;  %2771 = vmatpush.msra.mxu3 %v4931_v36 }
 0x6f8   :  { %2715 = vmatpush.msra.mxu0 %v4971_v41  ;;  %2735 = vmatpush.msra.mxu1 %v4973_v47 }
 0x6f9   :  { %2755 = vmatpush.msra.mxu2 %v4975_v43  ;;  %2772 = vmatpush.msra.mxu3 %v4943_v23 }
 0x6fa   :  { %2716 = vmatpush.msra.mxu0 %v4983_v9  ;;  %2736 = vmatpush.msra.mxu1 %v4985_v17 }
 0x6fb   :  { %2756 = vmatpush.msra.mxu2 %v4987_v18  ;;  %2773 = vmatpush.msra.mxu3 %v4955_v32 }
 0x6fc   :  { %2717 = vmatpush.msra.mxu0 %v4995_v13  ;;  %2737 = vmatpush.msra.mxu1 %v4997_v56 }
 0x6fd   :  { %2757 = vmatpush.msra.mxu2 %v4999_v10  ;;  %2774 = vmatpush.msra.mxu3 %v4967_v46 }
 0x6fe   :  { %2718 = vmatpush.msra.mxu0 %v5007_v15  ;;  %2738 = vmatpush.msra.mxu1 %v5009_v11 }
 0x6ff   :  { %2758 = vmatpush.msra.mxu2 %v5011_v6 }
 0x700   :  { %2719 = vmatpush.msra.mxu0 %v5019_v3  ;;  %2739 = vmatpush.msra.mxu1 %v5021_v2 }
 0x701   :  { %2759 = vmatpush.msra.mxu2 %v5662_v50 }
 0x702   :  { %2720 = vmatpush.msra.mxu0 %v5664_v49  ;;  %2740 = vmatpush.msra.mxu1 %v5665_v57 }
 0x703   :  { %2760 = vmatpush.msra.mxu2 %v5666_v58  ;;  %v5677_v58 = vld [vmem:[#allocation35_spill] sm:$0xff] }
 0x704   :  { %2721 = vmatpush.msra.mxu0 %v5667_v0  ;;  %2741 = vmatpush.msra.mxu1 %v5668_v1  ;;  %v1685_v57 = vadd.f32 %v5677_v58, %v4870_v51  ;;  %v5679_v58 = vld [vmem:[#allocation32_spill] sm:$0xff] }
 0x705   :  { %2761 = vmatpush.msra.mxu2 %v5669_v5  ;;  %2775 = vmatpush.msra.mxu3 %v5679_v58 }
 0x706   :  { %2722 = vmatpush.msra.mxu0 %v5053_v48  ;;  %2742 = vmatpush.msra.mxu1 %v5670_v16 }
 0x707   :  { %2762 = vmatpush.msra.mxu2 %v5671_v52  ;;  %v1603_v52 = vadd.f32 %v5675_v60, %v4860_v20  ;;  %v5678_v60 = vld [vmem:[#allocation36_spill] sm:$0xff] }
 0x708   :  { %2723 = vmatpush.msra.mxu0 %v5672_v14  ;;  %2743 = vmatpush.msra.mxu1 %v5673_v12  ;;  %v5676_v14 = vld [vmem:[#allocation34_spill] sm:$0xff]  ;;  %v1726_v20 = vadd.f32 %v5678_v60, %v4872_v54  ;;  %v5680_v60 = vld [vmem:[#allocation31_spill] sm:$0xff] }
 0x709   :  { %2763 = vmatpush.msra.mxu2 %v5674_v42  ;;  %v1644_v12 = vadd.f32 %v5676_v14, %v4862_v19  ;;  %2776 = vmatpush.msra.mxu3 %v5680_v60 }
 0x765   :  { %v2379_v16 = vpop.f32.mrf.mxu0  ;;  %v2399_v42 = vpop.f32.mrf.mxu1 }
 0x766   :  { %v2442_v48 = vadd.f32 %v2379_v16, %v1603_v52  ;;  %v2443_v5 = vadd.f32 %v2399_v42, %v1644_v12 }
 0x768   :  { %v2446_v1 = vmul.f32 0.5, %v2442_v48  ;;  %v2450_v0 = vmul.f32 0.5, %v2443_v5 }
 0x76a   :  { %3328 = vtanh.f32 %v2446_v1 }
 0x76b   :  { %3330 = vtanh.f32 %v2450_v0 }
 0x76c   :  { %v2419_v14 = vpop.f32.mrf.mxu2  ;;  %v2439_v19 = vpop.f32.mrf.mxu3 }
 0x76d   :  { %v2444_v16 = vadd.f32 %v2419_v14, %v1685_v57  ;;  %v2445_v12 = vadd.f32 %v2439_v19, %v1726_v20  ;;  %v5681_v57 = vld [vmem:[#allocation65_spill] sm:$0xff] }
 0x76e   :  { %v5682_v19 = vld [vmem:[#allocation49_spill] sm:$0xff] }
 0x76f   :  { %3332 = vtanh.f32 %v2444_v16  ;;  %v2455_v48 = vmul.f32 0.5, %v2445_v12  ;;  %2777 = vmatpush.msra.mxu3 %v5682_v19  ;;  %v5683_v16 = vld [vmem:[#allocation50_spill] sm:$0xff] }
 0x770   :  { %v3329_v5 = vpop.eup %3328 }
 0x771   :  { %v3331_v52 = vpop.eup %3330  ;;  %v2448_v1 = vmul.f32 0.5, %v3329_v5  ;;  %3334 = vtanh.f32 %v2455_v48  ;;  %2778 = vmatpush.msra.mxu3 %v5683_v16  ;;  %v5684_v5 = vld [vmem:[#allocation52_spill] sm:$0xff] }
 0x772   :  { %v2452_v42 = vmul.f32 0.5, %v3331_v52 }
 0x773   :  { %v2449_v0 = vadd.f32 0.5, %v2448_v1  ;;  %2779 = vmatpush.msra.mxu3 %v5684_v5 }
 0x774   :  { %v2453_v54 = vadd.f32 0.5, %v2452_v42 }
 0x775   :  { %v3333_v51 = vpop.eup %3332  ;;  %v2459_v20 = vmul.f32 %v2449_v0, %v5681_v57  ;;  %2780 = vmatpush.msra.mxu3 %v5039_v55  ;;  %v5705_v57 = vld [vmem:[#allocation42_spill] sm:$0xff] }
 0x776   :  { %v2460_v14 = vmul.f32 %v3333_v51, %v2453_v54  ;;  %v5695_v51 = vld [vmem:[#allocation63_spill] sm:$0xff]  ;;  %v5697_v54 = vld [vmem:[#allocation29_spill] sm:$0xff] }
 0x777   :  { %v3335_v12 = vpop.eup %3334  ;;  %2781 = vmatpush.msra.mxu3 %v5196_v59 }
 0x778   :  { %v5223_v49 = vadd.f32 %v2460_v14, %v2459_v20  ;;  %v2457_v48 = vmul.f32 0.5, %v3335_v12  ;;  %v1609_v20 = vadd.f32 %v5705_v57, %v5697_v54  ;;  %v3052_v12 = vld [vmem:[#allocation11 + $0x1f0] sm:$0xff]  ;;  %v3026_v57 = vld [vmem:[#allocation11 + $0x120] sm:$0xff] }
 0x779   :  { %2782 = vmatpush.msra.mxu3 %v5199_v25 }
 0x77a   :  { %3336 = vtanh.f32 %v5223_v49  ;;  %v2458_v52 = vadd.f32 0.5, %v2457_v48 }
 0x77b   :  { %2783 = vmatpush.msra.mxu3 %v5071_v39 }
 0x780   :  { %v3337_v1 = vpop.eup %3336 }
 0x781   :  { %v2463_v42 = vmul.f32 %v3337_v1, %v2458_v52  ;;  %v3053_v52 = vld [vmem:[#allocation11 + $0x1f8] sm:$0xff] }
 0x783   :  { %2465 = vst [vmem:[#allocation15 + $0x18] sm:$0xff] %v2463_v42  ;;  %2551 = vmatmul.f32.vlgmr.msrb.gmra.mxu0 %v2463_v42  ;;  %2571 = vmatmul.f32.vlgmr.msrb.gmra.mxu1 %v2463_v42 }
 0x784   :  { %2591 = vmatmul.f32.vlgmr.msrb.gmra.mxu2 %v2463_v42  ;;  %2611 = vmatmul.f32.vlgmr.msrb.gmra.mxu3 %v2463_v42 }
 0x785   :  { %2881 = vmatpush.msrb.mxu0 %v4880_v8  ;;  %2901 = vmatpush.msrb.mxu1 %v4882_v7  ;;  %v5698_v8 = vld [vmem:[#allocation41_spill] sm:$0xff] }
 0x786   :  { %2921 = vmatpush.msrb.mxu2 %v4884_v62  ;;  %2941 = vmatpush.msrb.mxu3 %v4888_v26  ;;  %v1606_v7 = vadd.f32 %v5698_v8, %v5697_v54  ;;  %v5699_v62 = vld [vmem:[#allocation26_spill] sm:$0xff] }
 0x787   :  { %2882 = vmatpush.msrb.mxu0 %v4899_v61  ;;  %2902 = vmatpush.msrb.mxu1 %v4901_v63  ;;  %v5700_v26 = vld [vmem:[#allocation38_spill] sm:$0xff] }
 0x788   :  { %2922 = vmatpush.msrb.mxu2 %v4903_v40  ;;  %2942 = vmatpush.msrb.mxu3 %v4907_v21  ;;  %v1647_v61 = vadd.f32 %v5700_v26, %v5699_v62 }
 0x789   :  { %2883 = vmatpush.msrb.mxu0 %v4911_v27  ;;  %2903 = vmatpush.msrb.mxu1 %v4913_v29 }
 0x78a   :  { %2923 = vmatpush.msrb.mxu2 %v4915_v44  ;;  %2943 = vmatpush.msrb.mxu3 %v4919_v45  ;;  %v5701_v45 = vld [vmem:[#allocation33_spill] sm:$0xff] }
 0x78b   :  { %2884 = vmatpush.msrb.mxu0 %v4923_v30  ;;  %2904 = vmatpush.msrb.mxu1 %v4925_v31  ;;  %v5702_v30 = vld [vmem:[#allocation39_spill] sm:$0xff] }
 0x78c   :  { %2924 = vmatpush.msrb.mxu2 %v4927_v33  ;;  %2944 = vmatpush.msrb.mxu3 %v4931_v36  ;;  %v1688_v31 = vadd.f32 %v5702_v30, %v5701_v45  ;;  %v5703_v33 = vld [vmem:[#allocation30_spill] sm:$0xff]  ;;  %v5704_v36 = vld [vmem:[#allocation40_spill] sm:$0xff] }
 0x78d   :  { %2885 = vmatpush.msrb.mxu0 %v4935_v4  ;;  %2905 = vmatpush.msrb.mxu1 %v4937_v38  ;;  %v1729_v4 = vadd.f32 %v5704_v36, %v5703_v33 }
 0x78e   :  { %2925 = vmatpush.msrb.mxu2 %v4939_v24  ;;  %2945 = vmatpush.msrb.mxu3 %v4943_v23 }
 0x78f   :  { %2886 = vmatpush.msrb.mxu0 %v4947_v22  ;;  %2906 = vmatpush.msrb.mxu1 %v4949_v37 }
 0x790   :  { %2926 = vmatpush.msrb.mxu2 %v4951_v34  ;;  %2946 = vmatpush.msrb.mxu3 %v4955_v32 }
 0x791   :  { %2887 = vmatpush.msrb.mxu0 %v4959_v35  ;;  %2907 = vmatpush.msrb.mxu1 %v4961_v28 }
 0x792   :  { %2927 = vmatpush.msrb.mxu2 %v4963_v53  ;;  %2947 = vmatpush.msrb.mxu3 %v4967_v46 }
 0x793   :  { %2888 = vmatpush.msrb.mxu0 %v4971_v41  ;;  %2908 = vmatpush.msrb.mxu1 %v4973_v47 }
 0x794   :  { %2928 = vmatpush.msrb.mxu2 %v4975_v43  ;;  %2948 = vmatpush.msrb.mxu3 %v5679_v58 }
 0x795   :  { %2889 = vmatpush.msrb.mxu0 %v4983_v9  ;;  %2909 = vmatpush.msrb.mxu1 %v4985_v17  ;;  %v5694_v17 = vld [vmem:[#allocation62_spill] sm:$0xff] }
 0x796   :  { %2929 = vmatpush.msrb.mxu2 %v4987_v18  ;;  %2949 = vmatpush.msrb.mxu3 %v5680_v60  ;;  %v5693_v18 = vld [vmem:[#allocation61_spill] sm:$0xff] }
 0x797   :  { %2890 = vmatpush.msrb.mxu0 %v4995_v13  ;;  %2910 = vmatpush.msrb.mxu1 %v4997_v56  ;;  %v5685_v56 = vld [vmem:[#allocation53_spill] sm:$0xff]  ;;  %v5687_v13 = vld [vmem:[#allocation55_spill] sm:$0xff] }
 0x798   :  { %2930 = vmatpush.msrb.mxu2 %v4999_v10  ;;  %2950 = vmatpush.msrb.mxu3 %v5682_v19  ;;  %v5686_v10 = vld [vmem:[#allocation54_spill] sm:$0xff]  ;;  %v5706_v19 = vld [vmem:[#allocation44_spill] sm:$0xff] }
 0x799   :  { %2891 = vmatpush.msrb.mxu0 %v5007_v15  ;;  %2911 = vmatpush.msrb.mxu1 %v5009_v11  ;;  %v5688_v11 = vld [vmem:[#allocation56_spill] sm:$0xff]  ;;  %v5690_v15 = vld [vmem:[#allocation58_spill] sm:$0xff]  ;;  %v1650_v14 = vadd.f32 %v5706_v19, %v5699_v62 }
 0x79a   :  { %2931 = vmatpush.msrb.mxu2 %v5011_v6  ;;  %2951 = vmatpush.msrb.mxu3 %v5683_v16  ;;  %v5689_v6 = vld [vmem:[#allocation57_spill] sm:$0xff]  ;;  %v3028_v19 = vld [vmem:[#allocation11 + $0x130] sm:$0xff] }
 0x79b   :  { %2892 = vmatpush.msrb.mxu0 %v5019_v3  ;;  %2912 = vmatpush.msrb.mxu1 %v5021_v2  ;;  %v5691_v2 = vld [vmem:[#allocation59_spill] sm:$0xff]  ;;  %v5692_v3 = vld [vmem:[#allocation60_spill] sm:$0xff]  ;;  %v3051_v16 = vld [vmem:[#allocation11 + $0x1e8] sm:$0xff] }
 0x79c   :  { %2932 = vmatpush.msrb.mxu2 %v5662_v50  ;;  %2952 = vmatpush.msrb.mxu3 %v5684_v5 }
 0x79d   :  { %2893 = vmatpush.msrb.mxu0 %v5685_v56  ;;  %2913 = vmatpush.msrb.mxu1 %v5686_v10 }
 0x79e   :  { %2933 = vmatpush.msrb.mxu2 %v5687_v13  ;;  %2953 = vmatpush.msrb.mxu3 %v5039_v55  ;;  %v5696_v55 = vld [vmem:[#allocation64_spill] sm:$0xff]  ;;  %v5707_v13 = vld [vmem:[#allocation45_spill] sm:$0xff] }
 0x79f   :  { %2894 = vmatpush.msrb.mxu0 %v5688_v11  ;;  %2914 = vmatpush.msrb.mxu1 %v5689_v6  ;;  %v1691_v11 = vadd.f32 %v5707_v13, %v5701_v45  ;;  %v5708_v6 = vld [vmem:[#allocation46_spill] sm:$0xff] }
 0x7a0   :  { %2934 = vmatpush.msrb.mxu2 %v5690_v15  ;;  %2954 = vmatpush.msrb.mxu3 %v5196_v59  ;;  %v1732_v15 = vadd.f32 %v5708_v6, %v5703_v33  ;;  %v3016_v13 = vld [vmem:[#allocation11 + $0xd0] sm:$0xff]  ;;  %v3010_v6 = vld [vmem:[#allocation11 + $0xa0] sm:$0xff] }
 0x7a1   :  { %2895 = vmatpush.msrb.mxu0 %v5691_v2  ;;  %2915 = vmatpush.msrb.mxu1 %v5692_v3 }
 0x7a2   :  { %2935 = vmatpush.msrb.mxu2 %v5693_v18  ;;  %2955 = vmatpush.msrb.mxu3 %v5199_v25 }
 0x7a3   :  { %2896 = vmatpush.msrb.mxu0 %v5694_v17  ;;  %2916 = vmatpush.msrb.mxu1 %v5695_v51 }
 0x7a4   :  { %2936 = vmatpush.msrb.mxu2 %v5696_v55  ;;  %2956 = vmatpush.msrb.mxu3 %v5071_v39 }
 0x800   :  { %v2552_v63 = vpop.f32.mrf.mxu0  ;;  %v2572_v40 = vpop.f32.mrf.mxu1 }
 0x801   :  { %v2615_v21 = vadd.f32 %v2552_v63, %v1606_v7  ;;  %v2616_v27 = vadd.f32 %v2572_v40, %v1647_v61 }
 0x803   :  { %v2619_v29 = vmul.f32 0.5, %v2615_v21  ;;  %v2623_v44 = vmul.f32 0.5, %v2616_v27 }
 0x805   :  { %3338 = vtanh.f32 %v2619_v29 }
 0x806   :  { %3340 = vtanh.f32 %v2623_v44 }
 0x807   :  { %v2592_v38 = vpop.f32.mrf.mxu2  ;;  %v2612_v24 = vpop.f32.mrf.mxu3 }
 0x808   :  { %v2617_v23 = vadd.f32 %v2592_v38, %v1688_v31  ;;  %v2618_v22 = vadd.f32 %v2612_v24, %v1729_v4  ;;  %v3046_v38 = vld [vmem:[#allocation11 + $0x1c0] sm:$0xff]  ;;  %v3047_v24 = vld [vmem:[#allocation11 + $0x1c8] sm:$0xff] }
 0x80a   :  { %3342 = vtanh.f32 %v2617_v23  ;;  %v2628_v37 = vmul.f32 0.5, %v2618_v22  ;;  %v3048_v23 = vld [vmem:[#allocation11 + $0x1d0] sm:$0xff]  ;;  %v3049_v22 = vld [vmem:[#allocation11 + $0x1d8] sm:$0xff] }
 0x80b   :  { %v3339_v34 = vpop.eup %3338 }
 0x80c   :  { %v3341_v32 = vpop.eup %3340  ;;  %v2621_v35 = vmul.f32 0.5, %v3339_v34  ;;  %3344 = vtanh.f32 %v2628_v37  ;;  %v3042_v37 = vld [vmem:[#allocation11 + $0x1a0] sm:$0xff]  ;;  %v3043_v34 = vld [vmem:[#allocation11 + $0x1a8] sm:$0xff] }
 0x80d   :  { %v2625_v28 = vmul.f32 0.5, %v3341_v32  ;;  %v3044_v32 = vld [vmem:[#allocation11 + $0x1b0] sm:$0xff] }
 0x80e   :  { %v2622_v53 = vadd.f32 0.5, %v2621_v35  ;;  %v3045_v35 = vld [vmem:[#allocation11 + $0x1b8] sm:$0xff] }
 0x80f   :  { %v2626_v46 = vadd.f32 0.5, %v2625_v28  ;;  %v3038_v28 = vld [vmem:[#allocation11 + $0x180] sm:$0xff] }
 0x810   :  { %v3343_v41 = vpop.eup %3342  ;;  %v2632_v47 = vmul.f32 %v2622_v53, %v5223_v49  ;;  %v3050_v49 = vld [vmem:[#allocation11 + $0x1e0] sm:$0xff]  ;;  %v3039_v53 = vld [vmem:[#allocation11 + $0x188] sm:$0xff] }
 0x811   :  { %v2633_v43 = vmul.f32 %v3343_v41, %v2626_v46  ;;  %v3040_v46 = vld [vmem:[#allocation11 + $0x190] sm:$0xff]  ;;  %v3041_v41 = vld [vmem:[#allocation11 + $0x198] sm:$0xff] }
 0x812   :  { %v3345_v9 = vpop.eup %3344 }
 0x813   :  { %v2634_v39 = vadd.f32 %v2633_v43, %v2632_v47  ;;  %v2630_v50 = vmul.f32 0.5, %v3345_v9  ;;  %v3034_v47 = vld [vmem:[#allocation11 + $0x160] sm:$0xff]  ;;  %v3035_v43 = vld [vmem:[#allocation11 + $0x168] sm:$0xff]  ;;  %v3036_v9 = vld [vmem:[#allocation11 + $0x170] sm:$0xff] }
 0x815   :  { %3346 = vtanh.f32 %v2634_v39  ;;  %v2631_v58 = vadd.f32 0.5, %v2630_v50  ;;  %v3030_v50 = vld [vmem:[#allocation11 + $0x140] sm:$0xff] }
 0x81b   :  { %v3347_v0 = vpop.eup %3346 }
 0x81c   :  { %v2636_v60 = vmul.f32 %v3347_v0, %v2631_v58  ;;  %v3031_v58 = vld [vmem:[#allocation11 + $0x148] sm:$0xff]  ;;  %v3032_v0 = vld [vmem:[#allocation11 + $0x150] sm:$0xff] }
 0x81e   :  { %2638 = vst [vmem:[#allocation15 + $0x20] sm:$0xff] %v2636_v60  ;;  %2724 = vmatmul.f32.vlgmr.msra.gmra.mxu0 %v2636_v60  ;;  %2744 = vmatmul.f32.vlgmr.msra.gmra.mxu1 %v2636_v60 }
 0x81f   :  { %2764 = vmatmul.f32.vlgmr.msra.gmra.mxu2 %v2636_v60  ;;  %2784 = vmatmul.f32.vlgmr.msra.gmra.mxu3 %v2636_v60  ;;  %v3033_v60 = vld [vmem:[#allocation11 + $0x158] sm:$0xff] }
 0x820   :  { %3054 = vmatpush.msra.mxu0 %v3050_v49  ;;  %3074 = vmatpush.msra.mxu1 %v3051_v16  ;;  %v3022_v49 = vld [vmem:[#allocation11 + $0x100] sm:$0xff]  ;;  %v3023_v16 = vld [vmem:[#allocation11 + $0x108] sm:$0xff] }
 0x821   :  { %3094 = vmatpush.msra.mxu2 %v3052_v12  ;;  %3114 = vmatpush.msra.mxu3 %v3053_v52  ;;  %v3024_v12 = vld [vmem:[#allocation11 + $0x110] sm:$0xff]  ;;  %v3019_v52 = vld [vmem:[#allocation11 + $0xe8] sm:$0xff] }
 0x822   :  { %3055 = vmatpush.msra.mxu0 %v3046_v38  ;;  %3075 = vmatpush.msra.mxu1 %v3047_v24  ;;  %v2993_v38 = vld [vmem:[#allocation11 + $0x18] sm:$0xff] }
 0x823   :  { %3095 = vmatpush.msra.mxu2 %v3048_v23  ;;  %3115 = vmatpush.msra.mxu3 %v3049_v22  ;;  %v5709_v24 = vld [vmem:[#allocation43_spill] sm:$0xff] }
 0x824   :  { %3056 = vmatpush.msra.mxu0 %v3042_v37  ;;  %3076 = vmatpush.msra.mxu1 %v3043_v34  ;;  %v1612_v23 = vadd.f32 %v5709_v24, %v5697_v54 }
 0x825   :  { %3096 = vmatpush.msra.mxu2 %v3044_v32  ;;  %3116 = vmatpush.msra.mxu3 %v3045_v35 }
 0x826   :  { %3057 = vmatpush.msra.mxu0 %v3038_v28  ;;  %3077 = vmatpush.msra.mxu1 %v3039_v53  ;;  %v5711_v53 = vld [vmem:[#allocation25_spill] sm:$0xff] }
 0x827   :  { %3097 = vmatpush.msra.mxu2 %v3040_v46  ;;  %3117 = vmatpush.msra.mxu3 %v3041_v41  ;;  %v1694_v46 = vadd.f32 %v5711_v53, %v5701_v45  ;;  %v5712_v41 = vld [vmem:[#allocation48_spill] sm:$0xff] }
 0x828   :  { %3058 = vmatpush.msra.mxu0 %v3034_v47  ;;  %3078 = vmatpush.msra.mxu1 %v3035_v43  ;;  %v1735_v47 = vadd.f32 %v5712_v41, %v5703_v33 }
 0x829   :  { %3098 = vmatpush.msra.mxu2 %v3036_v9 }
 0x82a   :  { %3059 = vmatpush.msra.mxu0 %v3030_v50  ;;  %3079 = vmatpush.msra.mxu1 %v3031_v58 }
 0x82b   :  { %3099 = vmatpush.msra.mxu2 %v3032_v0 }
 0x82c   :  { %3060 = vmatpush.msra.mxu0 %v3026_v57 }
 0x82d   :  { %3100 = vmatpush.msra.mxu2 %v3028_v19 }
 0x82e   :  { %3061 = vmatpush.msra.mxu0 %v3022_v49 }
 0x82f   :  { %3101 = vmatpush.msra.mxu2 %v3024_v12 }
 0x89b   :  { %v2725_v5 = vpop.f32.mrf.mxu0  ;;  %v2745_v48 = vpop.f32.mrf.mxu1 }
 0x89c   :  { %v2788_v1 = vadd.f32 %v2725_v5, %v1609_v20  ;;  %v2789_v42 = vadd.f32 %v2745_v48, %v1650_v14  ;;  %v3027_v20 = vld [vmem:[#allocation11 + $0x128] sm:$0xff]  ;;  %v3029_v14 = vld [vmem:[#allocation11 + $0x138] sm:$0xff]  ;;  %v3018_v48 = vld [vmem:[#allocation11 + $0xe0] sm:$0xff] }
 0x89d   :  { %3080 = vmatpush.msra.mxu1 %v3027_v20  ;;  %v3025_v5 = vld [vmem:[#allocation11 + $0x118] sm:$0xff]  ;;  %3062 = vmatpush.msra.mxu0 %v3018_v48 }
 0x89e   :  { %v2792_v56 = vmul.f32 0.5, %v2788_v1  ;;  %v2796_v10 = vmul.f32 0.5, %v2789_v42  ;;  %v3020_v1 = vld [vmem:[#allocation11 + $0xf0] sm:$0xff]  ;;  %v3021_v42 = vld [vmem:[#allocation11 + $0xf8] sm:$0xff] }
 0x89f   :  { %3081 = vmatpush.msra.mxu1 %v3023_v16  ;;  %3102 = vmatpush.msra.mxu2 %v3020_v1 }
 0x8a0   :  { %3348 = vtanh.f32 %v2792_v56  ;;  %v3014_v56 = vld [vmem:[#allocation11 + $0xc0] sm:$0xff] }
 0x8a1   :  { %3350 = vtanh.f32 %v2796_v10  ;;  %3082 = vmatpush.msra.mxu1 %v3019_v52  ;;  %v3015_v10 = vld [vmem:[#allocation11 + $0xc8] sm:$0xff]  ;;  %3063 = vmatpush.msra.mxu0 %v3014_v56 }
 0x8a2   :  { %v2765_v2 = vpop.f32.mrf.mxu2  ;;  %v2785_v3 = vpop.f32.mrf.mxu3  ;;  %3103 = vmatpush.msra.mxu2 %v3016_v13 }
 0x8a3   :  { %v2790_v18 = vadd.f32 %v2765_v2, %v1691_v11  ;;  %v2791_v17 = vadd.f32 %v2785_v3, %v1732_v15  ;;  %3083 = vmatpush.msra.mxu1 %v3015_v10  ;;  %v3017_v11 = vld [vmem:[#allocation11 + $0xd8] sm:$0xff]  ;;  %v3011_v15 = vld [vmem:[#allocation11 + $0xa8] sm:$0xff]  ;;  %v3012_v2 = vld [vmem:[#allocation11 + $0xb0] sm:$0xff]  ;;  %3064 = vmatpush.msra.mxu0 %v3010_v6 }
 0x8a4   :  { %v3013_v3 = vld [vmem:[#allocation11 + $0xb8] sm:$0xff]  ;;  %3104 = vmatpush.msra.mxu2 %v3012_v2 }
 0x8a5   :  { %3352 = vtanh.f32 %v2790_v18  ;;  %v2801_v51 = vmul.f32 0.5, %v2791_v17  ;;  %3084 = vmatpush.msra.mxu1 %v3011_v15  ;;  %v3006_v18 = vld [vmem:[#allocation11 + $0x80] sm:$0xff]  ;;  %v3007_v17 = vld [vmem:[#allocation11 + $0x88] sm:$0xff] }
 0x8a6   :  { %v3349_v55 = vpop.eup %3348  ;;  %3065 = vmatpush.msra.mxu0 %v3006_v18  ;;  %v5713_v10 = vld [vmem:[#allocation24_spill] sm:$0xff] }
 0x8a7   :  { %v3351_v8 = vpop.eup %3350  ;;  %v2794_v7 = vmul.f32 0.5, %v3349_v55  ;;  %3354 = vtanh.f32 %v2801_v51  ;;  %v3008_v51 = vld [vmem:[#allocation11 + $0x90] sm:$0xff]  ;;  %3085 = vmatpush.msra.mxu1 %v3007_v17  ;;  %v3009_v55 = vld [vmem:[#allocation11 + $0x98] sm:$0xff]  ;;  %v1615_v13 = vadd.f32 %v5713_v10, %v5697_v54 }
 0x8a8   :  { %v2798_v26 = vmul.f32 0.5, %v3351_v8  ;;  %3105 = vmatpush.msra.mxu2 %v3008_v51  ;;  %v3002_v8 = vld [vmem:[#allocation11 + $0x60] sm:$0xff]  ;;  %v5715_v51 = vld [vmem:[#allocation27_spill] sm:$0xff] }
 0x8a9   :  { %v2795_v61 = vadd.f32 0.5, %v2794_v7  ;;  %v3003_v7 = vld [vmem:[#allocation11 + $0x68] sm:$0xff]  ;;  %3066 = vmatpush.msra.mxu0 %v3002_v8  ;;  %v5716_v8 = vld [vmem:[#allocation28_spill] sm:$0xff] }
 0x8aa   :  { %v2799_v63 = vadd.f32 0.5, %v2798_v26  ;;  %v3004_v26 = vld [vmem:[#allocation11 + $0x70] sm:$0xff]  ;;  %3086 = vmatpush.msra.mxu1 %v3003_v7  ;;  %v1738_v7 = vadd.f32 %v5716_v8, %v5703_v33 }
 0x8ab   :  { %v3353_v40 = vpop.eup %3352  ;;  %v2805_v21 = vmul.f32 %v2795_v61, %v2634_v39  ;;  %v3037_v39 = vld [vmem:[#allocation11 + $0x178] sm:$0xff]  ;;  %3106 = vmatpush.msra.mxu2 %v3004_v26 }
 0x8ac   :  { %v2806_v27 = vmul.f32 %v3353_v40, %v2799_v63  ;;  %3118 = vmatpush.msra.mxu3 %v3037_v39  ;;  %v3005_v61 = vld [vmem:[#allocation11 + $0x78] sm:$0xff]  ;;  %v2998_v63 = vld [vmem:[#allocation11 + $0x40] sm:$0xff]  ;;  %v2999_v40 = vld [vmem:[#allocation11 + $0x48] sm:$0xff] }
 0x8ad   :  { %v3355_v29 = vpop.eup %3354  ;;  %3067 = vmatpush.msra.mxu0 %v2998_v63  ;;  %3087 = vmatpush.msra.mxu1 %v2999_v40 }
 0x8ae   :  { %v5312_v44 = vadd.f32 %v2806_v27, %v2805_v21  ;;  %v2803_v30 = vmul.f32 0.5, %v3355_v29  ;;  %3119 = vmatpush.msra.mxu3 %v3033_v60  ;;  %v3000_v21 = vld [vmem:[#allocation11 + $0x50] sm:$0xff]  ;;  %v2994_v27 = vld [vmem:[#allocation11 + $0x20] sm:$0xff]  ;;  %v2995_v29 = vld [vmem:[#allocation11 + $0x28] sm:$0xff] }
 0x8af   :  { %3107 = vmatpush.msra.mxu2 %v3000_v21  ;;  %3068 = vmatpush.msra.mxu0 %v2994_v27 }
 0x8b0   :  { %3356 = vtanh.f32 %v5312_v44  ;;  %v2804_v31 = vadd.f32 0.5, %v2803_v30  ;;  %3120 = vmatpush.msra.mxu3 %v3029_v14  ;;  %v2996_v30 = vld [vmem:[#allocation11 + $0x30] sm:$0xff]  ;;  %3088 = vmatpush.msra.mxu1 %v2995_v29 }
 0x8b1   :  { %3108 = vmatpush.msra.mxu2 %v2996_v30 }
 0x8b2   :  { %3121 = vmatpush.msra.mxu3 %v3025_v5 }
 0x8b4   :  { %3122 = vmatpush.msra.mxu3 %v3021_v42 }
 0x8b6   :  { %v3357_v36 = vpop.eup %3356  ;;  %3123 = vmatpush.msra.mxu3 %v3017_v11  ;;  %v5714_v11 = vld [vmem:[#allocation47_spill] sm:$0xff] }
 0x8b7   :  { %v2809_v4 = vmul.f32 %v3357_v36, %v2804_v31  ;;  %v2990_v31 = vld [vmem:[#allocation11] sm:$0xff]  ;;  %v2991_v36 = vld [vmem:[#allocation11 + $0x8] sm:$0xff]  ;;  %v1656_v6 = vadd.f32 %v5714_v11, %v5699_v62 }
 0x8b8   :  { %3124 = vmatpush.msra.mxu3 %v3013_v3  ;;  %3069 = vmatpush.msra.mxu0 %v2990_v31 }
 0x8b9   :  { %2811 = vst [vmem:[#allocation15 + $0x28] sm:$0xff] %v2809_v4  ;;  %2897 = vmatmul.f32.vlgmr.msrb.gmra.mxu0 %v2809_v4  ;;  %2917 = vmatmul.f32.vlgmr.msrb.gmra.mxu1 %v2809_v4 }
 0x8ba   :  { %2937 = vmatmul.f32.vlgmr.msrb.gmra.mxu2 %v2809_v4  ;;  %2957 = vmatmul.f32.vlgmr.msrb.gmra.mxu3 %v2809_v4  ;;  %v2992_v4 = vld [vmem:[#allocation11 + $0x10] sm:$0xff] }
 0x8bb   :  { %3125 = vmatpush.msra.mxu3 %v3009_v55  ;;  %3089 = vmatpush.msra.mxu1 %v2991_v36  ;;  %v1697_v55 = vadd.f32 %v5715_v51, %v5701_v45 }
 0x8bc   :  { %3109 = vmatpush.msra.mxu2 %v2992_v4 }
 0x8bd   :  { %3126 = vmatpush.msra.mxu3 %v3005_v61 }
 0x8bf   :  { %3127 = vmatpush.msra.mxu3 %v5196_v59  ;;  %v5710_v59 = vld [vmem:[#allocation23_spill] sm:$0xff] }
 0x8c0   :  { %v1653_v22 = vadd.f32 %v5710_v59, %v5699_v62 }
 0x8c1   :  { %3128 = vmatpush.msra.mxu3 %v5199_v25 }
 0x8c3   :  { %3129 = vmatpush.msra.mxu3 %v2993_v38 }
 0x936   :  { %v2898_v37 = vpop.f32.mrf.mxu0  ;;  %v2918_v34 = vpop.f32.mrf.mxu1 }
 0x937   :  { %v2961_v32 = vadd.f32 %v2898_v37, %v1612_v23  ;;  %v2962_v35 = vadd.f32 %v2918_v34, %v1653_v22 }
 0x939   :  { %v2965_v28 = vmul.f32 0.5, %v2961_v32  ;;  %v2969_v25 = vmul.f32 0.5, %v2962_v35 }
 0x93b   :  { %3358 = vtanh.f32 %v2965_v28 }
 0x93c   :  { %3360 = vtanh.f32 %v2969_v25 }
 0x93d   :  { %v2938_v43 = vpop.f32.mrf.mxu2  ;;  %v2958_v9 = vpop.f32.mrf.mxu3 }
 0x93e   :  { %v2963_v39 = vadd.f32 %v2938_v43, %v1694_v46  ;;  %v2964_v50 = vadd.f32 %v2958_v9, %v1735_v47 }
 0x940   :  { %3362 = vtanh.f32 %v2963_v39  ;;  %v2974_v58 = vmul.f32 0.5, %v2964_v50 }
 0x941   :  { %v3359_v0 = vpop.eup %3358 }
 0x942   :  { %v3361_v60 = vpop.eup %3360  ;;  %v2967_v57 = vmul.f32 0.5, %v3359_v0  ;;  %3364 = vtanh.f32 %v2974_v58 }
 0x943   :  { %v2971_v20 = vmul.f32 0.5, %v3361_v60 }
 0x944   :  { %v2968_v19 = vadd.f32 0.5, %v2967_v57 }
 0x945   :  { %v2972_v14 = vadd.f32 0.5, %v2971_v20 }
 0x946   :  { %v3363_v49 = vpop.eup %3362  ;;  %v2978_v16 = vmul.f32 %v2968_v19, %v5312_v44 }
 0x947   :  { %v2979_v12 = vmul.f32 %v3363_v49, %v2972_v14 }
 0x948   :  { %v3365_v5 = vpop.eup %3364 }
 0x949   :  { %v2980_v48 = vadd.f32 %v2979_v12, %v2978_v16  ;;  %v2976_v52 = vmul.f32 0.5, %v3365_v5 }
 0x94b   :  { %3366 = vtanh.f32 %v2980_v48  ;;  %v2977_v1 = vadd.f32 0.5, %v2976_v52 }
 0x951   :  { %v3367_v42 = vpop.eup %3366 }
 0x952   :  { %v2982_v56 = vmul.f32 %v3367_v42, %v2977_v1 }
 0x954   :  { %2984 = vst [vmem:[#allocation15 + $0x30] sm:$0xff] %v2982_v56  ;;  %3070 = vmatmul.f32.vlgmr.msra.gmra.mxu0 %v2982_v56  ;;  %3090 = vmatmul.f32.vlgmr.msra.gmra.mxu1 %v2982_v56 }
 0x955   :  { %3110 = vmatmul.f32.vlgmr.msra.gmra.mxu2 %v2982_v56  ;;  %3130 = vmatmul.f32.vlgmr.msra.gmra.mxu3 %v2982_v56 }
 0x9d1   :  { %v3071_v44 = vpop.f32.mrf.mxu0  ;;  %v3091_v15 = vpop.f32.mrf.mxu1 }
 0x9d2   :  { %v3134_v2 = vadd.f32 %v3071_v44, %v1615_v13  ;;  %v3135_v3 = vadd.f32 %v3091_v15, %v1656_v6 }
 0x9d4   :  { %v3138_v18 = vmul.f32 0.5, %v3134_v2  ;;  %v3142_v17 = vmul.f32 0.5, %v3135_v3 }
 0x9d6   :  { %3368 = vtanh.f32 %v3138_v18 }
 0x9d7   :  { %3370 = vtanh.f32 %v3142_v17 }
 0x9d8   :  { %v3111_v26 = vpop.f32.mrf.mxu2  ;;  %v3131_v61 = vpop.f32.mrf.mxu3 }
 0x9d9   :  { %v3136_v54 = vadd.f32 %v3111_v26, %v1697_v55  ;;  %v3137_v63 = vadd.f32 %v3131_v61, %v1738_v7 }
 0x9db   :  { %3372 = vtanh.f32 %v3136_v54  ;;  %v3147_v62 = vmul.f32 0.5, %v3137_v63 }
 0x9dc   :  { %v3369_v40 = vpop.eup %3368 }
 0x9dd   :  { %v3371_v21 = vpop.eup %3370  ;;  %v3140_v27 = vmul.f32 0.5, %v3369_v40  ;;  %3374 = vtanh.f32 %v3147_v62 }
 0x9de   :  { %v3144_v29 = vmul.f32 0.5, %v3371_v21 }
 0x9df   :  { %v3141_v30 = vadd.f32 0.5, %v3140_v27 }
 0x9e0   :  { %v3145_v31 = vadd.f32 0.5, %v3144_v29 }
 0x9e1   :  { %v3373_v36 = vpop.eup %3372  ;;  %v3151_v4 = vmul.f32 %v3141_v30, %v2980_v48 }
 0x9e2   :  { %v3152_v45 = vmul.f32 %v3373_v36, %v3145_v31 }
 0x9e3   :  { %v3375_v38 = vpop.eup %3374 }
 0x9e4   :  { %v3153_v24 = vadd.f32 %v3152_v45, %v3151_v4  ;;  %v3149_v33 = vmul.f32 0.5, %v3375_v38 }
 0x9e6   :  { %3376 = vtanh.f32 %v3153_v24  ;;  %v3150_v23 = vadd.f32 0.5, %v3149_v33 }
 0x9ec   :  { %v3377_v59 = vpop.eup %3376 }
 0x9ed   :  { %v3155_v22 = vmul.f32 %v3377_v59, %v3150_v23 }
 0x9ef   :  { %3157 = vst [vmem:[#allocation15 + $0x38] sm:$0xff] %v3155_v22 }
 0x9f0   :  { %3166 = vst [vmem:[#allocation16 + $0x8] sm:$0xff] %v3155_v22  ;;  %3179 = dma.vmem_to_hbm [thread:$0]  %s3172_s4, 1024, %s3174_s23, [#allocation8], %s3566_s29, %s3566_s29, %s3567_s30  }
 0x9f1   :  { %3192 = dma.vmem_to_hbm [thread:$0]  %s3185_s25, 256, %s3187_s28, [#allocation17], %s3566_s29, %s3566_s29, %s3567_s30  }
 0x9f2   :  { %3552 = dma.done.wait [#allocation8], 1024  }
 0x9f3   :  { %3553 = vsyncadd [#allocation8], 4294966272 }
 0x9f4   :  { %3554 = dma.done.wait [#allocation17], 256  }
 0x9f5   :  { %3555 = vsyncadd [#allocation17], 4294967040 }
 0x9f6   :  { %3201 = vsyncpa [#allocation7], 1 }
 0x9f7   :  { %3202 = vsyncpa [#allocation10], 1 }
 0x9f8   :  { %3203 = vsyncpa [#allocation13], 1 }
 0x9f9   :  { %3204 = vsyncpa [#allocation8], 1 }
 0x9fa   :  { %3205 = vsyncpa [#allocation17], 1 }

// kernel: tpu_custom_call.1
= control target key start
LH: loop header
LB: loop body
LE: loop exit
PB: predicated region body
PF: predicated region fallthrough
CT: control target
= control target key end

     0   :  { %12 = vsyncpa [#allocation7], 0  ;;  %s5340_s0 = inlined_call_operand.hbm [shape: f32[8,8,512], index: 0, kind: input, shape index: {}]   ;;  %s5341_s1 = inlined_call_operand.hbm [shape: f32[128,512], index: 1, kind: input, shape index: {}]   ;;  %s5342_s2 = inlined_call_operand.hbm [shape: f32[128,512], index: 2, kind: input, shape index: {}]   ;;  %s5343_s3 = inlined_call_operand.hbm [shape: f32[128,512], index: 3, kind: input, shape index: {}]   ;;  %s5344_s4 = inlined_call_operand.hbm [shape: f32[1,512], index: 4, kind: input, shape index: {}]   ;;  %s5345_s5 = inlined_call_operand.hbm [shape: f32[8,8,128], index: 5, kind: output, shape index: {0}]   ;;  %s5346_s6 = inlined_call_operand.hbm [shape: f32[2,8,128], index: 6, kind: output, shape index: {1}]  }
   0x1   :  { %13 = vsyncpa [#allocation10], 0 }
   0x2   :  { %14 = vsyncpa [#allocation13], 0 }
   0x3   :  { %15 = vsyncpa [#allocation8], 0 }
   0x4   :  { %16 = vsyncpa [#allocation17], 0  ;;  %s34_s23 = sshll.u32 %s5341_s1, 4  ;;  %s3556_s24 = smov [#allocation9]   ;;  %s35_s23 = int_to_ptr.hbm [resolvable:$true] %s34_s23 }
   0x5   :  { %s36_s25 = sshll.u32 %s3556_s24, 4  ;;  %s60_s28 = sshll.u32 %s5343_s3, 4  ;;  %s37_s25 = int_to_ptr.vmem [resolvable:$true] %s36_s25  ;;  %s61_s28 = int_to_ptr.hbm [resolvable:$true] %s60_s28 }
   0x6   :  { %s3557_s29 = smov 512   ;;  %s3558_s30 = smov 32  }
   0x7   :  { %42 = dma.hbm_to_vmem [thread:$0]  %s35_s23, 8192, %s37_s25, [#allocation10], %s3557_s29, %s3557_s29, %s3558_s30  }
   0x8   :  { %s3559_s7 = smov [#allocation12]   ;;  %s21_s11 = sshll.u32 %s5340_s0, 4  ;;  %s22_s11 = int_to_ptr.hbm [resolvable:$true] %s21_s11 }
   0x9   :  { %s62_s8 = sshll.u32 %s3559_s7, 4  ;;  %s47_s13 = sshll.u32 %s5342_s2, 4  ;;  %s63_s8 = int_to_ptr.vmem [resolvable:$true] %s62_s8  ;;  %s48_s13 = int_to_ptr.hbm [resolvable:$true] %s47_s13 }
   0xa   :  { %68 = dma.hbm_to_vmem [thread:$0]  %s61_s28, 8192, %s63_s8, [#allocation13], %s3557_s29, %s3557_s29, %s3558_s30  }
   0xb   :  { %s3560_s14 = smov [#allocation6]   ;;  %s3561_s3 = smov [#allocation11]  }
   0xc   :  { %s23_s15 = sshll.u32 %s3560_s14, 4  ;;  %s49_s16 = sshll.u32 %s3561_s3, 4  ;;  %s24_s15 = int_to_ptr.vmem [resolvable:$true] %s23_s15  ;;  %s50_s16 = int_to_ptr.vmem [resolvable:$true] %s49_s16 }
   0xd   :  { %29 = dma.hbm_to_vmem [thread:$0]  %s22_s11, 4096, %s24_s15, [#allocation7], %s3557_s29, %s3557_s29, %s3558_s30  }
   0xe   :  { %s74_s19 = sshll.u32 %s5344_s4, 4  ;;  %s3562_s0 = smov [#allocation14]   ;;  %s75_s19 = int_to_ptr.hbm [resolvable:$true] %s74_s19 }
   0xf   :  { %55 = dma.hbm_to_vmem [thread:$0]  %s48_s13, 8192, %s50_s16, [#allocation10], %s3557_s29, %s3557_s29, %s3558_s30  }
  0x10   :  { %s76_s20 = sshll.u32 %s3562_s0, 4  ;;  %s77_s20 = int_to_ptr.vmem [resolvable:$true] %s76_s20 }
  0x11   :  { %79 = dma.hbm_to_vmem [thread:$0]  %s75_s19, 64, %s77_s20, [#allocation13]  }
  0x12   :  { %3546 = dma.done.wait [#allocation7], 4096  }
  0x13   :  { %3547 = vsyncadd [#allocation7], 4294963200 }
  0x14   :  { %3548 = dma.done.wait [#allocation10], 16384  }
  0x15   :  { %3549 = vsyncadd [#allocation10], 4294950912 }
  0x16   :  { %3550 = dma.done.wait [#allocation13], 8256  }
  0x17   :  { %3551 = vsyncadd [#allocation13], 4294959040  ;;  %v3618_v0 = vld [vmem:[#allocation9 + $0x1e0] sm:$0xff]  ;;  %v3620_v1 = vld [vmem:[#allocation9 + $0x1e8] sm:$0xff]  ;;  %v5349_v63 = vmov 0.0   ;;  %s3564_s2 = smov [#allocation15]  }
  0x18   :  { %v3622_v2 = vld [vmem:[#allocation9 + $0x1f0] sm:$0xff]  ;;  %178 = vmatpush.msra.mxu0 %v3618_v0  ;;  %198 = vmatpush.msra.mxu1 %v3620_v1  ;;  %v3626_v3 = vld [vmem:[#allocation9 + $0x1c0] sm:$0xff]  ;;  %v3628_v4 = vld [vmem:[#allocation9 + $0x1c8] sm:$0xff]  ;;  %s3171_s4 = sshll.u32 %s3564_s2, 4  ;;  %s3173_s23 = sshll.u32 %s5345_s5, 4  ;;  %s3172_s4 = int_to_ptr.vmem [resolvable:$true] %s3171_s4  ;;  %s3174_s23 = int_to_ptr.hbm [resolvable:$true] %s3173_s23 }
  0x19   :  { %v3630_v5 = vld [vmem:[#allocation9 + $0x1d0] sm:$0xff]  ;;  %218 = vmatpush.msra.mxu2 %v3622_v2  ;;  %v3633_v6 = vld [vmem:[#allocation9 + $0x1a0] sm:$0xff]  ;;  %v3635_v7 = vld [vmem:[#allocation9 + $0x1a8] sm:$0xff]  ;;  %s3565_s24 = smov [#allocation16]   ;;  %s3186_s28 = sshll.u32 %s5346_s6, 4  ;;  %s3187_s28 = int_to_ptr.hbm [resolvable:$true] %s3186_s28 }
  0x1a   :  { %179 = vmatpush.msra.mxu0 %v3626_v3  ;;  %199 = vmatpush.msra.mxu1 %v3628_v4  ;;  %v3639_v8 = vld [vmem:[#allocation9 + $0x1b0] sm:$0xff]  ;;  %v3641_v9 = vld [vmem:[#allocation9 + $0x1f8] sm:$0xff]  ;;  %v3645_v10 = vld [vmem:[#allocation9 + $0x180] sm:$0xff]  ;;  %s3184_s25 = sshll.u32 %s3565_s24, 4  ;;  %s3566_s29 = smov 128   ;;  %s3185_s25 = int_to_ptr.vmem [resolvable:$true] %s3184_s25 }
  0x1b   :  { %219 = vmatpush.msra.mxu2 %v3630_v5  ;;  %238 = vmatpush.msra.mxu3 %v3641_v9  ;;  %v3647_v11 = vld [vmem:[#allocation9 + $0x188] sm:$0xff]  ;;  %v3649_v12 = vld [vmem:[#allocation9 + $0x1d8] sm:$0xff]  ;;  %v3653_v13 = vld [vmem:[#allocation9 + $0x190] sm:$0xff]  ;;  %s3567_s30 = smov 8  }
  0x1c   :  { %180 = vmatpush.msra.mxu0 %v3633_v6  ;;  %200 = vmatpush.msra.mxu1 %v3635_v7  ;;  %v3655_v14 = vld [vmem:[#allocation9 + $0x1b8] sm:$0xff]  ;;  %v3659_v15 = vld [vmem:[#allocation9 + $0x160] sm:$0xff]  ;;  %v3661_v16 = vld [vmem:[#allocation9 + $0x168] sm:$0xff] }
  0x1d   :  { %220 = vmatpush.msra.mxu2 %v3639_v8  ;;  %239 = vmatpush.msra.mxu3 %v3649_v12  ;;  %v3665_v17 = vld [vmem:[#allocation9 + $0x170] sm:$0xff]  ;;  %v3667_v18 = vld [vmem:[#allocation9 + $0x198] sm:$0xff]  ;;  %v3671_v19 = vld [vmem:[#allocation9 + $0x140] sm:$0xff] }
  0x1e   :  { %181 = vmatpush.msra.mxu0 %v3645_v10  ;;  %201 = vmatpush.msra.mxu1 %v3647_v11  ;;  %v3673_v20 = vld [vmem:[#allocation9 + $0x148] sm:$0xff]  ;;  %v3677_v21 = vld [vmem:[#allocation9 + $0x150] sm:$0xff]  ;;  %v3679_v22 = vld [vmem:[#allocation9 + $0x178] sm:$0xff] }
  0x1f   :  { %221 = vmatpush.msra.mxu2 %v3653_v13  ;;  %240 = vmatpush.msra.mxu3 %v3655_v14  ;;  %v3683_v23 = vld [vmem:[#allocation9 + $0x120] sm:$0xff]  ;;  %v3685_v24 = vld [vmem:[#allocation9 + $0x128] sm:$0xff]  ;;  %v3689_v25 = vld [vmem:[#allocation9 + $0x130] sm:$0xff] }
  0x20   :  { %182 = vmatpush.msra.mxu0 %v3659_v15  ;;  %202 = vmatpush.msra.mxu1 %v3661_v16  ;;  %v3691_v26 = vld [vmem:[#allocation9 + $0x158] sm:$0xff]  ;;  %v3695_v27 = vld [vmem:[#allocation9 + $0x100] sm:$0xff]  ;;  %v3697_v28 = vld [vmem:[#allocation9 + $0x108] sm:$0xff] }
  0x21   :  { %222 = vmatpush.msra.mxu2 %v3665_v17  ;;  %241 = vmatpush.msra.mxu3 %v3667_v18  ;;  %v3701_v29 = vld [vmem:[#allocation9 + $0x110] sm:$0xff]  ;;  %v3703_v30 = vld [vmem:[#allocation9 + $0x138] sm:$0xff]  ;;  %v3707_v31 = vld [vmem:[#allocation9 + $0xe0] sm:$0xff] }
  0x22   :  { %183 = vmatpush.msra.mxu0 %v3671_v19  ;;  %203 = vmatpush.msra.mxu1 %v3673_v20  ;;  %v3709_v32 = vld [vmem:[#allocation9 + $0xe8] sm:$0xff]  ;;  %v3713_v33 = vld [vmem:[#allocation9 + $0xf0] sm:$0xff]  ;;  %v3715_v34 = vld [vmem:[#allocation9 + $0x118] sm:$0xff] }
  0x23   :  { %223 = vmatpush.msra.mxu2 %v3677_v21  ;;  %242 = vmatpush.msra.mxu3 %v3679_v22  ;;  %v3719_v35 = vld [vmem:[#allocation9 + $0xc0] sm:$0xff]  ;;  %v3721_v36 = vld [vmem:[#allocation9 + $0xc8] sm:$0xff]  ;;  %v3725_v37 = vld [vmem:[#allocation9 + $0xd0] sm:$0xff] }
  0x24   :  { %184 = vmatpush.msra.mxu0 %v3683_v23  ;;  %204 = vmatpush.msra.mxu1 %v3685_v24  ;;  %v3727_v38 = vld [vmem:[#allocation9 + $0xf8] sm:$0xff]  ;;  %v3731_v39 = vld [vmem:[#allocation9 + $0xa0] sm:$0xff]  ;;  %v3733_v40 = vld [vmem:[#allocation9 + $0xa8] sm:$0xff] }
  0x25   :  { %224 = vmatpush.msra.mxu2 %v3689_v25  ;;  %243 = vmatpush.msra.mxu3 %v3691_v26  ;;  %v3737_v41 = vld [vmem:[#allocation9 + $0xb0] sm:$0xff]  ;;  %v3739_v42 = vld [vmem:[#allocation9 + $0xd8] sm:$0xff]  ;;  %v3743_v43 = vld [vmem:[#allocation9 + $0x80] sm:$0xff] }
  0x26   :  { %185 = vmatpush.msra.mxu0 %v3695_v27  ;;  %205 = vmatpush.msra.mxu1 %v3697_v28  ;;  %5495 = vst [vmem:[#allocation23_spill] sm:$0xff] %v3743_v43  ;;  %v3745_v44 = vld [vmem:[#allocation9 + $0x88] sm:$0xff]  ;;  %v3749_v45 = vld [vmem:[#allocation9 + $0x90] sm:$0xff]  ;;  %v3751_v46 = vld [vmem:[#allocation9 + $0xb8] sm:$0xff] }
  0x27   :  { %225 = vmatpush.msra.mxu2 %v3701_v29  ;;  %244 = vmatpush.msra.mxu3 %v3703_v30  ;;  %5496 = vst [vmem:[#allocation24_spill] sm:$0xff] %v3745_v44  ;;  %v3755_v47 = vld [vmem:[#allocation9 + $0x60] sm:$0xff]  ;;  %v3757_v48 = vld [vmem:[#allocation9 + $0x68] sm:$0xff]  ;;  %v3761_v49 = vld [vmem:[#allocation9 + $0x70] sm:$0xff] }
  0x28   :  { %186 = vmatpush.msra.mxu0 %v3707_v31  ;;  %206 = vmatpush.msra.mxu1 %v3709_v32  ;;  %5497 = vst [vmem:[#allocation25_spill] sm:$0xff] %v3749_v45  ;;  %v3763_v50 = vld [vmem:[#allocation9 + $0x98] sm:$0xff]  ;;  %v3767_v51 = vld [vmem:[#allocation9 + $0x40] sm:$0xff]  ;;  %v3769_v52 = vld [vmem:[#allocation9 + $0x48] sm:$0xff] }
  0x29   :  { %226 = vmatpush.msra.mxu2 %v3713_v33  ;;  %245 = vmatpush.msra.mxu3 %v3715_v34  ;;  %5498 = vst [vmem:[#allocation26_spill] sm:$0xff] %v3755_v47  ;;  %v3773_v53 = vld [vmem:[#allocation9 + $0x50] sm:$0xff]  ;;  %v3775_v54 = vld [vmem:[#allocation9 + $0x78] sm:$0xff]  ;;  %v3779_v55 = vld [vmem:[#allocation9 + $0x20] sm:$0xff] }
  0x2a   :  { %187 = vmatpush.msra.mxu0 %v3719_v35  ;;  %207 = vmatpush.msra.mxu1 %v3721_v36  ;;  %5499 = vst [vmem:[#allocation27_spill] sm:$0xff] %v3757_v48  ;;  %v3781_v56 = vld [vmem:[#allocation9 + $0x28] sm:$0xff]  ;;  %v3785_v57 = vld [vmem:[#allocation9 + $0x30] sm:$0xff]  ;;  %v3787_v58 = vld [vmem:[#allocation9 + $0x58] sm:$0xff] }
  0x2b   :  { %227 = vmatpush.msra.mxu2 %v3725_v37  ;;  %246 = vmatpush.msra.mxu3 %v3727_v38  ;;  %5500 = vst [vmem:[#allocation28_spill] sm:$0xff] %v3761_v49  ;;  %v3791_v59 = vld [vmem:[#allocation9] sm:$0xff]  ;;  %v3793_v60 = vld [vmem:[#allocation9 + $0x8] sm:$0xff]  ;;  %v3797_v61 = vld [vmem:[#allocation9 + $0x10] sm:$0xff] }
  0x2c   :  { %188 = vmatpush.msra.mxu0 %v3731_v39  ;;  %208 = vmatpush.msra.mxu1 %v3733_v40  ;;  %5501 = vst [vmem:[#allocation29_spill] sm:$0xff] %v3763_v50  ;;  %v3803_v62 = vld [vmem:[#allocation9 + $0x38] sm:$0xff] }
  0x2d   :  { %228 = vmatpush.msra.mxu2 %v3737_v41  ;;  %247 = vmatpush.msra.mxu3 %v3739_v42  ;;  %5502 = vst [vmem:[#allocation30_spill] sm:$0xff] %v3767_v51 }
  0x2e   :  { %189 = vmatpush.msra.mxu0 %v3743_v43  ;;  %209 = vmatpush.msra.mxu1 %v3745_v44  ;;  %5503 = vst [vmem:[#allocation31_spill] sm:$0xff] %v3769_v52 }
  0x2f   :  { %229 = vmatpush.msra.mxu2 %v3749_v45  ;;  %248 = vmatpush.msra.mxu3 %v3751_v46  ;;  %5504 = vst [vmem:[#allocation32_spill] sm:$0xff] %v3773_v53 }
  0x30   :  { %190 = vmatpush.msra.mxu0 %v3755_v47  ;;  %210 = vmatpush.msra.mxu1 %v3757_v48  ;;  %5505 = vst [vmem:[#allocation33_spill] sm:$0xff] %v3775_v54 }
  0x31   :  { %230 = vmatpush.msra.mxu2 %v3761_v49  ;;  %249 = vmatpush.msra.mxu3 %v3763_v50  ;;  %5506 = vst [vmem:[#allocation34_spill] sm:$0xff] %v3779_v55 }
  0x32   :  { %5507 = vst [vmem:[#allocation35_spill] sm:$0xff] %v3781_v56  ;;  %191 = vmatpush.msra.mxu0 %v3767_v51  ;;  %211 = vmatpush.msra.mxu1 %v3769_v52 }
  0x33   :  { %5508 = vst [vmem:[#allocation36_spill] sm:$0xff] %v3785_v57  ;;  %231 = vmatpush.msra.mxu2 %v3773_v53  ;;  %250 = vmatpush.msra.mxu3 %v3775_v54 }
  0x34   :  { %5509 = vst [vmem:[#allocation37_spill] sm:$0xff] %v3787_v58  ;;  %192 = vmatpush.msra.mxu0 %v3779_v55  ;;  %212 = vmatpush.msra.mxu1 %v3781_v56  ;;  %v3809_v56 = vld [vmem:[#allocation9 + $0x18] sm:$0xff] }
  0x35   :  { %5510 = vst [vmem:[#allocation38_spill] sm:$0xff] %v3791_v59  ;;  %232 = vmatpush.msra.mxu2 %v3785_v57  ;;  %251 = vmatpush.msra.mxu3 %v3787_v58 }
  0x36   :  { %5511 = vst [vmem:[#allocation39_spill] sm:$0xff] %v3793_v60  ;;  %193 = vmatpush.msra.mxu0 %v3791_v59  ;;  %213 = vmatpush.msra.mxu1 %v3793_v60 }
  0x37   :  { %5512 = vst [vmem:[#allocation40_spill] sm:$0xff] %v3797_v61  ;;  %233 = vmatpush.msra.mxu2 %v3797_v61  ;;  %194 = vmatmul.f32.vlgmr.msra.gmra.mxu0 %v5349_v63 }
  0x38   :  { %5513 = vst [vmem:[#allocation41_spill] sm:$0xff] %v3803_v62  ;;  %214 = vmatmul.f32.vlgmr.msra.gmra.mxu1 %v5349_v63  ;;  %234 = vmatmul.f32.vlgmr.msra.gmra.mxu2 %v5349_v63 }
  0x39   :  { %5514 = vst [vmem:[#allocation42_spill] sm:$0xff] %v3809_v56  ;;  %252 = vmatpush.msra.mxu3 %v3803_v62  ;;  %350 = vmatpush.msrb.mxu0 %v3618_v0 }
  0x3a   :  { %370 = vmatpush.msrb.mxu1 %v3620_v1  ;;  %390 = vmatpush.msrb.mxu2 %v3622_v2 }
  0x3b   :  { %253 = vmatpush.msra.mxu3 %v3809_v56  ;;  %351 = vmatpush.msrb.mxu0 %v3626_v3 }
  0x3c   :  { %254 = vmatmul.f32.vlgmr.msra.gmra.mxu3 %v5349_v63  ;;  %371 = vmatpush.msrb.mxu1 %v3628_v4  ;;  %v5515_v63 = vld [vmem:[#allocation35_spill] sm:$0xff] }
  0x3d   :  { %410 = vmatpush.msrb.mxu3 %v3641_v9  ;;  %391 = vmatpush.msrb.mxu2 %v3630_v5 }
  0x3e   :  { %352 = vmatpush.msrb.mxu0 %v3633_v6  ;;  %372 = vmatpush.msrb.mxu1 %v3635_v7 }
  0x3f   :  { %411 = vmatpush.msrb.mxu3 %v3649_v12  ;;  %392 = vmatpush.msrb.mxu2 %v3639_v8 }
  0x40   :  { %353 = vmatpush.msrb.mxu0 %v3645_v10  ;;  %373 = vmatpush.msrb.mxu1 %v3647_v11 }
  0x41   :  { %412 = vmatpush.msrb.mxu3 %v3655_v14  ;;  %393 = vmatpush.msrb.mxu2 %v3653_v13 }
  0x42   :  { %354 = vmatpush.msrb.mxu0 %v3659_v15  ;;  %374 = vmatpush.msrb.mxu1 %v3661_v16 }
  0x43   :  { %413 = vmatpush.msrb.mxu3 %v3667_v18  ;;  %394 = vmatpush.msrb.mxu2 %v3665_v17 }
  0x44   :  { %355 = vmatpush.msrb.mxu0 %v3671_v19  ;;  %375 = vmatpush.msrb.mxu1 %v3673_v20 }
  0x45   :  { %414 = vmatpush.msrb.mxu3 %v3679_v22  ;;  %395 = vmatpush.msrb.mxu2 %v3677_v21 }
  0x46   :  { %356 = vmatpush.msrb.mxu0 %v3683_v23  ;;  %376 = vmatpush.msrb.mxu1 %v3685_v24 }
  0x47   :  { %415 = vmatpush.msrb.mxu3 %v3691_v26  ;;  %396 = vmatpush.msrb.mxu2 %v3689_v25 }
  0x48   :  { %357 = vmatpush.msrb.mxu0 %v3695_v27  ;;  %377 = vmatpush.msrb.mxu1 %v3697_v28 }
  0x49   :  { %416 = vmatpush.msrb.mxu3 %v3703_v30  ;;  %397 = vmatpush.msrb.mxu2 %v3701_v29 }
  0x4a   :  { %358 = vmatpush.msrb.mxu0 %v3707_v31  ;;  %378 = vmatpush.msrb.mxu1 %v3709_v32 }
  0x4b   :  { %417 = vmatpush.msrb.mxu3 %v3715_v34  ;;  %398 = vmatpush.msrb.mxu2 %v3713_v33 }
  0x4c   :  { %359 = vmatpush.msrb.mxu0 %v3719_v35  ;;  %379 = vmatpush.msrb.mxu1 %v3721_v36 }
  0x4d   :  { %418 = vmatpush.msrb.mxu3 %v3727_v38  ;;  %399 = vmatpush.msrb.mxu2 %v3725_v37 }
  0x4e   :  { %360 = vmatpush.msrb.mxu0 %v3731_v39  ;;  %380 = vmatpush.msrb.mxu1 %v3733_v40 }
  0x4f   :  { %419 = vmatpush.msrb.mxu3 %v3739_v42  ;;  %400 = vmatpush.msrb.mxu2 %v3737_v41 }
  0x50   :  { %361 = vmatpush.msrb.mxu0 %v3743_v43  ;;  %381 = vmatpush.msrb.mxu1 %v3745_v44 }
  0x51   :  { %420 = vmatpush.msrb.mxu3 %v3751_v46  ;;  %401 = vmatpush.msrb.mxu2 %v3749_v45 }
  0x52   :  { %362 = vmatpush.msrb.mxu0 %v3755_v47  ;;  %382 = vmatpush.msrb.mxu1 %v3757_v48 }
  0x53   :  { %421 = vmatpush.msrb.mxu3 %v3763_v50  ;;  %402 = vmatpush.msrb.mxu2 %v3761_v49 }
  0x54   :  { %363 = vmatpush.msrb.mxu0 %v3767_v51  ;;  %383 = vmatpush.msrb.mxu1 %v3769_v52 }
  0x55   :  { %422 = vmatpush.msrb.mxu3 %v3775_v54  ;;  %403 = vmatpush.msrb.mxu2 %v3773_v53 }
  0x56   :  { %364 = vmatpush.msrb.mxu0 %v3779_v55  ;;  %384 = vmatpush.msrb.mxu1 %v5515_v63 }
  0x57   :  { %423 = vmatpush.msrb.mxu3 %v3787_v58  ;;  %404 = vmatpush.msrb.mxu2 %v3785_v57 }
  0x58   :  { %365 = vmatpush.msrb.mxu0 %v3791_v59  ;;  %385 = vmatpush.msrb.mxu1 %v3793_v60 }
  0x59   :  { %424 = vmatpush.msrb.mxu3 %v3803_v62  ;;  %405 = vmatpush.msrb.mxu2 %v3797_v61 }
  0x5a   :  { %523 = vmatpush.msra.mxu0 %v3618_v0  ;;  %543 = vmatpush.msra.mxu1 %v3620_v1 }
  0x5b   :  { %425 = vmatpush.msrb.mxu3 %v3809_v56  ;;  %563 = vmatpush.msra.mxu2 %v3622_v2 }
  0x5c   :  { %524 = vmatpush.msra.mxu0 %v3626_v3  ;;  %544 = vmatpush.msra.mxu1 %v3628_v4 }
  0x5d   :  { %583 = vmatpush.msra.mxu3 %v3641_v9  ;;  %564 = vmatpush.msra.mxu2 %v3630_v5 }
  0x5e   :  { %525 = vmatpush.msra.mxu0 %v3633_v6  ;;  %545 = vmatpush.msra.mxu1 %v3635_v7 }
  0x5f   :  { %584 = vmatpush.msra.mxu3 %v3649_v12  ;;  %565 = vmatpush.msra.mxu2 %v3639_v8 }
  0x60   :  { %526 = vmatpush.msra.mxu0 %v3645_v10  ;;  %546 = vmatpush.msra.mxu1 %v3647_v11 }
  0x61   :  { %585 = vmatpush.msra.mxu3 %v3655_v14  ;;  %566 = vmatpush.msra.mxu2 %v3653_v13 }
  0x62   :  { %527 = vmatpush.msra.mxu0 %v3659_v15  ;;  %547 = vmatpush.msra.mxu1 %v3661_v16 }
  0x63   :  { %586 = vmatpush.msra.mxu3 %v3667_v18  ;;  %567 = vmatpush.msra.mxu2 %v3665_v17 }
  0x64   :  { %528 = vmatpush.msra.mxu0 %v3671_v19  ;;  %548 = vmatpush.msra.mxu1 %v3673_v20 }
  0x65   :  { %587 = vmatpush.msra.mxu3 %v3679_v22  ;;  %568 = vmatpush.msra.mxu2 %v3677_v21 }
  0x66   :  { %529 = vmatpush.msra.mxu0 %v3683_v23  ;;  %549 = vmatpush.msra.mxu1 %v3685_v24 }
  0x67   :  { %588 = vmatpush.msra.mxu3 %v3691_v26  ;;  %569 = vmatpush.msra.mxu2 %v3689_v25 }
  0x68   :  { %530 = vmatpush.msra.mxu0 %v3695_v27  ;;  %550 = vmatpush.msra.mxu1 %v3697_v28 }
  0x69   :  { %589 = vmatpush.msra.mxu3 %v3703_v30  ;;  %570 = vmatpush.msra.mxu2 %v3701_v29 }
  0x6a   :  { %531 = vmatpush.msra.mxu0 %v3707_v31  ;;  %551 = vmatpush.msra.mxu1 %v3709_v32 }
  0x6b   :  { %590 = vmatpush.msra.mxu3 %v3715_v34  ;;  %571 = vmatpush.msra.mxu2 %v3713_v33 }
  0x6c   :  { %532 = vmatpush.msra.mxu0 %v3719_v35  ;;  %552 = vmatpush.msra.mxu1 %v3721_v36 }
  0x6d   :  { %591 = vmatpush.msra.mxu3 %v3727_v38  ;;  %572 = vmatpush.msra.mxu2 %v3725_v37 }
  0x6e   :  { %533 = vmatpush.msra.mxu0 %v3731_v39  ;;  %553 = vmatpush.msra.mxu1 %v3733_v40 }
  0x6f   :  { %592 = vmatpush.msra.mxu3 %v3739_v42  ;;  %573 = vmatpush.msra.mxu2 %v3737_v41 }
  0x70   :  { %534 = vmatpush.msra.mxu0 %v3743_v43  ;;  %554 = vmatpush.msra.mxu1 %v3745_v44 }
  0x71   :  { %593 = vmatpush.msra.mxu3 %v3751_v46  ;;  %574 = vmatpush.msra.mxu2 %v3749_v45 }
  0x72   :  { %535 = vmatpush.msra.mxu0 %v3755_v47  ;;  %555 = vmatpush.msra.mxu1 %v3757_v48 }
  0x73   :  { %594 = vmatpush.msra.mxu3 %v3763_v50  ;;  %575 = vmatpush.msra.mxu2 %v3761_v49 }
  0x74   :  { %536 = vmatpush.msra.mxu0 %v3767_v51  ;;  %556 = vmatpush.msra.mxu1 %v3769_v52  ;;  %v110_v52 = vld [vmem:[#allocation6] sm:$0xff] }
  0x75   :  { %595 = vmatpush.msra.mxu3 %v3775_v54  ;;  %576 = vmatpush.msra.mxu2 %v3773_v53  ;;  %v111_v53 = vld [vmem:[#allocation6 + $0x8] sm:$0xff] }
  0x76   :  { %537 = vmatpush.msra.mxu0 %v3779_v55  ;;  %557 = vmatpush.msra.mxu1 %v5515_v63 }
  0x77   :  { %596 = vmatpush.msra.mxu3 %v3787_v58  ;;  %577 = vmatpush.msra.mxu2 %v3785_v57  ;;  %v112_v57 = vld [vmem:[#allocation6 + $0x10] sm:$0xff] }
  0x78   :  { %538 = vmatpush.msra.mxu0 %v3791_v59  ;;  %558 = vmatpush.msra.mxu1 %v3793_v60  ;;  %v113_v59 = vld [vmem:[#allocation6 + $0x18] sm:$0xff] }
  0x79   :  { %597 = vmatpush.msra.mxu3 %v3803_v62  ;;  %578 = vmatpush.msra.mxu2 %v3797_v61 }
  0x7b   :  { %598 = vmatpush.msra.mxu3 %v3809_v56 }
  0xb4   :  { %v195_v51 = vpop.f32.mrf.mxu0 }
  0xb5   :  { %v258_v58 = vadd.f32 %v195_v51, %v110_v52  ;;  %v215_v54 = vpop.f32.mrf.mxu1 }
  0xb6   :  { %v259_v55 = vadd.f32 %v215_v54, %v111_v53 }
  0xb7   :  { %v262_v49 = vmul.f32 0.5, %v258_v58 }
  0xb8   :  { %v266_v63 = vmul.f32 0.5, %v259_v55 }
  0xb9   :  { %3218 = vtanh.f32 %v262_v49 }
  0xba   :  { %3220 = vtanh.f32 %v266_v63  ;;  %v4024_v63 = vld [vmem:[#allocation9 + $0x1e8] sm:$0xff] }
  0xbb   :  { %v235_v62 = vpop.f32.mrf.mxu2 }
  0xbc   :  { %v260_v48 = vadd.f32 %v235_v62, %v112_v57 }
  0xbe   :  { %3222 = vtanh.f32 %v260_v48 }
  0xbf   :  { %v3219_v60 = vpop.eup %3218  ;;  %v255_v47 = vpop.f32.mrf.mxu3 }
  0xc0   :  { %v3221_v61 = vpop.eup %3220  ;;  %v264_v50 = vmul.f32 0.5, %v3219_v60  ;;  %v261_v56 = vadd.f32 %v255_v47, %v113_v59  ;;  %v455_v59 = vld [vmem:[#allocation6 + $0x40] sm:$0xff]  ;;  %v456_v60 = vld [vmem:[#allocation6 + $0x48] sm:$0xff] }
  0xc1   :  { %v268_v45 = vmul.f32 0.5, %v3221_v61  ;;  %v4022_v61 = vld [vmem:[#allocation9 + $0x1e0] sm:$0xff] }
  0xc2   :  { %v265_v44 = vadd.f32 0.5, %v264_v50  ;;  %v271_v43 = vmul.f32 0.5, %v261_v56 }
  0xc3   :  { %v269_v51 = vadd.f32 0.5, %v268_v45 }
  0xc4   :  { %v3223_v52 = vpop.eup %3222  ;;  %v275_v53 = vmul.f32 0.0, %v265_v44  ;;  %3224 = vtanh.f32 %v271_v43 }
  0xc5   :  { %v276_v54 = vmul.f32 %v3223_v52, %v269_v51  ;;  %v4026_v51 = vld [vmem:[#allocation9 + $0x1f0] sm:$0xff] }
  0xc7   :  { %v3942_v49 = vadd.f32 %v276_v54, %v275_v53  ;;  %v4030_v54 = vld [vmem:[#allocation9 + $0x1f8] sm:$0xff] }
  0xc9   :  { %3226 = vtanh.f32 %v3942_v49 }
  0xca   :  { %v3225_v55 = vpop.eup %3224 }
  0xcb   :  { %v273_v57 = vmul.f32 0.5, %v3225_v55 }
  0xcd   :  { %v274_v48 = vadd.f32 0.5, %v273_v57 }
  0xcf   :  { %v3227_v58 = vpop.eup %3226 }
  0xd0   :  { %v3945_v62 = vmul.f32 %v3227_v58, %v274_v48  ;;  %v457_v58 = vld [vmem:[#allocation6 + $0x50] sm:$0xff] }
  0xd2   :  { %5516 = vst [vmem:[#allocation43_spill] sm:$0xff] %v3945_v62  ;;  %366 = vmatmul.f32.vlgmr.msrb.gmra.mxu0 %v3945_v62  ;;  %386 = vmatmul.f32.vlgmr.msrb.gmra.mxu1 %v3945_v62 }
  0xd3   :  { %406 = vmatmul.f32.vlgmr.msrb.gmra.mxu2 %v3945_v62  ;;  %426 = vmatmul.f32.vlgmr.msrb.gmra.mxu3 %v3945_v62  ;;  %v4215_v62 = vld [vmem:[#allocation9 + $0x10] sm:$0xff] }
  0xd4   :  { %696 = vmatpush.msrb.mxu0 %v3618_v0  ;;  %716 = vmatpush.msrb.mxu1 %v3620_v1  ;;  %v5517_v0 = vld [vmem:[#allocation23_spill] sm:$0xff]  ;;  %v5518_v1 = vld [vmem:[#allocation24_spill] sm:$0xff]  ;;  %5558 = vst [vmem:[#allocation45_spill] sm:$0xff] %v4215_v62 }
  0xd5   :  { %736 = vmatpush.msrb.mxu2 %v3622_v2  ;;  %756 = vmatpush.msrb.mxu3 %v3641_v9  ;;  %v5519_v2 = vld [vmem:[#allocation25_spill] sm:$0xff]  ;;  %v5526_v9 = vld [vmem:[#allocation31_spill] sm:$0xff]  ;;  %5538 = vst [vmem:[#allocation24_spill] sm:$0xff] %v4022_v61 }
  0xd6   :  { %697 = vmatpush.msrb.mxu0 %v3626_v3  ;;  %717 = vmatpush.msrb.mxu1 %v3628_v4  ;;  %v5520_v3 = vld [vmem:[#allocation29_spill] sm:$0xff]  ;;  %v5521_v4 = vld [vmem:[#allocation26_spill] sm:$0xff] }
  0xd7   :  { %737 = vmatpush.msrb.mxu2 %v3630_v5  ;;  %757 = vmatpush.msrb.mxu3 %v3649_v12  ;;  %v5522_v5 = vld [vmem:[#allocation27_spill] sm:$0xff]  ;;  %v5529_v12 = vld [vmem:[#allocation34_spill] sm:$0xff] }
  0xd8   :  { %698 = vmatpush.msrb.mxu0 %v3633_v6  ;;  %718 = vmatpush.msrb.mxu1 %v3635_v7  ;;  %v5523_v6 = vld [vmem:[#allocation28_spill] sm:$0xff]  ;;  %v5524_v7 = vld [vmem:[#allocation33_spill] sm:$0xff] }
  0xd9   :  { %738 = vmatpush.msrb.mxu2 %v3639_v8  ;;  %758 = vmatpush.msrb.mxu3 %v3655_v14  ;;  %v5525_v8 = vld [vmem:[#allocation30_spill] sm:$0xff]  ;;  %v5531_v14 = vld [vmem:[#allocation36_spill] sm:$0xff] }
  0xda   :  { %699 = vmatpush.msrb.mxu0 %v3645_v10  ;;  %719 = vmatpush.msrb.mxu1 %v3647_v11  ;;  %v5527_v10 = vld [vmem:[#allocation32_spill] sm:$0xff]  ;;  %v5528_v11 = vld [vmem:[#allocation37_spill] sm:$0xff] }
  0xdb   :  { %739 = vmatpush.msrb.mxu2 %v3653_v13  ;;  %759 = vmatpush.msrb.mxu3 %v3667_v18  ;;  %v5530_v13 = vld [vmem:[#allocation35_spill] sm:$0xff]  ;;  %v5535_v18 = vld [vmem:[#allocation40_spill] sm:$0xff] }
  0xdc   :  { %700 = vmatpush.msrb.mxu0 %v3659_v15  ;;  %720 = vmatpush.msrb.mxu1 %v3661_v16  ;;  %v5532_v15 = vld [vmem:[#allocation41_spill] sm:$0xff]  ;;  %v5533_v16 = vld [vmem:[#allocation38_spill] sm:$0xff] }
  0xdd   :  { %740 = vmatpush.msrb.mxu2 %v3665_v17  ;;  %760 = vmatpush.msrb.mxu3 %v3679_v22  ;;  %v5534_v17 = vld [vmem:[#allocation39_spill] sm:$0xff] }
  0xde   :  { %701 = vmatpush.msrb.mxu0 %v3671_v19  ;;  %721 = vmatpush.msrb.mxu1 %v3673_v20  ;;  %v5536_v19 = vld [vmem:[#allocation42_spill] sm:$0xff]  ;;  %v282_v20 = vld [vmem:[#allocation6 + $0x20] sm:$0xff] }
  0xdf   :  { %741 = vmatpush.msrb.mxu2 %v3677_v21  ;;  %761 = vmatpush.msrb.mxu3 %v3691_v26  ;;  %v283_v21 = vld [vmem:[#allocation6 + $0x28] sm:$0xff] }
  0xe0   :  { %702 = vmatpush.msrb.mxu0 %v3683_v23  ;;  %722 = vmatpush.msrb.mxu1 %v3685_v24 }
  0xe1   :  { %742 = vmatpush.msrb.mxu2 %v3689_v25  ;;  %762 = vmatpush.msrb.mxu3 %v3703_v30 }
  0xe2   :  { %703 = vmatpush.msrb.mxu0 %v3695_v27  ;;  %723 = vmatpush.msrb.mxu1 %v3697_v28  ;;  %v284_v28 = vld [vmem:[#allocation6 + $0x30] sm:$0xff] }
  0xe3   :  { %743 = vmatpush.msrb.mxu2 %v3701_v29  ;;  %763 = vmatpush.msrb.mxu3 %v3715_v34  ;;  %v285_v29 = vld [vmem:[#allocation6 + $0x38] sm:$0xff] }
  0xe4   :  { %704 = vmatpush.msrb.mxu0 %v3707_v31  ;;  %724 = vmatpush.msrb.mxu1 %v3709_v32 }
  0xe5   :  { %744 = vmatpush.msrb.mxu2 %v3713_v33  ;;  %764 = vmatpush.msrb.mxu3 %v3727_v38 }
  0xe6   :  { %705 = vmatpush.msrb.mxu0 %v3719_v35  ;;  %725 = vmatpush.msrb.mxu1 %v3721_v36 }
  0xe7   :  { %745 = vmatpush.msrb.mxu2 %v3725_v37  ;;  %765 = vmatpush.msrb.mxu3 %v3739_v42 }
  0xe8   :  { %706 = vmatpush.msrb.mxu0 %v3731_v39  ;;  %726 = vmatpush.msrb.mxu1 %v3733_v40 }
  0xe9   :  { %746 = vmatpush.msrb.mxu2 %v3737_v41  ;;  %766 = vmatpush.msrb.mxu3 %v3751_v46 }
  0xea   :  { %707 = vmatpush.msrb.mxu0 %v5517_v0  ;;  %727 = vmatpush.msrb.mxu1 %v5518_v1  ;;  %v458_v0 = vld [vmem:[#allocation6 + $0x58] sm:$0xff] }
  0xeb   :  { %747 = vmatpush.msrb.mxu2 %v5519_v2  ;;  %767 = vmatpush.msrb.mxu3 %v5520_v3 }
  0xec   :  { %708 = vmatpush.msrb.mxu0 %v5521_v4  ;;  %728 = vmatpush.msrb.mxu1 %v5522_v5 }
  0xed   :  { %748 = vmatpush.msrb.mxu2 %v5523_v6  ;;  %768 = vmatpush.msrb.mxu3 %v5524_v7 }
  0xee   :  { %709 = vmatpush.msrb.mxu0 %v5525_v8  ;;  %729 = vmatpush.msrb.mxu1 %v5526_v9 }
  0xef   :  { %749 = vmatpush.msrb.mxu2 %v5527_v10  ;;  %769 = vmatpush.msrb.mxu3 %v5528_v11 }
  0xf0   :  { %710 = vmatpush.msrb.mxu0 %v5529_v12  ;;  %730 = vmatpush.msrb.mxu1 %v5530_v13 }
  0xf1   :  { %750 = vmatpush.msrb.mxu2 %v5531_v14  ;;  %770 = vmatpush.msrb.mxu3 %v5532_v15 }
  0xf2   :  { %711 = vmatpush.msrb.mxu0 %v5533_v16  ;;  %731 = vmatpush.msrb.mxu1 %v5534_v17 }
  0xf3   :  { %751 = vmatpush.msrb.mxu2 %v5535_v18  ;;  %771 = vmatpush.msrb.mxu3 %v5536_v19 }
 0x14f   :  { %v367_v22 = vpop.f32.mrf.mxu0  ;;  %v387_v23 = vpop.f32.mrf.mxu1 }
 0x150   :  { %v430_v24 = vadd.f32 %v367_v22, %v282_v20  ;;  %v431_v25 = vadd.f32 %v387_v23, %v283_v21  ;;  %v4043_v21 = vld [vmem:[#allocation9 + $0x1c0] sm:$0xff]  ;;  %v4045_v22 = vld [vmem:[#allocation9 + $0x1c8] sm:$0xff]  ;;  %v4047_v23 = vld [vmem:[#allocation9 + $0x1d0] sm:$0xff] }
 0x152   :  { %v434_v26 = vmul.f32 0.5, %v430_v24  ;;  %v438_v27 = vmul.f32 0.5, %v431_v25  ;;  %v4051_v24 = vld [vmem:[#allocation9 + $0x1d8] sm:$0xff]  ;;  %v4055_v25 = vld [vmem:[#allocation9 + $0x1a0] sm:$0xff] }
 0x154   :  { %3228 = vtanh.f32 %v434_v26  ;;  %v4057_v26 = vld [vmem:[#allocation9 + $0x1a8] sm:$0xff] }
 0x155   :  { %3230 = vtanh.f32 %v438_v27  ;;  %v4059_v27 = vld [vmem:[#allocation9 + $0x1b0] sm:$0xff] }
 0x156   :  { %v407_v30 = vpop.f32.mrf.mxu2  ;;  %v427_v31 = vpop.f32.mrf.mxu3 }
 0x157   :  { %v432_v32 = vadd.f32 %v407_v30, %v284_v28  ;;  %v433_v33 = vadd.f32 %v427_v31, %v285_v29  ;;  %v4063_v28 = vld [vmem:[#allocation9 + $0x1b8] sm:$0xff]  ;;  %v4067_v29 = vld [vmem:[#allocation9 + $0x180] sm:$0xff]  ;;  %v4069_v30 = vld [vmem:[#allocation9 + $0x188] sm:$0xff] }
 0x158   :  { %v4071_v31 = vld [vmem:[#allocation9 + $0x190] sm:$0xff] }
 0x159   :  { %3232 = vtanh.f32 %v432_v32  ;;  %v443_v34 = vmul.f32 0.5, %v433_v33  ;;  %v4075_v32 = vld [vmem:[#allocation9 + $0x198] sm:$0xff]  ;;  %v4079_v33 = vld [vmem:[#allocation9 + $0x160] sm:$0xff] }
 0x15a   :  { %v3229_v35 = vpop.eup %3228 }
 0x15b   :  { %v3231_v36 = vpop.eup %3230  ;;  %v436_v37 = vmul.f32 0.5, %v3229_v35  ;;  %3234 = vtanh.f32 %v443_v34  ;;  %v4081_v34 = vld [vmem:[#allocation9 + $0x168] sm:$0xff]  ;;  %v4083_v35 = vld [vmem:[#allocation9 + $0x170] sm:$0xff] }
 0x15c   :  { %v440_v38 = vmul.f32 0.5, %v3231_v36  ;;  %v4087_v36 = vld [vmem:[#allocation9 + $0x178] sm:$0xff] }
 0x15d   :  { %v437_v39 = vadd.f32 0.5, %v436_v37  ;;  %v4091_v37 = vld [vmem:[#allocation9 + $0x140] sm:$0xff] }
 0x15e   :  { %v441_v40 = vadd.f32 0.5, %v440_v38  ;;  %v4093_v38 = vld [vmem:[#allocation9 + $0x148] sm:$0xff] }
 0x15f   :  { %v3233_v41 = vpop.eup %3232  ;;  %v447_v42 = vmul.f32 %v437_v39, %v3942_v49  ;;  %v4095_v39 = vld [vmem:[#allocation9 + $0x150] sm:$0xff] }
 0x160   :  { %v448_v43 = vmul.f32 %v3233_v41, %v441_v40  ;;  %v4099_v40 = vld [vmem:[#allocation9 + $0x158] sm:$0xff]  ;;  %v4103_v41 = vld [vmem:[#allocation9 + $0x120] sm:$0xff] }
 0x161   :  { %v3235_v44 = vpop.eup %3234 }
 0x162   :  { %v449_v45 = vadd.f32 %v448_v43, %v447_v42  ;;  %v445_v46 = vmul.f32 0.5, %v3235_v44  ;;  %v4105_v42 = vld [vmem:[#allocation9 + $0x128] sm:$0xff]  ;;  %v4107_v43 = vld [vmem:[#allocation9 + $0x130] sm:$0xff]  ;;  %v4111_v44 = vld [vmem:[#allocation9 + $0x138] sm:$0xff] }
 0x164   :  { %3236 = vtanh.f32 %v449_v45  ;;  %v446_v47 = vadd.f32 0.5, %v445_v46  ;;  %v4117_v46 = vld [vmem:[#allocation9 + $0x108] sm:$0xff] }
 0x16a   :  { %v3237_v50 = vpop.eup %3236 }
 0x16b   :  { %v4016_v56 = vmul.f32 %v3237_v50, %v446_v47  ;;  %v4119_v47 = vld [vmem:[#allocation9 + $0x110] sm:$0xff]  ;;  %v4123_v50 = vld [vmem:[#allocation9 + $0x118] sm:$0xff] }
 0x16d   :  { %5537 = vst [vmem:[#allocation23_spill] sm:$0xff] %v4016_v56  ;;  %539 = vmatmul.f32.vlgmr.msra.gmra.mxu0 %v4016_v56  ;;  %559 = vmatmul.f32.vlgmr.msra.gmra.mxu1 %v4016_v56 }
 0x16e   :  { %579 = vmatmul.f32.vlgmr.msra.gmra.mxu2 %v4016_v56  ;;  %599 = vmatmul.f32.vlgmr.msra.gmra.mxu3 %v4016_v56  ;;  %v4213_v56 = vld [vmem:[#allocation9 + $0x8] sm:$0xff] }
 0x16f   :  { %869 = vmatpush.msra.mxu0 %v4022_v61  ;;  %889 = vmatpush.msra.mxu1 %v4024_v63  ;;  %5557 = vst [vmem:[#allocation44_spill] sm:$0xff] %v4213_v56 }
 0x170   :  { %909 = vmatpush.msra.mxu2 %v4026_v51  ;;  %929 = vmatpush.msra.mxu3 %v4030_v54 }
 0x171   :  { %870 = vmatpush.msra.mxu0 %v4043_v21  ;;  %890 = vmatpush.msra.mxu1 %v4045_v22 }
 0x172   :  { %910 = vmatpush.msra.mxu2 %v4047_v23  ;;  %930 = vmatpush.msra.mxu3 %v4051_v24 }
 0x173   :  { %871 = vmatpush.msra.mxu0 %v4055_v25  ;;  %891 = vmatpush.msra.mxu1 %v4057_v26 }
 0x174   :  { %911 = vmatpush.msra.mxu2 %v4059_v27  ;;  %931 = vmatpush.msra.mxu3 %v4063_v28 }
 0x175   :  { %872 = vmatpush.msra.mxu0 %v4067_v29  ;;  %892 = vmatpush.msra.mxu1 %v4069_v30 }
 0x176   :  { %912 = vmatpush.msra.mxu2 %v4071_v31  ;;  %932 = vmatpush.msra.mxu3 %v4075_v32 }
 0x177   :  { %873 = vmatpush.msra.mxu0 %v4079_v33  ;;  %893 = vmatpush.msra.mxu1 %v4081_v34 }
 0x178   :  { %913 = vmatpush.msra.mxu2 %v4083_v35  ;;  %933 = vmatpush.msra.mxu3 %v4087_v36 }
 0x179   :  { %874 = vmatpush.msra.mxu0 %v4091_v37  ;;  %894 = vmatpush.msra.mxu1 %v4093_v38 }
 0x17a   :  { %914 = vmatpush.msra.mxu2 %v4095_v39  ;;  %934 = vmatpush.msra.mxu3 %v4099_v40 }
 0x17b   :  { %875 = vmatpush.msra.mxu0 %v4103_v41  ;;  %895 = vmatpush.msra.mxu1 %v4105_v42 }
 0x17c   :  { %915 = vmatpush.msra.mxu2 %v4107_v43  ;;  %935 = vmatpush.msra.mxu3 %v4111_v44 }
 0x17d   :  { %896 = vmatpush.msra.mxu1 %v4117_v46 }
 0x17e   :  { %916 = vmatpush.msra.mxu2 %v4119_v47  ;;  %936 = vmatpush.msra.mxu3 %v4123_v50 }
 0x1ea   :  { %v540_v52 = vpop.f32.mrf.mxu0  ;;  %v560_v53 = vpop.f32.mrf.mxu1 }
 0x1eb   :  { %v603_v49 = vadd.f32 %v540_v52, %v455_v59  ;;  %v604_v55 = vadd.f32 %v560_v53, %v456_v60  ;;  %v4127_v59 = vld [vmem:[#allocation9 + $0xe0] sm:$0xff]  ;;  %v4129_v60 = vld [vmem:[#allocation9 + $0xe8] sm:$0xff]  ;;  %v4131_v52 = vld [vmem:[#allocation9 + $0xf0] sm:$0xff] }
 0x1ec   :  { %897 = vmatpush.msra.mxu1 %v4129_v60  ;;  %v4135_v53 = vld [vmem:[#allocation9 + $0xf8] sm:$0xff]  ;;  %917 = vmatpush.msra.mxu2 %v4131_v52 }
 0x1ed   :  { %v607_v57 = vmul.f32 0.5, %v603_v49  ;;  %v611_v48 = vmul.f32 0.5, %v604_v55  ;;  %937 = vmatpush.msra.mxu3 %v4135_v53  ;;  %v4139_v49 = vld [vmem:[#allocation9 + $0xc0] sm:$0xff]  ;;  %v4141_v55 = vld [vmem:[#allocation9 + $0xc8] sm:$0xff] }
 0x1ee   :  { %898 = vmatpush.msra.mxu1 %v4141_v55 }
 0x1ef   :  { %3238 = vtanh.f32 %v607_v57  ;;  %v4143_v57 = vld [vmem:[#allocation9 + $0xd0] sm:$0xff] }
 0x1f0   :  { %3240 = vtanh.f32 %v611_v48  ;;  %v4147_v48 = vld [vmem:[#allocation9 + $0xd8] sm:$0xff]  ;;  %918 = vmatpush.msra.mxu2 %v4143_v57 }
 0x1f1   :  { %v580_v1 = vpop.f32.mrf.mxu2  ;;  %v600_v2 = vpop.f32.mrf.mxu3  ;;  %938 = vmatpush.msra.mxu3 %v4147_v48 }
 0x1f2   :  { %v605_v3 = vadd.f32 %v580_v1, %v457_v58  ;;  %v606_v4 = vadd.f32 %v600_v2, %v458_v0  ;;  %v4151_v58 = vld [vmem:[#allocation9 + $0xa0] sm:$0xff]  ;;  %v4153_v0 = vld [vmem:[#allocation9 + $0xa8] sm:$0xff]  ;;  %v4155_v1 = vld [vmem:[#allocation9 + $0xb0] sm:$0xff] }
 0x1f3   :  { %899 = vmatpush.msra.mxu1 %v4153_v0  ;;  %v4159_v2 = vld [vmem:[#allocation9 + $0xb8] sm:$0xff]  ;;  %919 = vmatpush.msra.mxu2 %v4155_v1 }
 0x1f4   :  { %3242 = vtanh.f32 %v605_v3  ;;  %v616_v5 = vmul.f32 0.5, %v606_v4  ;;  %939 = vmatpush.msra.mxu3 %v4159_v2  ;;  %v4163_v3 = vld [vmem:[#allocation9 + $0x80] sm:$0xff]  ;;  %v4165_v4 = vld [vmem:[#allocation9 + $0x88] sm:$0xff] }
 0x1f5   :  { %v3239_v6 = vpop.eup %3238  ;;  %5540 = vst [vmem:[#allocation29_spill] sm:$0xff] %v4163_v3  ;;  %900 = vmatpush.msra.mxu1 %v4165_v4 }
 0x1f6   :  { %v3241_v7 = vpop.eup %3240  ;;  %v609_v8 = vmul.f32 0.5, %v3239_v6  ;;  %3244 = vtanh.f32 %v616_v5  ;;  %5541 = vst [vmem:[#allocation26_spill] sm:$0xff] %v4165_v4  ;;  %v4167_v5 = vld [vmem:[#allocation9 + $0x90] sm:$0xff]  ;;  %v4171_v6 = vld [vmem:[#allocation9 + $0x98] sm:$0xff] }
 0x1f7   :  { %v613_v9 = vmul.f32 0.5, %v3241_v7  ;;  %5542 = vst [vmem:[#allocation27_spill] sm:$0xff] %v4167_v5  ;;  %920 = vmatpush.msra.mxu2 %v4167_v5  ;;  %940 = vmatpush.msra.mxu3 %v4171_v6  ;;  %v4175_v7 = vld [vmem:[#allocation9 + $0x60] sm:$0xff] }
 0x1f8   :  { %v610_v10 = vadd.f32 0.5, %v609_v8  ;;  %5543 = vst [vmem:[#allocation28_spill] sm:$0xff] %v4171_v6  ;;  %v4177_v8 = vld [vmem:[#allocation9 + $0x68] sm:$0xff] }
 0x1f9   :  { %v614_v11 = vadd.f32 0.5, %v613_v9  ;;  %5544 = vst [vmem:[#allocation33_spill] sm:$0xff] %v4175_v7  ;;  %v4179_v9 = vld [vmem:[#allocation9 + $0x70] sm:$0xff]  ;;  %901 = vmatpush.msra.mxu1 %v4177_v8 }
 0x1fa   :  { %v3243_v12 = vpop.eup %3242  ;;  %v620_v13 = vmul.f32 %v610_v10, %v449_v45  ;;  %v4115_v45 = vld [vmem:[#allocation9 + $0x100] sm:$0xff]  ;;  %5545 = vst [vmem:[#allocation30_spill] sm:$0xff] %v4177_v8  ;;  %v4183_v10 = vld [vmem:[#allocation9 + $0x78] sm:$0xff]  ;;  %921 = vmatpush.msra.mxu2 %v4179_v9 }
 0x1fb   :  { %v621_v14 = vmul.f32 %v3243_v12, %v614_v11  ;;  %876 = vmatpush.msra.mxu0 %v4115_v45  ;;  %5546 = vst [vmem:[#allocation31_spill] sm:$0xff] %v4179_v9  ;;  %941 = vmatpush.msra.mxu3 %v4183_v10  ;;  %v4187_v11 = vld [vmem:[#allocation9 + $0x40] sm:$0xff]  ;;  %v4189_v12 = vld [vmem:[#allocation9 + $0x48] sm:$0xff] }
 0x1fc   :  { %v3245_v15 = vpop.eup %3244  ;;  %5547 = vst [vmem:[#allocation32_spill] sm:$0xff] %v4183_v10  ;;  %902 = vmatpush.msra.mxu1 %v4189_v12 }
 0x1fd   :  { %v4034_v16 = vadd.f32 %v621_v14, %v620_v13  ;;  %v618_v17 = vmul.f32 0.5, %v3245_v15  ;;  %877 = vmatpush.msra.mxu0 %v4127_v59  ;;  %5548 = vst [vmem:[#allocation37_spill] sm:$0xff] %v4187_v11  ;;  %v4191_v13 = vld [vmem:[#allocation9 + $0x50] sm:$0xff]  ;;  %v4195_v14 = vld [vmem:[#allocation9 + $0x58] sm:$0xff]  ;;  %v4199_v15 = vld [vmem:[#allocation9 + $0x20] sm:$0xff] }
 0x1fe   :  { %5549 = vst [vmem:[#allocation34_spill] sm:$0xff] %v4189_v12  ;;  %922 = vmatpush.msra.mxu2 %v4191_v13  ;;  %942 = vmatpush.msra.mxu3 %v4195_v14 }
 0x1ff   :  { %3246 = vtanh.f32 %v4034_v16  ;;  %v619_v18 = vadd.f32 0.5, %v618_v17  ;;  %878 = vmatpush.msra.mxu0 %v4139_v49  ;;  %5550 = vst [vmem:[#allocation35_spill] sm:$0xff] %v4191_v13  ;;  %v4201_v17 = vld [vmem:[#allocation9 + $0x28] sm:$0xff] }
 0x200   :  { %5551 = vst [vmem:[#allocation36_spill] sm:$0xff] %v4195_v14  ;;  %903 = vmatpush.msra.mxu1 %v4201_v17  ;;  %v4219_v14 = vld [vmem:[#allocation9 + $0x18] sm:$0xff] }
 0x201   :  { %879 = vmatpush.msra.mxu0 %v4151_v58  ;;  %5552 = vst [vmem:[#allocation41_spill] sm:$0xff] %v4199_v15 }
 0x202   :  { %5553 = vst [vmem:[#allocation38_spill] sm:$0xff] %v4201_v17  ;;  %904 = vmatpush.msra.mxu1 %v4213_v56  ;;  %v629_v17 = vld [vmem:[#allocation6 + $0x68] sm:$0xff] }
 0x203   :  { %880 = vmatpush.msra.mxu0 %v4163_v3  ;;  %5559 = vst [vmem:[#allocation46_spill] sm:$0xff] %v4219_v14 }
 0x205   :  { %v3247_v19 = vpop.eup %3246  ;;  %881 = vmatpush.msra.mxu0 %v4175_v7 }
 0x206   :  { %v4037_v20 = vmul.f32 %v3247_v19, %v619_v18  ;;  %v4203_v18 = vld [vmem:[#allocation9 + $0x30] sm:$0xff]  ;;  %v4207_v19 = vld [vmem:[#allocation9 + $0x38] sm:$0xff] }
 0x207   :  { %882 = vmatpush.msra.mxu0 %v4187_v11  ;;  %5554 = vst [vmem:[#allocation39_spill] sm:$0xff] %v4203_v18  ;;  %923 = vmatpush.msra.mxu2 %v4203_v18 }
 0x208   :  { %5539 = vst [vmem:[#allocation25_spill] sm:$0xff] %v4037_v20  ;;  %712 = vmatmul.f32.vlgmr.msrb.gmra.mxu0 %v4037_v20  ;;  %732 = vmatmul.f32.vlgmr.msrb.gmra.mxu1 %v4037_v20 }
 0x209   :  { %752 = vmatmul.f32.vlgmr.msrb.gmra.mxu2 %v4037_v20  ;;  %772 = vmatmul.f32.vlgmr.msrb.gmra.mxu3 %v4037_v20  ;;  %5555 = vst [vmem:[#allocation40_spill] sm:$0xff] %v4207_v19  ;;  %v4211_v20 = vld [vmem:[#allocation9] sm:$0xff] }
 0x20a   :  { %883 = vmatpush.msra.mxu0 %v4199_v15  ;;  %943 = vmatpush.msra.mxu3 %v4207_v19  ;;  %5556 = vst [vmem:[#allocation42_spill] sm:$0xff] %v4211_v20  ;;  %v628_v15 = vld [vmem:[#allocation6 + $0x60] sm:$0xff] }
 0x20b   :  { %924 = vmatpush.msra.mxu2 %v4215_v62  ;;  %1062 = vmatpush.msrb.mxu1 %v4024_v63 }
 0x20c   :  { %884 = vmatpush.msra.mxu0 %v4211_v20  ;;  %944 = vmatpush.msra.mxu3 %v4219_v14 }
 0x20d   :  { %1082 = vmatpush.msrb.mxu2 %v4026_v51  ;;  %1063 = vmatpush.msrb.mxu1 %v4045_v22 }
 0x20e   :  { %1042 = vmatpush.msrb.mxu0 %v4022_v61  ;;  %1102 = vmatpush.msrb.mxu3 %v4030_v54 }
 0x20f   :  { %1083 = vmatpush.msrb.mxu2 %v4047_v23  ;;  %1064 = vmatpush.msrb.mxu1 %v4057_v26 }
 0x210   :  { %1043 = vmatpush.msrb.mxu0 %v4043_v21  ;;  %1103 = vmatpush.msrb.mxu3 %v4051_v24 }
 0x211   :  { %1084 = vmatpush.msrb.mxu2 %v4059_v27  ;;  %1065 = vmatpush.msrb.mxu1 %v4069_v30 }
 0x212   :  { %1044 = vmatpush.msrb.mxu0 %v4055_v25  ;;  %1104 = vmatpush.msrb.mxu3 %v4063_v28 }
 0x213   :  { %1085 = vmatpush.msrb.mxu2 %v4071_v31  ;;  %1066 = vmatpush.msrb.mxu1 %v4081_v34 }
 0x214   :  { %1045 = vmatpush.msrb.mxu0 %v4067_v29  ;;  %1105 = vmatpush.msrb.mxu3 %v4075_v32 }
 0x215   :  { %1086 = vmatpush.msrb.mxu2 %v4083_v35  ;;  %1067 = vmatpush.msrb.mxu1 %v4093_v38 }
 0x216   :  { %1046 = vmatpush.msrb.mxu0 %v4079_v33  ;;  %1106 = vmatpush.msrb.mxu3 %v4087_v36 }
 0x217   :  { %1087 = vmatpush.msrb.mxu2 %v4095_v39  ;;  %1068 = vmatpush.msrb.mxu1 %v4105_v42 }
 0x218   :  { %1047 = vmatpush.msrb.mxu0 %v4091_v37  ;;  %1107 = vmatpush.msrb.mxu3 %v4099_v40 }
 0x219   :  { %1088 = vmatpush.msrb.mxu2 %v4107_v43  ;;  %1069 = vmatpush.msrb.mxu1 %v4117_v46 }
 0x21a   :  { %1048 = vmatpush.msrb.mxu0 %v4103_v41  ;;  %1108 = vmatpush.msrb.mxu3 %v4111_v44 }
 0x21b   :  { %1089 = vmatpush.msrb.mxu2 %v4119_v47  ;;  %1070 = vmatpush.msrb.mxu1 %v4129_v60 }
 0x21c   :  { %1049 = vmatpush.msrb.mxu0 %v4115_v45  ;;  %1109 = vmatpush.msrb.mxu3 %v4123_v50 }
 0x21d   :  { %1090 = vmatpush.msrb.mxu2 %v4131_v52  ;;  %1071 = vmatpush.msrb.mxu1 %v4141_v55 }
 0x21e   :  { %1050 = vmatpush.msrb.mxu0 %v4127_v59  ;;  %1110 = vmatpush.msrb.mxu3 %v4135_v53 }
 0x21f   :  { %1091 = vmatpush.msrb.mxu2 %v4143_v57  ;;  %1072 = vmatpush.msrb.mxu1 %v4153_v0 }
 0x220   :  { %1051 = vmatpush.msrb.mxu0 %v4139_v49  ;;  %1111 = vmatpush.msrb.mxu3 %v4147_v48 }
 0x221   :  { %1092 = vmatpush.msrb.mxu2 %v4155_v1  ;;  %1073 = vmatpush.msrb.mxu1 %v4165_v4 }
 0x222   :  { %1052 = vmatpush.msrb.mxu0 %v4151_v58  ;;  %1112 = vmatpush.msrb.mxu3 %v4159_v2 }
 0x223   :  { %1093 = vmatpush.msrb.mxu2 %v4167_v5  ;;  %1074 = vmatpush.msrb.mxu1 %v4177_v8 }
 0x224   :  { %1053 = vmatpush.msrb.mxu0 %v4163_v3  ;;  %1113 = vmatpush.msrb.mxu3 %v4171_v6 }
 0x225   :  { %1094 = vmatpush.msrb.mxu2 %v4179_v9  ;;  %1075 = vmatpush.msrb.mxu1 %v4189_v12 }
 0x226   :  { %1054 = vmatpush.msrb.mxu0 %v4175_v7  ;;  %1114 = vmatpush.msrb.mxu3 %v4183_v10  ;;  %v5567_v10 = vld [vmem:[#allocation42_spill] sm:$0xff] }
 0x227   :  { %1095 = vmatpush.msrb.mxu2 %v4191_v13 }
 0x228   :  { %1055 = vmatpush.msrb.mxu0 %v4187_v11  ;;  %v5568_v11 = vld [vmem:[#allocation44_spill] sm:$0xff] }
 0x285   :  { %v713_v19 = vpop.f32.mrf.mxu0  ;;  %v733_v18 = vpop.f32.mrf.mxu1 }
 0x286   :  { %v776_v20 = vadd.f32 %v713_v19, %v628_v15  ;;  %v777_v56 = vadd.f32 %v733_v18, %v629_v17  ;;  %v630_v15 = vld [vmem:[#allocation6 + $0x70] sm:$0xff]  ;;  %v631_v17 = vld [vmem:[#allocation6 + $0x78] sm:$0xff] }
 0x288   :  { %v780_v14 = vmul.f32 0.5, %v776_v20  ;;  %v784_v61 = vmul.f32 0.5, %v777_v56 }
 0x28a   :  { %3248 = vtanh.f32 %v780_v14 }
 0x28b   :  { %3250 = vtanh.f32 %v784_v61 }
 0x28c   :  { %v753_v56 = vpop.f32.mrf.mxu2  ;;  %v773_v20 = vpop.f32.mrf.mxu3 }
 0x28d   :  { %v778_v18 = vadd.f32 %v753_v56, %v630_v15  ;;  %v779_v19 = vadd.f32 %v773_v20, %v631_v17 }
 0x28f   :  { %3252 = vtanh.f32 %v778_v18  ;;  %v789_v61 = vmul.f32 0.5, %v779_v19 }
 0x290   :  { %v3249_v14 = vpop.eup %3248 }
 0x291   :  { %v3251_v15 = vpop.eup %3250  ;;  %v782_v17 = vmul.f32 0.5, %v3249_v14  ;;  %3254 = vtanh.f32 %v789_v61 }
 0x292   :  { %v786_v56 = vmul.f32 0.5, %v3251_v15 }
 0x293   :  { %v783_v20 = vadd.f32 0.5, %v782_v17 }
 0x294   :  { %v787_v18 = vadd.f32 0.5, %v786_v56 }
 0x295   :  { %v3253_v19 = vpop.eup %3252  ;;  %v793_v14 = vmul.f32 %v783_v20, %v4034_v16  ;;  %v5561_v20 = vld [vmem:[#allocation36_spill] sm:$0xff] }
 0x296   :  { %v794_v61 = vmul.f32 %v3253_v19, %v787_v18  ;;  %1115 = vmatpush.msrb.mxu3 %v5561_v20  ;;  %v5562_v19 = vld [vmem:[#allocation41_spill] sm:$0xff] }
 0x297   :  { %v3255_v15 = vpop.eup %3254  ;;  %1056 = vmatpush.msrb.mxu0 %v5562_v19 }
 0x298   :  { %v4264_v17 = vadd.f32 %v794_v61, %v793_v14  ;;  %v791_v16 = vmul.f32 0.5, %v3255_v15  ;;  %v5563_v14 = vld [vmem:[#allocation38_spill] sm:$0xff]  ;;  %v5565_v15 = vld [vmem:[#allocation39_spill] sm:$0xff] }
 0x299   :  { %1076 = vmatpush.msrb.mxu1 %v5563_v14  ;;  %1096 = vmatpush.msrb.mxu2 %v5565_v15 }
 0x29a   :  { %5560 = vst [vmem:[#allocation47_spill] sm:$0xff] %v4264_v17  ;;  %3256 = vtanh.f32 %v4264_v17  ;;  %v792_v56 = vadd.f32 0.5, %v791_v16  ;;  %v5566_v17 = vld [vmem:[#allocation40_spill] sm:$0xff]  ;;  %1057 = vmatpush.msrb.mxu0 %v5567_v10  ;;  %v5569_v16 = vld [vmem:[#allocation46_spill] sm:$0xff] }
 0x29b   :  { %1116 = vmatpush.msrb.mxu3 %v5566_v17  ;;  %1077 = vmatpush.msrb.mxu1 %v5568_v11 }
 0x29c   :  { %1097 = vmatpush.msrb.mxu2 %v4215_v62 }
 0x29d   :  { %1117 = vmatpush.msrb.mxu3 %v5569_v16 }
 0x2a0   :  { %v3257_v18 = vpop.eup %3256 }
 0x2a1   :  { %v4285_v61 = vmul.f32 %v3257_v18, %v792_v56  ;;  %v5570_v56 = vld [vmem:[#allocation24_spill] sm:$0xff] }
 0x2a2   :  { %v5571_v18 = vld [vmem:[#allocation32_spill] sm:$0xff] }
 0x2a3   :  { %5564 = vst [vmem:[#allocation48_spill] sm:$0xff] %v4285_v61  ;;  %885 = vmatmul.f32.vlgmr.msra.gmra.mxu0 %v4285_v61  ;;  %905 = vmatmul.f32.vlgmr.msra.gmra.mxu1 %v4285_v61 }
 0x2a4   :  { %925 = vmatmul.f32.vlgmr.msra.gmra.mxu2 %v4285_v61  ;;  %945 = vmatmul.f32.vlgmr.msra.gmra.mxu3 %v4285_v61  ;;  %v5572_v61 = vld [vmem:[#allocation37_spill] sm:$0xff] }
 0x2a5   :  { %1215 = vmatpush.msra.mxu0 %v5570_v56  ;;  %1235 = vmatpush.msra.mxu1 %v4024_v63 }
 0x2a6   :  { %1255 = vmatpush.msra.mxu2 %v4026_v51  ;;  %1275 = vmatpush.msra.mxu3 %v4030_v54 }
 0x2a7   :  { %1216 = vmatpush.msra.mxu0 %v4043_v21  ;;  %1236 = vmatpush.msra.mxu1 %v4045_v22 }
 0x2a8   :  { %1256 = vmatpush.msra.mxu2 %v4047_v23  ;;  %1276 = vmatpush.msra.mxu3 %v4051_v24 }
 0x2a9   :  { %1217 = vmatpush.msra.mxu0 %v4055_v25  ;;  %1237 = vmatpush.msra.mxu1 %v4057_v26 }
 0x2aa   :  { %1257 = vmatpush.msra.mxu2 %v4059_v27  ;;  %1277 = vmatpush.msra.mxu3 %v4063_v28 }
 0x2ab   :  { %1218 = vmatpush.msra.mxu0 %v4067_v29  ;;  %1238 = vmatpush.msra.mxu1 %v4069_v30 }
 0x2ac   :  { %1258 = vmatpush.msra.mxu2 %v4071_v31  ;;  %1278 = vmatpush.msra.mxu3 %v4075_v32 }
 0x2ad   :  { %1219 = vmatpush.msra.mxu0 %v4079_v33  ;;  %1239 = vmatpush.msra.mxu1 %v4081_v34 }
 0x2ae   :  { %1259 = vmatpush.msra.mxu2 %v4083_v35  ;;  %1279 = vmatpush.msra.mxu3 %v4087_v36 }
 0x2af   :  { %1220 = vmatpush.msra.mxu0 %v4091_v37  ;;  %1240 = vmatpush.msra.mxu1 %v4093_v38 }
 0x2b0   :  { %1260 = vmatpush.msra.mxu2 %v4095_v39  ;;  %1280 = vmatpush.msra.mxu3 %v4099_v40 }
 0x2b1   :  { %1221 = vmatpush.msra.mxu0 %v4103_v41  ;;  %1241 = vmatpush.msra.mxu1 %v4105_v42 }
 0x2b2   :  { %1261 = vmatpush.msra.mxu2 %v4107_v43  ;;  %1281 = vmatpush.msra.mxu3 %v4111_v44 }
 0x2b3   :  { %1222 = vmatpush.msra.mxu0 %v4115_v45  ;;  %1242 = vmatpush.msra.mxu1 %v4117_v46 }
 0x2b4   :  { %1262 = vmatpush.msra.mxu2 %v4119_v47  ;;  %1282 = vmatpush.msra.mxu3 %v4123_v50 }
 0x2b5   :  { %1223 = vmatpush.msra.mxu0 %v4127_v59  ;;  %1243 = vmatpush.msra.mxu1 %v4129_v60 }
 0x2b6   :  { %1263 = vmatpush.msra.mxu2 %v4131_v52  ;;  %1283 = vmatpush.msra.mxu3 %v4135_v53 }
 0x2b7   :  { %1224 = vmatpush.msra.mxu0 %v4139_v49  ;;  %1244 = vmatpush.msra.mxu1 %v4141_v55 }
 0x2b8   :  { %1264 = vmatpush.msra.mxu2 %v4143_v57  ;;  %1284 = vmatpush.msra.mxu3 %v4147_v48 }
 0x2b9   :  { %1225 = vmatpush.msra.mxu0 %v4151_v58  ;;  %1245 = vmatpush.msra.mxu1 %v4153_v0 }
 0x2ba   :  { %1265 = vmatpush.msra.mxu2 %v4155_v1  ;;  %1285 = vmatpush.msra.mxu3 %v4159_v2 }
 0x2bb   :  { %1226 = vmatpush.msra.mxu0 %v4163_v3  ;;  %1246 = vmatpush.msra.mxu1 %v4165_v4 }
 0x2bc   :  { %1266 = vmatpush.msra.mxu2 %v4167_v5  ;;  %1286 = vmatpush.msra.mxu3 %v4171_v6 }
 0x2bd   :  { %1227 = vmatpush.msra.mxu0 %v4175_v7  ;;  %1247 = vmatpush.msra.mxu1 %v4177_v8  ;;  %v804_v8 = vld [vmem:[#allocation6 + $0x98] sm:$0xff] }
 0x2be   :  { %1267 = vmatpush.msra.mxu2 %v4179_v9  ;;  %1287 = vmatpush.msra.mxu3 %v5571_v18 }
 0x2bf   :  { %1228 = vmatpush.msra.mxu0 %v5572_v61  ;;  %1248 = vmatpush.msra.mxu1 %v4189_v12  ;;  %v801_v12 = vld [vmem:[#allocation6 + $0x80] sm:$0xff] }
 0x2c0   :  { %1268 = vmatpush.msra.mxu2 %v4191_v13  ;;  %1288 = vmatpush.msra.mxu3 %v5561_v20  ;;  %v802_v13 = vld [vmem:[#allocation6 + $0x88] sm:$0xff] }
 0x2c1   :  { %1229 = vmatpush.msra.mxu0 %v5562_v19  ;;  %1249 = vmatpush.msra.mxu1 %v5563_v14 }
 0x2c2   :  { %1269 = vmatpush.msra.mxu2 %v5565_v15  ;;  %1289 = vmatpush.msra.mxu3 %v5566_v17  ;;  %v803_v15 = vld [vmem:[#allocation6 + $0x90] sm:$0xff] }
 0x2c3   :  { %1230 = vmatpush.msra.mxu0 %v5567_v10  ;;  %1250 = vmatpush.msra.mxu1 %v5568_v11 }
 0x2c4   :  { %1270 = vmatpush.msra.mxu2 %v4215_v62  ;;  %1290 = vmatpush.msra.mxu3 %v5569_v16 }
 0x320   :  { %v886_v61 = vpop.f32.mrf.mxu0  ;;  %v906_v20 = vpop.f32.mrf.mxu1 }
 0x321   :  { %v949_v18 = vadd.f32 %v886_v61, %v801_v12  ;;  %v950_v19 = vadd.f32 %v906_v20, %v802_v13  ;;  %v5573_v20 = vld [vmem:[#allocation47_spill] sm:$0xff] }
 0x323   :  { %v953_v9 = vmul.f32 0.5, %v949_v18  ;;  %v957_v14 = vmul.f32 0.5, %v950_v19 }
 0x325   :  { %3258 = vtanh.f32 %v953_v9 }
 0x326   :  { %3260 = vtanh.f32 %v957_v14 }
 0x327   :  { %v926_v17 = vpop.f32.mrf.mxu2  ;;  %v946_v10 = vpop.f32.mrf.mxu3 }
 0x328   :  { %v951_v7 = vadd.f32 %v926_v17, %v803_v15  ;;  %v952_v11 = vadd.f32 %v946_v10, %v804_v8  ;;  %v1562_v15 = vld [vmem:[#allocation12 + $0x1e0] sm:$0xff] }
 0x32a   :  { %3262 = vtanh.f32 %v951_v7  ;;  %v962_v62 = vmul.f32 0.5, %v952_v11 }
 0x32b   :  { %v3259_v6 = vpop.eup %3258 }
 0x32c   :  { %v3261_v16 = vpop.eup %3260  ;;  %v955_v5 = vmul.f32 0.5, %v3259_v6  ;;  %3264 = vtanh.f32 %v962_v62  ;;  %v5574_v62 = vld [vmem:[#allocation29_spill] sm:$0xff] }
 0x32d   :  { %v959_v4 = vmul.f32 0.5, %v3261_v16  ;;  %v1563_v16 = vld [vmem:[#allocation12 + $0x1e8] sm:$0xff] }
 0x32e   :  { %v956_v3 = vadd.f32 0.5, %v955_v5 }
 0x32f   :  { %v960_v12 = vadd.f32 0.5, %v959_v4 }
 0x330   :  { %v3263_v13 = vpop.eup %3262  ;;  %v966_v19 = vmul.f32 %v956_v3, %v5573_v20  ;;  %v1559_v20 = vld [vmem:[#allocation12 + $0x1c8] sm:$0xff] }
 0x331   :  { %v967_v9 = vmul.f32 %v3263_v13, %v960_v12  ;;  %v1565_v12 = vld [vmem:[#allocation12 + $0x1f8] sm:$0xff]  ;;  %v1558_v13 = vld [vmem:[#allocation12 + $0x1c0] sm:$0xff] }
 0x332   :  { %v3265_v61 = vpop.eup %3264 }
 0x333   :  { %v4362_v18 = vadd.f32 %v967_v9, %v966_v19  ;;  %v964_v17 = vmul.f32 0.5, %v3265_v61  ;;  %v1560_v19 = vld [vmem:[#allocation12 + $0x1d0] sm:$0xff]  ;;  %v1561_v9 = vld [vmem:[#allocation12 + $0x1d8] sm:$0xff]  ;;  %v1554_v61 = vld [vmem:[#allocation12 + $0x1a0] sm:$0xff] }
 0x335   :  { %3266 = vtanh.f32 %v4362_v18  ;;  %v965_v8 = vadd.f32 0.5, %v964_v17  ;;  %v1556_v17 = vld [vmem:[#allocation12 + $0x1b0] sm:$0xff] }
 0x33b   :  { %v3267_v7 = vpop.eup %3266 }
 0x33c   :  { %v4365_v10 = vmul.f32 %v3267_v7, %v965_v8  ;;  %v1557_v8 = vld [vmem:[#allocation12 + $0x1b8] sm:$0xff]  ;;  %v1550_v7 = vld [vmem:[#allocation12 + $0x180] sm:$0xff] }
 0x33e   :  { %1058 = vmatmul.f32.vlgmr.msrb.gmra.mxu0 %v4365_v10  ;;  %1078 = vmatmul.f32.vlgmr.msrb.gmra.mxu1 %v4365_v10 }
 0x33f   :  { %1098 = vmatmul.f32.vlgmr.msrb.gmra.mxu2 %v4365_v10  ;;  %1118 = vmatmul.f32.vlgmr.msrb.gmra.mxu3 %v4365_v10 }
 0x340   :  { %1388 = vmatpush.msrb.mxu0 %v5570_v56  ;;  %1408 = vmatpush.msrb.mxu1 %v4024_v63  ;;  %v5575_v63 = vld [vmem:[#allocation26_spill] sm:$0xff] }
 0x341   :  { %1428 = vmatpush.msrb.mxu2 %v4026_v51  ;;  %1448 = vmatpush.msrb.mxu3 %v4030_v54  ;;  %v5576_v51 = vld [vmem:[#allocation27_spill] sm:$0xff]  ;;  %v5577_v54 = vld [vmem:[#allocation28_spill] sm:$0xff] }
 0x342   :  { %1389 = vmatpush.msrb.mxu0 %v4043_v21  ;;  %1409 = vmatpush.msrb.mxu1 %v4045_v22  ;;  %v5578_v21 = vld [vmem:[#allocation33_spill] sm:$0xff]  ;;  %v5579_v22 = vld [vmem:[#allocation30_spill] sm:$0xff] }
 0x343   :  { %1429 = vmatpush.msrb.mxu2 %v4047_v23  ;;  %1449 = vmatpush.msrb.mxu3 %v4051_v24  ;;  %v5580_v23 = vld [vmem:[#allocation31_spill] sm:$0xff]  ;;  %v5581_v24 = vld [vmem:[#allocation32_spill] sm:$0xff] }
 0x344   :  { %1390 = vmatpush.msrb.mxu0 %v4055_v25  ;;  %1410 = vmatpush.msrb.mxu1 %v4057_v26  ;;  %v5582_v25 = vld [vmem:[#allocation37_spill] sm:$0xff]  ;;  %v5583_v26 = vld [vmem:[#allocation34_spill] sm:$0xff] }
 0x345   :  { %1430 = vmatpush.msrb.mxu2 %v4059_v27  ;;  %1450 = vmatpush.msrb.mxu3 %v4063_v28  ;;  %v5584_v27 = vld [vmem:[#allocation35_spill] sm:$0xff]  ;;  %v5585_v28 = vld [vmem:[#allocation36_spill] sm:$0xff] }
 0x346   :  { %1391 = vmatpush.msrb.mxu0 %v4067_v29  ;;  %1411 = vmatpush.msrb.mxu1 %v4069_v30  ;;  %v5586_v29 = vld [vmem:[#allocation41_spill] sm:$0xff]  ;;  %v5587_v30 = vld [vmem:[#allocation38_spill] sm:$0xff] }
 0x347   :  { %1431 = vmatpush.msrb.mxu2 %v4071_v31  ;;  %1451 = vmatpush.msrb.mxu3 %v4075_v32  ;;  %v5588_v31 = vld [vmem:[#allocation39_spill] sm:$0xff]  ;;  %v5589_v32 = vld [vmem:[#allocation40_spill] sm:$0xff] }
 0x348   :  { %1392 = vmatpush.msrb.mxu0 %v4079_v33  ;;  %1412 = vmatpush.msrb.mxu1 %v4081_v34  ;;  %v5590_v33 = vld [vmem:[#allocation42_spill] sm:$0xff]  ;;  %v5591_v34 = vld [vmem:[#allocation44_spill] sm:$0xff] }
 0x349   :  { %1432 = vmatpush.msrb.mxu2 %v4083_v35  ;;  %1452 = vmatpush.msrb.mxu3 %v4087_v36  ;;  %v5592_v35 = vld [vmem:[#allocation45_spill] sm:$0xff]  ;;  %v5593_v36 = vld [vmem:[#allocation46_spill] sm:$0xff] }
 0x34a   :  { %1393 = vmatpush.msrb.mxu0 %v4091_v37  ;;  %1413 = vmatpush.msrb.mxu1 %v4093_v38  ;;  %v974_v37 = vld [vmem:[#allocation6 + $0xa0] sm:$0xff]  ;;  %v975_v38 = vld [vmem:[#allocation6 + $0xa8] sm:$0xff]  ;;  %v1564_v56 = vld [vmem:[#allocation12 + $0x1f0] sm:$0xff] }
 0x34b   :  { %1433 = vmatpush.msrb.mxu2 %v4095_v39  ;;  %1453 = vmatpush.msrb.mxu3 %v4099_v40 }
 0x34c   :  { %1394 = vmatpush.msrb.mxu0 %v4103_v41  ;;  %1414 = vmatpush.msrb.mxu1 %v4105_v42 }
 0x34d   :  { %1434 = vmatpush.msrb.mxu2 %v4107_v43  ;;  %1454 = vmatpush.msrb.mxu3 %v4111_v44 }
 0x34e   :  { %1395 = vmatpush.msrb.mxu0 %v4115_v45  ;;  %1415 = vmatpush.msrb.mxu1 %v4117_v46  ;;  %v976_v45 = vld [vmem:[#allocation6 + $0xb0] sm:$0xff]  ;;  %v977_v46 = vld [vmem:[#allocation6 + $0xb8] sm:$0xff] }
 0x34f   :  { %1435 = vmatpush.msrb.mxu2 %v4119_v47  ;;  %1455 = vmatpush.msrb.mxu3 %v4123_v50 }
 0x350   :  { %1396 = vmatpush.msrb.mxu0 %v4127_v59  ;;  %1416 = vmatpush.msrb.mxu1 %v4129_v60 }
 0x351   :  { %1436 = vmatpush.msrb.mxu2 %v4131_v52  ;;  %1456 = vmatpush.msrb.mxu3 %v4135_v53 }
 0x352   :  { %1397 = vmatpush.msrb.mxu0 %v4139_v49  ;;  %1417 = vmatpush.msrb.mxu1 %v4141_v55 }
 0x353   :  { %1437 = vmatpush.msrb.mxu2 %v4143_v57  ;;  %1457 = vmatpush.msrb.mxu3 %v4147_v48 }
 0x354   :  { %1398 = vmatpush.msrb.mxu0 %v4151_v58  ;;  %1418 = vmatpush.msrb.mxu1 %v4153_v0 }
 0x355   :  { %1438 = vmatpush.msrb.mxu2 %v4155_v1  ;;  %1458 = vmatpush.msrb.mxu3 %v4159_v2 }
 0x356   :  { %1399 = vmatpush.msrb.mxu0 %v5574_v62  ;;  %1419 = vmatpush.msrb.mxu1 %v5575_v63  ;;  %v1551_v62 = vld [vmem:[#allocation12 + $0x188] sm:$0xff]  ;;  %v1552_v63 = vld [vmem:[#allocation12 + $0x190] sm:$0xff] }
 0x357   :  { %1439 = vmatpush.msrb.mxu2 %v5576_v51  ;;  %1459 = vmatpush.msrb.mxu3 %v5577_v54  ;;  %v1553_v51 = vld [vmem:[#allocation12 + $0x198] sm:$0xff]  ;;  %v1546_v54 = vld [vmem:[#allocation12 + $0x160] sm:$0xff] }
 0x358   :  { %1400 = vmatpush.msrb.mxu0 %v5578_v21  ;;  %1420 = vmatpush.msrb.mxu1 %v5579_v22  ;;  %v1547_v21 = vld [vmem:[#allocation12 + $0x168] sm:$0xff]  ;;  %v1548_v22 = vld [vmem:[#allocation12 + $0x170] sm:$0xff] }
 0x359   :  { %1440 = vmatpush.msrb.mxu2 %v5580_v23  ;;  %1460 = vmatpush.msrb.mxu3 %v5581_v24  ;;  %v1549_v23 = vld [vmem:[#allocation12 + $0x178] sm:$0xff]  ;;  %v1542_v24 = vld [vmem:[#allocation12 + $0x140] sm:$0xff] }
 0x35a   :  { %1401 = vmatpush.msrb.mxu0 %v5582_v25  ;;  %1421 = vmatpush.msrb.mxu1 %v5583_v26  ;;  %v1543_v25 = vld [vmem:[#allocation12 + $0x148] sm:$0xff]  ;;  %v1544_v26 = vld [vmem:[#allocation12 + $0x150] sm:$0xff] }
 0x35b   :  { %1441 = vmatpush.msrb.mxu2 %v5584_v27  ;;  %1461 = vmatpush.msrb.mxu3 %v5585_v28  ;;  %v1545_v27 = vld [vmem:[#allocation12 + $0x158] sm:$0xff]  ;;  %v1538_v28 = vld [vmem:[#allocation12 + $0x120] sm:$0xff] }
 0x35c   :  { %1402 = vmatpush.msrb.mxu0 %v5586_v29  ;;  %1422 = vmatpush.msrb.mxu1 %v5587_v30  ;;  %v1539_v29 = vld [vmem:[#allocation12 + $0x128] sm:$0xff]  ;;  %v1540_v30 = vld [vmem:[#allocation12 + $0x130] sm:$0xff] }
 0x35d   :  { %1442 = vmatpush.msrb.mxu2 %v5588_v31  ;;  %1462 = vmatpush.msrb.mxu3 %v5589_v32  ;;  %v1541_v31 = vld [vmem:[#allocation12 + $0x138] sm:$0xff]  ;;  %v1534_v32 = vld [vmem:[#allocation12 + $0x100] sm:$0xff] }
 0x35e   :  { %1403 = vmatpush.msrb.mxu0 %v5590_v33  ;;  %1423 = vmatpush.msrb.mxu1 %v5591_v34  ;;  %v1535_v33 = vld [vmem:[#allocation12 + $0x108] sm:$0xff]  ;;  %v1536_v34 = vld [vmem:[#allocation12 + $0x110] sm:$0xff] }
 0x35f   :  { %1443 = vmatpush.msrb.mxu2 %v5592_v35  ;;  %1463 = vmatpush.msrb.mxu3 %v5593_v36  ;;  %v1537_v35 = vld [vmem:[#allocation12 + $0x118] sm:$0xff]  ;;  %v1530_v36 = vld [vmem:[#allocation12 + $0xe0] sm:$0xff] }
 0x3bb   :  { %v1059_v39 = vpop.f32.mrf.mxu0  ;;  %v1079_v40 = vpop.f32.mrf.mxu1 }
 0x3bc   :  { %v1122_v41 = vadd.f32 %v1059_v39, %v974_v37  ;;  %v1123_v42 = vadd.f32 %v1079_v40, %v975_v38  ;;  %v1531_v37 = vld [vmem:[#allocation12 + $0xe8] sm:$0xff]  ;;  %v1532_v38 = vld [vmem:[#allocation12 + $0xf0] sm:$0xff]  ;;  %v1533_v39 = vld [vmem:[#allocation12 + $0xf8] sm:$0xff] }
 0x3bd   :  { %v1526_v40 = vld [vmem:[#allocation12 + $0xc0] sm:$0xff] }
 0x3be   :  { %v1126_v43 = vmul.f32 0.5, %v1122_v41  ;;  %v1130_v44 = vmul.f32 0.5, %v1123_v42  ;;  %v1527_v41 = vld [vmem:[#allocation12 + $0xc8] sm:$0xff]  ;;  %v1528_v42 = vld [vmem:[#allocation12 + $0xd0] sm:$0xff] }
 0x3c0   :  { %3268 = vtanh.f32 %v1126_v43  ;;  %v1529_v43 = vld [vmem:[#allocation12 + $0xd8] sm:$0xff] }
 0x3c1   :  { %3270 = vtanh.f32 %v1130_v44  ;;  %v1522_v44 = vld [vmem:[#allocation12 + $0xa0] sm:$0xff] }
 0x3c2   :  { %v1099_v47 = vpop.f32.mrf.mxu2  ;;  %v1119_v50 = vpop.f32.mrf.mxu3 }
 0x3c3   :  { %v1124_v59 = vadd.f32 %v1099_v47, %v976_v45  ;;  %v1125_v60 = vadd.f32 %v1119_v50, %v977_v46  ;;  %v1523_v45 = vld [vmem:[#allocation12 + $0xa8] sm:$0xff]  ;;  %v1524_v46 = vld [vmem:[#allocation12 + $0xb0] sm:$0xff]  ;;  %v1525_v47 = vld [vmem:[#allocation12 + $0xb8] sm:$0xff] }
 0x3c4   :  { %v1518_v50 = vld [vmem:[#allocation12 + $0x80] sm:$0xff] }
 0x3c5   :  { %3272 = vtanh.f32 %v1124_v59  ;;  %v1135_v52 = vmul.f32 0.5, %v1125_v60  ;;  %v1519_v59 = vld [vmem:[#allocation12 + $0x88] sm:$0xff]  ;;  %v1520_v60 = vld [vmem:[#allocation12 + $0x90] sm:$0xff] }
 0x3c6   :  { %v3269_v53 = vpop.eup %3268 }
 0x3c7   :  { %v3271_v49 = vpop.eup %3270  ;;  %v1128_v55 = vmul.f32 0.5, %v3269_v53  ;;  %3274 = vtanh.f32 %v1135_v52  ;;  %v1521_v52 = vld [vmem:[#allocation12 + $0x98] sm:$0xff]  ;;  %v1147_v53 = vld [vmem:[#allocation6 + $0xc0] sm:$0xff] }
 0x3c8   :  { %v1132_v57 = vmul.f32 0.5, %v3271_v49  ;;  %v1148_v49 = vld [vmem:[#allocation6 + $0xc8] sm:$0xff] }
 0x3c9   :  { %v1129_v48 = vadd.f32 0.5, %v1128_v55  ;;  %v1514_v55 = vld [vmem:[#allocation12 + $0x60] sm:$0xff] }
 0x3ca   :  { %v1133_v58 = vadd.f32 0.5, %v1132_v57  ;;  %v1515_v57 = vld [vmem:[#allocation12 + $0x68] sm:$0xff] }
 0x3cb   :  { %v3273_v0 = vpop.eup %3272  ;;  %v1139_v1 = vmul.f32 %v1129_v48, %v4362_v18  ;;  %v1555_v18 = vld [vmem:[#allocation12 + $0x1a8] sm:$0xff]  ;;  %v1516_v48 = vld [vmem:[#allocation12 + $0x70] sm:$0xff] }
 0x3cc   :  { %v1140_v2 = vmul.f32 %v3273_v0, %v1133_v58 }
 0x3cd   :  { %v3275_v3 = vpop.eup %3274 }
 0x3ce   :  { %v4436_v4 = vadd.f32 %v1140_v2, %v1139_v1  ;;  %v1137_v5 = vmul.f32 0.5, %v3275_v3  ;;  %v1517_v1 = vld [vmem:[#allocation12 + $0x78] sm:$0xff]  ;;  %v1510_v2 = vld [vmem:[#allocation12 + $0x40] sm:$0xff]  ;;  %v1511_v3 = vld [vmem:[#allocation12 + $0x48] sm:$0xff] }
 0x3d0   :  { %3276 = vtanh.f32 %v4436_v4  ;;  %v1138_v6 = vadd.f32 0.5, %v1137_v5 }
 0x3d6   :  { %v3277_v11 = vpop.eup %3276 }
 0x3d7   :  { %v4439_v14 = vmul.f32 %v3277_v11, %v1138_v6  ;;  %v1512_v11 = vld [vmem:[#allocation12 + $0x50] sm:$0xff] }
 0x3d9   :  { %1231 = vmatmul.f32.vlgmr.msra.gmra.mxu0 %v4439_v14  ;;  %1251 = vmatmul.f32.vlgmr.msra.gmra.mxu1 %v4439_v14 }
 0x3da   :  { %1271 = vmatmul.f32.vlgmr.msra.gmra.mxu2 %v4439_v14  ;;  %1291 = vmatmul.f32.vlgmr.msra.gmra.mxu3 %v4439_v14 }
 0x3db   :  { %1576 = vmatpush.msra.mxu0 %v1562_v15  ;;  %1617 = vmatpush.msra.mxu1 %v1563_v16  ;;  %v1513_v15 = vld [vmem:[#allocation12 + $0x58] sm:$0xff]  ;;  %v1506_v16 = vld [vmem:[#allocation12 + $0x20] sm:$0xff] }
 0x3dc   :  { %1658 = vmatpush.msra.mxu2 %v1564_v56  ;;  %1699 = vmatpush.msra.mxu3 %v1565_v12  ;;  %v1507_v56 = vld [vmem:[#allocation12 + $0x28] sm:$0xff]  ;;  %v1508_v12 = vld [vmem:[#allocation12 + $0x30] sm:$0xff] }
 0x3dd   :  { %1577 = vmatpush.msra.mxu0 %v1558_v13  ;;  %1618 = vmatpush.msra.mxu1 %v1559_v20  ;;  %v1509_v13 = vld [vmem:[#allocation12 + $0x38] sm:$0xff] }
 0x3de   :  { %1659 = vmatpush.msra.mxu2 %v1560_v19  ;;  %1700 = vmatpush.msra.mxu3 %v1561_v9  ;;  %v1502_v9 = vld [vmem:[#allocation12] sm:$0xff] }
 0x3df   :  { %1578 = vmatpush.msra.mxu0 %v1554_v61  ;;  %1619 = vmatpush.msra.mxu1 %v1555_v18  ;;  %v1503_v61 = vld [vmem:[#allocation12 + $0x8] sm:$0xff]  ;;  %v1504_v18 = vld [vmem:[#allocation12 + $0x10] sm:$0xff] }
 0x3e0   :  { %1660 = vmatpush.msra.mxu2 %v1556_v17  ;;  %1701 = vmatpush.msra.mxu3 %v1557_v8  ;;  %v1505_v17 = vld [vmem:[#allocation12 + $0x18] sm:$0xff]  ;;  %v1149_v8 = vld [vmem:[#allocation6 + $0xd0] sm:$0xff] }
 0x3e1   :  { %1579 = vmatpush.msra.mxu0 %v1550_v7  ;;  %1620 = vmatpush.msra.mxu1 %v1551_v62  ;;  %v1150_v7 = vld [vmem:[#allocation6 + $0xd8] sm:$0xff] }
 0x3e2   :  { %1661 = vmatpush.msra.mxu2 %v1552_v63  ;;  %1702 = vmatpush.msra.mxu3 %v1553_v51 }
 0x3e3   :  { %1580 = vmatpush.msra.mxu0 %v1546_v54  ;;  %1621 = vmatpush.msra.mxu1 %v1547_v21 }
 0x3e4   :  { %1662 = vmatpush.msra.mxu2 %v1548_v22  ;;  %1703 = vmatpush.msra.mxu3 %v1549_v23 }
 0x3e5   :  { %1581 = vmatpush.msra.mxu0 %v1542_v24  ;;  %1622 = vmatpush.msra.mxu1 %v1543_v25 }
 0x3e6   :  { %1663 = vmatpush.msra.mxu2 %v1544_v26  ;;  %1704 = vmatpush.msra.mxu3 %v1545_v27 }
 0x3e7   :  { %1582 = vmatpush.msra.mxu0 %v1538_v28  ;;  %1623 = vmatpush.msra.mxu1 %v1539_v29 }
 0x3e8   :  { %1664 = vmatpush.msra.mxu2 %v1540_v30  ;;  %1705 = vmatpush.msra.mxu3 %v1541_v31 }
 0x3e9   :  { %1583 = vmatpush.msra.mxu0 %v1534_v32  ;;  %1624 = vmatpush.msra.mxu1 %v1535_v33 }
 0x3ea   :  { %1665 = vmatpush.msra.mxu2 %v1536_v34  ;;  %1706 = vmatpush.msra.mxu3 %v1537_v35 }
 0x3eb   :  { %1584 = vmatpush.msra.mxu0 %v1530_v36  ;;  %1625 = vmatpush.msra.mxu1 %v1531_v37  ;;  %v5595_v37 = vld [vmem:[#allocation23_spill] sm:$0xff] }
 0x3ec   :  { %1666 = vmatpush.msra.mxu2 %v1532_v38  ;;  %1707 = vmatpush.msra.mxu3 %v1533_v39  ;;  %v5596_v38 = vld [vmem:[#allocation25_spill] sm:$0xff] }
 0x3ed   :  { %1585 = vmatpush.msra.mxu0 %v1526_v40  ;;  %1626 = vmatpush.msra.mxu1 %v1527_v41  ;;  %v4467_v39 = vld [vmem:[#allocation11 + $0x1e0] sm:$0xff]  ;;  %v4469_v40 = vld [vmem:[#allocation11 + $0x1e8] sm:$0xff]  ;;  %v4471_v41 = vld [vmem:[#allocation11 + $0x1f0] sm:$0xff] }
 0x3ee   :  { %1667 = vmatpush.msra.mxu2 %v1528_v42  ;;  %1708 = vmatpush.msra.mxu3 %v1529_v43  ;;  %v4475_v42 = vld [vmem:[#allocation11 + $0x1c0] sm:$0xff]  ;;  %v4477_v43 = vld [vmem:[#allocation11 + $0x1c8] sm:$0xff] }
 0x3ef   :  { %1586 = vmatpush.msra.mxu0 %v1522_v44  ;;  %1627 = vmatpush.msra.mxu1 %v1523_v45  ;;  %v4479_v44 = vld [vmem:[#allocation11 + $0x1d0] sm:$0xff]  ;;  %v4482_v45 = vld [vmem:[#allocation11 + $0x1f8] sm:$0xff] }
 0x3f0   :  { %1668 = vmatpush.msra.mxu2 %v1524_v46  ;;  %1709 = vmatpush.msra.mxu3 %v1525_v47  ;;  %v4484_v46 = vld [vmem:[#allocation11 + $0x1a0] sm:$0xff]  ;;  %v4486_v47 = vld [vmem:[#allocation11 + $0x1a8] sm:$0xff] }
 0x3f1   :  { %1587 = vmatpush.msra.mxu0 %v1518_v50  ;;  %1628 = vmatpush.msra.mxu1 %v1519_v59  ;;  %v4490_v50 = vld [vmem:[#allocation11 + $0x1b0] sm:$0xff]  ;;  %v4492_v59 = vld [vmem:[#allocation11 + $0x1d8] sm:$0xff] }
 0x3f2   :  { %1669 = vmatpush.msra.mxu2 %v1520_v60  ;;  %1710 = vmatpush.msra.mxu3 %v1521_v52  ;;  %v4500_v60 = vld [vmem:[#allocation11 + $0x180] sm:$0xff]  ;;  %v4502_v52 = vld [vmem:[#allocation11 + $0x188] sm:$0xff] }
 0x3f3   :  { %1588 = vmatpush.msra.mxu0 %v1514_v55  ;;  %1629 = vmatpush.msra.mxu1 %v1515_v57  ;;  %v4508_v55 = vld [vmem:[#allocation11 + $0x1b8] sm:$0xff]  ;;  %v4512_v57 = vld [vmem:[#allocation11 + $0x160] sm:$0xff] }
 0x3f4   :  { %1670 = vmatpush.msra.mxu2 %v1516_v48  ;;  %1711 = vmatpush.msra.mxu3 %v1517_v1  ;;  %v4514_v48 = vld [vmem:[#allocation11 + $0x168] sm:$0xff]  ;;  %v4524_v1 = vld [vmem:[#allocation11 + $0x140] sm:$0xff] }
 0x3f5   :  { %1589 = vmatpush.msra.mxu0 %v1510_v2  ;;  %1630 = vmatpush.msra.mxu1 %v1511_v3  ;;  %v4526_v2 = vld [vmem:[#allocation11 + $0x148] sm:$0xff]  ;;  %v4530_v3 = vld [vmem:[#allocation11 + $0x150] sm:$0xff] }
 0x3f6   :  { %1671 = vmatpush.msra.mxu2 %v1512_v11  ;;  %1712 = vmatpush.msra.mxu3 %v1513_v15  ;;  %v4542_v11 = vld [vmem:[#allocation11 + $0x128] sm:$0xff]  ;;  %v4546_v15 = vld [vmem:[#allocation11 + $0x130] sm:$0xff] }
 0x3f7   :  { %1590 = vmatpush.msra.mxu0 %v1506_v16  ;;  %1631 = vmatpush.msra.mxu1 %v1507_v56  ;;  %v4548_v16 = vld [vmem:[#allocation11 + $0x158] sm:$0xff]  ;;  %v4566_v56 = vld [vmem:[#allocation11 + $0x108] sm:$0xff] }
 0x3f8   :  { %1672 = vmatpush.msra.mxu2 %v1508_v12  ;;  %1713 = vmatpush.msra.mxu3 %v1509_v13  ;;  %v4568_v12 = vld [vmem:[#allocation11 + $0x110] sm:$0xff]  ;;  %v4572_v13 = vld [vmem:[#allocation11 + $0x138] sm:$0xff] }
 0x3f9   :  { %1591 = vmatpush.msra.mxu0 %v1502_v9  ;;  %1632 = vmatpush.msra.mxu1 %v1503_v61  ;;  %v4585_v9 = vld [vmem:[#allocation11 + $0x118] sm:$0xff] }
 0x3fa   :  { %1673 = vmatpush.msra.mxu2 %v1504_v18  ;;  %1714 = vmatpush.msra.mxu3 %v1505_v17  ;;  %v4588_v61 = vld [vmem:[#allocation11 + $0xf8] sm:$0xff]  ;;  %v4591_v18 = vld [vmem:[#allocation11 + $0xc0] sm:$0xff]  ;;  %v4593_v17 = vld [vmem:[#allocation11 + $0xc8] sm:$0xff] }
 0x456   :  { %v1232_v58 = vpop.f32.mrf.mxu0  ;;  %v1252_v0 = vpop.f32.mrf.mxu1 }
 0x457   :  { %v1295_v5 = vadd.f32 %v1232_v58, %v1147_v53  ;;  %v1296_v6 = vadd.f32 %v1252_v0, %v1148_v49  ;;  %v5597_v53 = vld [vmem:[#allocation48_spill] sm:$0xff]  ;;  %v4506_v49 = vld [vmem:[#allocation11 + $0x190] sm:$0xff] }
 0x458   :  { %v4518_v58 = vld [vmem:[#allocation11 + $0x170] sm:$0xff]  ;;  %v4520_v0 = vld [vmem:[#allocation11 + $0x198] sm:$0xff] }
 0x459   :  { %v1299_v20 = vmul.f32 0.5, %v1295_v5  ;;  %v1303_v19 = vmul.f32 0.5, %v1296_v6  ;;  %v4532_v5 = vld [vmem:[#allocation11 + $0x178] sm:$0xff]  ;;  %v4540_v6 = vld [vmem:[#allocation11 + $0x120] sm:$0xff] }
 0x45b   :  { %3278 = vtanh.f32 %v1299_v20  ;;  %v4576_v20 = vld [vmem:[#allocation11 + $0xe8] sm:$0xff] }
 0x45c   :  { %3280 = vtanh.f32 %v1303_v19  ;;  %v4580_v19 = vld [vmem:[#allocation11 + $0xf0] sm:$0xff] }
 0x45d   :  { %v1272_v62 = vpop.f32.mrf.mxu2  ;;  %v1292_v63 = vpop.f32.mrf.mxu3 }
 0x45e   :  { %v1297_v51 = vadd.f32 %v1272_v62, %v1149_v8  ;;  %v1298_v54 = vadd.f32 %v1292_v63, %v1150_v7  ;;  %v4595_v8 = vld [vmem:[#allocation11 + $0xd0] sm:$0xff]  ;;  %v4599_v7 = vld [vmem:[#allocation11 + $0xd8] sm:$0xff]  ;;  %v4602_v62 = vld [vmem:[#allocation11 + $0xa0] sm:$0xff] }
 0x45f   :  { %v4604_v63 = vld [vmem:[#allocation11 + $0xa8] sm:$0xff] }
 0x460   :  { %3282 = vtanh.f32 %v1297_v51  ;;  %v1308_v21 = vmul.f32 0.5, %v1298_v54  ;;  %v4606_v51 = vld [vmem:[#allocation11 + $0xb0] sm:$0xff]  ;;  %v4611_v54 = vld [vmem:[#allocation11 + $0xb8] sm:$0xff] }
 0x461   :  { %v3279_v22 = vpop.eup %3278 }
 0x462   :  { %v3281_v23 = vpop.eup %3280  ;;  %v1301_v24 = vmul.f32 0.5, %v3279_v22  ;;  %3284 = vtanh.f32 %v1308_v21  ;;  %v4614_v21 = vld [vmem:[#allocation11 + $0x80] sm:$0xff]  ;;  %v4616_v22 = vld [vmem:[#allocation11 + $0x88] sm:$0xff] }
 0x463   :  { %v1305_v25 = vmul.f32 0.5, %v3281_v23  ;;  %5598 = vst [vmem:[#allocation24_spill] sm:$0xff] %v4616_v22  ;;  %v4618_v23 = vld [vmem:[#allocation11 + $0x90] sm:$0xff] }
 0x464   :  { %v1302_v26 = vadd.f32 0.5, %v1301_v24  ;;  %5599 = vst [vmem:[#allocation47_spill] sm:$0xff] %v4618_v23  ;;  %v1320_v24 = vld [vmem:[#allocation6 + $0xe0] sm:$0xff] }
 0x465   :  { %v1306_v27 = vadd.f32 0.5, %v1305_v25  ;;  %v1321_v25 = vld [vmem:[#allocation6 + $0xe8] sm:$0xff] }
 0x466   :  { %v3283_v28 = vpop.eup %3282  ;;  %v1312_v29 = vmul.f32 %v1302_v26, %v4436_v4  ;;  %v5594_v4 = vld [vmem:[#allocation43_spill] sm:$0xff] }
 0x467   :  { %v1313_v30 = vmul.f32 %v3283_v28, %v1306_v27  ;;  %v4623_v26 = vld [vmem:[#allocation11 + $0x98] sm:$0xff]  ;;  %v4626_v27 = vld [vmem:[#allocation11 + $0x60] sm:$0xff]  ;;  %v4628_v28 = vld [vmem:[#allocation11 + $0x68] sm:$0xff] }
 0x468   :  { %v3285_v31 = vpop.eup %3284  ;;  %5600 = vst [vmem:[#allocation29_spill] sm:$0xff] %v4623_v26 }
 0x469   :  { %v4446_v32 = vadd.f32 %v1313_v30, %v1312_v29  ;;  %v1310_v33 = vmul.f32 0.5, %v3285_v31  ;;  %5601 = vst [vmem:[#allocation26_spill] sm:$0xff] %v4626_v27  ;;  %v4630_v29 = vld [vmem:[#allocation11 + $0x70] sm:$0xff]  ;;  %v4635_v30 = vld [vmem:[#allocation11 + $0x40] sm:$0xff]  ;;  %v4637_v31 = vld [vmem:[#allocation11 + $0x48] sm:$0xff] }
 0x46a   :  { %5602 = vst [vmem:[#allocation27_spill] sm:$0xff] %v4628_v28 }
 0x46b   :  { %3286 = vtanh.f32 %v4446_v32  ;;  %v1311_v34 = vadd.f32 0.5, %v1310_v33  ;;  %5603 = vst [vmem:[#allocation28_spill] sm:$0xff] %v4630_v29  ;;  %v4639_v33 = vld [vmem:[#allocation11 + $0x50] sm:$0xff] }
 0x471   :  { %v3287_v35 = vpop.eup %3286 }
 0x472   :  { %v4449_v36 = vmul.f32 %v3287_v35, %v1311_v34 }
 0x474   :  { %1404 = vmatmul.f32.vlgmr.msrb.gmra.mxu0 %v4449_v36  ;;  %1424 = vmatmul.f32.vlgmr.msrb.gmra.mxu1 %v4449_v36 }
 0x475   :  { %1444 = vmatmul.f32.vlgmr.msrb.gmra.mxu2 %v4449_v36  ;;  %1464 = vmatmul.f32.vlgmr.msrb.gmra.mxu3 %v4449_v36 }
 0x476   :  { %1844 = vmatpush.msrb.mxu0 %v4467_v39  ;;  %1864 = vmatpush.msrb.mxu1 %v4469_v40 }
 0x477   :  { %1884 = vmatpush.msrb.mxu2 %v4471_v41  ;;  %1904 = vmatpush.msrb.mxu3 %v4482_v45 }
 0x478   :  { %1845 = vmatpush.msrb.mxu0 %v4475_v42  ;;  %1865 = vmatpush.msrb.mxu1 %v4477_v43 }
 0x479   :  { %1885 = vmatpush.msrb.mxu2 %v4479_v44  ;;  %1905 = vmatpush.msrb.mxu3 %v4492_v59 }
 0x47a   :  { %1846 = vmatpush.msrb.mxu0 %v4484_v46  ;;  %1866 = vmatpush.msrb.mxu1 %v4486_v47 }
 0x47b   :  { %1886 = vmatpush.msrb.mxu2 %v4490_v50  ;;  %1906 = vmatpush.msrb.mxu3 %v4508_v55 }
 0x47c   :  { %1592 = vmatmul.f32.vlgmr.msra.gmra.mxu0 %v5594_v4  ;;  %1633 = vmatmul.f32.vlgmr.msra.gmra.mxu1 %v5594_v4 }
 0x47d   :  { %1674 = vmatmul.f32.vlgmr.msra.gmra.mxu2 %v5594_v4  ;;  %1715 = vmatmul.f32.vlgmr.msra.gmra.mxu3 %v5594_v4  ;;  %v4644_v4 = vld [vmem:[#allocation11 + $0x20] sm:$0xff] }
 0x47e   :  { %1847 = vmatpush.msrb.mxu0 %v4500_v60  ;;  %1867 = vmatpush.msrb.mxu1 %v4502_v52 }
 0x47f   :  { %1887 = vmatpush.msrb.mxu2 %v4506_v49  ;;  %1907 = vmatpush.msrb.mxu3 %v4520_v0 }
 0x480   :  { %1848 = vmatpush.msrb.mxu0 %v4512_v57  ;;  %1868 = vmatpush.msrb.mxu1 %v4514_v48 }
 0x481   :  { %1888 = vmatpush.msrb.mxu2 %v4518_v58  ;;  %1908 = vmatpush.msrb.mxu3 %v4532_v5 }
 0x482   :  { %1849 = vmatpush.msrb.mxu0 %v4524_v1  ;;  %1869 = vmatpush.msrb.mxu1 %v4526_v2 }
 0x483   :  { %1889 = vmatpush.msrb.mxu2 %v4530_v3  ;;  %1909 = vmatpush.msrb.mxu3 %v4548_v16 }
 0x484   :  { %1595 = vmatmul.f32.gmra.mxu0 %v5595_v37  ;;  %1636 = vmatmul.f32.gmra.mxu1 %v5595_v37 }
 0x485   :  { %1677 = vmatmul.f32.gmra.mxu2 %v5595_v37  ;;  %1718 = vmatmul.f32.gmra.mxu3 %v5595_v37  ;;  %v4646_v37 = vld [vmem:[#allocation11 + $0x28] sm:$0xff] }
 0x486   :  { %1850 = vmatpush.msrb.mxu0 %v4540_v6  ;;  %1870 = vmatpush.msrb.mxu1 %v4542_v11  ;;  %5604 = vst [vmem:[#allocation33_spill] sm:$0xff] %v4646_v37 }
 0x487   :  { %1890 = vmatpush.msrb.mxu2 %v4546_v15  ;;  %1910 = vmatpush.msrb.mxu3 %v4572_v13 }
 0x488   :  { %1871 = vmatpush.msrb.mxu1 %v4566_v56 }
 0x489   :  { %1891 = vmatpush.msrb.mxu2 %v4568_v12  ;;  %1911 = vmatpush.msrb.mxu3 %v4585_v9 }
 0x48a   :  { %1872 = vmatpush.msrb.mxu1 %v4576_v20 }
 0x48b   :  { %1892 = vmatpush.msrb.mxu2 %v4580_v19  ;;  %1912 = vmatpush.msrb.mxu3 %v4588_v61 }
 0x48c   :  { %1598 = vmatmul.f32.gmra.mxu0 %v5596_v38  ;;  %1639 = vmatmul.f32.gmra.mxu1 %v5596_v38 }
 0x48d   :  { %1680 = vmatmul.f32.gmra.mxu2 %v5596_v38  ;;  %1721 = vmatmul.f32.gmra.mxu3 %v5596_v38 }
 0x48e   :  { %1873 = vmatpush.msrb.mxu1 %v4593_v17  ;;  %1893 = vmatpush.msrb.mxu2 %v4595_v8 }
 0x48f   :  { %1913 = vmatpush.msrb.mxu3 %v4599_v7 }
 0x490   :  { %1874 = vmatpush.msrb.mxu1 %v4604_v63  ;;  %1894 = vmatpush.msrb.mxu2 %v4606_v51 }
 0x491   :  { %1914 = vmatpush.msrb.mxu3 %v4611_v54 }
 0x492   :  { %1875 = vmatpush.msrb.mxu1 %v4616_v22  ;;  %1895 = vmatpush.msrb.mxu2 %v4618_v23 }
 0x493   :  { %1915 = vmatpush.msrb.mxu3 %v4623_v26  ;;  %v4658_v26 = vld [vmem:[#allocation11 + $0x8] sm:$0xff] }
 0x494   :  { %1601 = vmatmul.f32.gmra.mxu0 %v5597_v53  ;;  %1642 = vmatmul.f32.gmra.mxu1 %v5597_v53 }
 0x495   :  { %1683 = vmatmul.f32.gmra.mxu2 %v5597_v53  ;;  %1724 = vmatmul.f32.gmra.mxu3 %v5597_v53 }
 0x496   :  { %1876 = vmatpush.msrb.mxu1 %v4628_v28  ;;  %1896 = vmatpush.msrb.mxu2 %v4630_v29  ;;  %v4650_v28 = vld [vmem:[#allocation11 + $0x30] sm:$0xff]  ;;  %v4656_v29 = vld [vmem:[#allocation11] sm:$0xff] }
 0x497   :  { %5605 = vst [vmem:[#allocation30_spill] sm:$0xff] %v4650_v28 }
 0x498   :  { %1877 = vmatpush.msrb.mxu1 %v4637_v31  ;;  %1897 = vmatpush.msrb.mxu2 %v4639_v33 }
 0x49a   :  { %1878 = vmatpush.msrb.mxu1 %v4646_v37  ;;  %1898 = vmatpush.msrb.mxu2 %v4650_v28 }
 0x49c   :  { %1604 = vmatmul.f32.gmra.mxu0 %v4365_v10  ;;  %1645 = vmatmul.f32.gmra.mxu1 %v4365_v10 }
 0x49d   :  { %1686 = vmatmul.f32.gmra.mxu2 %v4365_v10  ;;  %1727 = vmatmul.f32.gmra.mxu3 %v4365_v10  ;;  %v4564_v10 = vld [vmem:[#allocation11 + $0x100] sm:$0xff] }
 0x49e   :  { %1851 = vmatpush.msrb.mxu0 %v4564_v10  ;;  %1879 = vmatpush.msrb.mxu1 %v4658_v26 }
 0x4a0   :  { %2036 = vmatpush.msra.mxu1 %v4469_v40 }
 0x4a2   :  { %2037 = vmatpush.msra.mxu1 %v4477_v43 }
 0x4a4   :  { %1607 = vmatmul.f32.gmra.mxu0 %v4439_v14  ;;  %1648 = vmatmul.f32.gmra.mxu1 %v4439_v14 }
 0x4a5   :  { %1689 = vmatmul.f32.gmra.mxu2 %v4439_v14  ;;  %1730 = vmatmul.f32.gmra.mxu3 %v4439_v14  ;;  %v4574_v14 = vld [vmem:[#allocation11 + $0xe0] sm:$0xff] }
 0x4a6   :  { %1852 = vmatpush.msrb.mxu0 %v4574_v14  ;;  %2038 = vmatpush.msra.mxu1 %v4486_v47 }
 0x4a8   :  { %1853 = vmatpush.msrb.mxu0 %v4591_v18  ;;  %2039 = vmatpush.msra.mxu1 %v4502_v52 }
 0x4aa   :  { %1854 = vmatpush.msrb.mxu0 %v4602_v62  ;;  %2040 = vmatpush.msra.mxu1 %v4514_v48 }
 0x4ac   :  { %1610 = vmatmul.f32.gmra.mxu0 %v4449_v36  ;;  %1651 = vmatmul.f32.gmra.mxu1 %v4449_v36 }
 0x4ad   :  { %1692 = vmatmul.f32.gmra.mxu2 %v4449_v36  ;;  %1733 = vmatmul.f32.gmra.mxu3 %v4449_v36  ;;  %v4642_v36 = vld [vmem:[#allocation11 + $0x78] sm:$0xff] }
 0x4ae   :  { %1855 = vmatpush.msrb.mxu0 %v4614_v21  ;;  %1916 = vmatpush.msrb.mxu3 %v4642_v36 }
 0x4af   :  { %2041 = vmatpush.msra.mxu1 %v4526_v2 }
 0x4b0   :  { %1856 = vmatpush.msrb.mxu0 %v4626_v27  ;;  %v4652_v27 = vld [vmem:[#allocation11 + $0x58] sm:$0xff] }
 0x4b1   :  { %5606 = vst [vmem:[#allocation31_spill] sm:$0xff] %v4652_v27  ;;  %1917 = vmatpush.msrb.mxu3 %v4652_v27  ;;  %2042 = vmatpush.msra.mxu1 %v4542_v11 }
 0x4b2   :  { %1857 = vmatpush.msrb.mxu0 %v4635_v30 }
 0x4b3   :  { %2043 = vmatpush.msra.mxu1 %v4566_v56 }
 0x4b4   :  { %1858 = vmatpush.msrb.mxu0 %v4644_v4 }
 0x4b5   :  { %2044 = vmatpush.msra.mxu1 %v4576_v20 }
 0x4b6   :  { %1859 = vmatpush.msrb.mxu0 %v4656_v29 }
 0x4b7   :  { %2045 = vmatpush.msra.mxu1 %v4593_v17 }
 0x4b8   :  { %2016 = vmatpush.msra.mxu0 %v4467_v39 }
 0x4b9   :  { %2046 = vmatpush.msra.mxu1 %v4604_v63 }
 0x4ba   :  { %2017 = vmatpush.msra.mxu0 %v4475_v42 }
 0x4bc   :  { %2018 = vmatpush.msra.mxu0 %v4484_v46 }
 0x4be   :  { %2019 = vmatpush.msra.mxu0 %v4500_v60 }
 0x4c0   :  { %2020 = vmatpush.msra.mxu0 %v4512_v57 }
 0x4c2   :  { %2021 = vmatpush.msra.mxu0 %v4524_v1 }
 0x4c4   :  { %2022 = vmatpush.msra.mxu0 %v4540_v6 }
 0x4c6   :  { %2023 = vmatpush.msra.mxu0 %v4564_v10 }
 0x4c8   :  { %2024 = vmatpush.msra.mxu0 %v4574_v14 }
 0x4ca   :  { %2025 = vmatpush.msra.mxu0 %v4591_v18 }
 0x4cc   :  { %2026 = vmatpush.msra.mxu0 %v4602_v62 }
 0x4ce   :  { %2027 = vmatpush.msra.mxu0 %v4614_v21 }
 0x4f1   :  { %v1405_v34 = vpop.f32.mrf.mxu0  ;;  %v1425_v35 = vpop.f32.mrf.mxu1 }
 0x4f2   :  { %v1468_v38 = vadd.f32 %v1405_v34, %v1320_v24  ;;  %v1469_v53 = vadd.f32 %v1425_v35, %v1321_v25  ;;  %v4662_v24 = vld [vmem:[#allocation11 + $0x10] sm:$0xff]  ;;  %v4664_v25 = vld [vmem:[#allocation11 + $0x38] sm:$0xff] }
 0x4f3   :  { %5607 = vst [vmem:[#allocation32_spill] sm:$0xff] %v4662_v24  ;;  %v1322_v34 = vld [vmem:[#allocation6 + $0xf0] sm:$0xff]  ;;  %v1323_v35 = vld [vmem:[#allocation6 + $0xf8] sm:$0xff]  ;;  %1899 = vmatpush.msrb.mxu2 %v4662_v24  ;;  %1918 = vmatpush.msrb.mxu3 %v4664_v25 }
 0x4f4   :  { %v1472_v23 = vmul.f32 0.5, %v1468_v38  ;;  %v1476_v22 = vmul.f32 0.5, %v1469_v53  ;;  %v4670_v38 = vld [vmem:[#allocation11 + $0x18] sm:$0xff] }
 0x4f5   :  { %1919 = vmatpush.msrb.mxu3 %v4670_v38  ;;  %2056 = vmatpush.msra.mxu2 %v4471_v41 }
 0x4f6   :  { %3288 = vtanh.f32 %v1472_v23 }
 0x4f7   :  { %3290 = vtanh.f32 %v1476_v22  ;;  %2076 = vmatpush.msra.mxu3 %v4482_v45  ;;  %2057 = vmatpush.msra.mxu2 %v4479_v44 }
 0x4f8   :  { %v1445_v53 = vpop.f32.mrf.mxu2  ;;  %v1465_v37 = vpop.f32.mrf.mxu3 }
 0x4f9   :  { %v1470_v23 = vadd.f32 %v1445_v53, %v1322_v34  ;;  %v1471_v28 = vadd.f32 %v1465_v37, %v1323_v35  ;;  %2077 = vmatpush.msra.mxu3 %v4492_v59  ;;  %2058 = vmatpush.msra.mxu2 %v4490_v50 }
 0x4fb   :  { %3292 = vtanh.f32 %v1470_v23  ;;  %v1481_v22 = vmul.f32 0.5, %v1471_v28  ;;  %2078 = vmatpush.msra.mxu3 %v4508_v55  ;;  %2059 = vmatpush.msra.mxu2 %v4506_v49 }
 0x4fc   :  { %v3289_v24 = vpop.eup %3288 }
 0x4fd   :  { %v3291_v37 = vpop.eup %3290  ;;  %v1474_v34 = vmul.f32 0.5, %v3289_v24  ;;  %3294 = vtanh.f32 %v1481_v22  ;;  %2079 = vmatpush.msra.mxu3 %v4520_v0  ;;  %2060 = vmatpush.msra.mxu2 %v4518_v58 }
 0x4fe   :  { %v1478_v35 = vmul.f32 0.5, %v3291_v37 }
 0x4ff   :  { %v1475_v28 = vadd.f32 0.5, %v1474_v34  ;;  %2080 = vmatpush.msra.mxu3 %v4532_v5  ;;  %2061 = vmatpush.msra.mxu2 %v4530_v3 }
 0x500   :  { %v1479_v53 = vadd.f32 0.5, %v1478_v35 }
 0x501   :  { %v3293_v24 = vpop.eup %3292  ;;  %v1485_v23 = vmul.f32 %v1475_v28, %v4446_v32  ;;  %2081 = vmatpush.msra.mxu3 %v4548_v16  ;;  %2062 = vmatpush.msra.mxu2 %v4546_v15 }
 0x502   :  { %v1486_v22 = vmul.f32 %v3293_v24, %v1479_v53  ;;  %v5608_v24 = vld [vmem:[#allocation24_spill] sm:$0xff] }
 0x503   :  { %v3295_v37 = vpop.eup %3294  ;;  %2082 = vmatpush.msra.mxu3 %v4572_v13  ;;  %2063 = vmatpush.msra.mxu2 %v4568_v12 }
 0x504   :  { %v1487_v34 = vadd.f32 %v1486_v22, %v1485_v23  ;;  %v1483_v32 = vmul.f32 0.5, %v3295_v37  ;;  %2047 = vmatpush.msra.mxu1 %v5608_v24  ;;  %v5609_v23 = vld [vmem:[#allocation47_spill] sm:$0xff]  ;;  %v5610_v22 = vld [vmem:[#allocation29_spill] sm:$0xff]  ;;  %v5611_v37 = vld [vmem:[#allocation26_spill] sm:$0xff] }
 0x505   :  { %2083 = vmatpush.msra.mxu3 %v4585_v9  ;;  %2064 = vmatpush.msra.mxu2 %v4580_v19 }
 0x506   :  { %3296 = vtanh.f32 %v1487_v34  ;;  %v1484_v35 = vadd.f32 0.5, %v1483_v32  ;;  %2028 = vmatpush.msra.mxu0 %v5611_v37  ;;  %v5612_v34 = vld [vmem:[#allocation27_spill] sm:$0xff]  ;;  %v5613_v32 = vld [vmem:[#allocation28_spill] sm:$0xff] }
 0x507   :  { %2084 = vmatpush.msra.mxu3 %v4588_v61  ;;  %2065 = vmatpush.msra.mxu2 %v4595_v8 }
 0x508   :  { %2048 = vmatpush.msra.mxu1 %v5612_v34  ;;  %2029 = vmatpush.msra.mxu0 %v4635_v30 }
 0x509   :  { %2085 = vmatpush.msra.mxu3 %v4599_v7  ;;  %2066 = vmatpush.msra.mxu2 %v4606_v51 }
 0x50a   :  { %2049 = vmatpush.msra.mxu1 %v4637_v31  ;;  %2030 = vmatpush.msra.mxu0 %v4644_v4 }
 0x50b   :  { %2086 = vmatpush.msra.mxu3 %v4611_v54  ;;  %2067 = vmatpush.msra.mxu2 %v5609_v23 }
 0x50c   :  { %v3297_v28 = vpop.eup %3296  ;;  %2031 = vmatpush.msra.mxu0 %v4656_v29 }
 0x50d   :  { %v1489_v53 = vmul.f32 %v3297_v28, %v1484_v35  ;;  %2087 = vmatpush.msra.mxu3 %v5610_v22  ;;  %2068 = vmatpush.msra.mxu2 %v5613_v32  ;;  %v5614_v35 = vmov 0.0   ;;  %v5615_v28 = vld [vmem:[#allocation33_spill] sm:$0xff] }
 0x50e   :  { %2050 = vmatpush.msra.mxu1 %v5615_v28 }
 0x50f   :  { %3165 = vst [vmem:[#allocation16] sm:$0xff] %v1489_v53  ;;  %1613 = vmatmul.f32.gmra.mxu0 %v1489_v53  ;;  %1654 = vmatmul.f32.gmra.mxu1 %v1489_v53 }
 0x510   :  { %1695 = vmatmul.f32.gmra.mxu2 %v1489_v53  ;;  %1736 = vmatmul.f32.gmra.mxu3 %v1489_v53  ;;  %v5616_v53 = vld [vmem:[#allocation30_spill] sm:$0xff] }
 0x511   :  { %2088 = vmatpush.msra.mxu3 %v4642_v36  ;;  %2069 = vmatpush.msra.mxu2 %v4639_v33 }
 0x512   :  { %2051 = vmatpush.msra.mxu1 %v4658_v26 }
 0x513   :  { %2089 = vmatpush.msra.mxu3 %v4652_v27  ;;  %2070 = vmatpush.msra.mxu2 %v5616_v53  ;;  %v5617_v27 = vld [vmem:[#allocation32_spill] sm:$0xff] }
 0x515   :  { %2090 = vmatpush.msra.mxu3 %v4664_v25  ;;  %2071 = vmatpush.msra.mxu2 %v5617_v27 }
 0x517   :  { %1860 = vmatmul.f32.vlgmr.msrb.gmra.mxu0 %v5614_v35  ;;  %1880 = vmatmul.f32.vlgmr.msrb.gmra.mxu1 %v5614_v35 }
 0x518   :  { %1900 = vmatmul.f32.vlgmr.msrb.gmra.mxu2 %v5614_v35  ;;  %1920 = vmatmul.f32.vlgmr.msrb.gmra.mxu3 %v5614_v35 }
 0x519   :  { %2091 = vmatpush.msra.mxu3 %v4670_v38  ;;  %2189 = vmatpush.msrb.mxu0 %v4467_v39  ;;  %v5618_v39 = vld [vmem:[#allocation31_spill] sm:$0xff] }
 0x51a   :  { %2209 = vmatpush.msrb.mxu1 %v4469_v40  ;;  %2229 = vmatpush.msrb.mxu2 %v4471_v41  ;;  %v1593_v40 = vpop.f32.mrf.mxu0  ;;  %v1634_v41 = vpop.f32.mrf.mxu1 }
 0x51b   :  { %2249 = vmatpush.msrb.mxu3 %v4482_v45  ;;  %2190 = vmatpush.msrb.mxu0 %v4475_v42  ;;  %v1675_v42 = vpop.f32.mrf.mxu2 }
 0x51c   :  { %2210 = vmatpush.msrb.mxu1 %v4477_v43  ;;  %2230 = vmatpush.msrb.mxu2 %v4479_v44  ;;  %v1716_v43 = vpop.f32.mrf.mxu3 }
 0x51d   :  { %2250 = vmatpush.msrb.mxu3 %v4492_v59  ;;  %2191 = vmatpush.msrb.mxu0 %v4484_v46 }
 0x51e   :  { %2211 = vmatpush.msrb.mxu1 %v4486_v47  ;;  %2231 = vmatpush.msrb.mxu2 %v4490_v50 }
 0x51f   :  { %2251 = vmatpush.msrb.mxu3 %v4508_v55  ;;  %2192 = vmatpush.msrb.mxu0 %v4500_v60 }
 0x520   :  { %2212 = vmatpush.msrb.mxu1 %v4502_v52  ;;  %2232 = vmatpush.msrb.mxu2 %v4506_v49 }
 0x521   :  { %2252 = vmatpush.msrb.mxu3 %v4520_v0  ;;  %2193 = vmatpush.msrb.mxu0 %v4512_v57 }
 0x522   :  { %2213 = vmatpush.msrb.mxu1 %v4514_v48  ;;  %2233 = vmatpush.msrb.mxu2 %v4518_v58  ;;  %v4808_v44 = vpop.f32.mrf.mxu0  ;;  %v4810_v45 = vpop.f32.mrf.mxu1 }
 0x523   :  { %2253 = vmatpush.msrb.mxu3 %v4532_v5  ;;  %2194 = vmatpush.msrb.mxu0 %v4524_v1  ;;  %v4812_v46 = vpop.f32.mrf.mxu2 }
 0x524   :  { %2214 = vmatpush.msrb.mxu1 %v4526_v2  ;;  %2234 = vmatpush.msrb.mxu2 %v4530_v3  ;;  %v4814_v47 = vpop.f32.mrf.mxu3 }
 0x525   :  { %2254 = vmatpush.msrb.mxu3 %v4548_v16  ;;  %2195 = vmatpush.msrb.mxu0 %v4540_v6 }
 0x526   :  { %2215 = vmatpush.msrb.mxu1 %v4542_v11  ;;  %2235 = vmatpush.msrb.mxu2 %v4546_v15 }
 0x527   :  { %2255 = vmatpush.msrb.mxu3 %v4572_v13  ;;  %2196 = vmatpush.msrb.mxu0 %v4564_v10 }
 0x528   :  { %2216 = vmatpush.msrb.mxu1 %v4566_v56  ;;  %2236 = vmatpush.msrb.mxu2 %v4568_v12  ;;  %v1566_v12 = vld [vmem:[#allocation14] sm:$0xf] }
 0x529   :  { %2256 = vmatpush.msrb.mxu3 %v4585_v9  ;;  %2197 = vmatpush.msrb.mxu0 %v4574_v14 }
 0x52a   :  { %2217 = vmatpush.msrb.mxu1 %v4576_v20  ;;  %2237 = vmatpush.msrb.mxu2 %v4580_v19  ;;  %v4816_v50 = vpop.f32.mrf.mxu0  ;;  %v4818_v59 = vpop.f32.mrf.mxu1  ;;  %v4860_v20 = vperm.slane %v1566_v12, 0  ;;  %v4862_v19 = vperm.slane %v1566_v12, 1 }
 0x52b   :  { %2257 = vmatpush.msrb.mxu3 %v4588_v61  ;;  %2198 = vmatpush.msrb.mxu0 %v4591_v18  ;;  %v4820_v60 = vpop.f32.mrf.mxu2 }
 0x52c   :  { %2218 = vmatpush.msrb.mxu1 %v4593_v17  ;;  %2238 = vmatpush.msrb.mxu2 %v4595_v8  ;;  %v4822_v52 = vpop.f32.mrf.mxu3  ;;  %5637 = vst [vmem:[#allocation29_spill] sm:$0xff] %v4860_v20  ;;  %v1594_v9 = vadd.f32 %v1593_v40, %v4860_v20  ;;  %v1635_v61 = vadd.f32 %v1634_v41, %v4862_v19 }
 0x52d   :  { %2258 = vmatpush.msrb.mxu3 %v4599_v7  ;;  %2199 = vmatpush.msrb.mxu0 %v4602_v62  ;;  %5638 = vst [vmem:[#allocation26_spill] sm:$0xff] %v4862_v19 }
 0x52e   :  { %2219 = vmatpush.msrb.mxu1 %v4604_v63  ;;  %2239 = vmatpush.msrb.mxu2 %v4606_v51  ;;  %v4870_v51 = vperm.slane %v1566_v12, 2 }
 0x52f   :  { %2259 = vmatpush.msrb.mxu3 %v4611_v54  ;;  %2200 = vmatpush.msrb.mxu0 %v4614_v21  ;;  %v4872_v54 = vperm.slane %v1566_v12, 3 }
 0x530   :  { %2220 = vmatpush.msrb.mxu1 %v5608_v24  ;;  %2240 = vmatpush.msrb.mxu2 %v5609_v23  ;;  %5641 = vst [vmem:[#allocation33_spill] sm:$0xff] %v4870_v51 }
 0x531   :  { %2260 = vmatpush.msrb.mxu3 %v5610_v22  ;;  %2201 = vmatpush.msrb.mxu0 %v5611_v37  ;;  %5642 = vst [vmem:[#allocation30_spill] sm:$0xff] %v4872_v54 }
 0x532   :  { %2221 = vmatpush.msrb.mxu1 %v5612_v34  ;;  %2241 = vmatpush.msrb.mxu2 %v5613_v32  ;;  %v4824_v49 = vpop.f32.mrf.mxu0  ;;  %v4826_v55 = vpop.f32.mrf.mxu1 }
 0x533   :  { %2261 = vmatpush.msrb.mxu3 %v4642_v36  ;;  %2202 = vmatpush.msrb.mxu0 %v4635_v30  ;;  %5619 = vst [vmem:[#allocation37_spill] sm:$0xff] %v4824_v49  ;;  %v4828_v57 = vpop.f32.mrf.mxu2  ;;  %v5043_v49 = vld [vmem:[#allocation11 + $0x40] sm:$0xff] }
 0x534   :  { %2222 = vmatpush.msrb.mxu1 %v4637_v31  ;;  %2242 = vmatpush.msrb.mxu2 %v4639_v33  ;;  %5620 = vst [vmem:[#allocation34_spill] sm:$0xff] %v4826_v55  ;;  %v4830_v48 = vpop.f32.mrf.mxu3  ;;  %v5039_v55 = vld [vmem:[#allocation11 + $0x78] sm:$0xff] }
 0x535   :  { %2262 = vmatpush.msrb.mxu3 %v5618_v39  ;;  %2203 = vmatpush.msrb.mxu0 %v4644_v4  ;;  %5621 = vst [vmem:[#allocation35_spill] sm:$0xff] %v4828_v57  ;;  %v5035_v57 = vld [vmem:[#allocation11 + $0x70] sm:$0xff] }
 0x536   :  { %2223 = vmatpush.msrb.mxu1 %v5615_v28  ;;  %2243 = vmatpush.msrb.mxu2 %v5616_v53  ;;  %5622 = vst [vmem:[#allocation36_spill] sm:$0xff] %v4830_v48  ;;  %v5033_v48 = vld [vmem:[#allocation11 + $0x68] sm:$0xff] }
 0x537   :  { %2263 = vmatpush.msrb.mxu3 %v4664_v25  ;;  %2204 = vmatpush.msrb.mxu0 %v4656_v29  ;;  %v1717_v29 = vadd.f32 %v1716_v43, %v4872_v54  ;;  %5650 = vst [vmem:[#allocation54_spill] sm:$0xff] %v5033_v48 }
 0x538   :  { %2224 = vmatpush.msrb.mxu1 %v4658_v26  ;;  %2244 = vmatpush.msrb.mxu2 %v5617_v27  ;;  %v1676_v27 = vadd.f32 %v1675_v42, %v4870_v51  ;;  %5651 = vst [vmem:[#allocation55_spill] sm:$0xff] %v5035_v57 }
 0x539   :  { %2264 = vmatpush.msrb.mxu3 %v4670_v38  ;;  %5652 = vst [vmem:[#allocation56_spill] sm:$0xff] %v5043_v49 }
 0x53a   :  { %v4832_v58 = vpop.f32.mrf.mxu0  ;;  %v4834_v0 = vpop.f32.mrf.mxu1 }
 0x53b   :  { %5623 = vst [vmem:[#allocation41_spill] sm:$0xff] %v4832_v58  ;;  %v4836_v1 = vpop.f32.mrf.mxu2  ;;  %v5031_v58 = vld [vmem:[#allocation11 + $0x60] sm:$0xff] }
 0x53c   :  { %5624 = vst [vmem:[#allocation38_spill] sm:$0xff] %v4834_v0  ;;  %v4838_v2 = vpop.f32.mrf.mxu3  ;;  %v5027_v0 = vld [vmem:[#allocation11 + $0x98] sm:$0xff] }
 0x53d   :  { %5625 = vst [vmem:[#allocation39_spill] sm:$0xff] %v4836_v1  ;;  %v5023_v1 = vld [vmem:[#allocation11 + $0x90] sm:$0xff] }
 0x53e   :  { %5626 = vst [vmem:[#allocation40_spill] sm:$0xff] %v4838_v2  ;;  %v5021_v2 = vld [vmem:[#allocation11 + $0x88] sm:$0xff] }
 0x53f   :  { %5647 = vst [vmem:[#allocation51_spill] sm:$0xff] %v5023_v1 }
 0x540   :  { %5648 = vst [vmem:[#allocation52_spill] sm:$0xff] %v5027_v0 }
 0x541   :  { %5649 = vst [vmem:[#allocation53_spill] sm:$0xff] %v5031_v58 }
 0x542   :  { %v4840_v3 = vpop.f32.mrf.mxu0  ;;  %v4842_v5 = vpop.f32.mrf.mxu1 }
 0x543   :  { %5627 = vst [vmem:[#allocation42_spill] sm:$0xff] %v4840_v3  ;;  %v4844_v6 = vpop.f32.mrf.mxu2  ;;  %v5019_v3 = vld [vmem:[#allocation11 + $0x80] sm:$0xff] }
 0x544   :  { %5628 = vst [vmem:[#allocation44_spill] sm:$0xff] %v4842_v5  ;;  %v4846_v11 = vpop.f32.mrf.mxu3  ;;  %v5015_v5 = vld [vmem:[#allocation11 + $0xb8] sm:$0xff] }
 0x545   :  { %5629 = vst [vmem:[#allocation45_spill] sm:$0xff] %v4844_v6  ;;  %v5011_v6 = vld [vmem:[#allocation11 + $0xb0] sm:$0xff] }
 0x546   :  { %5630 = vst [vmem:[#allocation46_spill] sm:$0xff] %v4846_v11  ;;  %v5009_v11 = vld [vmem:[#allocation11 + $0xa8] sm:$0xff] }
 0x547   :  { %5646 = vst [vmem:[#allocation50_spill] sm:$0xff] %v5015_v5 }
 0x54a   :  { %v4848_v15 = vpop.f32.mrf.mxu0  ;;  %v4850_v16 = vpop.f32.mrf.mxu1 }
 0x54b   :  { %5631 = vst [vmem:[#allocation43_spill] sm:$0xff] %v4848_v15  ;;  %v4852_v10 = vpop.f32.mrf.mxu2  ;;  %v5007_v15 = vld [vmem:[#allocation11 + $0xa0] sm:$0xff] }
 0x54c   :  { %5632 = vst [vmem:[#allocation23_spill] sm:$0xff] %v4850_v16  ;;  %v4854_v56 = vpop.f32.mrf.mxu3  ;;  %v5003_v16 = vld [vmem:[#allocation11 + $0xd8] sm:$0xff] }
 0x54d   :  { %5633 = vst [vmem:[#allocation25_spill] sm:$0xff] %v4852_v10  ;;  %v4999_v10 = vld [vmem:[#allocation11 + $0xd0] sm:$0xff] }
 0x54e   :  { %5634 = vst [vmem:[#allocation48_spill] sm:$0xff] %v4854_v56  ;;  %v4997_v56 = vld [vmem:[#allocation11 + $0xc8] sm:$0xff] }
 0x54f   :  { %5645 = vst [vmem:[#allocation49_spill] sm:$0xff] %v5003_v16 }
 0x58c   :  { %v4856_v13 = vpop.f32.mrf.mxu0  ;;  %v4858_v14 = vpop.f32.mrf.mxu1 }
 0x58d   :  { %5635 = vst [vmem:[#allocation24_spill] sm:$0xff] %v4856_v13  ;;  %v4995_v13 = vld [vmem:[#allocation11 + $0xc0] sm:$0xff] }
 0x58e   :  { %5636 = vst [vmem:[#allocation47_spill] sm:$0xff] %v4858_v14  ;;  %v4991_v14 = vld [vmem:[#allocation11 + $0xf8] sm:$0xff] }
 0x58f   :  { %5644 = vst [vmem:[#allocation31_spill] sm:$0xff] %v4991_v14 }
 0x593   :  { %v4866_v18 = vpop.f32.mrf.mxu2  ;;  %v4868_v17 = vpop.f32.mrf.mxu3 }
 0x594   :  { %5639 = vst [vmem:[#allocation27_spill] sm:$0xff] %v4866_v18  ;;  %v1861_v8 = vpop.f32.mrf.mxu0  ;;  %v1881_v7 = vpop.f32.mrf.mxu1  ;;  %v4987_v18 = vld [vmem:[#allocation11 + $0xf0] sm:$0xff] }
 0x595   :  { %5640 = vst [vmem:[#allocation28_spill] sm:$0xff] %v4868_v17  ;;  %v1924_v62 = vadd.f32 %v1861_v8, %v1594_v9  ;;  %v1925_v63 = vadd.f32 %v1881_v7, %v1635_v61  ;;  %v1597_v9 = vadd.f32 %v4808_v44, %v4860_v20  ;;  %v1638_v61 = vadd.f32 %v4810_v45, %v4862_v19  ;;  %v4880_v8 = vld [vmem:[#allocation11 + $0x1e0] sm:$0xff]  ;;  %v4882_v7 = vld [vmem:[#allocation11 + $0x1e8] sm:$0xff] }
 0x596   :  { %v4985_v17 = vld [vmem:[#allocation11 + $0xe8] sm:$0xff] }
 0x597   :  { %v1928_v21 = vmul.f32 0.5, %v1924_v62  ;;  %v1932_v26 = vmul.f32 0.5, %v1925_v63  ;;  %v4884_v62 = vld [vmem:[#allocation11 + $0x1f0] sm:$0xff] }
 0x599   :  { %3298 = vtanh.f32 %v1928_v21 }
 0x59a   :  { %3300 = vtanh.f32 %v1932_v26  ;;  %v4888_v26 = vld [vmem:[#allocation11 + $0x1f8] sm:$0xff] }
 0x59b   :  { %v1901_v30 = vpop.f32.mrf.mxu2  ;;  %v1921_v31 = vpop.f32.mrf.mxu3 }
 0x59c   :  { %v1926_v33 = vadd.f32 %v1901_v30, %v1676_v27  ;;  %v1927_v36 = vadd.f32 %v1921_v31, %v1717_v29  ;;  %v1679_v30 = vadd.f32 %v4812_v46, %v4870_v51  ;;  %v1720_v31 = vadd.f32 %v4814_v47, %v4872_v54 }
 0x59e   :  { %3302 = vtanh.f32 %v1926_v33  ;;  %v1937_v4 = vmul.f32 0.5, %v1927_v36 }
 0x59f   :  { %v3299_v38 = vpop.eup %3298 }
 0x5a0   :  { %v3301_v24 = vpop.eup %3300  ;;  %v1930_v23 = vmul.f32 0.5, %v3299_v38  ;;  %3304 = vtanh.f32 %v1937_v4 }
 0x5a1   :  { %v1934_v22 = vmul.f32 0.5, %v3301_v24 }
 0x5a2   :  { %v1931_v37 = vadd.f32 0.5, %v1930_v23 }
 0x5a3   :  { %v1935_v34 = vadd.f32 0.5, %v1934_v22 }
 0x5a4   :  { %v3303_v32 = vpop.eup %3302  ;;  %v1941_v35 = vmul.f32 0.0, %v1931_v37 }
 0x5a5   :  { %v1942_v28 = vmul.f32 %v3303_v32, %v1935_v34 }
 0x5a6   :  { %v3305_v53 = vpop.eup %3304 }
 0x5a7   :  { %v1943_v40 = vadd.f32 %v1942_v28, %v1941_v35  ;;  %v1939_v41 = vmul.f32 0.5, %v3305_v53 }
 0x5a9   :  { %3306 = vtanh.f32 %v1943_v40  ;;  %v1940_v42 = vadd.f32 0.5, %v1939_v41 }
 0x5af   :  { %v3307_v43 = vpop.eup %3306 }
 0x5b0   :  { %v1945_v12 = vmul.f32 %v3307_v43, %v1940_v42 }
 0x5b2   :  { %1946 = vst [vmem:[#allocation15] sm:$0xff] %v1945_v12  ;;  %2032 = vmatmul.f32.vlgmr.msra.gmra.mxu0 %v1945_v12  ;;  %2052 = vmatmul.f32.vlgmr.msra.gmra.mxu1 %v1945_v12 }
 0x5b3   :  { %2072 = vmatmul.f32.vlgmr.msra.gmra.mxu2 %v1945_v12  ;;  %2092 = vmatmul.f32.vlgmr.msra.gmra.mxu3 %v1945_v12 }
 0x5b4   :  { %2362 = vmatpush.msra.mxu0 %v4880_v8  ;;  %2382 = vmatpush.msra.mxu1 %v4882_v7 }
 0x5b5   :  { %2402 = vmatpush.msra.mxu2 %v4884_v62  ;;  %2422 = vmatpush.msra.mxu3 %v4888_v26 }
 0x62f   :  { %v2033_v63 = vpop.f32.mrf.mxu0  ;;  %v2053_v21 = vpop.f32.mrf.mxu1 }
 0x630   :  { %v2096_v27 = vadd.f32 %v2033_v63, %v1597_v9  ;;  %v2097_v29 = vadd.f32 %v2053_v21, %v1638_v61  ;;  %v4899_v61 = vld [vmem:[#allocation11 + $0x1c0] sm:$0xff]  ;;  %v4901_v63 = vld [vmem:[#allocation11 + $0x1c8] sm:$0xff]  ;;  %v4907_v21 = vld [vmem:[#allocation11 + $0x1d8] sm:$0xff] }
 0x631   :  { %2363 = vmatpush.msra.mxu0 %v4899_v61  ;;  %2383 = vmatpush.msra.mxu1 %v4901_v63 }
 0x632   :  { %v2100_v44 = vmul.f32 0.5, %v2096_v27  ;;  %v2104_v45 = vmul.f32 0.5, %v2097_v29  ;;  %2423 = vmatpush.msra.mxu3 %v4907_v21  ;;  %v4911_v27 = vld [vmem:[#allocation11 + $0x1a0] sm:$0xff]  ;;  %v4913_v29 = vld [vmem:[#allocation11 + $0x1a8] sm:$0xff] }
 0x633   :  { %2364 = vmatpush.msra.mxu0 %v4911_v27  ;;  %2384 = vmatpush.msra.mxu1 %v4913_v29 }
 0x634   :  { %3308 = vtanh.f32 %v2100_v44  ;;  %v4915_v44 = vld [vmem:[#allocation11 + $0x1b0] sm:$0xff] }
 0x635   :  { %3310 = vtanh.f32 %v2104_v45  ;;  %v4919_v45 = vld [vmem:[#allocation11 + $0x1b8] sm:$0xff] }
 0x636   :  { %v2073_v33 = vpop.f32.mrf.mxu2  ;;  %v2093_v36 = vpop.f32.mrf.mxu3  ;;  %2424 = vmatpush.msra.mxu3 %v4919_v45 }
 0x637   :  { %v2098_v4 = vadd.f32 %v2073_v33, %v1679_v30  ;;  %v2099_v38 = vadd.f32 %v2093_v36, %v1720_v31  ;;  %v4923_v30 = vld [vmem:[#allocation11 + $0x180] sm:$0xff]  ;;  %v4925_v31 = vld [vmem:[#allocation11 + $0x188] sm:$0xff]  ;;  %v4927_v33 = vld [vmem:[#allocation11 + $0x190] sm:$0xff] }
 0x638   :  { %2365 = vmatpush.msra.mxu0 %v4923_v30  ;;  %2385 = vmatpush.msra.mxu1 %v4925_v31  ;;  %v4931_v36 = vld [vmem:[#allocation11 + $0x198] sm:$0xff] }
 0x639   :  { %3312 = vtanh.f32 %v2098_v4  ;;  %v2109_v24 = vmul.f32 0.5, %v2099_v38  ;;  %2425 = vmatpush.msra.mxu3 %v4931_v36  ;;  %v4935_v4 = vld [vmem:[#allocation11 + $0x160] sm:$0xff]  ;;  %v4937_v38 = vld [vmem:[#allocation11 + $0x168] sm:$0xff] }
 0x63a   :  { %v3309_v23 = vpop.eup %3308  ;;  %2366 = vmatpush.msra.mxu0 %v4935_v4  ;;  %2386 = vmatpush.msra.mxu1 %v4937_v38 }
 0x63b   :  { %v3311_v22 = vpop.eup %3310  ;;  %v2102_v37 = vmul.f32 0.5, %v3309_v23  ;;  %3314 = vtanh.f32 %v2109_v24  ;;  %v4939_v24 = vld [vmem:[#allocation11 + $0x170] sm:$0xff]  ;;  %v4943_v23 = vld [vmem:[#allocation11 + $0x178] sm:$0xff] }
 0x63c   :  { %v2106_v34 = vmul.f32 0.5, %v3311_v22  ;;  %2426 = vmatpush.msra.mxu3 %v4943_v23  ;;  %v4947_v22 = vld [vmem:[#allocation11 + $0x140] sm:$0xff] }
 0x63d   :  { %v2103_v32 = vadd.f32 0.5, %v2102_v37  ;;  %v4949_v37 = vld [vmem:[#allocation11 + $0x148] sm:$0xff]  ;;  %2367 = vmatpush.msra.mxu0 %v4947_v22 }
 0x63e   :  { %v2107_v35 = vadd.f32 0.5, %v2106_v34  ;;  %v4951_v34 = vld [vmem:[#allocation11 + $0x150] sm:$0xff]  ;;  %2387 = vmatpush.msra.mxu1 %v4949_v37 }
 0x63f   :  { %v3313_v28 = vpop.eup %3312  ;;  %v2113_v53 = vmul.f32 %v2103_v32, %v1943_v40  ;;  %v4903_v40 = vld [vmem:[#allocation11 + $0x1d0] sm:$0xff]  ;;  %v4955_v32 = vld [vmem:[#allocation11 + $0x158] sm:$0xff] }
 0x640   :  { %v2114_v46 = vmul.f32 %v3313_v28, %v2107_v35  ;;  %2403 = vmatpush.msra.mxu2 %v4903_v40  ;;  %2427 = vmatpush.msra.mxu3 %v4955_v32  ;;  %v4959_v35 = vld [vmem:[#allocation11 + $0x120] sm:$0xff]  ;;  %v4961_v28 = vld [vmem:[#allocation11 + $0x128] sm:$0xff] }
 0x641   :  { %v3315_v41 = vpop.eup %3314  ;;  %2368 = vmatpush.msra.mxu0 %v4959_v35  ;;  %2388 = vmatpush.msra.mxu1 %v4961_v28 }
 0x642   :  { %v4896_v42 = vadd.f32 %v2114_v46, %v2113_v53  ;;  %v2111_v47 = vmul.f32 0.5, %v3315_v41  ;;  %2404 = vmatpush.msra.mxu2 %v4915_v44  ;;  %v4963_v53 = vld [vmem:[#allocation11 + $0x130] sm:$0xff]  ;;  %v4967_v46 = vld [vmem:[#allocation11 + $0x138] sm:$0xff]  ;;  %v4971_v41 = vld [vmem:[#allocation11 + $0x100] sm:$0xff] }
 0x643   :  { %2428 = vmatpush.msra.mxu3 %v4967_v46  ;;  %2369 = vmatpush.msra.mxu0 %v4971_v41 }
 0x644   :  { %3316 = vtanh.f32 %v4896_v42  ;;  %v2112_v43 = vadd.f32 0.5, %v2111_v47  ;;  %2405 = vmatpush.msra.mxu2 %v4927_v33  ;;  %v4973_v47 = vld [vmem:[#allocation11 + $0x108] sm:$0xff] }
 0x645   :  { %2389 = vmatpush.msra.mxu1 %v4973_v47 }
 0x646   :  { %2406 = vmatpush.msra.mxu2 %v4939_v24 }
 0x647   :  { %2390 = vmatpush.msra.mxu1 %v4985_v17 }
 0x648   :  { %2407 = vmatpush.msra.mxu2 %v4951_v34 }
 0x649   :  { %2391 = vmatpush.msra.mxu1 %v4997_v56 }
 0x64a   :  { %v3317_v12 = vpop.eup %3316  ;;  %2408 = vmatpush.msra.mxu2 %v4963_v53 }
 0x64b   :  { %v2117_v9 = vmul.f32 %v3317_v12, %v2112_v43  ;;  %v4975_v43 = vld [vmem:[#allocation11 + $0x110] sm:$0xff]  ;;  %v4979_v12 = vld [vmem:[#allocation11 + $0x118] sm:$0xff]  ;;  %2392 = vmatpush.msra.mxu1 %v5009_v11 }
 0x64c   :  { %5643 = vst [vmem:[#allocation32_spill] sm:$0xff] %v4979_v12  ;;  %2409 = vmatpush.msra.mxu2 %v4975_v43  ;;  %2429 = vmatpush.msra.mxu3 %v4979_v12 }
 0x64d   :  { %2119 = vst [vmem:[#allocation15 + $0x8] sm:$0xff] %v2117_v9  ;;  %2205 = vmatmul.f32.vlgmr.msrb.gmra.mxu0 %v2117_v9  ;;  %2225 = vmatmul.f32.vlgmr.msrb.gmra.mxu1 %v2117_v9 }
 0x64e   :  { %2245 = vmatmul.f32.vlgmr.msrb.gmra.mxu2 %v2117_v9  ;;  %2265 = vmatmul.f32.vlgmr.msrb.gmra.mxu3 %v2117_v9  ;;  %v4983_v9 = vld [vmem:[#allocation11 + $0xe0] sm:$0xff] }
 0x64f   :  { %2370 = vmatpush.msra.mxu0 %v4983_v9  ;;  %2410 = vmatpush.msra.mxu2 %v4987_v18 }
 0x650   :  { %2430 = vmatpush.msra.mxu3 %v4991_v14  ;;  %2393 = vmatpush.msra.mxu1 %v5021_v2 }
 0x651   :  { %2371 = vmatpush.msra.mxu0 %v4995_v13  ;;  %2411 = vmatpush.msra.mxu2 %v4999_v10 }
 0x652   :  { %2431 = vmatpush.msra.mxu3 %v5003_v16  ;;  %2394 = vmatpush.msra.mxu1 %v5033_v48  ;;  %v5053_v48 = vld [vmem:[#allocation11 + $0x20] sm:$0xff] }
 0x653   :  { %2372 = vmatpush.msra.mxu0 %v5007_v15  ;;  %2412 = vmatpush.msra.mxu2 %v5011_v6  ;;  %5655 = vst [vmem:[#allocation59_spill] sm:$0xff] %v5053_v48 }
 0x654   :  { %2432 = vmatpush.msra.mxu3 %v5015_v5 }
 0x655   :  { %2373 = vmatpush.msra.mxu0 %v5019_v3  ;;  %2413 = vmatpush.msra.mxu2 %v5023_v1  ;;  %v5045_v1 = vld [vmem:[#allocation11 + $0x48] sm:$0xff] }
 0x656   :  { %2433 = vmatpush.msra.mxu3 %v5027_v0  ;;  %5653 = vst [vmem:[#allocation57_spill] sm:$0xff] %v5045_v1  ;;  %v5047_v0 = vld [vmem:[#allocation11 + $0x50] sm:$0xff]  ;;  %2395 = vmatpush.msra.mxu1 %v5045_v1  ;;  %v5065_v1 = vld [vmem:[#allocation11 + $0x8] sm:$0xff] }
 0x657   :  { %2374 = vmatpush.msra.mxu0 %v5031_v58  ;;  %2414 = vmatpush.msra.mxu2 %v5035_v57  ;;  %5654 = vst [vmem:[#allocation58_spill] sm:$0xff] %v5047_v0  ;;  %v5055_v58 = vld [vmem:[#allocation11 + $0x28] sm:$0xff]  ;;  %v5057_v57 = vld [vmem:[#allocation11 + $0x30] sm:$0xff] }
 0x658   :  { %2434 = vmatpush.msra.mxu3 %v5039_v55  ;;  %5656 = vst [vmem:[#allocation60_spill] sm:$0xff] %v5055_v58  ;;  %2396 = vmatpush.msra.mxu1 %v5055_v58 }
 0x659   :  { %2375 = vmatpush.msra.mxu0 %v5043_v49  ;;  %2415 = vmatpush.msra.mxu2 %v5047_v0  ;;  %5657 = vst [vmem:[#allocation61_spill] sm:$0xff] %v5057_v57  ;;  %v5063_v49 = vld [vmem:[#allocation11] sm:$0xff]  ;;  %v5067_v0 = vld [vmem:[#allocation11 + $0x10] sm:$0xff] }
 0x65a   :  { %2435 = vmatpush.msra.mxu3 %v5618_v39  ;;  %5658 = vst [vmem:[#allocation62_spill] sm:$0xff] %v5063_v49  ;;  %2397 = vmatpush.msra.mxu1 %v5065_v1  ;;  %v5071_v39 = vld [vmem:[#allocation11 + $0x18] sm:$0xff] }
 0x65b   :  { %2376 = vmatpush.msra.mxu0 %v5053_v48  ;;  %2416 = vmatpush.msra.mxu2 %v5057_v57  ;;  %5659 = vst [vmem:[#allocation63_spill] sm:$0xff] %v5065_v1  ;;  %v1600_v57 = vadd.f32 %v4816_v50, %v4860_v20 }
 0x65c   :  { %2436 = vmatpush.msra.mxu3 %v4664_v25  ;;  %5660 = vst [vmem:[#allocation64_spill] sm:$0xff] %v5067_v0  ;;  %v1641_v25 = vadd.f32 %v4818_v59, %v4862_v19  ;;  %2555 = vmatpush.msrb.mxu1 %v4882_v7 }
 0x65d   :  { %2377 = vmatpush.msra.mxu0 %v5063_v49  ;;  %2417 = vmatpush.msra.mxu2 %v5067_v0 }
 0x65e   :  { %2437 = vmatpush.msra.mxu3 %v5071_v39  ;;  %2556 = vmatpush.msrb.mxu1 %v4901_v63 }
 0x65f   :  { %2535 = vmatpush.msrb.mxu0 %v4880_v8  ;;  %2575 = vmatpush.msrb.mxu2 %v4884_v62 }
 0x660   :  { %2595 = vmatpush.msrb.mxu3 %v4888_v26  ;;  %2557 = vmatpush.msrb.mxu1 %v4913_v29 }
 0x661   :  { %2536 = vmatpush.msrb.mxu0 %v4899_v61  ;;  %2576 = vmatpush.msrb.mxu2 %v4903_v40 }
 0x662   :  { %2596 = vmatpush.msrb.mxu3 %v4907_v21  ;;  %2558 = vmatpush.msrb.mxu1 %v4925_v31 }
 0x663   :  { %2537 = vmatpush.msrb.mxu0 %v4911_v27  ;;  %2577 = vmatpush.msrb.mxu2 %v4915_v44 }
 0x664   :  { %2597 = vmatpush.msrb.mxu3 %v4919_v45  ;;  %2559 = vmatpush.msrb.mxu1 %v4937_v38 }
 0x665   :  { %2538 = vmatpush.msrb.mxu0 %v4923_v30  ;;  %2578 = vmatpush.msrb.mxu2 %v4927_v33 }
 0x666   :  { %2598 = vmatpush.msrb.mxu3 %v4931_v36  ;;  %2560 = vmatpush.msrb.mxu1 %v4949_v37 }
 0x667   :  { %2539 = vmatpush.msrb.mxu0 %v4935_v4  ;;  %2579 = vmatpush.msrb.mxu2 %v4939_v24 }
 0x668   :  { %2599 = vmatpush.msrb.mxu3 %v4943_v23  ;;  %2561 = vmatpush.msrb.mxu1 %v4961_v28 }
 0x669   :  { %2540 = vmatpush.msrb.mxu0 %v4947_v22  ;;  %2580 = vmatpush.msrb.mxu2 %v4951_v34 }
 0x66a   :  { %2600 = vmatpush.msrb.mxu3 %v4955_v32  ;;  %2562 = vmatpush.msrb.mxu1 %v4973_v47 }
 0x66b   :  { %2541 = vmatpush.msrb.mxu0 %v4959_v35  ;;  %2581 = vmatpush.msrb.mxu2 %v4963_v53 }
 0x66c   :  { %2601 = vmatpush.msrb.mxu3 %v4967_v46  ;;  %2563 = vmatpush.msrb.mxu1 %v4985_v17 }
 0x66d   :  { %2542 = vmatpush.msrb.mxu0 %v4971_v41  ;;  %2582 = vmatpush.msrb.mxu2 %v4975_v43 }
 0x66e   :  { %2602 = vmatpush.msrb.mxu3 %v4979_v12  ;;  %2564 = vmatpush.msrb.mxu1 %v4997_v56  ;;  %v5673_v12 = vld [vmem:[#allocation63_spill] sm:$0xff] }
 0x66f   :  { %2543 = vmatpush.msrb.mxu0 %v4983_v9  ;;  %2583 = vmatpush.msrb.mxu2 %v4987_v18 }
 0x670   :  { %2603 = vmatpush.msrb.mxu3 %v4991_v14  ;;  %2565 = vmatpush.msrb.mxu1 %v5009_v11  ;;  %v5672_v14 = vld [vmem:[#allocation62_spill] sm:$0xff] }
 0x671   :  { %2544 = vmatpush.msrb.mxu0 %v4995_v13  ;;  %2584 = vmatpush.msrb.mxu2 %v4999_v10 }
 0x672   :  { %2604 = vmatpush.msrb.mxu3 %v5003_v16  ;;  %2566 = vmatpush.msrb.mxu1 %v5021_v2  ;;  %v5670_v16 = vld [vmem:[#allocation60_spill] sm:$0xff] }
 0x673   :  { %2545 = vmatpush.msrb.mxu0 %v5007_v15  ;;  %2585 = vmatpush.msrb.mxu2 %v5011_v6 }
 0x674   :  { %2605 = vmatpush.msrb.mxu3 %v5015_v5  ;;  %v5669_v5 = vld [vmem:[#allocation58_spill] sm:$0xff] }
 0x675   :  { %2546 = vmatpush.msrb.mxu0 %v5019_v3 }
 0x6ca   :  { %v2206_v58 = vpop.f32.mrf.mxu0  ;;  %v2226_v49 = vpop.f32.mrf.mxu1 }
 0x6cb   :  { %v2269_v1 = vadd.f32 %v2206_v58, %v1600_v57  ;;  %v2270_v0 = vadd.f32 %v2226_v49, %v1641_v25  ;;  %v1682_v49 = vadd.f32 %v4820_v60, %v4870_v51  ;;  %v1723_v57 = vadd.f32 %v4822_v52, %v4872_v54 }
 0x6cd   :  { %v2273_v50 = vmul.f32 0.5, %v2269_v1  ;;  %v2277_v59 = vmul.f32 0.5, %v2270_v0 }
 0x6cf   :  { %3318 = vtanh.f32 %v2273_v50 }
 0x6d0   :  { %3320 = vtanh.f32 %v2277_v59 }
 0x6d1   :  { %v2246_v58 = vpop.f32.mrf.mxu2  ;;  %v2266_v0 = vpop.f32.mrf.mxu3 }
 0x6d2   :  { %v2271_v1 = vadd.f32 %v2246_v58, %v1682_v49  ;;  %v2272_v25 = vadd.f32 %v2266_v0, %v1723_v57 }
 0x6d4   :  { %3322 = vtanh.f32 %v2271_v1  ;;  %v2282_v60 = vmul.f32 0.5, %v2272_v25 }
 0x6d5   :  { %v3319_v52 = vpop.eup %3318 }
 0x6d6   :  { %v3321_v50 = vpop.eup %3320  ;;  %v2275_v59 = vmul.f32 0.5, %v3319_v52  ;;  %3324 = vtanh.f32 %v2282_v60 }
 0x6d7   :  { %v2279_v49 = vmul.f32 0.5, %v3321_v50  ;;  %v5662_v50 = vld [vmem:[#allocation51_spill] sm:$0xff] }
 0x6d8   :  { %v2276_v57 = vadd.f32 0.5, %v2275_v59  ;;  %2586 = vmatpush.msrb.mxu2 %v5662_v50  ;;  %v5663_v59 = vld [vmem:[#allocation52_spill] sm:$0xff] }
 0x6d9   :  { %v2280_v58 = vadd.f32 0.5, %v2279_v49  ;;  %2606 = vmatpush.msrb.mxu3 %v5663_v59  ;;  %v5664_v49 = vld [vmem:[#allocation53_spill] sm:$0xff] }
 0x6da   :  { %v3323_v0 = vpop.eup %3322  ;;  %v2286_v1 = vmul.f32 %v2276_v57, %v4896_v42  ;;  %2547 = vmatpush.msrb.mxu0 %v5664_v49  ;;  %v5665_v57 = vld [vmem:[#allocation54_spill] sm:$0xff] }
 0x6db   :  { %v2287_v25 = vmul.f32 %v3323_v0, %v2280_v58  ;;  %2567 = vmatpush.msrb.mxu1 %v5665_v57  ;;  %v5666_v58 = vld [vmem:[#allocation55_spill] sm:$0xff]  ;;  %2607 = vmatpush.msrb.mxu3 %v5039_v55  ;;  %v5667_v0 = vld [vmem:[#allocation56_spill] sm:$0xff] }
 0x6dc   :  { %v3325_v60 = vpop.eup %3324  ;;  %2587 = vmatpush.msrb.mxu2 %v5666_v58  ;;  %2548 = vmatpush.msrb.mxu0 %v5667_v0 }
 0x6dd   :  { %v5124_v52 = vadd.f32 %v2287_v25, %v2286_v1  ;;  %v2284_v42 = vmul.f32 0.5, %v3325_v60  ;;  %v5668_v1 = vld [vmem:[#allocation57_spill] sm:$0xff] }
 0x6de   :  { %2568 = vmatpush.msrb.mxu1 %v5668_v1  ;;  %2588 = vmatpush.msrb.mxu2 %v5669_v5 }
 0x6df   :  { %5661 = vst [vmem:[#allocation65_spill] sm:$0xff] %v5124_v52  ;;  %3326 = vtanh.f32 %v5124_v52  ;;  %v2285_v25 = vadd.f32 0.5, %v2284_v42  ;;  %2549 = vmatpush.msrb.mxu0 %v5053_v48  ;;  %v5671_v52 = vld [vmem:[#allocation61_spill] sm:$0xff]  ;;  %v5674_v42 = vld [vmem:[#allocation64_spill] sm:$0xff] }
 0x6e0   :  { %2569 = vmatpush.msrb.mxu1 %v5670_v16  ;;  %2589 = vmatpush.msrb.mxu2 %v5671_v52 }
 0x6e1   :  { %2550 = vmatpush.msrb.mxu0 %v5672_v14 }
 0x6e2   :  { %2570 = vmatpush.msrb.mxu1 %v5673_v12  ;;  %2590 = vmatpush.msrb.mxu2 %v5674_v42 }
 0x6e5   :  { %v3327_v60 = vpop.eup %3326 }
 0x6e6   :  { %v2290_v59 = vmul.f32 %v3327_v60, %v2285_v25  ;;  %v5199_v25 = vld [vmem:[#allocation11 + $0x38] sm:$0xff]  ;;  %v5675_v60 = vld [vmem:[#allocation37_spill] sm:$0xff] }
 0x6e8   :  { %2292 = vst [vmem:[#allocation15 + $0x10] sm:$0xff] %v2290_v59  ;;  %2378 = vmatmul.f32.vlgmr.msra.gmra.mxu0 %v2290_v59  ;;  %2398 = vmatmul.f32.vlgmr.msra.gmra.mxu1 %v2290_v59 }
 0x6e9   :  { %2418 = vmatmul.f32.vlgmr.msra.gmra.mxu2 %v2290_v59  ;;  %2438 = vmatmul.f32.vlgmr.msra.gmra.mxu3 %v2290_v59  ;;  %v5196_v59 = vld [vmem:[#allocation11 + $0x58] sm:$0xff] }
 0x6ea   :  { %2708 = vmatpush.msra.mxu0 %v4880_v8  ;;  %2728 = vmatpush.msra.mxu1 %v4882_v7 }
 0x6eb   :  { %2748 = vmatpush.msra.mxu2 %v4884_v62  ;;  %2608 = vmatpush.msrb.mxu3 %v5196_v59 }
 0x6ec   :  { %2709 = vmatpush.msra.mxu0 %v4899_v61  ;;  %2729 = vmatpush.msra.mxu1 %v4901_v63 }
 0x6ed   :  { %2749 = vmatpush.msra.mxu2 %v4903_v40  ;;  %2609 = vmatpush.msrb.mxu3 %v5199_v25 }
 0x6ee   :  { %2710 = vmatpush.msra.mxu0 %v4911_v27  ;;  %2730 = vmatpush.msra.mxu1 %v4913_v29 }
 0x6ef   :  { %2750 = vmatpush.msra.mxu2 %v4915_v44  ;;  %2610 = vmatpush.msrb.mxu3 %v5071_v39 }
 0x6f0   :  { %2711 = vmatpush.msra.mxu0 %v4923_v30  ;;  %2731 = vmatpush.msra.mxu1 %v4925_v31 }
 0x6f1   :  { %2751 = vmatpush.msra.mxu2 %v4927_v33  ;;  %2768 = vmatpush.msra.mxu3 %v4888_v26 }
 0x6f2   :  { %2712 = vmatpush.msra.mxu0 %v4935_v4  ;;  %2732 = vmatpush.msra.mxu1 %v4937_v38 }
 0x6f3   :  { %2752 = vmatpush.msra.mxu2 %v4939_v24  ;;  %2769 = vmatpush.msra.mxu3 %v4907_v21 }
 0x6f4   :  { %2713 = vmatpush.msra.mxu0 %v4947_v22  ;;  %2733 = vmatpush.msra.mxu1 %v4949_v37 }
 0x6f5   :  { %2753 = vmatpush.msra.mxu2 %v4951_v34  ;;  %2770 = vmatpush.msra.mxu3 %v4919_v45 }
 0x6f6   :  { %2714 = vmatpush.msra.mxu0 %v4959_v35  ;;  %2734 = vmatpush.msra.mxu1 %v4961_v28 }
 0x6f7   :  { %2754 = vmatpush.msra.mxu2 %v4963_v53  ;;  %2771 = vmatpush.msra.mxu3 %v4931_v36 }
 0x6f8   :  { %2715 = vmatpush.msra.mxu0 %v4971_v41  ;;  %2735 = vmatpush.msra.mxu1 %v4973_v47 }
 0x6f9   :  { %2755 = vmatpush.msra.mxu2 %v4975_v43  ;;  %2772 = vmatpush.msra.mxu3 %v4943_v23 }
 0x6fa   :  { %2716 = vmatpush.msra.mxu0 %v4983_v9  ;;  %2736 = vmatpush.msra.mxu1 %v4985_v17 }
 0x6fb   :  { %2756 = vmatpush.msra.mxu2 %v4987_v18  ;;  %2773 = vmatpush.msra.mxu3 %v4955_v32 }
 0x6fc   :  { %2717 = vmatpush.msra.mxu0 %v4995_v13  ;;  %2737 = vmatpush.msra.mxu1 %v4997_v56 }
 0x6fd   :  { %2757 = vmatpush.msra.mxu2 %v4999_v10  ;;  %2774 = vmatpush.msra.mxu3 %v4967_v46 }
 0x6fe   :  { %2718 = vmatpush.msra.mxu0 %v5007_v15  ;;  %2738 = vmatpush.msra.mxu1 %v5009_v11 }
 0x6ff   :  { %2758 = vmatpush.msra.mxu2 %v5011_v6 }
 0x700   :  { %2719 = vmatpush.msra.mxu0 %v5019_v3  ;;  %2739 = vmatpush.msra.mxu1 %v5021_v2 }
 0x701   :  { %2759 = vmatpush.msra.mxu2 %v5662_v50 }
 0x702   :  { %2720 = vmatpush.msra.mxu0 %v5664_v49  ;;  %2740 = vmatpush.msra.mxu1 %v5665_v57 }
 0x703   :  { %2760 = vmatpush.msra.mxu2 %v5666_v58  ;;  %v5677_v58 = vld [vmem:[#allocation35_spill] sm:$0xff] }
 0x704   :  { %2721 = vmatpush.msra.mxu0 %v5667_v0  ;;  %2741 = vmatpush.msra.mxu1 %v5668_v1  ;;  %v1685_v57 = vadd.f32 %v5677_v58, %v4870_v51  ;;  %v5679_v58 = vld [vmem:[#allocation32_spill] sm:$0xff] }
 0x705   :  { %2761 = vmatpush.msra.mxu2 %v5669_v5  ;;  %2775 = vmatpush.msra.mxu3 %v5679_v58 }
 0x706   :  { %2722 = vmatpush.msra.mxu0 %v5053_v48  ;;  %2742 = vmatpush.msra.mxu1 %v5670_v16 }
 0x707   :  { %2762 = vmatpush.msra.mxu2 %v5671_v52  ;;  %v1603_v52 = vadd.f32 %v5675_v60, %v4860_v20  ;;  %v5678_v60 = vld [vmem:[#allocation36_spill] sm:$0xff] }
 0x708   :  { %2723 = vmatpush.msra.mxu0 %v5672_v14  ;;  %2743 = vmatpush.msra.mxu1 %v5673_v12  ;;  %v5676_v14 = vld [vmem:[#allocation34_spill] sm:$0xff]  ;;  %v1726_v20 = vadd.f32 %v5678_v60, %v4872_v54  ;;  %v5680_v60 = vld [vmem:[#allocation31_spill] sm:$0xff] }
 0x709   :  { %2763 = vmatpush.msra.mxu2 %v5674_v42  ;;  %v1644_v12 = vadd.f32 %v5676_v14, %v4862_v19  ;;  %2776 = vmatpush.msra.mxu3 %v5680_v60 }
 0x765   :  { %v2379_v16 = vpop.f32.mrf.mxu0  ;;  %v2399_v42 = vpop.f32.mrf.mxu1 }
 0x766   :  { %v2442_v48 = vadd.f32 %v2379_v16, %v1603_v52  ;;  %v2443_v5 = vadd.f32 %v2399_v42, %v1644_v12 }
 0x768   :  { %v2446_v1 = vmul.f32 0.5, %v2442_v48  ;;  %v2450_v0 = vmul.f32 0.5, %v2443_v5 }
 0x76a   :  { %3328 = vtanh.f32 %v2446_v1 }
 0x76b   :  { %3330 = vtanh.f32 %v2450_v0 }
 0x76c   :  { %v2419_v14 = vpop.f32.mrf.mxu2  ;;  %v2439_v19 = vpop.f32.mrf.mxu3 }
 0x76d   :  { %v2444_v16 = vadd.f32 %v2419_v14, %v1685_v57  ;;  %v2445_v12 = vadd.f32 %v2439_v19, %v1726_v20  ;;  %v5681_v57 = vld [vmem:[#allocation65_spill] sm:$0xff] }
 0x76e   :  { %v5682_v19 = vld [vmem:[#allocation49_spill] sm:$0xff] }
 0x76f   :  { %3332 = vtanh.f32 %v2444_v16  ;;  %v2455_v48 = vmul.f32 0.5, %v2445_v12  ;;  %2777 = vmatpush.msra.mxu3 %v5682_v19  ;;  %v5683_v16 = vld [vmem:[#allocation50_spill] sm:$0xff] }
 0x770   :  { %v3329_v5 = vpop.eup %3328 }
 0x771   :  { %v3331_v52 = vpop.eup %3330  ;;  %v2448_v1 = vmul.f32 0.5, %v3329_v5  ;;  %3334 = vtanh.f32 %v2455_v48  ;;  %2778 = vmatpush.msra.mxu3 %v5683_v16  ;;  %v5684_v5 = vld [vmem:[#allocation52_spill] sm:$0xff] }
 0x772   :  { %v2452_v42 = vmul.f32 0.5, %v3331_v52 }
 0x773   :  { %v2449_v0 = vadd.f32 0.5, %v2448_v1  ;;  %2779 = vmatpush.msra.mxu3 %v5684_v5 }
 0x774   :  { %v2453_v54 = vadd.f32 0.5, %v2452_v42 }
 0x775   :  { %v3333_v51 = vpop.eup %3332  ;;  %v2459_v20 = vmul.f32 %v2449_v0, %v5681_v57  ;;  %2780 = vmatpush.msra.mxu3 %v5039_v55  ;;  %v5705_v57 = vld [vmem:[#allocation42_spill] sm:$0xff] }
 0x776   :  { %v2460_v14 = vmul.f32 %v3333_v51, %v2453_v54  ;;  %v5695_v51 = vld [vmem:[#allocation63_spill] sm:$0xff]  ;;  %v5697_v54 = vld [vmem:[#allocation29_spill] sm:$0xff] }
 0x777   :  { %v3335_v12 = vpop.eup %3334  ;;  %2781 = vmatpush.msra.mxu3 %v5196_v59 }
 0x778   :  { %v5223_v49 = vadd.f32 %v2460_v14, %v2459_v20  ;;  %v2457_v48 = vmul.f32 0.5, %v3335_v12  ;;  %v1609_v20 = vadd.f32 %v5705_v57, %v5697_v54  ;;  %v3052_v12 = vld [vmem:[#allocation11 + $0x1f0] sm:$0xff]  ;;  %v3026_v57 = vld [vmem:[#allocation11 + $0x120] sm:$0xff] }
 0x779   :  { %2782 = vmatpush.msra.mxu3 %v5199_v25 }
 0x77a   :  { %3336 = vtanh.f32 %v5223_v49  ;;  %v2458_v52 = vadd.f32 0.5, %v2457_v48 }
 0x77b   :  { %2783 = vmatpush.msra.mxu3 %v5071_v39 }
 0x780   :  { %v3337_v1 = vpop.eup %3336 }
 0x781   :  { %v2463_v42 = vmul.f32 %v3337_v1, %v2458_v52  ;;  %v3053_v52 = vld [vmem:[#allocation11 + $0x1f8] sm:$0xff] }
 0x783   :  { %2465 = vst [vmem:[#allocation15 + $0x18] sm:$0xff] %v2463_v42  ;;  %2551 = vmatmul.f32.vlgmr.msrb.gmra.mxu0 %v2463_v42  ;;  %2571 = vmatmul.f32.vlgmr.msrb.gmra.mxu1 %v2463_v42 }
 0x784   :  { %2591 = vmatmul.f32.vlgmr.msrb.gmra.mxu2 %v2463_v42  ;;  %2611 = vmatmul.f32.vlgmr.msrb.gmra.mxu3 %v2463_v42 }
 0x785   :  { %2881 = vmatpush.msrb.mxu0 %v4880_v8  ;;  %2901 = vmatpush.msrb.mxu1 %v4882_v7  ;;  %v5698_v8 = vld [vmem:[#allocation41_spill] sm:$0xff] }
 0x786   :  { %2921 = vmatpush.msrb.mxu2 %v4884_v62  ;;  %2941 = vmatpush.msrb.mxu3 %v4888_v26  ;;  %v1606_v7 = vadd.f32 %v5698_v8, %v5697_v54  ;;  %v5699_v62 = vld [vmem:[#allocation26_spill] sm:$0xff] }
 0x787   :  { %2882 = vmatpush.msrb.mxu0 %v4899_v61  ;;  %2902 = vmatpush.msrb.mxu1 %v4901_v63  ;;  %v5700_v26 = vld [vmem:[#allocation38_spill] sm:$0xff] }
 0x788   :  { %2922 = vmatpush.msrb.mxu2 %v4903_v40  ;;  %2942 = vmatpush.msrb.mxu3 %v4907_v21  ;;  %v1647_v61 = vadd.f32 %v5700_v26, %v5699_v62 }
 0x789   :  { %2883 = vmatpush.msrb.mxu0 %v4911_v27  ;;  %2903 = vmatpush.msrb.mxu1 %v4913_v29 }
 0x78a   :  { %2923 = vmatpush.msrb.mxu2 %v4915_v44  ;;  %2943 = vmatpush.msrb.mxu3 %v4919_v45  ;;  %v5701_v45 = vld [vmem:[#allocation33_spill] sm:$0xff] }
 0x78b   :  { %2884 = vmatpush.msrb.mxu0 %v4923_v30  ;;  %2904 = vmatpush.msrb.mxu1 %v4925_v31  ;;  %v5702_v30 = vld [vmem:[#allocation39_spill] sm:$0xff] }
 0x78c   :  { %2924 = vmatpush.msrb.mxu2 %v4927_v33  ;;  %2944 = vmatpush.msrb.mxu3 %v4931_v36  ;;  %v1688_v31 = vadd.f32 %v5702_v30, %v5701_v45  ;;  %v5703_v33 = vld [vmem:[#allocation30_spill] sm:$0xff]  ;;  %v5704_v36 = vld [vmem:[#allocation40_spill] sm:$0xff] }
 0x78d   :  { %2885 = vmatpush.msrb.mxu0 %v4935_v4  ;;  %2905 = vmatpush.msrb.mxu1 %v4937_v38  ;;  %v1729_v4 = vadd.f32 %v5704_v36, %v5703_v33 }
 0x78e   :  { %2925 = vmatpush.msrb.mxu2 %v4939_v24  ;;  %2945 = vmatpush.msrb.mxu3 %v4943_v23 }
 0x78f   :  { %2886 = vmatpush.msrb.mxu0 %v4947_v22  ;;  %2906 = vmatpush.msrb.mxu1 %v4949_v37 }
 0x790   :  { %2926 = vmatpush.msrb.mxu2 %v4951_v34  ;;  %2946 = vmatpush.msrb.mxu3 %v4955_v32 }
 0x791   :  { %2887 = vmatpush.msrb.mxu0 %v4959_v35  ;;  %2907 = vmatpush.msrb.mxu1 %v4961_v28 }
 0x792   :  { %2927 = vmatpush.msrb.mxu2 %v4963_v53  ;;  %2947 = vmatpush.msrb.mxu3 %v4967_v46 }
 0x793   :  { %2888 = vmatpush.msrb.mxu0 %v4971_v41  ;;  %2908 = vmatpush.msrb.mxu1 %v4973_v47 }
 0x794   :  { %2928 = vmatpush.msrb.mxu2 %v4975_v43  ;;  %2948 = vmatpush.msrb.mxu3 %v5679_v58 }
 0x795   :  { %2889 = vmatpush.msrb.mxu0 %v4983_v9  ;;  %2909 = vmatpush.msrb.mxu1 %v4985_v17  ;;  %v5694_v17 = vld [vmem:[#allocation62_spill] sm:$0xff] }
 0x796   :  { %2929 = vmatpush.msrb.mxu2 %v4987_v18  ;;  %2949 = vmatpush.msrb.mxu3 %v5680_v60  ;;  %v5693_v18 = vld [vmem:[#allocation61_spill] sm:$0xff] }
 0x797   :  { %2890 = vmatpush.msrb.mxu0 %v4995_v13  ;;  %2910 = vmatpush.msrb.mxu1 %v4997_v56  ;;  %v5685_v56 = vld [vmem:[#allocation53_spill] sm:$0xff]  ;;  %v5687_v13 = vld [vmem:[#allocation55_spill] sm:$0xff] }
 0x798   :  { %2930 = vmatpush.msrb.mxu2 %v4999_v10  ;;  %2950 = vmatpush.msrb.mxu3 %v5682_v19  ;;  %v5686_v10 = vld [vmem:[#allocation54_spill] sm:$0xff]  ;;  %v5706_v19 = vld [vmem:[#allocation44_spill] sm:$0xff] }
 0x799   :  { %2891 = vmatpush.msrb.mxu0 %v5007_v15  ;;  %2911 = vmatpush.msrb.mxu1 %v5009_v11  ;;  %v5688_v11 = vld [vmem:[#allocation56_spill] sm:$0xff]  ;;  %v5690_v15 = vld [vmem:[#allocation58_spill] sm:$0xff]  ;;  %v1650_v14 = vadd.f32 %v5706_v19, %v5699_v62 }
 0x79a   :  { %2931 = vmatpush.msrb.mxu2 %v5011_v6  ;;  %2951 = vmatpush.msrb.mxu3 %v5683_v16  ;;  %v5689_v6 = vld [vmem:[#allocation57_spill] sm:$0xff]  ;;  %v3028_v19 = vld [vmem:[#allocation11 + $0x130] sm:$0xff] }
 0x79b   :  { %2892 = vmatpush.msrb.mxu0 %v5019_v3  ;;  %2912 = vmatpush.msrb.mxu1 %v5021_v2  ;;  %v5691_v2 = vld [vmem:[#allocation59_spill] sm:$0xff]  ;;  %v5692_v3 = vld [vmem:[#allocation60_spill] sm:$0xff]  ;;  %v3051_v16 = vld [vmem:[#allocation11 + $0x1e8] sm:$0xff] }
 0x79c   :  { %2932 = vmatpush.msrb.mxu2 %v5662_v50  ;;  %2952 = vmatpush.msrb.mxu3 %v5684_v5 }
 0x79d   :  { %2893 = vmatpush.msrb.mxu0 %v5685_v56  ;;  %2913 = vmatpush.msrb.mxu1 %v5686_v10 }
 0x79e   :  { %2933 = vmatpush.msrb.mxu2 %v5687_v13  ;;  %2953 = vmatpush.msrb.mxu3 %v5039_v55  ;;  %v5696_v55 = vld [vmem:[#allocation64_spill] sm:$0xff]  ;;  %v5707_v13 = vld [vmem:[#allocation45_spill] sm:$0xff] }
 0x79f   :  { %2894 = vmatpush.msrb.mxu0 %v5688_v11  ;;  %2914 = vmatpush.msrb.mxu1 %v5689_v6  ;;  %v1691_v11 = vadd.f32 %v5707_v13, %v5701_v45  ;;  %v5708_v6 = vld [vmem:[#allocation46_spill] sm:$0xff] }
 0x7a0   :  { %2934 = vmatpush.msrb.mxu2 %v5690_v15  ;;  %2954 = vmatpush.msrb.mxu3 %v5196_v59  ;;  %v1732_v15 = vadd.f32 %v5708_v6, %v5703_v33  ;;  %v3016_v13 = vld [vmem:[#allocation11 + $0xd0] sm:$0xff]  ;;  %v3010_v6 = vld [vmem:[#allocation11 + $0xa0] sm:$0xff] }
 0x7a1   :  { %2895 = vmatpush.msrb.mxu0 %v5691_v2  ;;  %2915 = vmatpush.msrb.mxu1 %v5692_v3 }
 0x7a2   :  { %2935 = vmatpush.msrb.mxu2 %v5693_v18  ;;  %2955 = vmatpush.msrb.mxu3 %v5199_v25 }
 0x7a3   :  { %2896 = vmatpush.msrb.mxu0 %v5694_v17  ;;  %2916 = vmatpush.msrb.mxu1 %v5695_v51 }
 0x7a4   :  { %2936 = vmatpush.msrb.mxu2 %v5696_v55  ;;  %2956 = vmatpush.msrb.mxu3 %v5071_v39 }
 0x800   :  { %v2552_v63 = vpop.f32.mrf.mxu0  ;;  %v2572_v40 = vpop.f32.mrf.mxu1 }
 0x801   :  { %v2615_v21 = vadd.f32 %v2552_v63, %v1606_v7  ;;  %v2616_v27 = vadd.f32 %v2572_v40, %v1647_v61 }
 0x803   :  { %v2619_v29 = vmul.f32 0.5, %v2615_v21  ;;  %v2623_v44 = vmul.f32 0.5, %v2616_v27 }
 0x805   :  { %3338 = vtanh.f32 %v2619_v29 }
 0x806   :  { %3340 = vtanh.f32 %v2623_v44 }
 0x807   :  { %v2592_v38 = vpop.f32.mrf.mxu2  ;;  %v2612_v24 = vpop.f32.mrf.mxu3 }
 0x808   :  { %v2617_v23 = vadd.f32 %v2592_v38, %v1688_v31  ;;  %v2618_v22 = vadd.f32 %v2612_v24, %v1729_v4  ;;  %v3046_v38 = vld [vmem:[#allocation11 + $0x1c0] sm:$0xff]  ;;  %v3047_v24 = vld [vmem:[#allocation11 + $0x1c8] sm:$0xff] }
 0x80a   :  { %3342 = vtanh.f32 %v2617_v23  ;;  %v2628_v37 = vmul.f32 0.5, %v2618_v22  ;;  %v3048_v23 = vld [vmem:[#allocation11 + $0x1d0] sm:$0xff]  ;;  %v3049_v22 = vld [vmem:[#allocation11 + $0x1d8] sm:$0xff] }
 0x80b   :  { %v3339_v34 = vpop.eup %3338 }
 0x80c   :  { %v3341_v32 = vpop.eup %3340  ;;  %v2621_v35 = vmul.f32 0.5, %v3339_v34  ;;  %3344 = vtanh.f32 %v2628_v37  ;;  %v3042_v37 = vld [vmem:[#allocation11 + $0x1a0] sm:$0xff]  ;;  %v3043_v34 = vld [vmem:[#allocation11 + $0x1a8] sm:$0xff] }
 0x80d   :  { %v2625_v28 = vmul.f32 0.5, %v3341_v32  ;;  %v3044_v32 = vld [vmem:[#allocation11 + $0x1b0] sm:$0xff] }
 0x80e   :  { %v2622_v53 = vadd.f32 0.5, %v2621_v35  ;;  %v3045_v35 = vld [vmem:[#allocation11 + $0x1b8] sm:$0xff] }
 0x80f   :  { %v2626_v46 = vadd.f32 0.5, %v2625_v28  ;;  %v3038_v28 = vld [vmem:[#allocation11 + $0x180] sm:$0xff] }
 0x810   :  { %v3343_v41 = vpop.eup %3342  ;;  %v2632_v47 = vmul.f32 %v2622_v53, %v5223_v49  ;;  %v3050_v49 = vld [vmem:[#allocation11 + $0x1e0] sm:$0xff]  ;;  %v3039_v53 = vld [vmem:[#allocation11 + $0x188] sm:$0xff] }
 0x811   :  { %v2633_v43 = vmul.f32 %v3343_v41, %v2626_v46  ;;  %v3040_v46 = vld [vmem:[#allocation11 + $0x190] sm:$0xff]  ;;  %v3041_v41 = vld [vmem:[#allocation11 + $0x198] sm:$0xff] }
 0x812   :  { %v3345_v9 = vpop.eup %3344 }
 0x813   :  { %v2634_v39 = vadd.f32 %v2633_v43, %v2632_v47  ;;  %v2630_v50 = vmul.f32 0.5, %v3345_v9  ;;  %v3034_v47 = vld [vmem:[#allocation11 + $0x160] sm:$0xff]  ;;  %v3035_v43 = vld [vmem:[#allocation11 + $0x168] sm:$0xff]  ;;  %v3036_v9 = vld [vmem:[#allocation11 + $0x170] sm:$0xff] }
 0x815   :  { %3346 = vtanh.f32 %v2634_v39  ;;  %v2631_v58 = vadd.f32 0.5, %v2630_v50  ;;  %v3030_v50 = vld [vmem:[#allocation11 + $0x140] sm:$0xff] }
 0x81b   :  { %v3347_v0 = vpop.eup %3346 }
 0x81c   :  { %v2636_v60 = vmul.f32 %v3347_v0, %v2631_v58  ;;  %v3031_v58 = vld [vmem:[#allocation11 + $0x148] sm:$0xff]  ;;  %v3032_v0 = vld [vmem:[#allocation11 + $0x150] sm:$0xff] }
 0x81e   :  { %2638 = vst [vmem:[#allocation15 + $0x20] sm:$0xff] %v2636_v60  ;;  %2724 = vmatmul.f32.vlgmr.msra.gmra.mxu0 %v2636_v60  ;;  %2744 = vmatmul.f32.vlgmr.msra.gmra.mxu1 %v2636_v60 }
 0x81f   :  { %2764 = vmatmul.f32.vlgmr.msra.gmra.mxu2 %v2636_v60  ;;  %2784 = vmatmul.f32.vlgmr.msra.gmra.mxu3 %v2636_v60  ;;  %v3033_v60 = vld [vmem:[#allocation11 + $0x158] sm:$0xff] }
 0x820   :  { %3054 = vmatpush.msra.mxu0 %v3050_v49  ;;  %3074 = vmatpush.msra.mxu1 %v3051_v16  ;;  %v3022_v49 = vld [vmem:[#allocation11 + $0x100] sm:$0xff]  ;;  %v3023_v16 = vld [vmem:[#allocation11 + $0x108] sm:$0xff] }
 0x821   :  { %3094 = vmatpush.msra.mxu2 %v3052_v12  ;;  %3114 = vmatpush.msra.mxu3 %v3053_v52  ;;  %v3024_v12 = vld [vmem:[#allocation11 + $0x110] sm:$0xff]  ;;  %v3019_v52 = vld [vmem:[#allocation11 + $0xe8] sm:$0xff] }
 0x822   :  { %3055 = vmatpush.msra.mxu0 %v3046_v38  ;;  %3075 = vmatpush.msra.mxu1 %v3047_v24  ;;  %v2993_v38 = vld [vmem:[#allocation11 + $0x18] sm:$0xff] }
 0x823   :  { %3095 = vmatpush.msra.mxu2 %v3048_v23  ;;  %3115 = vmatpush.msra.mxu3 %v3049_v22  ;;  %v5709_v24 = vld [vmem:[#allocation43_spill] sm:$0xff] }
 0x824   :  { %3056 = vmatpush.msra.mxu0 %v3042_v37  ;;  %3076 = vmatpush.msra.mxu1 %v3043_v34  ;;  %v1612_v23 = vadd.f32 %v5709_v24, %v5697_v54 }
 0x825   :  { %3096 = vmatpush.msra.mxu2 %v3044_v32  ;;  %3116 = vmatpush.msra.mxu3 %v3045_v35 }
 0x826   :  { %3057 = vmatpush.msra.mxu0 %v3038_v28  ;;  %3077 = vmatpush.msra.mxu1 %v3039_v53  ;;  %v5711_v53 = vld [vmem:[#allocation25_spill] sm:$0xff] }
 0x827   :  { %3097 = vmatpush.msra.mxu2 %v3040_v46  ;;  %3117 = vmatpush.msra.mxu3 %v3041_v41  ;;  %v1694_v46 = vadd.f32 %v5711_v53, %v5701_v45  ;;  %v5712_v41 = vld [vmem:[#allocation48_spill] sm:$0xff] }
 0x828   :  { %3058 = vmatpush.msra.mxu0 %v3034_v47  ;;  %3078 = vmatpush.msra.mxu1 %v3035_v43  ;;  %v1735_v47 = vadd.f32 %v5712_v41, %v5703_v33 }
 0x829   :  { %3098 = vmatpush.msra.mxu2 %v3036_v9 }
 0x82a   :  { %3059 = vmatpush.msra.mxu0 %v3030_v50  ;;  %3079 = vmatpush.msra.mxu1 %v3031_v58 }
 0x82b   :  { %3099 = vmatpush.msra.mxu2 %v3032_v0 }
 0x82c   :  { %3060 = vmatpush.msra.mxu0 %v3026_v57 }
 0x82d   :  { %3100 = vmatpush.msra.mxu2 %v3028_v19 }
 0x82e   :  { %3061 = vmatpush.msra.mxu0 %v3022_v49 }
 0x82f   :  { %3101 = vmatpush.msra.mxu2 %v3024_v12 }
 0x89b   :  { %v2725_v5 = vpop.f32.mrf.mxu0  ;;  %v2745_v48 = vpop.f32.mrf.mxu1 }
 0x89c   :  { %v2788_v1 = vadd.f32 %v2725_v5, %v1609_v20  ;;  %v2789_v42 = vadd.f32 %v2745_v48, %v1650_v14  ;;  %v3027_v20 = vld [vmem:[#allocation11 + $0x128] sm:$0xff]  ;;  %v3029_v14 = vld [vmem:[#allocation11 + $0x138] sm:$0xff]  ;;  %v3018_v48 = vld [vmem:[#allocation11 + $0xe0] sm:$0xff] }
 0x89d   :  { %3080 = vmatpush.msra.mxu1 %v3027_v20  ;;  %v3025_v5 = vld [vmem:[#allocation11 + $0x118] sm:$0xff]  ;;  %3062 = vmatpush.msra.mxu0 %v3018_v48 }
 0x89e   :  { %v2792_v56 = vmul.f32 0.5, %v2788_v1  ;;  %v2796_v10 = vmul.f32 0.5, %v2789_v42  ;;  %v3020_v1 = vld [vmem:[#allocation11 + $0xf0] sm:$0xff]  ;;  %v3021_v42 = vld [vmem:[#allocation11 + $0xf8] sm:$0xff] }
 0x89f   :  { %3081 = vmatpush.msra.mxu1 %v3023_v16  ;;  %3102 = vmatpush.msra.mxu2 %v3020_v1 }
 0x8a0   :  { %3348 = vtanh.f32 %v2792_v56  ;;  %v3014_v56 = vld [vmem:[#allocation11 + $0xc0] sm:$0xff] }
 0x8a1   :  { %3350 = vtanh.f32 %v2796_v10  ;;  %3082 = vmatpush.msra.mxu1 %v3019_v52  ;;  %v3015_v10 = vld [vmem:[#allocation11 + $0xc8] sm:$0xff]  ;;  %3063 = vmatpush.msra.mxu0 %v3014_v56 }
 0x8a2   :  { %v2765_v2 = vpop.f32.mrf.mxu2  ;;  %v2785_v3 = vpop.f32.mrf.mxu3  ;;  %3103 = vmatpush.msra.mxu2 %v3016_v13 }
 0x8a3   :  { %v2790_v18 = vadd.f32 %v2765_v2, %v1691_v11  ;;  %v2791_v17 = vadd.f32 %v2785_v3, %v1732_v15  ;;  %3083 = vmatpush.msra.mxu1 %v3015_v10  ;;  %v3017_v11 = vld [vmem:[#allocation11 + $0xd8] sm:$0xff]  ;;  %v3011_v15 = vld [vmem:[#allocation11 + $0xa8] sm:$0xff]  ;;  %v3012_v2 = vld [vmem:[#allocation11 + $0xb0] sm:$0xff]  ;;  %3064 = vmatpush.msra.mxu0 %v3010_v6 }
 0x8a4   :  { %v3013_v3 = vld [vmem:[#allocation11 + $0xb8] sm:$0xff]  ;;  %3104 = vmatpush.msra.mxu2 %v3012_v2 }
 0x8a5   :  { %3352 = vtanh.f32 %v2790_v18  ;;  %v2801_v51 = vmul.f32 0.5, %v2791_v17  ;;  %3084 = vmatpush.msra.mxu1 %v3011_v15  ;;  %v3006_v18 = vld [vmem:[#allocation11 + $0x80] sm:$0xff]  ;;  %v3007_v17 = vld [vmem:[#allocation11 + $0x88] sm:$0xff] }
 0x8a6   :  { %v3349_v55 = vpop.eup %3348  ;;  %3065 = vmatpush.msra.mxu0 %v3006_v18  ;;  %v5713_v10 = vld [vmem:[#allocation24_spill] sm:$0xff] }
 0x8a7   :  { %v3351_v8 = vpop.eup %3350  ;;  %v2794_v7 = vmul.f32 0.5, %v3349_v55  ;;  %3354 = vtanh.f32 %v2801_v51  ;;  %v3008_v51 = vld [vmem:[#allocation11 + $0x90] sm:$0xff]  ;;  %3085 = vmatpush.msra.mxu1 %v3007_v17  ;;  %v3009_v55 = vld [vmem:[#allocation11 + $0x98] sm:$0xff]  ;;  %v1615_v13 = vadd.f32 %v5713_v10, %v5697_v54 }
 0x8a8   :  { %v2798_v26 = vmul.f32 0.5, %v3351_v8  ;;  %3105 = vmatpush.msra.mxu2 %v3008_v51  ;;  %v3002_v8 = vld [vmem:[#allocation11 + $0x60] sm:$0xff]  ;;  %v5715_v51 = vld [vmem:[#allocation27_spill] sm:$0xff] }
 0x8a9   :  { %v2795_v61 = vadd.f32 0.5, %v2794_v7  ;;  %v3003_v7 = vld [vmem:[#allocation11 + $0x68] sm:$0xff]  ;;  %3066 = vmatpush.msra.mxu0 %v3002_v8  ;;  %v5716_v8 = vld [vmem:[#allocation28_spill] sm:$0xff] }
 0x8aa   :  { %v2799_v63 = vadd.f32 0.5, %v2798_v26  ;;  %v3004_v26 = vld [vmem:[#allocation11 + $0x70] sm:$0xff]  ;;  %3086 = vmatpush.msra.mxu1 %v3003_v7  ;;  %v1738_v7 = vadd.f32 %v5716_v8, %v5703_v33 }
 0x8ab   :  { %v3353_v40 = vpop.eup %3352  ;;  %v2805_v21 = vmul.f32 %v2795_v61, %v2634_v39  ;;  %v3037_v39 = vld [vmem:[#allocation11 + $0x178] sm:$0xff]  ;;  %3106 = vmatpush.msra.mxu2 %v3004_v26 }
 0x8ac   :  { %v2806_v27 = vmul.f32 %v3353_v40, %v2799_v63  ;;  %3118 = vmatpush.msra.mxu3 %v3037_v39  ;;  %v3005_v61 = vld [vmem:[#allocation11 + $0x78] sm:$0xff]  ;;  %v2998_v63 = vld [vmem:[#allocation11 + $0x40] sm:$0xff]  ;;  %v2999_v40 = vld [vmem:[#allocation11 + $0x48] sm:$0xff] }
 0x8ad   :  { %v3355_v29 = vpop.eup %3354  ;;  %3067 = vmatpush.msra.mxu0 %v2998_v63  ;;  %3087 = vmatpush.msra.mxu1 %v2999_v40 }
 0x8ae   :  { %v5312_v44 = vadd.f32 %v2806_v27, %v2805_v21  ;;  %v2803_v30 = vmul.f32 0.5, %v3355_v29  ;;  %3119 = vmatpush.msra.mxu3 %v3033_v60  ;;  %v3000_v21 = vld [vmem:[#allocation11 + $0x50] sm:$0xff]  ;;  %v2994_v27 = vld [vmem:[#allocation11 + $0x20] sm:$0xff]  ;;  %v2995_v29 = vld [vmem:[#allocation11 + $0x28] sm:$0xff] }
 0x8af   :  { %3107 = vmatpush.msra.mxu2 %v3000_v21  ;;  %3068 = vmatpush.msra.mxu0 %v2994_v27 }
 0x8b0   :  { %3356 = vtanh.f32 %v5312_v44  ;;  %v2804_v31 = vadd.f32 0.5, %v2803_v30  ;;  %3120 = vmatpush.msra.mxu3 %v3029_v14  ;;  %v2996_v30 = vld [vmem:[#allocation11 + $0x30] sm:$0xff]  ;;  %3088 = vmatpush.msra.mxu1 %v2995_v29 }
 0x8b1   :  { %3108 = vmatpush.msra.mxu2 %v2996_v30 }
 0x8b2   :  { %3121 = vmatpush.msra.mxu3 %v3025_v5 }
 0x8b4   :  { %3122 = vmatpush.msra.mxu3 %v3021_v42 }
 0x8b6   :  { %v3357_v36 = vpop.eup %3356  ;;  %3123 = vmatpush.msra.mxu3 %v3017_v11  ;;  %v5714_v11 = vld [vmem:[#allocation47_spill] sm:$0xff] }
 0x8b7   :  { %v2809_v4 = vmul.f32 %v3357_v36, %v2804_v31  ;;  %v2990_v31 = vld [vmem:[#allocation11] sm:$0xff]  ;;  %v2991_v36 = vld [vmem:[#allocation11 + $0x8] sm:$0xff]  ;;  %v1656_v6 = vadd.f32 %v5714_v11, %v5699_v62 }
 0x8b8   :  { %3124 = vmatpush.msra.mxu3 %v3013_v3  ;;  %3069 = vmatpush.msra.mxu0 %v2990_v31 }
 0x8b9   :  { %2811 = vst [vmem:[#allocation15 + $0x28] sm:$0xff] %v2809_v4  ;;  %2897 = vmatmul.f32.vlgmr.msrb.gmra.mxu0 %v2809_v4  ;;  %2917 = vmatmul.f32.vlgmr.msrb.gmra.mxu1 %v2809_v4 }
 0x8ba   :  { %2937 = vmatmul.f32.vlgmr.msrb.gmra.mxu2 %v2809_v4  ;;  %2957 = vmatmul.f32.vlgmr.msrb.gmra.mxu3 %v2809_v4  ;;  %v2992_v4 = vld [vmem:[#allocation11 + $0x10] sm:$0xff] }
 0x8bb   :  { %3125 = vmatpush.msra.mxu3 %v3009_v55  ;;  %3089 = vmatpush.msra.mxu1 %v2991_v36  ;;  %v1697_v55 = vadd.f32 %v5715_v51, %v5701_v45 }
 0x8bc   :  { %3109 = vmatpush.msra.mxu2 %v2992_v4 }
 0x8bd   :  { %3126 = vmatpush.msra.mxu3 %v3005_v61 }
 0x8bf   :  { %3127 = vmatpush.msra.mxu3 %v5196_v59  ;;  %v5710_v59 = vld [vmem:[#allocation23_spill] sm:$0xff] }
 0x8c0   :  { %v1653_v22 = vadd.f32 %v5710_v59, %v5699_v62 }
 0x8c1   :  { %3128 = vmatpush.msra.mxu3 %v5199_v25 }
 0x8c3   :  { %3129 = vmatpush.msra.mxu3 %v2993_v38 }
 0x936   :  { %v2898_v37 = vpop.f32.mrf.mxu0  ;;  %v2918_v34 = vpop.f32.mrf.mxu1 }
 0x937   :  { %v2961_v32 = vadd.f32 %v2898_v37, %v1612_v23  ;;  %v2962_v35 = vadd.f32 %v2918_v34, %v1653_v22 }
 0x939   :  { %v2965_v28 = vmul.f32 0.5, %v2961_v32  ;;  %v2969_v25 = vmul.f32 0.5, %v2962_v35 }
 0x93b   :  { %3358 = vtanh.f32 %v2965_v28 }
 0x93c   :  { %3360 = vtanh.f32 %v2969_v25 }
 0x93d   :  { %v2938_v43 = vpop.f32.mrf.mxu2  ;;  %v2958_v9 = vpop.f32.mrf.mxu3 }
 0x93e   :  { %v2963_v39 = vadd.f32 %v2938_v43, %v1694_v46  ;;  %v2964_v50 = vadd.f32 %v2958_v9, %v1735_v47 }
 0x940   :  { %3362 = vtanh.f32 %v2963_v39  ;;  %v2974_v58 = vmul.f32 0.5, %v2964_v50 }
 0x941   :  { %v3359_v0 = vpop.eup %3358 }
 0x942   :  { %v3361_v60 = vpop.eup %3360  ;;  %v2967_v57 = vmul.f32 0.5, %v3359_v0  ;;  %3364 = vtanh.f32 %v2974_v58 }
 0x943   :  { %v2971_v20 = vmul.f32 0.5, %v3361_v60 }
 0x944   :  { %v2968_v19 = vadd.f32 0.5, %v2967_v57 }
 0x945   :  { %v2972_v14 = vadd.f32 0.5, %v2971_v20 }
 0x946   :  { %v3363_v49 = vpop.eup %3362  ;;  %v2978_v16 = vmul.f32 %v2968_v19, %v5312_v44 }
 0x947   :  { %v2979_v12 = vmul.f32 %v3363_v49, %v2972_v14 }
 0x948   :  { %v3365_v5 = vpop.eup %3364 }
 0x949   :  { %v2980_v48 = vadd.f32 %v2979_v12, %v2978_v16  ;;  %v2976_v52 = vmul.f32 0.5, %v3365_v5 }
 0x94b   :  { %3366 = vtanh.f32 %v2980_v48  ;;  %v2977_v1 = vadd.f32 0.5, %v2976_v52 }
 0x951   :  { %v3367_v42 = vpop.eup %3366 }
 0x952   :  { %v2982_v56 = vmul.f32 %v3367_v42, %v2977_v1 }
 0x954   :  { %2984 = vst [vmem:[#allocation15 + $0x30] sm:$0xff] %v2982_v56  ;;  %3070 = vmatmul.f32.vlgmr.msra.gmra.mxu0 %v2982_v56  ;;  %3090 = vmatmul.f32.vlgmr.msra.gmra.mxu1 %v2982_v56 }
 0x955   :  { %3110 = vmatmul.f32.vlgmr.msra.gmra.mxu2 %v2982_v56  ;;  %3130 = vmatmul.f32.vlgmr.msra.gmra.mxu3 %v2982_v56 }
 0x9d1   :  { %v3071_v44 = vpop.f32.mrf.mxu0  ;;  %v3091_v15 = vpop.f32.mrf.mxu1 }
 0x9d2   :  { %v3134_v2 = vadd.f32 %v3071_v44, %v1615_v13  ;;  %v3135_v3 = vadd.f32 %v3091_v15, %v1656_v6 }
 0x9d4   :  { %v3138_v18 = vmul.f32 0.5, %v3134_v2  ;;  %v3142_v17 = vmul.f32 0.5, %v3135_v3 }
 0x9d6   :  { %3368 = vtanh.f32 %v3138_v18 }
 0x9d7   :  { %3370 = vtanh.f32 %v3142_v17 }
 0x9d8   :  { %v3111_v26 = vpop.f32.mrf.mxu2  ;;  %v3131_v61 = vpop.f32.mrf.mxu3 }
 0x9d9   :  { %v3136_v54 = vadd.f32 %v3111_v26, %v1697_v55  ;;  %v3137_v63 = vadd.f32 %v3131_v61, %v1738_v7 }
 0x9db   :  { %3372 = vtanh.f32 %v3136_v54  ;;  %v3147_v62 = vmul.f32 0.5, %v3137_v63 }
 0x9dc   :  { %v3369_v40 = vpop.eup %3368 }
 0x9dd   :  { %v3371_v21 = vpop.eup %3370  ;;  %v3140_v27 = vmul.f32 0.5, %v3369_v40  ;;  %3374 = vtanh.f32 %v3147_v62 }
 0x9de   :  { %v3144_v29 = vmul.f32 0.5, %v3371_v21 }
 0x9df   :  { %v3141_v30 = vadd.f32 0.5, %v3140_v27 }
 0x9e0   :  { %v3145_v31 = vadd.f32 0.5, %v3144_v29 }
 0x9e1   :  { %v3373_v36 = vpop.eup %3372  ;;  %v3151_v4 = vmul.f32 %v3141_v30, %v2980_v48 }
 0x9e2   :  { %v3152_v45 = vmul.f32 %v3373_v36, %v3145_v31 }
 0x9e3   :  { %v3375_v38 = vpop.eup %3374 }
 0x9e4   :  { %v3153_v24 = vadd.f32 %v3152_v45, %v3151_v4  ;;  %v3149_v33 = vmul.f32 0.5, %v3375_v38 }
 0x9e6   :  { %3376 = vtanh.f32 %v3153_v24  ;;  %v3150_v23 = vadd.f32 0.5, %v3149_v33 }
 0x9ec   :  { %v3377_v59 = vpop.eup %3376 }
 0x9ed   :  { %v3155_v22 = vmul.f32 %v3377_v59, %v3150_v23 }
 0x9ef   :  { %3157 = vst [vmem:[#allocation15 + $0x38] sm:$0xff] %v3155_v22 }
 0x9f0   :  { %3166 = vst [vmem:[#allocation16 + $0x8] sm:$0xff] %v3155_v22  ;;  %3179 = dma.vmem_to_hbm [thread:$0]  %s3172_s4, 1024, %s3174_s23, [#allocation8], %s3566_s29, %s3566_s29, %s3567_s30  }
 0x9f1   :  { %3192 = dma.vmem_to_hbm [thread:$0]  %s3185_s25, 256, %s3187_s28, [#allocation17], %s3566_s29, %s3566_s29, %s3567_s30  }
 0x9f2   :  { %3552 = dma.done.wait [#allocation8], 1024  }
 0x9f3   :  { %3553 = vsyncadd [#allocation8], 4294966272 }
 0x9f4   :  { %3554 = dma.done.wait [#allocation17], 256  }
 0x9f5   :  { %3555 = vsyncadd [#allocation17], 4294967040 }
 0x9f6   :  { %3201 = vsyncpa [#allocation7], 1 }
 0x9f7   :  { %3202 = vsyncpa [#allocation10], 1 }
 0x9f8   :  { %3203 = vsyncpa [#allocation13], 1 }
 0x9f9   :  { %3204 = vsyncpa [#allocation8], 1 }
 0x9fa   :  { %3205 = vsyncpa [#allocation17], 1 }

</bundles_post_ra>
